<compile_context>
chip_gen: v7x
topology: tpu7x:2x2x1
jax: 0.10.0
libtpu: 0.0.40
codegen_flags: <defaults>
</compile_context>

<pallas_src>
import jax
import jax.numpy as jnp
from jax.experimental import pallas as pl
from jax.experimental.pallas import tpu as pltpu

NEG_SLOPE = 0.2
BN_EPS = 1e-5

IN_DIM = 512
HIDDEN = 1024
OUT_DIM = 514
NBLOCKS = 4


def _leaky(x):
    return jnp.where(x > 0, x, NEG_SLOPE * x)


# ---------------------------------------------------------------------------
# Fused whole-network kernel
#   grid axis l = layer index (0 .. L-1), L = 2 + 2*nblocks
#     l == 0          : h = x @ W0 + b0                     (no activation)
#     l odd, l < L-1  : u = Leaky(h*s + t) @ Wl + bl        (branch 1st half)
#     l even, l > 0   : h = h + Leaky(u*s + t) @ Wl + bl    (branch 2nd half + residual)
#     l == L-1        : out = Leaky(h*1 + 0) @ Wl + bl      (final Leaky+Linear)
# h, u are VMEM scratch resident across the whole grid.
# ---------------------------------------------------------------------------
def _phi_fused_kernel(x_ref, w_ref, b_ref, s_ref, t_ref, o_ref, h_sc, u_sc):
    l = pl.program_id(0)
    n = pl.num_programs(0)

    def layer(src):
        a = _leaky(src * s_ref[0] + t_ref[0]).astype(w_ref.dtype)
        return jnp.dot(a, w_ref[0], preferred_element_type=jnp.float32) + b_ref[0]

    @pl.when(l == 0)
    def _():
        xb = x_ref[...].astype(w_ref.dtype)
        h_sc[...] = jnp.dot(xb, w_ref[0], preferred_element_type=jnp.float32) + b_ref[0]

    @pl.when(jnp.logical_and(l % 2 == 1, l != n - 1))
    def _():
        u_sc[...] = layer(h_sc[...])

    @pl.when(jnp.logical_and(l % 2 == 0, l != 0))
    def _():
        h_sc[...] = h_sc[...] + layer(u_sc[...])

    @pl.when(l == n - 1)
    def _():
        o_ref[...] = layer(h_sc[...]).astype(o_ref.dtype)


def phi_regressor_forward(x, packed, out_dim=OUT_DIM):
    """Single fused Pallas forward. x: (B, 512) f32 -> (B, 514) f32."""
    W, Bv, S, T = packed                      # (L,H,H) bf16, (L,1,H) f32 x3
    L, H, _ = W.shape
    Bsz, Din = x.shape
    x_pad = jnp.pad(x, ((0, 0), (0, H - Din))) if Din < H else x

    out = pl.pallas_call(
        _phi_fused_kernel,
        out_shape=jax.ShapeDtypeStruct((Bsz, H), jnp.float32),
        grid_spec=pltpu.PrefetchScalarGridSpec(
            num_scalar_prefetch=0,
            grid=(L,),
            in_specs=[
                pl.BlockSpec((Bsz, H), lambda l: (0, 0)),      # x (resident, DMA'd once)
                pl.BlockSpec((1, H, H), lambda l: (l, 0, 0)),  # W[l] (pipelined, bf16)
                pl.BlockSpec((1, 1, H), lambda l: (l, 0, 0)),  # bias[l]
                pl.BlockSpec((1, 1, H), lambda l: (l, 0, 0)),  # bn scale[l]
                pl.BlockSpec((1, 1, H), lambda l: (l, 0, 0)),  # bn shift[l]
            ],
            out_specs=pl.BlockSpec((Bsz, H), lambda l: (0, 0)),
            scratch_shapes=[
                pltpu.VMEM((Bsz, H), jnp.float32),   # h: residual stream
                pltpu.VMEM((Bsz, H), jnp.float32),   # u: branch intermediate
            ],
        ),
        compiler_params=pltpu.CompilerParams(
            dimension_semantics=("arbitrary",),       # sequential layer dependence
            vmem_limit_bytes=32 << 20,
        ),
    )(x_pad, W, Bv, S, T)
    return out[:, :out_dim]


# ---------------------------------------------------------------------------
# Parameter construction (deterministic, PyTorch-default-style init)
# ---------------------------------------------------------------------------
def _linear_params(key, fan_in, fan_out):
    kw, kb = jax.random.split(key)
    bound = 1.0 / jnp.sqrt(fan_in)
    w = jax.random.uniform(kw, (fan_in, fan_out), jnp.float32, -bound, bound)
    b = jax.random.uniform(kb, (1, fan_out), jnp.float32, -bound, bound)
    return w, b


def _bn_affine(key, dim):
    # Eval-mode BatchNorm1d folded to per-feature scale/shift.
    kg, kb, km, kv = jax.random.split(key, 4)
    gamma = jax.random.uniform(kg, (1, dim), jnp.float32, 0.5, 1.5)
    beta = jax.random.uniform(kb, (1, dim), jnp.float32, -0.1, 0.1)
    mean = jax.random.uniform(km, (1, dim), jnp.float32, -0.1, 0.1)
    var = jax.random.uniform(kv, (1, dim), jnp.float32, 0.5, 1.5)
    scale = gamma / jnp.sqrt(var + BN_EPS)
    shift = beta - mean * scale
    return scale, shift


def make_params(key, nblocks=NBLOCKS, in_dim=IN_DIM, hidden=HIDDEN, out_dim=OUT_DIM):
    keys = jax.random.split(key, 2 + 4 * nblocks)
    params = {"first": _linear_params(keys[0], in_dim, hidden), "blocks": []}
    k_idx = 1
    for _ in range(nblocks):
        s1, t1 = _bn_affine(keys[k_idx], hidden)
        wa, ba = _linear_params(keys[k_idx + 1], hidden, hidden)
        s2, t2 = _bn_affine(keys[k_idx + 2], hidden)
        wb, bb = _linear_params(keys[k_idx + 3], hidden, hidden)
        k_idx += 4
        params["blocks"].append(((s1, t1, wa, ba), (s2, t2, wb, bb)))
    params["last"] = _linear_params(keys[k_idx], hidden, out_dim)
    return params


def pack_params(params, in_dim=IN_DIM, hidden=HIDDEN, out_dim=OUT_DIM,
                w_dtype=jnp.bfloat16):
    """Stack all layers into (L,H,H) bf16 weights + (L,1,H) f32 bias/scale/shift."""
    ones = jnp.ones((1, hidden), jnp.float32)
    zeros = jnp.zeros((1, hidden), jnp.float32)
    ws, bs, ss, ts = [], [], [], []

    # Layer 0: Linear(512,1024) -> pad input rows to 1024 with zeros, no activation.
    w1, b1 = params["first"]
    w1p = jnp.zeros((hidden, hidden), jnp.float32).at[:in_dim].set(w1)
    ws.append(w1p); bs.append(b1); ss.append(ones); ts.append(zeros)

    # Layers 1..2*nblocks: res-block halves.
    for (s1, t1, wa, ba), (s2, t2, wb, bb) in params["blocks"]:
        ws.append(wa); bs.append(ba); ss.append(s1); ts.append(t1)
        ws.append(wb); bs.append(bb); ss.append(s2); ts.append(t2)

    # Last layer: Leaky + Linear(1024,514) -> pad output columns to 1024 (lane-dense).
    wo, bo = params["last"]
    wop = jnp.zeros((hidden, hidden), jnp.float32).at[:, :out_dim].set(wo)
    bop = jnp.zeros((1, hidden), jnp.float32).at[:, :out_dim].set(bo)
    ws.append(wop); bs.append(bop); ss.append(ones); ts.append(zeros)

    W = jnp.stack(ws).astype(w_dtype)      # (L, H, H)
    Bv = jnp.stack(bs)                     # (L, 1, H)
    S = jnp.stack(ss)                      # (L, 1, H)
    T = jnp.stack(ts)                      # (L, 1, H)
    return W, Bv, S, T


# ---------------------------------------------------------------------------
# References
# ---------------------------------------------------------------------------
def phi_regressor_reference_packed(x, packed, out_dim=OUT_DIM):
    """Pure-jnp reference mimicking the kernel's numerics (bf16 weights/acts, f32 acc)."""
    W, Bv, S, T = packed
    L, H, _ = W.shape
    xp = jnp.pad(x, ((0, 0), (0, H - x.shape[1])))
    h = jnp.dot(xp.astype(W.dtype), W[0], preferred_element_type=jnp.float32) + Bv[0]
    u = None
    for l in range(1, L):
        src = h if (l % 2 == 1) else u
        a = _leaky(src * S[l] + T[l]).astype(W.dtype)
        y = jnp.dot(a, W[l], preferred_element_type=jnp.float32) + Bv[l]
        if l == L - 1:
            return y[:, :out_dim]
        if l % 2 == 1:
            u = y
        else:
            h = h + y


def phi_regressor_reference_f32(x, params):
    """Full-f32 reference of the original module semantics (loose sanity check)."""
    w1, b1 = params["first"]
    h = x @ w1 + b1
    for (s1, t1, wa, ba), (s2, t2, wb, bb) in params["blocks"]:
        z = _leaky(h * s1 + t1) @ wa + ba
        z = _leaky(z * s2 + t2) @ wb + bb
        h = h + z
    wo, bo = params["last"]
    return _leaky(h) @ wo + bo


if __name__ == "__main__":
    key = jax.random.PRNGKey(0)
    k_params, k_x = jax.random.split(key)

    params = make_params(k_params, nblocks=NBLOCKS)
    packed = pack_params(params)
    x = jax.random.normal(k_x, (2, IN_DIM), jnp.float32)

    out = jax.block_until_ready(phi_regressor_forward(x, packed))
    assert out.shape == (2, OUT_DIM), out.shape

    ref_bf16 = phi_regressor_reference_packed(x, packed)
    err_bf16 = float(jnp.max(jnp.abs(out - ref_bf16)))
    assert jnp.allclose(out, ref_bf16, atol=5e-3, rtol=5e-3), err_bf16

    ref_f32 = phi_regressor_reference_f32(x, params)
    err_f32 = float(jnp.max(jnp.abs(out - ref_f32)))
    assert jnp.allclose(out, ref_f32, atol=5e-2, rtol=5e-2), err_f32

    print("KERNEL_OK")
</pallas_src>

<mosaic_0001>
module attributes {stable_mosaic.version = 11 : i64} {
  func.func @_phi_fused_kernel(%arg0: i32, %arg1: memref<2x1024xf32, #tpu.memory_space<vmem>>, %arg2: memref<1x1024x1024xbf16, #tpu.memory_space<vmem>>, %arg3: memref<1x1x1024xf32, #tpu.memory_space<vmem>>, %arg4: memref<1x1x1024xf32, #tpu.memory_space<vmem>>, %arg5: memref<1x1x1024xf32, #tpu.memory_space<vmem>>, %arg6: memref<2x1024xf32, #tpu.memory_space<vmem>>, %arg7: memref<2x1024xf32, #tpu.memory_space<vmem>>, %arg8: memref<2x1024xf32, #tpu.memory_space<vmem>>) attributes {dimension_semantics = [#tpu.dimension_semantics<arbitrary>], iteration_bounds = array<i64: 10>, scalar_prefetch = 0 : i64, scratch_operands = 2 : i64, tpu.core_type = #tpu.core_type<tc>, window_params = [{pipeline_mode = #tpu.pipeline_mode<synchronous>, transform_indices = @transform_0, window_bounds = array<i64: 2, 1024>}, {transform_indices = @transform_1, window_bounds = array<i64: 1, 1024, 1024>}, {transform_indices = @transform_2, window_bounds = array<i64: 1, 1, 1024>}, {transform_indices = @transform_3, window_bounds = array<i64: 1, 1, 1024>}, {transform_indices = @transform_4, window_bounds = array<i64: 1, 1, 1024>}, {pipeline_mode = #tpu.pipeline_mode<synchronous>, transform_indices = @transform_5, window_bounds = array<i64: 2, 1024>}]} {
    %c0_i32 = arith.constant 0 : i32
    %0 = arith.cmpi eq, %arg0, %c0_i32 : i32
    %1 = arith.extui %0 : i1 to i32
    %c0_i32_0 = arith.constant 0 : i32
    %2 = arith.cmpi ne, %1, %c0_i32_0 : i32
    scf.if %2 {
      %c0 = arith.constant 0 : index
      %c0_18 = arith.constant 0 : index
      %36 = vector.load %arg1[%c0, %c0_18] : memref<2x1024xf32, #tpu.memory_space<vmem>>, vector<2x1024xf32>
      %37 = arith.truncf %36 : vector<2x1024xf32> to vector<2x1024xbf16>
      %c0_19 = arith.constant 0 : index
      %c0_20 = arith.constant 0 : index
      %c0_21 = arith.constant 0 : index
      %38 = vector.load %arg2[%c0_19, %c0_20, %c0_21] : memref<1x1024x1024xbf16, #tpu.memory_space<vmem>>, vector<1x1024x1024xbf16>
      %39 = vector.shape_cast %38 : vector<1x1024x1024xbf16> to vector<1024x1024xbf16>
      %cst = arith.constant dense<0.000000e+00> : vector<2x1024xf32>
      %40 = tpu.matmul %37, %39, %cst {dimension_numbers = #tpu.dot_dimension_numbers<[1], [0], [0], [1], [0, 0, 1, 1], [], []>} : vector<2x1024xbf16>, vector<1024x1024xbf16>, vector<2x1024xf32> -> vector<2x1024xf32>
      %c0_22 = arith.constant 0 : index
      %c0_23 = arith.constant 0 : index
      %c0_24 = arith.constant 0 : index
      %41 = vector.load %arg3[%c0_22, %c0_23, %c0_24] : memref<1x1x1024xf32, #tpu.memory_space<vmem>>, vector<1x1x1024xf32>
      %42 = vector.shape_cast %41 : vector<1x1x1024xf32> to vector<1x1024xf32>
      %43 = vector.broadcast %42 : vector<1x1024xf32> to vector<2x1024xf32>
      %44 = arith.addf %40, %43 : vector<2x1024xf32>
      %c0_25 = arith.constant 0 : index
      %c0_26 = arith.constant 0 : index
      %45 = vector.load %arg7[%c0_25, %c0_26] : memref<2x1024xf32, #tpu.memory_space<vmem>>, vector<2x1024xf32>
      tpu.vector_store %arg7[%c0_25, %c0_26], %44 {strides = array<i32>} : memref<2x1024xf32, #tpu.memory_space<vmem>>, vector<2x1024xf32>,
    } else {
    }
    %c2_i32 = arith.constant 2 : i32
    %c0_i32_1 = arith.constant 0 : i32
    %3 = arith.cmpi eq, %c2_i32, %c0_i32_1 : i32
    %c1_i32 = arith.constant 1 : i32
    %4 = arith.select %3, %c1_i32, %c2_i32 : i32
    %5 = arith.remsi %arg0, %4 : i32
    %c0_i32_2 = arith.constant 0 : i32
    %6 = arith.cmpi ne, %5, %c0_i32_2 : i32
    %c0_i32_3 = arith.constant 0 : i32
    %7 = arith.cmpi slt, %5, %c0_i32_3 : i32
    %c0_i32_4 = arith.constant 0 : i32
    %8 = arith.cmpi slt, %4, %c0_i32_4 : i32
    %9 = arith.xori %7, %8 : i1
    %10 = arith.andi %9, %6 : i1
    %11 = arith.addi %5, %4 : i32
    %12 = arith.select %10, %11, %5 : i32
    %c1_i32_5 = arith.constant 1 : i32
    %13 = arith.cmpi eq, %12, %c1_i32_5 : i32
    %c9_i32 = arith.constant 9 : i32
    %14 = arith.cmpi ne, %arg0, %c9_i32 : i32
    %15 = arith.andi %13, %14 : i1
    %16 = arith.extui %15 : i1 to i32
    %c0_i32_6 = arith.constant 0 : i32
    %17 = arith.cmpi ne, %16, %c0_i32_6 : i32
    scf.if %17 {
      %c0 = arith.constant 0 : index
      %c0_18 = arith.constant 0 : index
      %36 = vector.load %arg7[%c0, %c0_18] : memref<2x1024xf32, #tpu.memory_space<vmem>>, vector<2x1024xf32>
      %c0_19 = arith.constant 0 : index
      %c0_20 = arith.constant 0 : index
      %c0_21 = arith.constant 0 : index
      %37 = vector.load %arg4[%c0_19, %c0_20, %c0_21] : memref<1x1x1024xf32, #tpu.memory_space<vmem>>, vector<1x1x1024xf32>
      %38 = vector.shape_cast %37 : vector<1x1x1024xf32> to vector<1x1024xf32>
      %39 = vector.broadcast %38 : vector<1x1024xf32> to vector<2x1024xf32>
      %40 = arith.mulf %36, %39 : vector<2x1024xf32>
      %c0_22 = arith.constant 0 : index
      %c0_23 = arith.constant 0 : index
      %c0_24 = arith.constant 0 : index
      %41 = vector.load %arg5[%c0_22, %c0_23, %c0_24] : memref<1x1x1024xf32, #tpu.memory_space<vmem>>, vector<1x1x1024xf32>
      %42 = vector.shape_cast %41 : vector<1x1x1024xf32> to vector<1x1024xf32>
      %43 = vector.broadcast %42 : vector<1x1024xf32> to vector<2x1024xf32>
      %44 = arith.addf %40, %43 : vector<2x1024xf32>
      %cst = arith.constant 0.000000e+00 : f32
      %45 = vector.broadcast %cst : f32 to vector<2x1024xf32>
      %46 = arith.cmpf ogt, %44, %45 : vector<2x1024xf32>
      %cst_25 = arith.constant 2.000000e-01 : f32
      %47 = vector.broadcast %cst_25 : f32 to vector<2x1024xf32>
      %48 = arith.mulf %47, %44 : vector<2x1024xf32>
      %49 = arith.select %46, %44, %48 : vector<2x1024xi1>, vector<2x1024xf32>
      %50 = arith.truncf %49 : vector<2x1024xf32> to vector<2x1024xbf16>
      %c0_26 = arith.constant 0 : index
      %c0_27 = arith.constant 0 : index
      %c0_28 = arith.constant 0 : index
      %51 = vector.load %arg2[%c0_26, %c0_27, %c0_28] : memref<1x1024x1024xbf16, #tpu.memory_space<vmem>>, vector<1x1024x1024xbf16>
      %52 = vector.shape_cast %51 : vector<1x1024x1024xbf16> to vector<1024x1024xbf16>
      %cst_29 = arith.constant dense<0.000000e+00> : vector<2x1024xf32>
      %53 = tpu.matmul %50, %52, %cst_29 {dimension_numbers = #tpu.dot_dimension_numbers<[1], [0], [0], [1], [0, 0, 1, 1], [], []>} : vector<2x1024xbf16>, vector<1024x1024xbf16>, vector<2x1024xf32> -> vector<2x1024xf32>
      %c0_30 = arith.constant 0 : index
      %c0_31 = arith.constant 0 : index
      %c0_32 = arith.constant 0 : index
      %54 = vector.load %arg3[%c0_30, %c0_31, %c0_32] : memref<1x1x1024xf32, #tpu.memory_space<vmem>>, vector<1x1x1024xf32>
      %55 = vector.shape_cast %54 : vector<1x1x1024xf32> to vector<1x1024xf32>
      %56 = vector.broadcast %55 : vector<1x1024xf32> to vector<2x1024xf32>
      %57 = arith.addf %53, %56 : vector<2x1024xf32>
      %c0_33 = arith.constant 0 : index
      %c0_34 = arith.constant 0 : index
      %58 = vector.load %arg8[%c0_33, %c0_34] : memref<2x1024xf32, #tpu.memory_space<vmem>>, vector<2x1024xf32>
      tpu.vector_store %arg8[%c0_33, %c0_34], %57 {strides = array<i32>} : memref<2x1024xf32, #tpu.memory_space<vmem>>, vector<2x1024xf32>,
    } else {
    }
    %c2_i32_7 = arith.constant 2 : i32
    %c0_i32_8 = arith.constant 0 : i32
    %18 = arith.cmpi eq, %c2_i32_7, %c0_i32_8 : i32
    %c1_i32_9 = arith.constant 1 : i32
    %19 = arith.select %18, %c1_i32_9, %c2_i32_7 : i32
    %20 = arith.remsi %arg0, %19 : i32
    %c0_i32_10 = arith.constant 0 : i32
    %21 = arith.cmpi ne, %20, %c0_i32_10 : i32
    %c0_i32_11 = arith.constant 0 : i32
    %22 = arith.cmpi slt, %20, %c0_i32_11 : i32
    %c0_i32_12 = arith.constant 0 : i32
    %23 = arith.cmpi slt, %19, %c0_i32_12 : i32
    %24 = arith.xori %22, %23 : i1
    %25 = arith.andi %24, %21 : i1
    %26 = arith.addi %20, %19 : i32
    %27 = arith.select %25, %26, %20 : i32
    %c0_i32_13 = arith.constant 0 : i32
    %28 = arith.cmpi eq, %27, %c0_i32_13 : i32
    %c0_i32_14 = arith.constant 0 : i32
    %29 = arith.cmpi ne, %arg0, %c0_i32_14 : i32
    %30 = arith.andi %28, %29 : i1
    %31 = arith.extui %30 : i1 to i32
    %c0_i32_15 = arith.constant 0 : i32
    %32 = arith.cmpi ne, %31, %c0_i32_15 : i32
    scf.if %32 {
      %c0 = arith.constant 0 : index
      %c0_18 = arith.constant 0 : index
      %36 = vector.load %arg7[%c0, %c0_18] : memref<2x1024xf32, #tpu.memory_space<vmem>>, vector<2x1024xf32>
      %c0_19 = arith.constant 0 : index
      %c0_20 = arith.constant 0 : index
      %37 = vector.load %arg8[%c0_19, %c0_20] : memref<2x1024xf32, #tpu.memory_space<vmem>>, vector<2x1024xf32>
      %c0_21 = arith.constant 0 : index
      %c0_22 = arith.constant 0 : index
      %c0_23 = arith.constant 0 : index
      %38 = vector.load %arg4[%c0_21, %c0_22, %c0_23] : memref<1x1x1024xf32, #tpu.memory_space<vmem>>, vector<1x1x1024xf32>
      %39 = vector.shape_cast %38 : vector<1x1x1024xf32> to vector<1x1024xf32>
      %40 = vector.broadcast %39 : vector<1x1024xf32> to vector<2x1024xf32>
      %41 = arith.mulf %37, %40 : vector<2x1024xf32>
      %c0_24 = arith.constant 0 : index
      %c0_25 = arith.constant 0 : index
      %c0_26 = arith.constant 0 : index
      %42 = vector.load %arg5[%c0_24, %c0_25, %c0_26] : memref<1x1x1024xf32, #tpu.memory_space<vmem>>, vector<1x1x1024xf32>
      %43 = vector.shape_cast %42 : vector<1x1x1024xf32> to vector<1x1024xf32>
      %44 = vector.broadcast %43 : vector<1x1024xf32> to vector<2x1024xf32>
      %45 = arith.addf %41, %44 : vector<2x1024xf32>
      %cst = arith.constant 0.000000e+00 : f32
      %46 = vector.broadcast %cst : f32 to vector<2x1024xf32>
      %47 = arith.cmpf ogt, %45, %46 : vector<2x1024xf32>
      %cst_27 = arith.constant 2.000000e-01 : f32
      %48 = vector.broadcast %cst_27 : f32 to vector<2x1024xf32>
      %49 = arith.mulf %48, %45 : vector<2x1024xf32>
      %50 = arith.select %47, %45, %49 : vector<2x1024xi1>, vector<2x1024xf32>
      %51 = arith.truncf %50 : vector<2x1024xf32> to vector<2x1024xbf16>
      %c0_28 = arith.constant 0 : index
      %c0_29 = arith.constant 0 : index
      %c0_30 = arith.constant 0 : index
      %52 = vector.load %arg2[%c0_28, %c0_29, %c0_30] : memref<1x1024x1024xbf16, #tpu.memory_space<vmem>>, vector<1x1024x1024xbf16>
      %53 = vector.shape_cast %52 : vector<1x1024x1024xbf16> to vector<1024x1024xbf16>
      %cst_31 = arith.constant dense<0.000000e+00> : vector<2x1024xf32>
      %54 = tpu.matmul %51, %53, %cst_31 {dimension_numbers = #tpu.dot_dimension_numbers<[1], [0], [0], [1], [0, 0, 1, 1], [], []>} : vector<2x1024xbf16>, vector<1024x1024xbf16>, vector<2x1024xf32> -> vector<2x1024xf32>
      %c0_32 = arith.constant 0 : index
      %c0_33 = arith.constant 0 : index
      %c0_34 = arith.constant 0 : index
      %55 = vector.load %arg3[%c0_32, %c0_33, %c0_34] : memref<1x1x1024xf32, #tpu.memory_space<vmem>>, vector<1x1x1024xf32>
      %56 = vector.shape_cast %55 : vector<1x1x1024xf32> to vector<1x1024xf32>
      %57 = vector.broadcast %56 : vector<1x1024xf32> to vector<2x1024xf32>
      %58 = arith.addf %54, %57 : vector<2x1024xf32>
      %59 = arith.addf %36, %58 : vector<2x1024xf32>
      %c0_35 = arith.constant 0 : index
      %c0_36 = arith.constant 0 : index
      %60 = vector.load %arg7[%c0_35, %c0_36] : memref<2x1024xf32, #tpu.memory_space<vmem>>, vector<2x1024xf32>
      tpu.vector_store %arg7[%c0_35, %c0_36], %59 {strides = array<i32>} : memref<2x1024xf32, #tpu.memory_space<vmem>>, vector<2x1024xf32>,
    } else {
    }
    %c9_i32_16 = arith.constant 9 : i32
    %33 = arith.cmpi eq, %arg0, %c9_i32_16 : i32
    %34 = arith.extui %33 : i1 to i32
    %c0_i32_17 = arith.constant 0 : i32
    %35 = arith.cmpi ne, %34, %c0_i32_17 : i32
    scf.if %35 {
      %c0 = arith.constant 0 : index
      %c0_18 = arith.constant 0 : index
      %36 = vector.load %arg7[%c0, %c0_18] : memref<2x1024xf32, #tpu.memory_space<vmem>>, vector<2x1024xf32>
      %c0_19 = arith.constant 0 : index
      %c0_20 = arith.constant 0 : index
      %c0_21 = arith.constant 0 : index
      %37 = vector.load %arg4[%c0_19, %c0_20, %c0_21] : memref<1x1x1024xf32, #tpu.memory_space<vmem>>, vector<1x1x1024xf32>
      %38 = vector.shape_cast %37 : vector<1x1x1024xf32> to vector<1x1024xf32>
      %39 = vector.broadcast %38 : vector<1x1024xf32> to vector<2x1024xf32>
      %40 = arith.mulf %36, %39 : vector<2x1024xf32>
      %c0_22 = arith.constant 0 : index
      %c0_23 = arith.constant 0 : index
      %c0_24 = arith.constant 0 : index
      %41 = vector.load %arg5[%c0_22, %c0_23, %c0_24] : memref<1x1x1024xf32, #tpu.memory_space<vmem>>, vector<1x1x1024xf32>
      %42 = vector.shape_cast %41 : vector<1x1x1024xf32> to vector<1x1024xf32>
      %43 = vector.broadcast %42 : vector<1x1024xf32> to vector<2x1024xf32>
      %44 = arith.addf %40, %43 : vector<2x1024xf32>
      %cst = arith.constant 0.000000e+00 : f32
      %45 = vector.broadcast %cst : f32 to vector<2x1024xf32>
      %46 = arith.cmpf ogt, %44, %45 : vector<2x1024xf32>
      %cst_25 = arith.constant 2.000000e-01 : f32
      %47 = vector.broadcast %cst_25 : f32 to vector<2x1024xf32>
      %48 = arith.mulf %47, %44 : vector<2x1024xf32>
      %49 = arith.select %46, %44, %48 : vector<2x1024xi1>, vector<2x1024xf32>
      %50 = arith.truncf %49 : vector<2x1024xf32> to vector<2x1024xbf16>
      %c0_26 = arith.constant 0 : index
      %c0_27 = arith.constant 0 : index
      %c0_28 = arith.constant 0 : index
      %51 = vector.load %arg2[%c0_26, %c0_27, %c0_28] : memref<1x1024x1024xbf16, #tpu.memory_space<vmem>>, vector<1x1024x1024xbf16>
      %52 = vector.shape_cast %51 : vector<1x1024x1024xbf16> to vector<1024x1024xbf16>
      %cst_29 = arith.constant dense<0.000000e+00> : vector<2x1024xf32>
      %53 = tpu.matmul %50, %52, %cst_29 {dimension_numbers = #tpu.dot_dimension_numbers<[1], [0], [0], [1], [0, 0, 1, 1], [], []>} : vector<2x1024xbf16>, vector<1024x1024xbf16>, vector<2x1024xf32> -> vector<2x1024xf32>
      %c0_30 = arith.constant 0 : index
      %c0_31 = arith.constant 0 : index
      %c0_32 = arith.constant 0 : index
      %54 = vector.load %arg3[%c0_30, %c0_31, %c0_32] : memref<1x1x1024xf32, #tpu.memory_space<vmem>>, vector<1x1x1024xf32>
      %55 = vector.shape_cast %54 : vector<1x1x1024xf32> to vector<1x1024xf32>
      %56 = vector.broadcast %55 : vector<1x1024xf32> to vector<2x1024xf32>
      %57 = arith.addf %53, %56 : vector<2x1024xf32>
      %c0_33 = arith.constant 0 : index
      %c0_34 = arith.constant 0 : index
      %58 = vector.load %arg6[%c0_33, %c0_34] : memref<2x1024xf32, #tpu.memory_space<vmem>>, vector<2x1024xf32>
      tpu.vector_store %arg6[%c0_33, %c0_34], %57 {strides = array<i32>} : memref<2x1024xf32, #tpu.memory_space<vmem>>, vector<2x1024xf32>,
    } else {
    }
    return
  }
  func.func @transform_0(%arg0: i32) -> (i32, i32) {
    %c0_i32 = arith.constant 0 : i32
    %c0_i32_0 = arith.constant 0 : i32
    %c0_i32_1 = arith.constant 0 : i32
    return %c0_i32, %c0_i32_0 : i32, i32
  }
  func.func @transform_1(%arg0: i32) -> (i32, i32, i32) {
    %c0_i32 = arith.constant 0 : i32
    %c0_i32_0 = arith.constant 0 : i32
    %c0_i32_1 = arith.constant 0 : i32
    return %arg0, %c0_i32, %c0_i32_0 : i32, i32, i32
  }
  func.func @transform_2(%arg0: i32) -> (i32, i32, i32) {
    %c0_i32 = arith.constant 0 : i32
    %c0_i32_0 = arith.constant 0 : i32
    %c0_i32_1 = arith.constant 0 : i32
    return %arg0, %c0_i32, %c0_i32_0 : i32, i32, i32
  }
  func.func @transform_3(%arg0: i32) -> (i32, i32, i32) {
    %c0_i32 = arith.constant 0 : i32
    %c0_i32_0 = arith.constant 0 : i32
    %c0_i32_1 = arith.constant 0 : i32
    return %arg0, %c0_i32, %c0_i32_0 : i32, i32, i32
  }
  func.func @transform_4(%arg0: i32) -> (i32, i32, i32) {
    %c0_i32 = arith.constant 0 : i32
    %c0_i32_0 = arith.constant 0 : i32
    %c0_i32_1 = arith.constant 0 : i32
    return %arg0, %c0_i32, %c0_i32_0 : i32, i32, i32
  }
  func.func @transform_5(%arg0: i32) -> (i32, i32) {
    %c0_i32 = arith.constant 0 : i32
    %c0_i32_0 = arith.constant 0 : i32
    %c0_i32_1 = arith.constant 0 : i32
    return %c0_i32, %c0_i32_0 : i32, i32
  }
}

</mosaic_0001>

<bundles_post_ra>
// kernel: tpu_custom_call.1
= control target key start
LH: loop header
LB: loop body
LE: loop exit
PB: predicated region body
PF: predicated region fallthrough
CT: control target
= control target key end

     0   :  { %s22123_s0 = inlined_call_operand.hbm [shape: f32[2,1024], index: 0, kind: input, shape index: {}]   ;;  %s22124_s1 = inlined_call_operand.hbm [shape: bf16[10,1024,1024], index: 1, kind: input, shape index: {}]   ;;  %s22125_s2 = inlined_call_operand.hbm [shape: f32[10,1,1024], index: 2, kind: input, shape index: {}]   ;;  %s22126_s3 = inlined_call_operand.hbm [shape: f32[10,1,1024], index: 3, kind: input, shape index: {}]   ;;  %s22127_s4 = inlined_call_operand.hbm [shape: f32[10,1,1024], index: 4, kind: input, shape index: {}]   ;;  %s22128_s5 = inlined_call_operand.hbm [shape: f32[2,1024], index: 5, kind: output, shape index: {}]  }
   0x1   :  { %22137 = sst [smem:[#allocation18_spill]] %s22124_s1 }
   0x2   :  { %10 = vsyncpa [#allocation5], 0 }
   0x3   :  { %11 = vsyncpa [#allocation8], 0 }
   0x4   :  { %13 = vsyncpa [#allocation8 + $0x1], 0 }
   0x5   :  { %14 = vsyncpa [#allocation11], 0 }
   0x6   :  { %16 = vsyncpa [#allocation11 + $0x1], 0 }
   0x7   :  { %17 = vsyncpa [#allocation6], 0  ;;  %s19101_s18 = smov 0   ;;  %s19103_s19 = smov 0  }
   0x8   :  { %s19105_s20 = smov 0   ;;  %s19107_s21 = smov 0  }
   0x9 LB: > { %s19122_s22 = sadd.s32 1, %s19057_s21   ;;  %s51_s23 = sadd.s32 1, %s19053_s20  ;;  %s19057_s21 = sphi %s19107_s21, %s22158_s21   ;;  %s19053_s20 = sphi %s19105_s20, %s22157_s20   ;;  %s19049_s19 = sphi %s19103_s19, %s22156_s19   ;;  %s19045_s18 = sphi %s19101_s18, %s22155_s18  }
   0xa   : > { %s48_s24 = ssub.s32 %s19057_s21, %s19122_s22  ;;  %p58_p0 = scmp.ne.s32.totalorder %s19053_s20, %s19049_s19 }
   0xb   : > { %p49_p1 = scmp.eq.s32.totalorder %s48_s24, 0  ;;  %p59_p2 = scmp.eq.s32.totalorder %s19057_s21, 0 }
   0xc   : > { %p18791_p3 = scmp.lt.s32.totalorder %s19057_s21, 10  ;;  %s198_s26 = sand.u32 1, %s19057_s21  }
   0xd   : > { %s19132_s25 = scalar_select %p49_p1, %s19053_s20, %s51_s23  }
   0xe   : > { %p60_p4 = por %p59_p2, %p58_p0  ;;  %s200_s27 = sand.u32 1, %s19053_s20  }
   0xf   : > { %s16454_s28 = sshll.u32 %s200_s27, 12  ;;  %s18529_s29 = sshll.u32 %s19057_s21, 16 }
  0x10   : > { %s22138_s1 = sld [smem:[#allocation18_spill]]  ;;  %s202_s8 = scalar_lea.vmem [#allocation7], %s16454_s28 }
  0x11   : > { %s209_s9 = sshll.u32 %s202_s8, 4  ;;  %p19144_p5 = pnand %p18791_p3, %p60_p4  ;;  %s19148_s9 = int_to_ptr.vmem [resolvable:$true] %s209_s9 }
  0x12   : > { %s19152_s11 = scalar_lea.sflag [#allocation8], %s198_s26 }
  0x13   : > { %s22139_s10 = scalar_select %p19144_p5, 1, 0 }
  0x14   : > { %p19158_p7 = pneg %p19144_p5 }
  0x16   : > { %s19142_s7 = scalar_lea.hbm %s22138_s1, %s18529_s29  ;;  %s18842_s16 = scalar_lea.hbm %s22138_s1, 655360 }
  0x17   : > { %s18837_s12 = scalar_lea.hbm %s19142_s7, 65536  ;;  %p18843_p10 = scmp.lt.u32.totalorder %s19142_s7, %s22138_s1 }
  0x18   : > { %p18838_p6 = scmp.ne.s32.totalorder %s19142_s7, %s18837_s12  ;;  %p18844_p11 = scmp.lt.u32.totalorder %s18842_s16, %s18837_s12 }
  0x19   : > { %s22140_s13 = scalar_select %p19158_p7, 1, 0 }
  0x1a   : > { %p18840_p8 = pnand %p19158_p7, %p18838_p6  ;;  %p18845_p12 = por %p18844_p11, %p18843_p10 }
  0x1b   : > { %p18846_p13 = scmp.lt.u32.totalorder %s18837_s12, %s19142_s7 }
  0x1c   : > { %p18841_p9 = pneg %p18840_p8 }
  0x1d   : > { %p18847_p0 = por %p18846_p13, %p18845_p12 }
  0x1f   : > { %p18848_p1 = pnand %p18847_p0, %p18841_p9 }
  0x21   : > { %18851 = shalt.err (!%p18848_p1)
}
  0x22   : > { %s18852_s24 = scalar_lea.vmem %s19148_s9, 65536  ;;  %s19059_s28 = smov [#allocation7]  }
  0x23   : > { %p18853_p2 = scmp.ne.s32.totalorder %s19148_s9, %s18852_s24  ;;  %s18857_s29 = sshll.u32 %s19059_s28, 4  ;;  %s18858_s29 = int_to_ptr.vmem [resolvable:$false] %s18857_s29 }
  0x24   : > { %s18859_s30 = scalar_lea.vmem %s18858_s29, 131072  ;;  %p18860_p6 = scmp.lt.s32.totalorder %s19148_s9, %s18858_s29 }
  0x25   : > { %p18855_p3 = pnand %p18853_p2, %p19158_p7  ;;  %p18861_p8 = scmp.lt.s32.totalorder %s18859_s30, %s18852_s24 }
  0x27   : > { %p18856_p4 = pneg %p18855_p3  ;;  %p18862_p10 = por %p18861_p8, %p18860_p6 }
  0x29   : > { %p18863_p11 = pnand %p18862_p10, %p18856_p4 }
  0x2b   : > { %18866 = shalt.err (!%p18863_p11)
}
  0x2c   : > { %s19060_s6 = smov 512   ;;  %s19061_s8 = smov 32  }
  0x2d   : > { %18780 = dma.hbm_to_vmem [thread:$0]  (!%p19144_p5), %s19142_s7, 65536, %s19148_s9, %s19152_s11, %s19060_s6, %s19060_s6, %s19061_s8  }
  0x2e   : > { %s19184_s12 = sshll.u32 %s200_s27, 3  ;;  %s19187_s14 = sshll.u32 %s19057_s21, 7 }
  0x2f   : > { %s19193_s17 = scalar_lea.hbm %s22126_s3, %s19187_s14  ;;  %s242_s23 = scalar_lea.vmem [#allocation10], %s19184_s12 }
  0x30   : > { %s250_s24 = sshll.u32 %s242_s23, 4  ;;  %s19198_s7 = scalar_lea.sflag [#allocation11], %s198_s26  ;;  %s251_s24 = int_to_ptr.vmem [resolvable:$true] %s250_s24 }
  0x31   : > { %s18867_s27 = scalar_lea.hbm %s19193_s17, 128  ;;  %s18872_s29 = scalar_lea.hbm %s22126_s3, 1280 }
  0x32   : > { %p18868_p9 = scmp.ne.s32.totalorder %s19193_s17, %s18867_s27  ;;  %p18873_p0 = scmp.lt.u32.totalorder %s19193_s17, %s22126_s3 }
  0x33   : > { %p18874_p1 = scmp.lt.u32.totalorder %s18872_s29, %s18867_s27  ;;  %p18876_p3 = scmp.lt.u32.totalorder %s18867_s27, %s19193_s17 }
  0x34   : > { %p18870_p12 = pnand %p18868_p9, %p19158_p7 }
  0x35   : > { %p18875_p2 = por %p18874_p1, %p18873_p0 }
  0x36   : > { %p18871_p13 = pneg %p18870_p12 }
  0x37   : > { %p18877_p4 = por %p18876_p3, %p18875_p2 }
  0x39   : > { %p18878_p6 = pnand %p18877_p4, %p18871_p13 }
  0x3b   : > { %18881 = shalt.err (!%p18878_p6)
}
  0x3c   : > { %s18882_s26 = scalar_lea.vmem %s251_s24, 128  ;;  %s19062_s8 = smov [#allocation10]  }
  0x3d   : > { %p18883_p8 = scmp.ne.s32.totalorder %s251_s24, %s18882_s26  ;;  %s18887_s15 = sshll.u32 %s19062_s8, 4  ;;  %s18888_s15 = int_to_ptr.vmem [resolvable:$false] %s18887_s15 }
  0x3e   : > { %s18889_s16 = scalar_lea.vmem %s18888_s15, 256  ;;  %p18890_p9 = scmp.lt.s32.totalorder %s251_s24, %s18888_s15 }
  0x3f   : > { %p18885_p10 = pnand %p18883_p8, %p19158_p7  ;;  %p18891_p12 = scmp.lt.s32.totalorder %s18889_s16, %s18882_s26 }
  0x41   : > { %p18886_p11 = pneg %p18885_p10  ;;  %p18892_p5 = por %p18891_p12, %p18890_p9 }
  0x43   : > { %p18893_p0 = pnand %p18892_p5, %p18886_p11 }
  0x45   : > { %18896 = shalt.err (!%p18893_p0)
}
  0x46   : > { %p22141_p1 = scmp.ne.s32.totalorder %s22139_s10, 0  ;;  %s19219_s23 = sadd.s32 4294967295, %s19057_s21  }
  0x47   : > { %p64_p5 = scmp.ne.s32.totalorder %s19049_s19, %s19045_s18  ;;  %p22131_p13 = scmp.eq.s32.totalorder %s19219_s23, 0 }
  0x48   : > { %18786 = dma.hbm_to_vmem [thread:$0]  (!%p22141_p1), %s19193_s17, 128, %s251_s24, %s19198_s7  }
  0x49   : > { %p16451_p2 = scmp.ge.s32.totalorder %s19057_s21, 1  ;;  %p174_p3 = scmp.lt.s32.totalorder %s19057_s21, 11 }
  0x4a   : > { %p19228_p4 = por %p22131_p13, %p64_p5  ;;  %s19063_s17 = smov [#allocation4]  }
  0x4b   : > { %p19233_p8 = pnand %p16451_p2, %p174_p3  ;;  %s187_s24 = sshll.u32 %s19063_s17, 4  ;;  %s19239_s24 = int_to_ptr.vmem [resolvable:$true] %s187_s24 }
  0x4c   : > { %s22142_s27 = scalar_select %p19228_p4, 1, 0 }
  0x4d   : > { %s22143_s9 = scalar_select %p19233_p8, 1, 0 }
  0x4e   : > { %p18773_p10 = pneg %p19233_p8  ;;  %s19245_s21 = scalar_lea.hbm %s22125_s2, %s19187_s14 }
  0x4f   : > { %s223_s29 = scalar_lea.vmem [#allocation9], %s19184_s12  ;;  %s18897_s26 = scalar_lea.hbm %s19245_s21, 128 }
  0x50   : > { %s231_s30 = sshll.u32 %s223_s29, 4  ;;  %p19250_p11 = pnand %p18773_p10, %p22131_p13  ;;  %s232_s30 = int_to_ptr.vmem [resolvable:$true] %s231_s30 }
  0x51   : > { %p18898_p9 = scmp.ne.s32.totalorder %s19245_s21, %s18897_s26  ;;  %s18902_s16 = scalar_lea.hbm %s22125_s2, 1280 }
  0x52   : > { %s22144_s6 = scalar_select %p19250_p11, 1, 0 }
  0x53   : > { %p18900_p12 = pnand %p18898_p9, %p19158_p7  ;;  %p18903_p5 = scmp.lt.u32.totalorder %s19245_s21, %s22125_s2 }
  0x54   : > { %p18904_p2 = scmp.lt.u32.totalorder %s18902_s16, %s18897_s26  ;;  %p18906_p10 = scmp.lt.u32.totalorder %s18897_s26, %s19245_s21 }
  0x55   : > { %p18901_p0 = pneg %p18900_p12 }
  0x56   : > { %p18905_p3 = por %p18904_p2, %p18903_p5 }
  0x58   : > { %p18907_p6 = por %p18906_p10, %p18905_p3 }
  0x5a   : > { %p18908_p13 = pnand %p18907_p6, %p18901_p0 }
  0x5c   : > { %18911 = shalt.err (!%p18908_p13)
}
  0x5d   : > { %s18912_s28 = scalar_lea.vmem %s232_s30, 128  ;;  %s19064_s29 = smov [#allocation9]  }
  0x5e   : > { %p18913_p4 = scmp.ne.s32.totalorder %s232_s30, %s18912_s28  ;;  %s18917_s1 = sshll.u32 %s19064_s29, 4  ;;  %s18918_s1 = int_to_ptr.vmem [resolvable:$false] %s18917_s1 }
  0x5f   : > { %s18919_s8 = scalar_lea.vmem %s18918_s1, 256  ;;  %p18920_p8 = scmp.lt.s32.totalorder %s232_s30, %s18918_s1 }
  0x60   : > { %p18915_p9 = pnand %p18913_p4, %p19158_p7  ;;  %p18921_p11 = scmp.lt.s32.totalorder %s18919_s8, %s18912_s28 }
  0x62   : > { %p18916_p12 = pneg %p18915_p9  ;;  %p18922_p1 = por %p18921_p11, %p18920_p8 }
  0x64   : > { %p18923_p2 = pnand %p18922_p1, %p18916_p12 }
  0x66   : > { %18926 = shalt.err (!%p18923_p2)
}
  0x67   : > { %p22145_p5 = scmp.ne.s32.totalorder %s22139_s10, 0  ;;  %s18927_s16 = scalar_lea.hbm %s22123_s0, 256 }
  0x68   : > { %p18928_p13 = scmp.ne.s32.totalorder %s22123_s0, %s18927_s16  ;;  %p22146_p4 = scmp.ne.s32.totalorder %s22144_s6, 0 }
  0x69   : > { %18783 = dma.hbm_to_vmem [thread:$0]  (!%p22145_p5), %s19245_s21, 128, %s232_s30, %s19152_s11  }
  0x6a   : > { %p18929_p6 = pneg %p22146_p4  ;;  %p18934_p1 = scmp.lt.u32.totalorder %s18927_s16, %s22123_s0 }
  0x6c   : > { %p18930_p0 = pnand %p18929_p6, %p18928_p13 }
  0x6e   : > { %p18931_p8 = pneg %p18930_p0 }
  0x70   : > { %p18936_p11 = pnand %p18934_p1, %p18931_p8 }
  0x72   : > { %18939 = shalt.err (!%p18936_p11)
}
  0x73   : > { %s18940_s11 = scalar_lea.vmem %s19239_s24, 256  ;;  %p18948_p12 = scmp.lt.s32.totalorder %s19239_s24, %s19239_s24 }
  0x74   : > { %p18941_p3 = scmp.ne.s32.totalorder %s19239_s24, %s18940_s11  ;;  %p18949_p2 = scmp.lt.s32.totalorder %s18940_s11, %s18940_s11 }
  0x76   : > { %p18943_p10 = pnand %p18941_p3, %p18929_p6  ;;  %p18950_p5 = por %p18949_p2, %p18948_p12 }
  0x78   : > { %p18944_p9 = pneg %p18943_p10 }
  0x7a   : > { %p18951_p7 = pnand %p18950_p5, %p18944_p9 }
  0x7c   : > { %18954 = shalt.err (!%p18951_p7)
}
  0x7d   : > { %18776 = dma.hbm_to_vmem [thread:$0]  (!%p22146_p4), %s22123_s0, 256, %s19239_s24, [#allocation5]  }
  0x7e   : > { %s19297_s26 = scalar_lea.hbm %s22127_s4, %s19187_s14  ;;  %s261_s15 = scalar_lea.vmem [#allocation12], %s19184_s12 }
  0x7f   : > { %s269_s16 = sshll.u32 %s261_s15, 4  ;;  %s18955_s6 = scalar_lea.hbm %s19297_s26, 128  ;;  %s270_s16 = int_to_ptr.vmem [resolvable:$true] %s269_s16 }
  0x80   : > { %p18956_p7 = scmp.ne.s32.totalorder %s19297_s26, %s18955_s6  ;;  %p22147_p5 = scmp.ne.s32.totalorder %s22140_s13, 0 }
  0x81   : > { %s18960_s24 = scalar_lea.hbm %s22127_s4, 1280  ;;  %p18961_p4 = scmp.lt.u32.totalorder %s19297_s26, %s22127_s4 }
  0x82   : > { %p18958_p13 = pnand %p18956_p7, %p22147_p5  ;;  %p18962_p0 = scmp.lt.u32.totalorder %s18960_s24, %s18955_s6 }
  0x83   : > { %p18964_p1 = scmp.lt.u32.totalorder %s18955_s6, %s19297_s26 }
  0x84   : > { %p18959_p6 = pneg %p18958_p13  ;;  %p18963_p8 = por %p18962_p0, %p18961_p4 }
  0x86   : > { %p18965_p11 = por %p18964_p1, %p18963_p8 }
  0x88   : > { %p18966_p3 = pnand %p18965_p11, %p18959_p6 }
  0x8a   : > { %18969 = shalt.err (!%p18966_p3)
}
  0x8b   : > { %s18970_s12 = scalar_lea.vmem %s270_s16, 128  ;;  %s19065_s14 = smov [#allocation12]  }
  0x8c   : > { %p18971_p10 = scmp.ne.s32.totalorder %s270_s16, %s18970_s12  ;;  %s18975_s11 = sshll.u32 %s19065_s14, 4  ;;  %s18976_s11 = int_to_ptr.vmem [resolvable:$false] %s18975_s11 }
  0x8d   : > { %s18977_s21 = scalar_lea.vmem %s18976_s11, 256  ;;  %p18978_p2 = scmp.lt.s32.totalorder %s270_s16, %s18976_s11 }
  0x8e   : > { %p18973_p9 = pnand %p18971_p10, %p22147_p5  ;;  %p18979_p7 = scmp.lt.s32.totalorder %s18977_s21, %s18970_s12 }
  0x90   : > { %p18974_p12 = pneg %p18973_p9  ;;  %p18980_p13 = por %p18979_p7, %p18978_p2 }
  0x92   : > { %p18981_p0 = pnand %p18980_p13, %p18974_p12 }
  0x94   : > { %18984 = shalt.err (!%p18981_p0)
}
  0x95   : > { %p22148_p4 = scmp.ne.s32.totalorder %s22139_s10, 0  ;;  %p22149_p6 = scmp.ne.s32.totalorder %s22143_s9, 0 }
  0x96   : > { %p22150_p5 = scmp.eq.s32.totalorder (!%p22149_p6), %s19219_s23, 0 }
  0x97   : > { %18789 = dma.hbm_to_vmem [thread:$0]  (!%p22148_p4), %s19297_s26, 128, %s270_s16, %s19198_s7  }
  0x98   : > { %278 = sbr.rel (%p22149_p6) target bundleno = 3162 (0xc5a), region = 40 }
  0x9f   : > { %19028 = dma.done.wait (%p22150_p5), [#allocation5], 256   ;;  %p22151_p8 = pmov %p22150_p5 }
  0xa0   : > { %s284_s13 = sand.u32 1, %s19219_s23   ;;  %s286_s30 = sand.u32 1, %s19049_s19  }
  0xa1   : > { %19030 = vsyncadd (%p22151_p8), [#allocation5], 4294967040  ;;  %s16468_s29 = sshll.u32 %s286_s30, 12  ;;  %s285_s8 = scalar_lea.sflag [#allocation8], %s284_s13 }
  0xa2   : > { %s19326_s10 = scalar_lea.vmem [#allocation7], %s16468_s29  ;;  %p22152_p1 = scmp.ne.s32.totalorder %s22142_s27, 0 }
  0xa4   : > { %19032 = dma.done.wait (%p22152_p1), %s285_s8, 65664  }
  0xa5   : > { %19034 = vsyncadd (%p22152_p1), %s285_s8, 4294901632  ;;  %s16469_s7 = sshll.u32 %s286_s30, 3  ;;  %s303_s26 = scalar_lea.sflag [#allocation11], %s284_s13 }
  0xa6   : > { %s19332_s9 = scalar_lea.vmem [#allocation9], %s16469_s7  ;;  %s19334_s15 = scalar_lea.vmem [#allocation10], %s16469_s7 }
  0xa7   : > { %19036 = dma.done.wait (%p22152_p1), %s303_s26, 256  }
  0xa8   : > { %19038 = vsyncadd (%p22152_p1), %s303_s26, 4294967040  ;;  %s19340_s16 = scalar_lea.vmem [#allocation12], %s16469_s7  ;;  %p22153_p11 = scmp.ne.s32.totalorder %s19219_s23, 0 }
  0xa9   : > { %v410_v0 = vld [vmem:[%s19326_s10] sm:$0xff] (!%p22153_p11)  ;;  %v411_v2 = vld [vmem:[%s19326_s10 + $0x8] sm:$0xff] (!%p22153_p11)  ;;  %v19066_v32 = vmov (!%p22153_p11), 1983009808   ;;  %v364_v34 = vlaneseq (!%p22153_p11)  ;;  %v19377_v59 = vld [vmem:[#allocation4] sm:$0xff] (!%p22153_p11) }
  0xaa   : > { %355 = sbr.rel (%p22153_p11) target bundleno = 907 (0x38b), region = 64  ;;  %v414_v1 = vld [vmem:[%s19326_s10 + $0x20] sm:$0xff] (!%p22153_p11)  ;;  %v415_v4 = vld [vmem:[%s19326_s10 + $0x28] sm:$0xff] (!%p22153_p11)  ;;  %v362_v33 = vunpack.c.l.s4 (!%p22153_p11), %v19066_v32 }
  0xab   : > { %v16474_v3 = vcombine.high (!%p22153_p11), %v410_v0, %v414_v1  ;;  %v16473_v5 = vcombine.low (!%p22153_p11), %v410_v0, %v414_v1  ;;  %v418_v6 = vld [vmem:[%s19326_s10 + $0x40] sm:$0xff] (!%p22153_p11)  ;;  %v16476_v8 = vcombine.high (!%p22153_p11), %v411_v2, %v415_v4  ;;  %v16475_v9 = vcombine.low (!%p22153_p11), %v411_v2, %v415_v4  ;;  %v419_v11 = vld [vmem:[%s19326_s10 + $0x48] sm:$0xff] (!%p22153_p11) }
  0xac   : > { %v422_v7 = vld [vmem:[%s19326_s10 + $0x60] sm:$0xff] (!%p22153_p11)  ;;  %v423_v12 = vld [vmem:[%s19326_s10 + $0x68] sm:$0xff] (!%p22153_p11)  ;;  %v363_v43 = vunpack.c.0.s8 (!%p22153_p11), %v362_v33  ;;  %v19366_v44 = vshrl.u32 (!%p22153_p11), %v364_v34, 7 }
  0xad   : > { %v16482_v10 = vcombine.high (!%p22153_p11), %v418_v6, %v422_v7  ;;  %v426_v13 = vld [vmem:[%s19326_s10 + $0x80] sm:$0xff] (!%p22153_p11)  ;;  %3524 = vmatprep.subr.bf16.mxu0 (!%p22153_p11), %v16474_v3  ;;  %v16484_v14 = vcombine.high (!%p22153_p11), %v419_v11, %v423_v12  ;;  %v427_v16 = vld [vmem:[%s19326_s10 + $0x88] sm:$0xff] (!%p22153_p11)  ;;  %3688 = vmatprep.subr.bf16.mxu1 (!%p22153_p11), %v16476_v8  ;;  %v16481_v18 = vcombine.low (!%p22153_p11), %v418_v6, %v422_v7 }
  0xae   : > { %v430_v15 = vld [vmem:[%s19326_s10 + $0xa0] sm:$0xff] (!%p22153_p11)  ;;  %v431_v17 = vld [vmem:[%s19326_s10 + $0xa8] sm:$0xff] (!%p22153_p11)  ;;  %3525 = vmatpush1.bf16.msra.mxu0 (!%p22153_p11), %v16473_v5  ;;  %3689 = vmatpush1.bf16.msra.mxu1 (!%p22153_p11), %v16475_v9  ;;  %v16483_v19 = vcombine.low (!%p22153_p11), %v419_v11, %v423_v12  ;;  %v19373_v53 = vsub.s32 (!%p22153_p11), %v363_v43, %v19366_v44 }
  0xaf   : > { %3526 = vmatprep.subr.bf16.mxu0 (!%p22153_p11), %v16482_v10  ;;  %v16490_v20 = vcombine.high (!%p22153_p11), %v426_v13, %v430_v15  ;;  %3690 = vmatprep.subr.bf16.mxu1 (!%p22153_p11), %v16484_v14  ;;  %v16492_v21 = vcombine.high (!%p22153_p11), %v427_v16, %v431_v17  ;;  %v434_v22 = vld [vmem:[%s19326_s10 + $0xc0] sm:$0xff] (!%p22153_p11)  ;;  %v435_v24 = vld [vmem:[%s19326_s10 + $0xc8] sm:$0xff] (!%p22153_p11)  ;;  %v16489_v26 = vcombine.low (!%p22153_p11), %v426_v13, %v430_v15 }
  0xb0   : > { %v438_v23 = vld [vmem:[%s19326_s10 + $0xe0] sm:$0xff] (!%p22153_p11)  ;;  %v439_v25 = vld [vmem:[%s19326_s10 + $0xe8] sm:$0xff] (!%p22153_p11)  ;;  %v16491_v27 = vcombine.low (!%p22153_p11), %v427_v16, %v431_v17  ;;  %v19383_v63 = vrot.slane (!%p22153_p11), %v19377_v59, %v19373_v53 }
  0xb1   : > { %v16498_v28 = vcombine.high %v434_v22, %v438_v23  ;;  %v16500_v29 = vcombine.high %v435_v24, %v439_v25  ;;  %v442_v30 = vld [vmem:[%s19326_s10 + $0x100] sm:$0xff]  ;;  %v443_v35 = vld [vmem:[%s19326_s10 + $0x108] sm:$0xff]  ;;  %v16497_v37 = vcombine.low %v434_v22, %v438_v23  ;;  %v16499_v38 = vcombine.low %v435_v24, %v439_v25 }
  0xb2   : > { %3527 = vmatpush1.bf16.msra.mxu0 %v16481_v18  ;;  %3691 = vmatpush1.bf16.msra.mxu1 %v16483_v19  ;;  %v446_v31 = vld [vmem:[%s19326_s10 + $0x120] sm:$0xff]  ;;  %v447_v36 = vld [vmem:[%s19326_s10 + $0x128] sm:$0xff]  ;;  %v375_v3 = vcombine.high %v19383_v63, %v19383_v63 }
  0xb3   : > { %3528 = vmatprep.subr.bf16.mxu0 %v16490_v20  ;;  %3692 = vmatprep.subr.bf16.mxu1 %v16492_v21  ;;  %v16506_v39 = vcombine.high %v442_v30, %v446_v31  ;;  %v16508_v40 = vcombine.high %v443_v35, %v447_v36  ;;  %v450_v41 = vld [vmem:[%s19326_s10 + $0x140] sm:$0xff]  ;;  %v451_v45 = vld [vmem:[%s19326_s10 + $0x148] sm:$0xff]  ;;  %v16505_v47 = vcombine.low %v442_v30, %v446_v31 }
  0xb4   : > { %v454_v42 = vld [vmem:[%s19326_s10 + $0x160] sm:$0xff]  ;;  %v455_v46 = vld [vmem:[%s19326_s10 + $0x168] sm:$0xff]  ;;  %v16507_v48 = vcombine.low %v443_v35, %v447_v36  ;;  %v19391_v9 = vpack.c.bf16 %v375_v3, %v375_v3 }
  0xb5   : > { %v16514_v49 = vcombine.high %v450_v41, %v454_v42  ;;  %v16516_v50 = vcombine.high %v451_v45, %v455_v46  ;;  %v458_v51 = vld [vmem:[%s19326_s10 + $0x180] sm:$0xff]  ;;  %v459_v54 = vld [vmem:[%s19326_s10 + $0x188] sm:$0xff]  ;;  %v16513_v56 = vcombine.low %v450_v41, %v454_v42  ;;  %v16515_v57 = vcombine.low %v451_v45, %v455_v46 }
  0xb6   : > { %3529 = vmatpush1.bf16.msra.mxu0 %v16489_v26  ;;  %3693 = vmatpush1.bf16.msra.mxu1 %v16491_v27  ;;  %v462_v52 = vld [vmem:[%s19326_s10 + $0x1a0] sm:$0xff]  ;;  %v463_v55 = vld [vmem:[%s19326_s10 + $0x1a8] sm:$0xff] }
  0xb7   : > { %3530 = vmatprep.subr.bf16.mxu0 %v16498_v28  ;;  %3694 = vmatprep.subr.bf16.mxu1 %v16500_v29  ;;  %v16522_v58 = vcombine.high %v458_v51, %v462_v52  ;;  %v16524_v60 = vcombine.high %v459_v54, %v463_v55  ;;  %v466_v61 = vld [vmem:[%s19326_s10 + $0x1c0] sm:$0xff]  ;;  %v467_v0 = vld [vmem:[%s19326_s10 + $0x1c8] sm:$0xff]  ;;  %v16521_v2 = vcombine.low %v458_v51, %v462_v52 }
  0xb8   : > { %v470_v62 = vld [vmem:[%s19326_s10 + $0x1e0] sm:$0xff]  ;;  %v471_v1 = vld [vmem:[%s19326_s10 + $0x1e8] sm:$0xff]  ;;  %v16523_v4 = vcombine.low %v459_v54, %v463_v55  ;;  %3556 = vmatprep.mubr.bf16.mxu0 %v19391_v9  ;;  %3720 = vmatprep.mubr.bf16.mxu1 %v19391_v9 }
  0xb9   : > { %v16530_v5 = vcombine.high %v466_v61, %v470_v62  ;;  %v16532_v6 = vcombine.high %v467_v0, %v471_v1  ;;  %v474_v7 = vld [vmem:[%s19326_s10 + $0x200] sm:$0xff]  ;;  %v475_v10 = vld [vmem:[%s19326_s10 + $0x208] sm:$0xff]  ;;  %v16529_v12 = vcombine.low %v466_v61, %v470_v62  ;;  %v16531_v13 = vcombine.low %v467_v0, %v471_v1 }
  0xba   : > { %3531 = vmatpush1.bf16.msra.mxu0 %v16497_v37  ;;  %3695 = vmatpush1.bf16.msra.mxu1 %v16499_v38  ;;  %v478_v8 = vld [vmem:[%s19326_s10 + $0x220] sm:$0xff]  ;;  %v479_v11 = vld [vmem:[%s19326_s10 + $0x228] sm:$0xff] }
  0xbb   : > { %3532 = vmatprep.subr.bf16.mxu0 %v16506_v39  ;;  %3696 = vmatprep.subr.bf16.mxu1 %v16508_v40  ;;  %v16538_v14 = vcombine.high %v474_v7, %v478_v8  ;;  %v16540_v15 = vcombine.high %v475_v10, %v479_v11  ;;  %v482_v16 = vld [vmem:[%s19326_s10 + $0x240] sm:$0xff]  ;;  %v483_v18 = vld [vmem:[%s19326_s10 + $0x248] sm:$0xff]  ;;  %v16537_v20 = vcombine.low %v474_v7, %v478_v8 }
  0xbc   : > { %v486_v17 = vld [vmem:[%s19326_s10 + $0x260] sm:$0xff]  ;;  %v487_v19 = vld [vmem:[%s19326_s10 + $0x268] sm:$0xff]  ;;  %v16539_v21 = vcombine.low %v475_v10, %v479_v11 }
  0xbd   : > { %v16546_v22 = vcombine.high %v482_v16, %v486_v17  ;;  %v16548_v23 = vcombine.high %v483_v18, %v487_v19  ;;  %v490_v24 = vld [vmem:[%s19326_s10 + $0x280] sm:$0xff]  ;;  %v491_v26 = vld [vmem:[%s19326_s10 + $0x288] sm:$0xff]  ;;  %v16545_v28 = vcombine.low %v482_v16, %v486_v17  ;;  %v16547_v29 = vcombine.low %v483_v18, %v487_v19 }
  0xbe   : > { %3533 = vmatpush1.bf16.msra.mxu0 %v16505_v47  ;;  %3697 = vmatpush1.bf16.msra.mxu1 %v16507_v48  ;;  %v494_v25 = vld [vmem:[%s19326_s10 + $0x2a0] sm:$0xff]  ;;  %v495_v27 = vld [vmem:[%s19326_s10 + $0x2a8] sm:$0xff] }
  0xbf   : > { %3534 = vmatprep.subr.bf16.mxu0 %v16514_v49  ;;  %3698 = vmatprep.subr.bf16.mxu1 %v16516_v50  ;;  %v16554_v30 = vcombine.high %v490_v24, %v494_v25  ;;  %v16556_v31 = vcombine.high %v491_v26, %v495_v27  ;;  %v498_v32 = vld [vmem:[%s19326_s10 + $0x2c0] sm:$0xff]  ;;  %v499_v34 = vld [vmem:[%s19326_s10 + $0x2c8] sm:$0xff]  ;;  %v16553_v36 = vcombine.low %v490_v24, %v494_v25 }
  0xc0   : > { %v502_v33 = vld [vmem:[%s19326_s10 + $0x2e0] sm:$0xff]  ;;  %v503_v35 = vld [vmem:[%s19326_s10 + $0x2e8] sm:$0xff]  ;;  %v16555_v37 = vcombine.low %v491_v26, %v495_v27  ;;  %v19440_v25 = vpack.c.bf16 %v19383_v63, %v19383_v63 }
  0xc1   : > { %v16562_v38 = vcombine.high %v498_v32, %v502_v33  ;;  %v16564_v39 = vcombine.high %v499_v34, %v503_v35  ;;  %v506_v40 = vld [vmem:[%s19326_s10 + $0x300] sm:$0xff]  ;;  %v507_v42 = vld [vmem:[%s19326_s10 + $0x308] sm:$0xff]  ;;  %v16561_v45 = vcombine.low %v498_v32, %v502_v33  ;;  %v16563_v46 = vcombine.low %v499_v34, %v503_v35 }
  0xc2   : > { %3535 = vmatpush1.bf16.msra.mxu0 %v16513_v56  ;;  %3699 = vmatpush1.bf16.msra.mxu1 %v16515_v57  ;;  %v510_v41 = vld [vmem:[%s19326_s10 + $0x320] sm:$0xff]  ;;  %v511_v43 = vld [vmem:[%s19326_s10 + $0x328] sm:$0xff] }
  0xc3   : > { %3536 = vmatprep.subr.bf16.mxu0 %v16522_v58  ;;  %3700 = vmatprep.subr.bf16.mxu1 %v16524_v60  ;;  %v16570_v47 = vcombine.high %v506_v40, %v510_v41  ;;  %v16572_v48 = vcombine.high %v507_v42, %v511_v43  ;;  %v514_v49 = vld [vmem:[%s19326_s10 + $0x340] sm:$0xff]  ;;  %v515_v51 = vld [vmem:[%s19326_s10 + $0x348] sm:$0xff]  ;;  %v16569_v54 = vcombine.low %v506_v40, %v510_v41 }
  0xc4   : > { %v518_v50 = vld [vmem:[%s19326_s10 + $0x360] sm:$0xff]  ;;  %v519_v52 = vld [vmem:[%s19326_s10 + $0x368] sm:$0xff]  ;;  %v16571_v55 = vcombine.low %v507_v42, %v511_v43 }
  0xc5   : > { %v16578_v56 = vcombine.high %v514_v49, %v518_v50  ;;  %v16580_v57 = vcombine.high %v515_v51, %v519_v52  ;;  %v522_v58 = vld [vmem:[%s19326_s10 + $0x380] sm:$0xff]  ;;  %v523_v61 = vld [vmem:[%s19326_s10 + $0x388] sm:$0xff]  ;;  %v16577_v0 = vcombine.low %v514_v49, %v518_v50  ;;  %v16579_v1 = vcombine.low %v515_v51, %v519_v52 }
  0xc6   : > { %3537 = vmatpush1.bf16.msra.mxu0 %v16521_v2  ;;  %3701 = vmatpush1.bf16.msra.mxu1 %v16523_v4  ;;  %v526_v60 = vld [vmem:[%s19326_s10 + $0x3a0] sm:$0xff]  ;;  %v527_v62 = vld [vmem:[%s19326_s10 + $0x3a8] sm:$0xff] }
  0xc7   : > { %3538 = vmatprep.subr.bf16.mxu0 %v16530_v5  ;;  %3702 = vmatprep.subr.bf16.mxu1 %v16532_v6  ;;  %v16586_v2 = vcombine.high %v522_v58, %v526_v60  ;;  %v16588_v3 = vcombine.high %v523_v61, %v527_v62  ;;  %v530_v4 = vld [vmem:[%s19326_s10 + $0x3c0] sm:$0xff]  ;;  %v360_v6 = vcombine.high %v19377_v59, %v19377_v59  ;;  %v531_v7 = vld [vmem:[%s19326_s10 + $0x3c8] sm:$0xff] }
  0xc8   : > { %v534_v5 = vld [vmem:[%s19326_s10 + $0x3e0] sm:$0xff]  ;;  %v535_v8 = vld [vmem:[%s19326_s10 + $0x3e8] sm:$0xff]  ;;  %v16585_v10 = vcombine.low %v522_v58, %v526_v60  ;;  %v16587_v11 = vcombine.low %v523_v61, %v527_v62 }
  0xc9   : > { %v19430_v16 = vrot.slane %v360_v6, %v19373_v53  ;;  %v539_v59 = vld [vmem:[%s19326_s10 + $0x408] sm:$0xff]  ;;  %v16593_v18 = vcombine.low %v530_v4, %v534_v5  ;;  %v16595_v19 = vcombine.low %v531_v7, %v535_v8  ;;  %v554_v32 = vld [vmem:[%s19326_s10 + $0x480] sm:$0xff] }
  0xca   : > { %3539 = vmatpush1.bf16.msra.mxu0 %v16529_v12  ;;  %3703 = vmatpush1.bf16.msra.mxu1 %v16531_v13  ;;  %v16594_v12 = vcombine.high %v530_v4, %v534_v5  ;;  %v16596_v13 = vcombine.high %v531_v7, %v535_v8  ;;  %v543_v17 = vld [vmem:[%s19326_s10 + $0x428] sm:$0xff]  ;;  %v558_v33 = vld [vmem:[%s19326_s10 + $0x4a0] sm:$0xff] }
  0xcb   : > { %3540 = vmatprep.subr.bf16.mxu0 %v16538_v14  ;;  %3704 = vmatprep.subr.bf16.mxu1 %v16540_v15  ;;  %v538_v14 = vld [vmem:[%s19326_s10 + $0x400] sm:$0xff]  ;;  %v376_v24 = vcombine.high %v19430_v16, %v19430_v16  ;;  %v547_v26 = vld [vmem:[%s19326_s10 + $0x448] sm:$0xff] }
  0xcc   : > { %v542_v15 = vld [vmem:[%s19326_s10 + $0x420] sm:$0xff]  ;;  %v551_v27 = vld [vmem:[%s19326_s10 + $0x468] sm:$0xff] }
  0xcd   : > { %v19446_v34 = vpack.c.bf16 %v376_v24, %v376_v24  ;;  %v555_v63 = vld [vmem:[%s19326_s10 + $0x488] sm:$0xff]  ;;  %v562_v40 = vld [vmem:[%s19326_s10 + $0x4c0] sm:$0xff] }
  0xce   : > { %3541 = vmatpush1.bf16.msra.mxu0 %v16537_v20  ;;  %3705 = vmatpush1.bf16.msra.mxu1 %v16539_v21  ;;  %v16602_v20 = vcombine.high %v538_v14, %v542_v15  ;;  %v16604_v21 = vcombine.high %v539_v59, %v543_v17  ;;  %v559_v35 = vld [vmem:[%s19326_s10 + $0x4a8] sm:$0xff]  ;;  %v566_v41 = vld [vmem:[%s19326_s10 + $0x4e0] sm:$0xff] }
  0xcf   : > { %3542 = vmatprep.subr.bf16.mxu0 %v16546_v22  ;;  %3706 = vmatprep.subr.bf16.mxu1 %v16548_v23  ;;  %v546_v22 = vld [vmem:[%s19326_s10 + $0x440] sm:$0xff]  ;;  %v563_v42 = vld [vmem:[%s19326_s10 + $0x4c8] sm:$0xff] }
  0xd0   : > { %v550_v23 = vld [vmem:[%s19326_s10 + $0x460] sm:$0xff]  ;;  %v567_v43 = vld [vmem:[%s19326_s10 + $0x4e8] sm:$0xff] }
  0xd1   : > { %v570_v49 = vld [vmem:[%s19326_s10 + $0x500] sm:$0xff]  ;;  %v571_v51 = vld [vmem:[%s19326_s10 + $0x508] sm:$0xff] }
  0xd2   : > { %3543 = vmatpush1.bf16.msra.mxu0 %v16545_v28  ;;  %3707 = vmatpush1.bf16.msra.mxu1 %v16547_v29  ;;  %v16601_v28 = vcombine.low %v538_v14, %v542_v15  ;;  %v16603_v29 = vcombine.low %v539_v59, %v543_v17  ;;  %v574_v50 = vld [vmem:[%s19326_s10 + $0x520] sm:$0xff]  ;;  %v575_v52 = vld [vmem:[%s19326_s10 + $0x528] sm:$0xff] }
  0xd3   : > { %3544 = vmatprep.subr.bf16.mxu0 %v16554_v30  ;;  %3708 = vmatprep.subr.bf16.mxu1 %v16556_v31  ;;  %v16610_v30 = vcombine.high %v546_v22, %v550_v23  ;;  %v16612_v31 = vcombine.high %v547_v26, %v551_v27  ;;  %v578_v58 = vld [vmem:[%s19326_s10 + $0x540] sm:$0xff]  ;;  %v579_v61 = vld [vmem:[%s19326_s10 + $0x548] sm:$0xff] }
  0xd4   : > { %v582_v60 = vld [vmem:[%s19326_s10 + $0x560] sm:$0xff]  ;;  %v583_v62 = vld [vmem:[%s19326_s10 + $0x568] sm:$0xff] }
  0xd5   : > { %v586_v4 = vld [vmem:[%s19326_s10 + $0x580] sm:$0xff]  ;;  %v587_v6 = vld [vmem:[%s19326_s10 + $0x588] sm:$0xff]  ;;  %v16641_v8 = vcombine.low %v578_v58, %v582_v60 }
  0xd6   : > { %3545 = vmatpush1.bf16.msra.mxu0 %v16553_v36  ;;  %3709 = vmatpush1.bf16.msra.mxu1 %v16555_v37  ;;  %v16609_v36 = vcombine.low %v546_v22, %v550_v23  ;;  %v16611_v37 = vcombine.low %v547_v26, %v551_v27  ;;  %v590_v5 = vld [vmem:[%s19326_s10 + $0x5a0] sm:$0xff]  ;;  %v591_v7 = vld [vmem:[%s19326_s10 + $0x5a8] sm:$0xff] }
  0xd7   : > { %3546 = vmatprep.subr.bf16.mxu0 %v16562_v38  ;;  %3710 = vmatprep.subr.bf16.mxu1 %v16564_v39  ;;  %v16618_v38 = vcombine.high %v554_v32, %v558_v33  ;;  %v16620_v39 = vcombine.high %v555_v63, %v559_v35  ;;  %v598_v14 = vld [vmem:[%s19326_s10 + $0x5e0] sm:$0xff]  ;;  %v595_v15 = vld [vmem:[%s19326_s10 + $0x5c8] sm:$0xff]  ;;  %v16649_v17 = vcombine.low %v586_v4, %v590_v5 }
  0xd8   : > { %v599_v59 = vld [vmem:[%s19326_s10 + $0x5e8] sm:$0xff]  ;;  %v606_v22 = vld [vmem:[%s19326_s10 + $0x620] sm:$0xff] }
  0xd9   : > { %v603_v23 = vld [vmem:[%s19326_s10 + $0x608] sm:$0xff]  ;;  %v16659_v27 = vcombine.low %v595_v15, %v599_v59 }
  0xda   : > { %3547 = vmatpush1.bf16.msra.mxu0 %v16561_v45  ;;  %3711 = vmatpush1.bf16.msra.mxu1 %v16563_v46  ;;  %v16617_v45 = vcombine.low %v554_v32, %v558_v33  ;;  %v16619_v46 = vcombine.low %v555_v63, %v559_v35  ;;  %v607_v24 = vld [vmem:[%s19326_s10 + $0x628] sm:$0xff] }
  0xdb   : > { %3548 = vmatprep.subr.bf16.mxu0 %v16570_v47  ;;  %3712 = vmatprep.subr.bf16.mxu1 %v16572_v48  ;;  %v16626_v47 = vcombine.high %v562_v40, %v566_v41  ;;  %v16628_v48 = vcombine.high %v563_v42, %v567_v43  ;;  %v611_v32 = vld [vmem:[%s19326_s10 + $0x648] sm:$0xff]  ;;  %v16667_v35 = vcombine.low %v603_v23, %v607_v24 }
  0xdc   : > { %v615_v33 = vld [vmem:[%s19326_s10 + $0x668] sm:$0xff] }
  0xde   : > { %3549 = vmatpush1.bf16.msra.mxu0 %v16569_v54  ;;  %3713 = vmatpush1.bf16.msra.mxu1 %v16571_v55  ;;  %v16625_v54 = vcombine.low %v562_v40, %v566_v41  ;;  %v16627_v55 = vcombine.low %v563_v42, %v567_v43  ;;  %v619_v40 = vld [vmem:[%s19326_s10 + $0x688] sm:$0xff]  ;;  %v16675_v43 = vcombine.low %v611_v32, %v615_v33 }
  0xdf   : > { %3550 = vmatprep.subr.bf16.mxu0 %v16578_v56  ;;  %3714 = vmatprep.subr.bf16.mxu1 %v16580_v57  ;;  %v16634_v56 = vcombine.high %v570_v49, %v574_v50  ;;  %v16636_v57 = vcombine.high %v571_v51, %v575_v52  ;;  %v623_v41 = vld [vmem:[%s19326_s10 + $0x6a8] sm:$0xff] }
  0xe2   : > { %3551 = vmatpush1.bf16.msra.mxu0 %v16577_v0  ;;  %3715 = vmatpush1.bf16.msra.mxu1 %v16579_v1  ;;  %v16633_v0 = vcombine.low %v570_v49, %v574_v50  ;;  %v16635_v1 = vcombine.low %v571_v51, %v575_v52  ;;  %v627_v49 = vld [vmem:[%s19326_s10 + $0x6c8] sm:$0xff]  ;;  %v16683_v52 = vcombine.low %v619_v40, %v623_v41 }
  0xe3   : > { %3552 = vmatprep.subr.bf16.mxu0 %v16586_v2  ;;  %3716 = vmatprep.subr.bf16.mxu1 %v16588_v3  ;;  %v16642_v2 = vcombine.high %v578_v58, %v582_v60  ;;  %v16644_v3 = vcombine.high %v579_v61, %v583_v62  ;;  %v631_v50 = vld [vmem:[%s19326_s10 + $0x6e8] sm:$0xff] }
  0xe4   : > { %v635_v58 = vld [vmem:[%s19326_s10 + $0x708] sm:$0xff] }
  0xe5   : > { %v639_v60 = vld [vmem:[%s19326_s10 + $0x728] sm:$0xff] }
  0xe6   : > { %3553 = vmatpush1.bf16.msra.mxu0 %v16585_v10  ;;  %3717 = vmatpush1.bf16.msra.mxu1 %v16587_v11  ;;  %v16643_v10 = vcombine.low %v579_v61, %v583_v62  ;;  %v16650_v11 = vcombine.high %v586_v4, %v590_v5  ;;  %v16691_v62 = vcombine.low %v627_v49, %v631_v50  ;;  %v643_v4 = vld [vmem:[%s19326_s10 + $0x748] sm:$0xff] }
  0xe7   : > { %3554 = vmatprep.subr.bf16.mxu0 %v16594_v12  ;;  %3718 = vmatprep.subr.bf16.mxu1 %v16596_v13  ;;  %v16652_v12 = vcombine.high %v587_v6, %v591_v7  ;;  %v594_v13 = vld [vmem:[%s19326_s10 + $0x5c0] sm:$0xff]  ;;  %v647_v5 = vld [vmem:[%s19326_s10 + $0x768] sm:$0xff] }
  0xe8   : > { %v16657_v26 = vcombine.low %v594_v13, %v598_v14 }
  0xea   : > { %3555 = vmatpush1.bf16.msra.mxu0 %v16593_v18  ;;  %3719 = vmatpush1.bf16.msra.mxu1 %v16595_v19  ;;  %v16651_v18 = vcombine.low %v587_v6, %v591_v7  ;;  %v16658_v19 = vcombine.high %v594_v13, %v598_v14  ;;  %v16699_v7 = vcombine.low %v635_v58, %v639_v60  ;;  %v651_v13 = vld [vmem:[%s19326_s10 + $0x788] sm:$0xff] }
  0xeb   : > { %3565 = vmatprep.subr.bf16.mxu0 %v16602_v20  ;;  %3729 = vmatprep.subr.bf16.mxu1 %v16604_v21  ;;  %v16660_v20 = vcombine.high %v595_v15, %v599_v59  ;;  %v602_v21 = vld [vmem:[%s19326_s10 + $0x600] sm:$0xff]  ;;  %v655_v14 = vld [vmem:[%s19326_s10 + $0x7a8] sm:$0xff]  ;;  %v16707_v59 = vcombine.low %v643_v4, %v647_v5 }
  0xec   : > { %v16665_v63 = vcombine.low %v602_v21, %v606_v22 }
  0xed   : > { %3557 = vmatmul.mubr.bf16.vlgmr.msra.gmra.mrb[0].mxu0 %v19440_v25  ;;  %3721 = vmatmul.mubr.bf16.vlgmr.msra.gmra.mrb[0].mxu1 %v19440_v25 }
  0xee   : > { %3566 = vmatpush1.bf16.msra.mxu0 %v16601_v28  ;;  %3730 = vmatpush1.bf16.msra.mxu1 %v16603_v29  ;;  %v16666_v28 = vcombine.high %v602_v21, %v606_v22  ;;  %v16668_v29 = vcombine.high %v603_v23, %v607_v24  ;;  %v659_v21 = vld [vmem:[%s19326_s10 + $0x7c8] sm:$0xff]  ;;  %v19506_v23 = vld [vmem:[#allocation4 + $0x8] sm:$0xff] }
  0xef   : > { %3567 = vmatprep.subr.bf16.mxu0 %v16610_v30  ;;  %3731 = vmatprep.subr.bf16.mxu1 %v16612_v31  ;;  %v610_v30 = vld [vmem:[%s19326_s10 + $0x640] sm:$0xff]  ;;  %v663_v22 = vld [vmem:[%s19326_s10 + $0x7e8] sm:$0xff] }
  0xf0   : > { %3597 = vmatprep.mubr.bf16.mxu0 %v19446_v34  ;;  %3761 = vmatprep.mubr.bf16.mxu1 %v19446_v34  ;;  %v614_v31 = vld [vmem:[%s19326_s10 + $0x660] sm:$0xff] }
  0xf1   : > { %v16673_v42 = vcombine.low %v610_v30, %v614_v31 }
  0xf2   : > { %3568 = vmatpush1.bf16.msra.mxu0 %v16609_v36  ;;  %3732 = vmatpush1.bf16.msra.mxu1 %v16611_v37  ;;  %v16674_v36 = vcombine.high %v610_v30, %v614_v31  ;;  %v16676_v37 = vcombine.high %v611_v32, %v615_v33  ;;  %v670_v30 = vld [vmem:[%s19326_s10 + $0x820] sm:$0xff]  ;;  %v19512_v31 = vrot.slane %v19506_v23, %v19373_v53  ;;  %v667_v32 = vld [vmem:[%s19326_s10 + $0x808] sm:$0xff] }
  0xf3   : > { %3569 = vmatprep.subr.bf16.mxu0 %v16618_v38  ;;  %3733 = vmatprep.subr.bf16.mxu1 %v16620_v39  ;;  %v618_v38 = vld [vmem:[%s19326_s10 + $0x680] sm:$0xff]  ;;  %v671_v33 = vld [vmem:[%s19326_s10 + $0x828] sm:$0xff] }
  0xf4   : > { %v622_v39 = vld [vmem:[%s19326_s10 + $0x6a0] sm:$0xff] }
  0xf5   : > { %v16681_v51 = vcombine.low %v618_v38, %v622_v39 }
  0xf6   : > { %3570 = vmatpush1.bf16.msra.mxu0 %v16617_v45  ;;  %3734 = vmatpush1.bf16.msra.mxu1 %v16619_v46  ;;  %v16682_v45 = vcombine.high %v618_v38, %v622_v39  ;;  %v16684_v46 = vcombine.high %v619_v40, %v623_v41  ;;  %v674_v38 = vld [vmem:[%s19326_s10 + $0x840] sm:$0xff]  ;;  %v392_v40 = vcombine.high %v19512_v31, %v19512_v31 }
  0xf7   : > { %3571 = vmatprep.subr.bf16.mxu0 %v16626_v47  ;;  %3735 = vmatprep.subr.bf16.mxu1 %v16628_v48  ;;  %v626_v47 = vld [vmem:[%s19326_s10 + $0x6c0] sm:$0xff]  ;;  %v19522_v41 = vpack.c.bf16 %v19430_v16, %v19430_v16  ;;  %v683_v16 = vld [vmem:[%s19326_s10 + $0x888] sm:$0xff] }
  0xf8   : > { %v630_v48 = vld [vmem:[%s19326_s10 + $0x6e0] sm:$0xff] }
  0xf9   : > { %v16689_v61 = vcombine.low %v626_v47, %v630_v48  ;;  %v678_v39 = vld [vmem:[%s19326_s10 + $0x860] sm:$0xff] }
  0xfa   : > { %3572 = vmatpush1.bf16.msra.mxu0 %v16625_v54  ;;  %3736 = vmatpush1.bf16.msra.mxu1 %v16627_v55  ;;  %v16690_v54 = vcombine.high %v626_v47, %v630_v48  ;;  %v16692_v55 = vcombine.high %v627_v49, %v631_v50  ;;  %v16738_v47 = vcombine.high %v674_v38, %v678_v39  ;;  %v682_v49 = vld [vmem:[%s19326_s10 + $0x880] sm:$0xff] }
  0xfb   : > { %3573 = vmatprep.subr.bf16.mxu0 %v16634_v56  ;;  %3737 = vmatprep.subr.bf16.mxu1 %v16636_v57  ;;  %v634_v56 = vld [vmem:[%s19326_s10 + $0x700] sm:$0xff] }
  0xfc   : > { %v638_v57 = vld [vmem:[%s19326_s10 + $0x720] sm:$0xff] }
  0xfd   : > { %v16697_v6 = vcombine.low %v634_v56, %v638_v57  ;;  %v686_v50 = vld [vmem:[%s19326_s10 + $0x8a0] sm:$0xff] }
  0xfe   : > { %3574 = vmatpush1.bf16.msra.mxu0 %v16633_v0  ;;  %3738 = vmatpush1.bf16.msra.mxu1 %v16635_v1  ;;  %v16698_v0 = vcombine.high %v634_v56, %v638_v57  ;;  %v16700_v1 = vcombine.high %v635_v58, %v639_v60  ;;  %v16746_v56 = vcombine.high %v682_v49, %v686_v50  ;;  %v690_v58 = vld [vmem:[%s19326_s10 + $0x8c0] sm:$0xff] }
  0xff   : > { %3575 = vmatprep.subr.bf16.mxu0 %v16642_v2  ;;  %3739 = vmatprep.subr.bf16.mxu1 %v16644_v3  ;;  %v642_v2 = vld [vmem:[%s19326_s10 + $0x740] sm:$0xff] }
 0x100   : > { %v646_v3 = vld [vmem:[%s19326_s10 + $0x760] sm:$0xff] }
 0x101   : > { %v16705_v15 = vcombine.low %v642_v2, %v646_v3  ;;  %v694_v60 = vld [vmem:[%s19326_s10 + $0x8e0] sm:$0xff] }
 0x102   : > { %3576 = vmatpush1.bf16.msra.mxu0 %v16641_v8  ;;  %3740 = vmatpush1.bf16.msra.mxu1 %v16643_v10  ;;  %v16706_v8 = vcombine.high %v642_v2, %v646_v3  ;;  %v16708_v10 = vcombine.high %v643_v4, %v647_v5  ;;  %v16754_v2 = vcombine.high %v690_v58, %v694_v60  ;;  %v698_v4 = vld [vmem:[%s19326_s10 + $0x900] sm:$0xff] }
 0x103   : > { %3577 = vmatprep.subr.bf16.mxu0 %v16650_v11  ;;  %3741 = vmatprep.subr.bf16.mxu1 %v16652_v12  ;;  %v650_v11 = vld [vmem:[%s19326_s10 + $0x780] sm:$0xff] }
 0x104   : > { %v654_v12 = vld [vmem:[%s19326_s10 + $0x7a0] sm:$0xff] }
 0x105   : > { %v16713_v24 = vcombine.low %v650_v11, %v654_v12  ;;  %v702_v5 = vld [vmem:[%s19326_s10 + $0x920] sm:$0xff] }
 0x106   : > { %3578 = vmatpush1.bf16.msra.mxu0 %v16649_v17  ;;  %3742 = vmatpush1.bf16.msra.mxu1 %v16651_v18  ;;  %v16714_v17 = vcombine.high %v650_v11, %v654_v12  ;;  %v16716_v18 = vcombine.high %v651_v13, %v655_v14  ;;  %v16762_v11 = vcombine.high %v698_v4, %v702_v5 }
 0x107   : > { %3579 = vmatprep.subr.bf16.mxu0 %v16658_v19  ;;  %3743 = vmatprep.subr.bf16.mxu1 %v16660_v20  ;;  %v658_v19 = vld [vmem:[%s19326_s10 + $0x7c0] sm:$0xff] }
 0x108   : > { %v662_v20 = vld [vmem:[%s19326_s10 + $0x7e0] sm:$0xff] }
 0x10a   : > { %3580 = vmatpush1.bf16.msra.mxu0 %v16657_v26  ;;  %3744 = vmatpush1.bf16.msra.mxu1 %v16659_v27  ;;  %v16715_v26 = vcombine.low %v651_v13, %v655_v14  ;;  %v16722_v27 = vcombine.high %v658_v19, %v662_v20  ;;  %v706_v13 = vld [vmem:[%s19326_s10 + $0x940] sm:$0xff] }
 0x10b   : > { %3581 = vmatprep.subr.bf16.mxu0 %v16666_v28  ;;  %3745 = vmatprep.subr.bf16.mxu1 %v16668_v29  ;;  %v16724_v28 = vcombine.high %v659_v21, %v663_v22  ;;  %v666_v29 = vld [vmem:[%s19326_s10 + $0x800] sm:$0xff] }
 0x10c   : > { %v710_v14 = vld [vmem:[%s19326_s10 + $0x960] sm:$0xff] }
 0x10e   : > { %3582 = vmatpush1.bf16.msra.mxu0 %v16665_v63  ;;  %3746 = vmatpush1.bf16.msra.mxu1 %v16667_v35  ;;  %v16721_v63 = vcombine.low %v658_v19, %v662_v20  ;;  %v16723_v35 = vcombine.low %v659_v21, %v663_v22  ;;  %v16770_v19 = vcombine.high %v706_v13, %v710_v14  ;;  %v714_v21 = vld [vmem:[%s19326_s10 + $0x980] sm:$0xff] }
 0x10f   : > { %3583 = vmatprep.subr.bf16.mxu0 %v16674_v36  ;;  %3747 = vmatprep.subr.bf16.mxu1 %v16676_v37  ;;  %v16730_v36 = vcombine.high %v666_v29, %v670_v30  ;;  %v16732_v37 = vcombine.high %v667_v32, %v671_v33  ;;  %v718_v22 = vld [vmem:[%s19326_s10 + $0x9a0] sm:$0xff] }
 0x112   : > { %3584 = vmatpush1.bf16.msra.mxu0 %v16673_v42  ;;  %3748 = vmatpush1.bf16.msra.mxu1 %v16675_v43  ;;  %v675_v42 = vld [vmem:[%s19326_s10 + $0x848] sm:$0xff] }
 0x113   : > { %3585 = vmatprep.subr.bf16.mxu0 %v16682_v45  ;;  %3749 = vmatprep.subr.bf16.mxu1 %v16684_v46  ;;  %v679_v43 = vld [vmem:[%s19326_s10 + $0x868] sm:$0xff]  ;;  %v16729_v45 = vcombine.low %v666_v29, %v670_v30  ;;  %v16731_v46 = vcombine.low %v667_v32, %v671_v33  ;;  %v16778_v29 = vcombine.high %v714_v21, %v718_v22  ;;  %v722_v32 = vld [vmem:[%s19326_s10 + $0x9c0] sm:$0xff] }
 0x114   : > { %v16740_v48 = vcombine.high %v675_v42, %v679_v43  ;;  %v726_v33 = vld [vmem:[%s19326_s10 + $0x9e0] sm:$0xff] }
 0x116   : > { %3586 = vmatpush1.bf16.msra.mxu0 %v16681_v51  ;;  %3750 = vmatpush1.bf16.msra.mxu1 %v16683_v52  ;;  %v19528_v51 = vpack.c.bf16 %v392_v40, %v392_v40  ;;  %v687_v52 = vld [vmem:[%s19326_s10 + $0x8a8] sm:$0xff]  ;;  %v730_v40 = vld [vmem:[%s19326_s10 + $0xa00] sm:$0xff] }
 0x117   : > { %3587 = vmatprep.subr.bf16.mxu0 %v16690_v54  ;;  %3751 = vmatprep.subr.bf16.mxu1 %v16692_v55  ;;  %v16737_v54 = vcombine.low %v674_v38, %v678_v39  ;;  %v16739_v55 = vcombine.low %v675_v42, %v679_v43  ;;  %v16748_v57 = vcombine.high %v683_v16, %v687_v52  ;;  %v734_v42 = vld [vmem:[%s19326_s10 + $0xa20] sm:$0xff]  ;;  %v731_v43 = vld [vmem:[%s19326_s10 + $0xa08] sm:$0xff] }
 0x118   : > { %v16786_v38 = vcombine.high %v722_v32, %v726_v33 }
 0x11a   : > { %3588 = vmatpush1.bf16.msra.mxu0 %v16689_v61  ;;  %3752 = vmatpush1.bf16.msra.mxu1 %v16691_v62  ;;  %v691_v61 = vld [vmem:[%s19326_s10 + $0x8c8] sm:$0xff] }
 0x11b   : > { %3589 = vmatprep.subr.bf16.mxu0 %v16698_v0  ;;  %3753 = vmatprep.subr.bf16.mxu1 %v16700_v1  ;;  %v695_v62 = vld [vmem:[%s19326_s10 + $0x8e8] sm:$0xff]  ;;  %v16745_v0 = vcombine.low %v682_v49, %v686_v50  ;;  %v16747_v1 = vcombine.low %v683_v16, %v687_v52  ;;  %v738_v50 = vld [vmem:[%s19326_s10 + $0xa40] sm:$0xff] }
 0x11c   : > { %v16756_v3 = vcombine.high %v691_v61, %v695_v62  ;;  %v742_v16 = vld [vmem:[%s19326_s10 + $0xa60] sm:$0xff]  ;;  %v739_v52 = vld [vmem:[%s19326_s10 + $0xa48] sm:$0xff] }
 0x11e   : > { %3590 = vmatpush1.bf16.msra.mxu0 %v16697_v6  ;;  %3754 = vmatpush1.bf16.msra.mxu1 %v16699_v7  ;;  %v699_v6 = vld [vmem:[%s19326_s10 + $0x908] sm:$0xff] }
 0x11f   : > { %3591 = vmatprep.subr.bf16.mxu0 %v16706_v8  ;;  %3755 = vmatprep.subr.bf16.mxu1 %v16708_v10  ;;  %v703_v7 = vld [vmem:[%s19326_s10 + $0x928] sm:$0xff]  ;;  %v16753_v8 = vcombine.low %v690_v58, %v694_v60  ;;  %v16755_v10 = vcombine.low %v691_v61, %v695_v62  ;;  %v746_v60 = vld [vmem:[%s19326_s10 + $0xa80] sm:$0xff] }
 0x120   : > { %v16764_v12 = vcombine.high %v699_v6, %v703_v7  ;;  %v750_v61 = vld [vmem:[%s19326_s10 + $0xaa0] sm:$0xff]  ;;  %v747_v62 = vld [vmem:[%s19326_s10 + $0xa88] sm:$0xff] }
 0x122   : > { %3592 = vmatpush1.bf16.msra.mxu0 %v16705_v15  ;;  %3756 = vmatpush1.bf16.msra.mxu1 %v16707_v59  ;;  %v707_v15 = vld [vmem:[%s19326_s10 + $0x948] sm:$0xff] }
 0x123   : > { %3593 = vmatprep.subr.bf16.mxu0 %v16714_v17  ;;  %3757 = vmatprep.subr.bf16.mxu1 %v16716_v18  ;;  %v711_v59 = vld [vmem:[%s19326_s10 + $0x968] sm:$0xff]  ;;  %v16761_v17 = vcombine.low %v698_v4, %v702_v5  ;;  %v16763_v18 = vcombine.low %v699_v6, %v703_v7  ;;  %v754_v5 = vld [vmem:[%s19326_s10 + $0xac0] sm:$0xff] }
 0x124   : > { %v16772_v20 = vcombine.high %v707_v15, %v711_v59  ;;  %v758_v6 = vld [vmem:[%s19326_s10 + $0xae0] sm:$0xff]  ;;  %v755_v7 = vld [vmem:[%s19326_s10 + $0xac8] sm:$0xff] }
 0x126   : > { %3594 = vmatpush1.bf16.msra.mxu0 %v16713_v24  ;;  %3758 = vmatpush1.bf16.msra.mxu1 %v16715_v26  ;;  %v715_v24 = vld [vmem:[%s19326_s10 + $0x988] sm:$0xff] }
 0x127   : > { %3595 = vmatprep.subr.bf16.mxu0 %v16722_v27  ;;  %3759 = vmatprep.subr.bf16.mxu1 %v16724_v28  ;;  %v719_v26 = vld [vmem:[%s19326_s10 + $0x9a8] sm:$0xff]  ;;  %v16769_v27 = vcombine.low %v706_v13, %v710_v14  ;;  %v16771_v28 = vcombine.low %v707_v15, %v711_v59  ;;  %v762_v14 = vld [vmem:[%s19326_s10 + $0xb00] sm:$0xff] }
 0x128   : > { %v16780_v30 = vcombine.high %v715_v24, %v719_v26  ;;  %v766_v15 = vld [vmem:[%s19326_s10 + $0xb20] sm:$0xff]  ;;  %v763_v59 = vld [vmem:[%s19326_s10 + $0xb08] sm:$0xff] }
 0x12a   : > { %3596 = vmatpush1.bf16.msra.mxu0 %v16721_v63  ;;  %3760 = vmatpush1.bf16.msra.mxu1 %v16723_v35  ;;  %v723_v63 = vld [vmem:[%s19326_s10 + $0x9c8] sm:$0xff] }
 0x12b   : > { %3606 = vmatprep.subr.bf16.mxu0 %v16730_v36  ;;  %3770 = vmatprep.subr.bf16.mxu1 %v16732_v37  ;;  %v727_v35 = vld [vmem:[%s19326_s10 + $0x9e8] sm:$0xff]  ;;  %v16777_v36 = vcombine.low %v714_v21, %v718_v22  ;;  %v16779_v37 = vcombine.low %v715_v24, %v719_v26  ;;  %v770_v22 = vld [vmem:[%s19326_s10 + $0xb40] sm:$0xff] }
 0x12c   : > { %v16788_v39 = vcombine.high %v723_v63, %v727_v35  ;;  %v774_v24 = vld [vmem:[%s19326_s10 + $0xb60] sm:$0xff]  ;;  %v771_v26 = vld [vmem:[%s19326_s10 + $0xb48] sm:$0xff] }
 0x12d   : > { %3598 = vmatmul.mubr.bf16.vlgmr.msra.gmra.mrb[0].mxu0 %v19522_v41  ;;  %3762 = vmatmul.mubr.bf16.vlgmr.msra.gmra.mrb[0].mxu1 %v19522_v41 }
 0x12e   : > { %3607 = vmatpush1.bf16.msra.mxu0 %v16729_v45  ;;  %3771 = vmatpush1.bf16.msra.mxu1 %v16731_v46  ;;  %v735_v45 = vld [vmem:[%s19326_s10 + $0xa28] sm:$0xff]  ;;  %v16785_v46 = vcombine.low %v722_v32, %v726_v33  ;;  %v778_v33 = vld [vmem:[%s19326_s10 + $0xb80] sm:$0xff] }
 0x12f   : > { %3608 = vmatprep.subr.bf16.mxu0 %v16738_v47  ;;  %3772 = vmatprep.subr.bf16.mxu1 %v16740_v48  ;;  %v16787_v47 = vcombine.low %v723_v63, %v727_v35  ;;  %v16794_v48 = vcombine.high %v730_v40, %v734_v42  ;;  %v16796_v49 = vcombine.high %v731_v43, %v735_v45  ;;  %v782_v63 = vld [vmem:[%s19326_s10 + $0xba0] sm:$0xff]  ;;  %v779_v35 = vld [vmem:[%s19326_s10 + $0xb88] sm:$0xff] }
 0x130   : > { %3638 = vmatprep.mubr.bf16.mxu0 %v19528_v51  ;;  %3802 = vmatprep.mubr.bf16.mxu1 %v19528_v51 }
 0x132   : > { %3609 = vmatpush1.bf16.msra.mxu0 %v16737_v54  ;;  %3773 = vmatpush1.bf16.msra.mxu1 %v16739_v55  ;;  %v743_v54 = vld [vmem:[%s19326_s10 + $0xa68] sm:$0xff]  ;;  %v16793_v55 = vcombine.low %v730_v40, %v734_v42  ;;  %v786_v42 = vld [vmem:[%s19326_s10 + $0xbc0] sm:$0xff] }
 0x133   : > { %3610 = vmatprep.subr.bf16.mxu0 %v16746_v56  ;;  %3774 = vmatprep.subr.bf16.mxu1 %v16748_v57  ;;  %v16795_v56 = vcombine.low %v731_v43, %v735_v45  ;;  %v16802_v57 = vcombine.high %v738_v50, %v742_v16  ;;  %v16804_v58 = vcombine.high %v739_v52, %v743_v54  ;;  %v790_v43 = vld [vmem:[%s19326_s10 + $0xbe0] sm:$0xff] }
 0x134   : > { %v377_v45 = vcombine.high %v19506_v23, %v19506_v23  ;;  %v795_v23 = vld [vmem:[%s19326_s10 + $0xc08] sm:$0xff] }
 0x136   : > { %3611 = vmatpush1.bf16.msra.mxu0 %v16745_v0  ;;  %3775 = vmatpush1.bf16.msra.mxu1 %v16747_v1  ;;  %v751_v0 = vld [vmem:[%s19326_s10 + $0xaa8] sm:$0xff]  ;;  %v16801_v1 = vcombine.low %v738_v50, %v742_v16  ;;  %v16850_v50 = vcombine.high %v786_v42, %v790_v43 }
 0x137   : > { %3612 = vmatprep.subr.bf16.mxu0 %v16754_v2  ;;  %3776 = vmatprep.subr.bf16.mxu1 %v16756_v3  ;;  %v16803_v2 = vcombine.low %v739_v52, %v743_v54  ;;  %v16810_v3 = vcombine.high %v746_v60, %v750_v61  ;;  %v16812_v4 = vcombine.high %v747_v62, %v751_v0  ;;  %v794_v52 = vld [vmem:[%s19326_s10 + $0xc00] sm:$0xff] }
 0x138   : > { %v798_v54 = vld [vmem:[%s19326_s10 + $0xc20] sm:$0xff] }
 0x13a   : > { %3613 = vmatpush1.bf16.msra.mxu0 %v16753_v8  ;;  %3777 = vmatpush1.bf16.msra.mxu1 %v16755_v10  ;;  %v759_v8 = vld [vmem:[%s19326_s10 + $0xae8] sm:$0xff]  ;;  %v16809_v10 = vcombine.low %v746_v60, %v750_v61  ;;  %v16858_v60 = vcombine.high %v794_v52, %v798_v54 }
 0x13b   : > { %3614 = vmatprep.subr.bf16.mxu0 %v16762_v11  ;;  %3778 = vmatprep.subr.bf16.mxu1 %v16764_v12  ;;  %v16811_v11 = vcombine.low %v747_v62, %v751_v0  ;;  %v16818_v12 = vcombine.high %v754_v5, %v758_v6  ;;  %v16820_v13 = vcombine.high %v755_v7, %v759_v8  ;;  %v802_v62 = vld [vmem:[%s19326_s10 + $0xc40] sm:$0xff] }
 0x13c   : > { %v806_v0 = vld [vmem:[%s19326_s10 + $0xc60] sm:$0xff] }
 0x13e   : > { %3615 = vmatpush1.bf16.msra.mxu0 %v16761_v17  ;;  %3779 = vmatpush1.bf16.msra.mxu1 %v16763_v18  ;;  %v767_v17 = vld [vmem:[%s19326_s10 + $0xb28] sm:$0xff]  ;;  %v16817_v18 = vcombine.low %v754_v5, %v758_v6  ;;  %v16857_v5 = vcombine.low %v794_v52, %v798_v54 }
 0x13f   : > { %3616 = vmatprep.subr.bf16.mxu0 %v16770_v19  ;;  %3780 = vmatprep.subr.bf16.mxu1 %v16772_v20  ;;  %v16819_v19 = vcombine.low %v755_v7, %v759_v8  ;;  %v16826_v20 = vcombine.high %v762_v14, %v766_v15  ;;  %v16828_v21 = vcombine.high %v763_v59, %v767_v17 }
 0x140   : > { %v16866_v7 = vcombine.high %v802_v62, %v806_v0 }
 0x142   : > { %3617 = vmatpush1.bf16.msra.mxu0 %v16769_v27  ;;  %3781 = vmatpush1.bf16.msra.mxu1 %v16771_v28  ;;  %v775_v27 = vld [vmem:[%s19326_s10 + $0xb68] sm:$0xff]  ;;  %v16825_v28 = vcombine.low %v762_v14, %v766_v15  ;;  %v16865_v14 = vcombine.low %v802_v62, %v806_v0 }
 0x143   : > { %3618 = vmatprep.subr.bf16.mxu0 %v16778_v29  ;;  %3782 = vmatprep.subr.bf16.mxu1 %v16780_v30  ;;  %v16827_v29 = vcombine.low %v763_v59, %v767_v17  ;;  %v16834_v30 = vcombine.high %v770_v22, %v774_v24  ;;  %v16836_v32 = vcombine.high %v771_v26, %v775_v27 }
 0x146   : > { %3619 = vmatpush1.bf16.msra.mxu0 %v16777_v36  ;;  %3783 = vmatpush1.bf16.msra.mxu1 %v16779_v37  ;;  %v783_v36 = vld [vmem:[%s19326_s10 + $0xba8] sm:$0xff]  ;;  %v16833_v37 = vcombine.low %v770_v22, %v774_v24 }
 0x147   : > { %3620 = vmatprep.subr.bf16.mxu0 %v16786_v38  ;;  %3784 = vmatprep.subr.bf16.mxu1 %v16788_v39  ;;  %v16835_v38 = vcombine.low %v771_v26, %v775_v27  ;;  %v16842_v39 = vcombine.high %v778_v33, %v782_v63  ;;  %v16844_v40 = vcombine.high %v779_v35, %v783_v36 }
 0x14a   : > { %3621 = vmatpush1.bf16.msra.mxu0 %v16785_v46  ;;  %3785 = vmatpush1.bf16.msra.mxu1 %v16787_v47  ;;  %v787_v46 = vld [vmem:[%s19326_s10 + $0xbc8] sm:$0xff] }
 0x14b   : > { %3622 = vmatprep.subr.bf16.mxu0 %v16794_v48  ;;  %3786 = vmatprep.subr.bf16.mxu1 %v16796_v49  ;;  %v791_v47 = vld [vmem:[%s19326_s10 + $0xbe8] sm:$0xff]  ;;  %v16841_v48 = vcombine.low %v778_v33, %v782_v63  ;;  %v16843_v49 = vcombine.low %v779_v35, %v783_v36 }
 0x14c   : > { %v16852_v16 = vcombine.high %v787_v46, %v791_v47 }
 0x14e   : > { %3623 = vmatpush1.bf16.msra.mxu0 %v16793_v55  ;;  %3787 = vmatpush1.bf16.msra.mxu1 %v16795_v56  ;;  %v19593_v55 = vrot.slane %v377_v45, %v19373_v53  ;;  %v799_v56 = vld [vmem:[%s19326_s10 + $0xc28] sm:$0xff] }
 0x14f   : > { %3624 = vmatprep.subr.bf16.mxu0 %v16802_v57  ;;  %3788 = vmatprep.subr.bf16.mxu1 %v16804_v58  ;;  %v16849_v57 = vcombine.low %v786_v42, %v790_v43  ;;  %v16851_v58 = vcombine.low %v787_v46, %v791_v47  ;;  %v16860_v61 = vcombine.high %v795_v23, %v799_v56  ;;  %v842_v47 = vld [vmem:[%s19326_s10 + $0xd80] sm:$0xff] }
 0x150   : > { %v16859_v6 = vcombine.low %v795_v23, %v799_v56  ;;  %v850_v56 = vld [vmem:[%s19326_s10 + $0xdc0] sm:$0xff] }
 0x152   : > { %3625 = vmatpush1.bf16.msra.mxu0 %v16801_v1  ;;  %3789 = vmatpush1.bf16.msra.mxu1 %v16803_v2  ;;  %v393_v1 = vcombine.high %v19593_v55, %v19593_v55  ;;  %v19603_v2 = vpack.c.bf16 %v19512_v31, %v19512_v31  ;;  %v811_v31 = vld [vmem:[%s19326_s10 + $0xc88] sm:$0xff] }
 0x153   : > { %3626 = vmatprep.subr.bf16.mxu0 %v16810_v3  ;;  %3790 = vmatprep.subr.bf16.mxu1 %v16812_v4  ;;  %v803_v3 = vld [vmem:[%s19326_s10 + $0xc48] sm:$0xff] }
 0x154   : > { %v807_v4 = vld [vmem:[%s19326_s10 + $0xc68] sm:$0xff] }
 0x155   : > { %v16868_v8 = vcombine.high %v803_v3, %v807_v4  ;;  %v16867_v15 = vcombine.low %v803_v3, %v807_v4  ;;  %v858_v3 = vld [vmem:[%s19326_s10 + $0xe00] sm:$0xff] }
 0x156   : > { %3627 = vmatpush1.bf16.msra.mxu0 %v16809_v10  ;;  %3791 = vmatpush1.bf16.msra.mxu1 %v16811_v11  ;;  %v810_v10 = vld [vmem:[%s19326_s10 + $0xc80] sm:$0xff] }
 0x157   : > { %3628 = vmatprep.subr.bf16.mxu0 %v16818_v12  ;;  %3792 = vmatprep.subr.bf16.mxu1 %v16820_v13  ;;  %v814_v11 = vld [vmem:[%s19326_s10 + $0xca0] sm:$0xff]  ;;  %v19609_v12 = vpack.c.bf16 %v393_v1, %v393_v1  ;;  %v815_v13 = vld [vmem:[%s19326_s10 + $0xca8] sm:$0xff] }
 0x158   : > { %v16874_v59 = vcombine.high %v810_v10, %v814_v11  ;;  %v16876_v17 = vcombine.high %v811_v31, %v815_v13  ;;  %v16873_v22 = vcombine.low %v810_v10, %v814_v11  ;;  %v16875_v24 = vcombine.low %v811_v31, %v815_v13  ;;  %v862_v4 = vld [vmem:[%s19326_s10 + $0xe20] sm:$0xff] }
 0x159   : > { %v16922_v10 = vcombine.high %v858_v3, %v862_v4  ;;  %v866_v31 = vld [vmem:[%s19326_s10 + $0xe40] sm:$0xff] }
 0x15a   : > { %3629 = vmatpush1.bf16.msra.mxu0 %v16817_v18  ;;  %3793 = vmatpush1.bf16.msra.mxu1 %v16819_v19  ;;  %v818_v18 = vld [vmem:[%s19326_s10 + $0xcc0] sm:$0xff] }
 0x15b   : > { %3630 = vmatprep.subr.bf16.mxu0 %v16826_v20  ;;  %3794 = vmatprep.subr.bf16.mxu1 %v16828_v21  ;;  %v822_v19 = vld [vmem:[%s19326_s10 + $0xce0] sm:$0xff]  ;;  %v819_v20 = vld [vmem:[%s19326_s10 + $0xcc8] sm:$0xff] }
 0x15c   : > { %v823_v21 = vld [vmem:[%s19326_s10 + $0xce8] sm:$0xff]  ;;  %v16882_v26 = vcombine.high %v818_v18, %v822_v19  ;;  %v16881_v33 = vcombine.low %v818_v18, %v822_v19  ;;  %v870_v13 = vld [vmem:[%s19326_s10 + $0xe60] sm:$0xff] }
 0x15d   : > { %v16884_v27 = vcombine.high %v819_v20, %v823_v21  ;;  %v16883_v63 = vcombine.low %v819_v20, %v823_v21  ;;  %v16930_v18 = vcombine.high %v866_v31, %v870_v13  ;;  %v874_v20 = vld [vmem:[%s19326_s10 + $0xe80] sm:$0xff] }
 0x15e   : > { %3631 = vmatpush1.bf16.msra.mxu0 %v16825_v28  ;;  %3795 = vmatpush1.bf16.msra.mxu1 %v16827_v29  ;;  %v826_v28 = vld [vmem:[%s19326_s10 + $0xd00] sm:$0xff] }
 0x15f   : > { %3632 = vmatprep.subr.bf16.mxu0 %v16834_v30  ;;  %3796 = vmatprep.subr.bf16.mxu1 %v16836_v32  ;;  %v830_v29 = vld [vmem:[%s19326_s10 + $0xd20] sm:$0xff]  ;;  %v827_v30 = vld [vmem:[%s19326_s10 + $0xd08] sm:$0xff] }
 0x160   : > { %v831_v32 = vld [vmem:[%s19326_s10 + $0xd28] sm:$0xff]  ;;  %v16890_v35 = vcombine.high %v826_v28, %v830_v29  ;;  %v16889_v42 = vcombine.low %v826_v28, %v830_v29  ;;  %v878_v21 = vld [vmem:[%s19326_s10 + $0xea0] sm:$0xff] }
 0x161   : > { %v16892_v36 = vcombine.high %v827_v30, %v831_v32  ;;  %v16891_v43 = vcombine.low %v827_v30, %v831_v32  ;;  %v16938_v28 = vcombine.high %v874_v20, %v878_v21  ;;  %v882_v30 = vld [vmem:[%s19326_s10 + $0xec0] sm:$0xff] }
 0x162   : > { %3633 = vmatpush1.bf16.msra.mxu0 %v16833_v37  ;;  %3797 = vmatpush1.bf16.msra.mxu1 %v16835_v38  ;;  %v834_v37 = vld [vmem:[%s19326_s10 + $0xd40] sm:$0xff] }
 0x163   : > { %3634 = vmatprep.subr.bf16.mxu0 %v16842_v39  ;;  %3798 = vmatprep.subr.bf16.mxu1 %v16844_v40  ;;  %v838_v38 = vld [vmem:[%s19326_s10 + $0xd60] sm:$0xff]  ;;  %v835_v39 = vld [vmem:[%s19326_s10 + $0xd48] sm:$0xff] }
 0x164   : > { %v839_v40 = vld [vmem:[%s19326_s10 + $0xd68] sm:$0xff]  ;;  %v16898_v45 = vcombine.high %v834_v37, %v838_v38  ;;  %v886_v32 = vld [vmem:[%s19326_s10 + $0xee0] sm:$0xff] }
 0x165   : > { %v16900_v46 = vcombine.high %v835_v39, %v839_v40  ;;  %v16899_v52 = vcombine.low %v835_v39, %v839_v40  ;;  %v890_v39 = vld [vmem:[%s19326_s10 + $0xf00] sm:$0xff] }
 0x166   : > { %3635 = vmatpush1.bf16.msra.mxu0 %v16841_v48  ;;  %3799 = vmatpush1.bf16.msra.mxu1 %v16843_v49  ;;  %v846_v48 = vld [vmem:[%s19326_s10 + $0xda0] sm:$0xff]  ;;  %v843_v49 = vld [vmem:[%s19326_s10 + $0xd88] sm:$0xff] }
 0x167   : > { %3636 = vmatprep.subr.bf16.mxu0 %v16850_v50  ;;  %3800 = vmatprep.subr.bf16.mxu1 %v16852_v16  ;;  %v847_v50 = vld [vmem:[%s19326_s10 + $0xda8] sm:$0xff]  ;;  %v16897_v16 = vcombine.low %v834_v37, %v838_v38  ;;  %v16906_v54 = vcombine.high %v842_v47, %v846_v48  ;;  %v16946_v37 = vcombine.high %v882_v30, %v886_v32  ;;  %v894_v40 = vld [vmem:[%s19326_s10 + $0xf20] sm:$0xff] }
 0x168   : > { %v16908_v23 = vcombine.high %v843_v49, %v847_v50  ;;  %v16907_v62 = vcombine.low %v843_v49, %v847_v50  ;;  %v898_v49 = vld [vmem:[%s19326_s10 + $0xf40] sm:$0xff] }
 0x169   : > { %v902_v50 = vld [vmem:[%s19326_s10 + $0xf60] sm:$0xff] }
 0x16a   : > { %3637 = vmatpush1.bf16.msra.mxu0 %v16849_v57  ;;  %3801 = vmatpush1.bf16.msra.mxu1 %v16851_v58  ;;  %v854_v57 = vld [vmem:[%s19326_s10 + $0xde0] sm:$0xff]  ;;  %v851_v58 = vld [vmem:[%s19326_s10 + $0xdc8] sm:$0xff] }
 0x16b   : > { %3647 = vmatprep.subr.bf16.mxu0 %v16858_v60  ;;  %3811 = vmatprep.subr.bf16.mxu1 %v16860_v61  ;;  %v855_v60 = vld [vmem:[%s19326_s10 + $0xde8] sm:$0xff]  ;;  %v16905_v61 = vcombine.low %v842_v47, %v846_v48  ;;  %v16914_v0 = vcombine.high %v850_v56, %v854_v57  ;;  %v16954_v47 = vcombine.high %v890_v39, %v894_v40 }
 0x16c   : > { %v16916_v1 = vcombine.high %v851_v58, %v855_v60 }
 0x16d   : > { %3639 = vmatmul.mubr.bf16.vlgmr.msra.gmra.mrb[0].mxu0 %v19603_v2  ;;  %3803 = vmatmul.mubr.bf16.vlgmr.msra.gmra.mrb[0].mxu1 %v19603_v2 }
 0x16e   : > { %3648 = vmatpush1.bf16.msra.mxu0 %v16857_v5  ;;  %3812 = vmatpush1.bf16.msra.mxu1 %v16859_v6  ;;  %v859_v5 = vld [vmem:[%s19326_s10 + $0xe08] sm:$0xff] }
 0x16f   : > { %3649 = vmatprep.subr.bf16.mxu0 %v16866_v7  ;;  %3813 = vmatprep.subr.bf16.mxu1 %v16868_v8  ;;  %v863_v6 = vld [vmem:[%s19326_s10 + $0xe28] sm:$0xff]  ;;  %v16913_v7 = vcombine.low %v850_v56, %v854_v57  ;;  %v16915_v8 = vcombine.low %v851_v58, %v855_v60  ;;  %v16962_v56 = vcombine.high %v898_v49, %v902_v50  ;;  %v906_v58 = vld [vmem:[%s19326_s10 + $0xf80] sm:$0xff] }
 0x170   : > { %3679 = vmatprep.mubr.bf16.mxu0 %v19609_v12  ;;  %3843 = vmatprep.mubr.bf16.mxu1 %v19609_v12  ;;  %v16924_v11 = vcombine.high %v859_v5, %v863_v6  ;;  %v910_v60 = vld [vmem:[%s19326_s10 + $0xfa0] sm:$0xff] }
 0x172   : > { %3650 = vmatpush1.bf16.msra.mxu0 %v16865_v14  ;;  %3814 = vmatpush1.bf16.msra.mxu1 %v16867_v15  ;;  %v867_v14 = vld [vmem:[%s19326_s10 + $0xe48] sm:$0xff] }
 0x173   : > { %3651 = vmatprep.subr.bf16.mxu0 %v16874_v59  ;;  %3815 = vmatprep.subr.bf16.mxu1 %v16876_v17  ;;  %v871_v15 = vld [vmem:[%s19326_s10 + $0xe68] sm:$0xff]  ;;  %v16921_v59 = vcombine.low %v858_v3, %v862_v4  ;;  %v16923_v17 = vcombine.low %v859_v5, %v863_v6  ;;  %v16970_v3 = vcombine.high %v906_v58, %v910_v60  ;;  %v914_v5 = vld [vmem:[%s19326_s10 + $0xfc0] sm:$0xff] }
 0x174   : > { %v16932_v19 = vcombine.high %v867_v14, %v871_v15  ;;  %v918_v6 = vld [vmem:[%s19326_s10 + $0xfe0] sm:$0xff] }
 0x176   : > { %3652 = vmatpush1.bf16.msra.mxu0 %v16873_v22  ;;  %3816 = vmatpush1.bf16.msra.mxu1 %v16875_v24  ;;  %v875_v22 = vld [vmem:[%s19326_s10 + $0xe88] sm:$0xff] }
 0x177   : > { %3653 = vmatprep.subr.bf16.mxu0 %v16882_v26  ;;  %3817 = vmatprep.subr.bf16.mxu1 %v16884_v27  ;;  %v879_v24 = vld [vmem:[%s19326_s10 + $0xea8] sm:$0xff]  ;;  %v16929_v26 = vcombine.low %v866_v31, %v870_v13  ;;  %v16931_v27 = vcombine.low %v867_v14, %v871_v15  ;;  %v16978_v31 = vcombine.high %v914_v5, %v918_v6  ;;  %v412_v14 = vld [vmem:[%s19326_s10 + $0x10] sm:$0xff] }
 0x178   : > { %v16940_v29 = vcombine.high %v875_v22, %v879_v24  ;;  %v416_v15 = vld [vmem:[%s19326_s10 + $0x30] sm:$0xff] }
 0x17a   : > { %3654 = vmatpush1.bf16.msra.mxu0 %v16881_v33  ;;  %3818 = vmatpush1.bf16.msra.mxu1 %v16883_v63  ;;  %v883_v33 = vld [vmem:[%s19326_s10 + $0xec8] sm:$0xff] }
 0x17b   : > { %3655 = vmatprep.subr.bf16.mxu0 %v16890_v35  ;;  %3819 = vmatprep.subr.bf16.mxu1 %v16892_v36  ;;  %v887_v63 = vld [vmem:[%s19326_s10 + $0xee8] sm:$0xff]  ;;  %v16937_v35 = vcombine.low %v874_v20, %v878_v21  ;;  %v16939_v36 = vcombine.low %v875_v22, %v879_v24  ;;  %v16478_v20 = vcombine.high %v412_v14, %v416_v15  ;;  %v420_v22 = vld [vmem:[%s19326_s10 + $0x50] sm:$0xff] }
 0x17c   : > { %v16948_v38 = vcombine.high %v883_v33, %v887_v63  ;;  %v424_v24 = vld [vmem:[%s19326_s10 + $0x70] sm:$0xff] }
 0x17e   : > { %3656 = vmatpush1.bf16.msra.mxu0 %v16889_v42  ;;  %3820 = vmatpush1.bf16.msra.mxu1 %v16891_v43  ;;  %v891_v42 = vld [vmem:[%s19326_s10 + $0xf08] sm:$0xff] }
 0x17f   : > { %3657 = vmatprep.subr.bf16.mxu0 %v16898_v45  ;;  %3821 = vmatprep.subr.bf16.mxu1 %v16900_v46  ;;  %v895_v43 = vld [vmem:[%s19326_s10 + $0xf28] sm:$0xff]  ;;  %v16945_v45 = vcombine.low %v882_v30, %v886_v32  ;;  %v16947_v46 = vcombine.low %v883_v33, %v887_v63  ;;  %v16486_v32 = vcombine.high %v420_v22, %v424_v24  ;;  %v428_v63 = vld [vmem:[%s19326_s10 + $0x90] sm:$0xff] }
 0x180   : > { %v16956_v48 = vcombine.high %v891_v42, %v895_v43 }
 0x182   : > { %3658 = vmatpush1.bf16.msra.mxu0 %v16897_v16  ;;  %3822 = vmatpush1.bf16.msra.mxu1 %v16899_v52  ;;  %v899_v16 = vld [vmem:[%s19326_s10 + $0xf48] sm:$0xff] }
 0x183   : > { %3659 = vmatprep.subr.bf16.mxu0 %v16906_v54  ;;  %3823 = vmatprep.subr.bf16.mxu1 %v16908_v23  ;;  %v903_v52 = vld [vmem:[%s19326_s10 + $0xf68] sm:$0xff]  ;;  %v16953_v54 = vcombine.low %v890_v39, %v894_v40  ;;  %v16955_v23 = vcombine.low %v891_v42, %v895_v43  ;;  %v436_v42 = vld [vmem:[%s19326_s10 + $0xd0] sm:$0xff] }
 0x184   : > { %v16964_v57 = vcombine.high %v899_v16, %v903_v52  ;;  %v440_v43 = vld [vmem:[%s19326_s10 + $0xf0] sm:$0xff] }
 0x186   : > { %3660 = vmatpush1.bf16.msra.mxu0 %v16905_v61  ;;  %3824 = vmatpush1.bf16.msra.mxu1 %v16907_v62  ;;  %v907_v61 = vld [vmem:[%s19326_s10 + $0xf88] sm:$0xff] }
 0x187   : > { %3661 = vmatprep.subr.bf16.mxu0 %v16914_v0  ;;  %3825 = vmatprep.subr.bf16.mxu1 %v16916_v1  ;;  %v911_v62 = vld [vmem:[%s19326_s10 + $0xfa8] sm:$0xff]  ;;  %v16961_v0 = vcombine.low %v898_v49, %v902_v50  ;;  %v16963_v1 = vcombine.low %v899_v16, %v903_v52  ;;  %v16502_v49 = vcombine.high %v436_v42, %v440_v43  ;;  %v444_v16 = vld [vmem:[%s19326_s10 + $0x110] sm:$0xff] }
 0x188   : > { %v16972_v4 = vcombine.high %v907_v61, %v911_v62  ;;  %v448_v52 = vld [vmem:[%s19326_s10 + $0x130] sm:$0xff] }
 0x18a   : > { %3662 = vmatpush1.bf16.msra.mxu0 %v16913_v7  ;;  %3826 = vmatpush1.bf16.msra.mxu1 %v16915_v8  ;;  %v915_v7 = vld [vmem:[%s19326_s10 + $0xfc8] sm:$0xff] }
 0x18b   : > { %3663 = vmatprep.subr.bf16.mxu0 %v16922_v10  ;;  %3827 = vmatprep.subr.bf16.mxu1 %v16924_v11  ;;  %v919_v8 = vld [vmem:[%s19326_s10 + $0xfe8] sm:$0xff]  ;;  %v16969_v10 = vcombine.low %v906_v58, %v910_v60  ;;  %v16971_v11 = vcombine.low %v907_v61, %v911_v62  ;;  %v452_v60 = vld [vmem:[%s19326_s10 + $0x150] sm:$0xff]  ;;  %v453_v62 = vld [vmem:[%s19326_s10 + $0x158] sm:$0xff] }
 0x18c   : > { %v16980_v13 = vcombine.high %v915_v7, %v919_v8  ;;  %v456_v61 = vld [vmem:[%s19326_s10 + $0x170] sm:$0xff] }
 0x18e   : > { %3664 = vmatpush1.bf16.msra.mxu0 %v16921_v59  ;;  %3828 = vmatpush1.bf16.msra.mxu1 %v16923_v17  ;;  %v413_v59 = vld [vmem:[%s19326_s10 + $0x18] sm:$0xff] }
 0x18f   : > { %3665 = vmatprep.subr.bf16.mxu0 %v16930_v18  ;;  %3829 = vmatprep.subr.bf16.mxu1 %v16932_v19  ;;  %v417_v17 = vld [vmem:[%s19326_s10 + $0x38] sm:$0xff]  ;;  %v16977_v18 = vcombine.low %v914_v5, %v918_v6  ;;  %v16979_v19 = vcombine.low %v915_v7, %v919_v8  ;;  %v460_v6 = vld [vmem:[%s19326_s10 + $0x190] sm:$0xff] }
 0x190   : > { %v16480_v21 = vcombine.high %v413_v59, %v417_v17  ;;  %v16479_v30 = vcombine.low %v413_v59, %v417_v17  ;;  %v464_v7 = vld [vmem:[%s19326_s10 + $0x1b0] sm:$0xff]  ;;  %v461_v8 = vld [vmem:[%s19326_s10 + $0x198] sm:$0xff] }
 0x191   : > { %v472_v59 = vld [vmem:[%s19326_s10 + $0x1f0] sm:$0xff]  ;;  %v469_v17 = vld [vmem:[%s19326_s10 + $0x1d8] sm:$0xff] }
 0x192   : > { %3666 = vmatpush1.bf16.msra.mxu0 %v16929_v26  ;;  %3830 = vmatpush1.bf16.msra.mxu1 %v16931_v27  ;;  %v19677_v26 = vpack.c.bf16 %v19593_v55, %v19593_v55  ;;  %v421_v27 = vld [vmem:[%s19326_s10 + $0x58] sm:$0xff] }
 0x193   : > { %3667 = vmatprep.subr.bf16.mxu0 %v16938_v28  ;;  %3831 = vmatprep.subr.bf16.mxu1 %v16940_v29  ;;  %v425_v28 = vld [vmem:[%s19326_s10 + $0x78] sm:$0xff]  ;;  %v16477_v29 = vcombine.low %v412_v14, %v416_v15  ;;  %v468_v15 = vld [vmem:[%s19326_s10 + $0x1d0] sm:$0xff] }
 0x194   : > { %v16488_v33 = vcombine.high %v421_v27, %v425_v28  ;;  %v429_v55 = vld [vmem:[%s19326_s10 + $0x98] sm:$0xff] }
 0x196   : > { %3668 = vmatpush1.bf16.msra.mxu0 %v16937_v35  ;;  %3832 = vmatpush1.bf16.msra.mxu1 %v16939_v36  ;;  %v432_v35 = vld [vmem:[%s19326_s10 + $0xb0] sm:$0xff]  ;;  %v433_v36 = vld [vmem:[%s19326_s10 + $0xb8] sm:$0xff] }
 0x197   : > { %3669 = vmatprep.subr.bf16.mxu0 %v16946_v37  ;;  %3833 = vmatprep.subr.bf16.mxu1 %v16948_v38  ;;  %v16485_v37 = vcombine.low %v420_v22, %v424_v24  ;;  %v16487_v38 = vcombine.low %v421_v27, %v425_v28  ;;  %v16494_v39 = vcombine.high %v428_v63, %v432_v35  ;;  %v476_v24 = vld [vmem:[%s19326_s10 + $0x210] sm:$0xff]  ;;  %v477_v28 = vld [vmem:[%s19326_s10 + $0x218] sm:$0xff] }
 0x198   : > { %v16496_v40 = vcombine.high %v429_v55, %v433_v36  ;;  %v480_v27 = vld [vmem:[%s19326_s10 + $0x230] sm:$0xff] }
 0x19a   : > { %3670 = vmatpush1.bf16.msra.mxu0 %v16945_v45  ;;  %3834 = vmatpush1.bf16.msra.mxu1 %v16947_v46  ;;  %v437_v45 = vld [vmem:[%s19326_s10 + $0xd8] sm:$0xff] }
 0x19b   : > { %3671 = vmatprep.subr.bf16.mxu0 %v16954_v47  ;;  %3835 = vmatprep.subr.bf16.mxu1 %v16956_v48  ;;  %v441_v46 = vld [vmem:[%s19326_s10 + $0xf8] sm:$0xff]  ;;  %v16493_v47 = vcombine.low %v428_v63, %v432_v35  ;;  %v16495_v48 = vcombine.low %v429_v55, %v433_v36  ;;  %v484_v35 = vld [vmem:[%s19326_s10 + $0x250] sm:$0xff] }
 0x19c   : > { %v16504_v50 = vcombine.high %v437_v45, %v441_v46  ;;  %v488_v55 = vld [vmem:[%s19326_s10 + $0x270] sm:$0xff]  ;;  %v485_v36 = vld [vmem:[%s19326_s10 + $0x258] sm:$0xff] }
 0x19e   : > { %3672 = vmatpush1.bf16.msra.mxu0 %v16953_v54  ;;  %3836 = vmatpush1.bf16.msra.mxu1 %v16955_v23  ;;  %v445_v54 = vld [vmem:[%s19326_s10 + $0x118] sm:$0xff] }
 0x19f   : > { %3673 = vmatprep.subr.bf16.mxu0 %v16962_v56  ;;  %3837 = vmatprep.subr.bf16.mxu1 %v16964_v57  ;;  %v449_v23 = vld [vmem:[%s19326_s10 + $0x138] sm:$0xff]  ;;  %v16501_v56 = vcombine.low %v436_v42, %v440_v43  ;;  %v16510_v57 = vcombine.high %v444_v16, %v448_v52  ;;  %v492_v43 = vld [vmem:[%s19326_s10 + $0x290] sm:$0xff] }
 0x1a0   : > { %v16512_v58 = vcombine.high %v445_v54, %v449_v23 }
 0x1a2   : > { %3674 = vmatpush1.bf16.msra.mxu0 %v16961_v0  ;;  %3838 = vmatpush1.bf16.msra.mxu1 %v16963_v1  ;;  %v457_v0 = vld [vmem:[%s19326_s10 + $0x178] sm:$0xff]  ;;  %v16509_v1 = vcombine.low %v444_v16, %v448_v52  ;;  %v500_v52 = vld [vmem:[%s19326_s10 + $0x2d0] sm:$0xff] }
 0x1a3   : > { %3675 = vmatprep.subr.bf16.mxu0 %v16970_v3  ;;  %3839 = vmatprep.subr.bf16.mxu1 %v16972_v4  ;;  %v16511_v3 = vcombine.low %v445_v54, %v449_v23  ;;  %v16518_v4 = vcombine.high %v452_v60, %v456_v61  ;;  %v16520_v5 = vcombine.high %v453_v62, %v457_v0  ;;  %v504_v54 = vld [vmem:[%s19326_s10 + $0x2f0] sm:$0xff]  ;;  %v501_v23 = vld [vmem:[%s19326_s10 + $0x2d8] sm:$0xff] }
 0x1a6   : > { %3676 = vmatpush1.bf16.msra.mxu0 %v16969_v10  ;;  %3840 = vmatpush1.bf16.msra.mxu1 %v16971_v11  ;;  %v465_v10 = vld [vmem:[%s19326_s10 + $0x1b8] sm:$0xff]  ;;  %v16517_v11 = vcombine.low %v452_v60, %v456_v61  ;;  %v508_v61 = vld [vmem:[%s19326_s10 + $0x310] sm:$0xff] }
 0x1a7   : > { %3677 = vmatprep.subr.bf16.mxu0 %v16978_v31  ;;  %3841 = vmatprep.subr.bf16.mxu1 %v16980_v13  ;;  %v16519_v31 = vcombine.low %v453_v62, %v457_v0  ;;  %v16526_v13 = vcombine.high %v460_v6, %v464_v7  ;;  %v16528_v14 = vcombine.high %v461_v8, %v465_v10  ;;  %v512_v62 = vld [vmem:[%s19326_s10 + $0x330] sm:$0xff]  ;;  %v509_v0 = vld [vmem:[%s19326_s10 + $0x318] sm:$0xff] }
 0x1aa   : > { %3678 = vmatpush1.bf16.msra.mxu0 %v16977_v18  ;;  %3842 = vmatpush1.bf16.msra.mxu1 %v16979_v19  ;;  %v473_v18 = vld [vmem:[%s19326_s10 + $0x1f8] sm:$0xff]  ;;  %v16525_v19 = vcombine.low %v460_v6, %v464_v7  ;;  %v516_v7 = vld [vmem:[%s19326_s10 + $0x350] sm:$0xff] }
 0x1ab   : > { %3852 = vmatprep.subr.bf16.mxu0 %v16478_v20  ;;  %4016 = vmatprep.subr.bf16.mxu1 %v16480_v21  ;;  %v16527_v20 = vcombine.low %v461_v8, %v465_v10  ;;  %v16534_v21 = vcombine.high %v468_v15, %v472_v59  ;;  %v16536_v22 = vcombine.high %v469_v17, %v473_v18  ;;  %v520_v8 = vld [vmem:[%s19326_s10 + $0x370] sm:$0xff]  ;;  %v517_v10 = vld [vmem:[%s19326_s10 + $0x358] sm:$0xff] }
 0x1ad   : > { %3680 = vmatmul.mubr.bf16.vlgmr.msra.gmra.mrb[0].mxu0 %v19677_v26  ;;  %3844 = vmatmul.mubr.bf16.vlgmr.msra.gmra.mrb[0].mxu1 %v19677_v26 }
 0x1ae   : > { %3853 = vmatpush1.bf16.msra.mxu0 %v16477_v29  ;;  %4017 = vmatpush1.bf16.msra.mxu1 %v16479_v30  ;;  %v481_v29 = vld [vmem:[%s19326_s10 + $0x238] sm:$0xff]  ;;  %v16533_v30 = vcombine.low %v468_v15, %v472_v59  ;;  %v524_v59 = vld [vmem:[%s19326_s10 + $0x390] sm:$0xff] }
 0x1af   : > { %3854 = vmatprep.subr.bf16.mxu0 %v16486_v32  ;;  %4018 = vmatprep.subr.bf16.mxu1 %v16488_v33  ;;  %v16535_v32 = vcombine.low %v469_v17, %v473_v18  ;;  %v16542_v33 = vcombine.high %v476_v24, %v480_v27  ;;  %v16544_v63 = vcombine.high %v477_v28, %v481_v29  ;;  %v528_v17 = vld [vmem:[%s19326_s10 + $0x3b0] sm:$0xff]  ;;  %v525_v18 = vld [vmem:[%s19326_s10 + $0x398] sm:$0xff] }
 0x1b0   : > { %3884 = vmatprep.mubr.bf16.mxu0 %v19391_v9  ;;  %4048 = vmatprep.mubr.bf16.mxu1 %v19391_v9  ;;  %v16503_v9 = vcombine.low %v437_v45, %v441_v46  ;;  %v496_v45 = vld [vmem:[%s19326_s10 + $0x2b0] sm:$0xff]  ;;  %v493_v46 = vld [vmem:[%s19326_s10 + $0x298] sm:$0xff] }
 0x1b2   : > { %3855 = vmatpush1.bf16.msra.mxu0 %v16485_v37  ;;  %4019 = vmatpush1.bf16.msra.mxu1 %v16487_v38  ;;  %v489_v37 = vld [vmem:[%s19326_s10 + $0x278] sm:$0xff]  ;;  %v16541_v38 = vcombine.low %v476_v24, %v480_v27  ;;  %v532_v27 = vld [vmem:[%s19326_s10 + $0x3d0] sm:$0xff] }
 0x1b3   : > { %3856 = vmatprep.subr.bf16.mxu0 %v16494_v39  ;;  %4020 = vmatprep.subr.bf16.mxu1 %v16496_v40  ;;  %v16543_v39 = vcombine.low %v477_v28, %v481_v29  ;;  %v16550_v40 = vcombine.high %v484_v35, %v488_v55  ;;  %v16552_v42 = vcombine.high %v485_v36, %v489_v37  ;;  %v536_v28 = vld [vmem:[%s19326_s10 + $0x3f0] sm:$0xff]  ;;  %v533_v29 = vld [vmem:[%s19326_s10 + $0x3d8] sm:$0xff] }
 0x1b6   : > { %3857 = vmatpush1.bf16.msra.mxu0 %v16493_v47  ;;  %4021 = vmatpush1.bf16.msra.mxu1 %v16495_v48  ;;  %v497_v47 = vld [vmem:[%s19326_s10 + $0x2b8] sm:$0xff]  ;;  %v16549_v48 = vcombine.low %v484_v35, %v488_v55  ;;  %v540_v55 = vld [vmem:[%s19326_s10 + $0x410] sm:$0xff] }
 0x1b7   : > { %3858 = vmatprep.subr.bf16.mxu0 %v16502_v49  ;;  %4022 = vmatprep.subr.bf16.mxu1 %v16504_v50  ;;  %v16551_v49 = vcombine.low %v485_v36, %v489_v37  ;;  %v16558_v50 = vcombine.high %v492_v43, %v496_v45  ;;  %v16560_v16 = vcombine.high %v493_v46, %v497_v47  ;;  %v544_v36 = vld [vmem:[%s19326_s10 + $0x430] sm:$0xff]  ;;  %v541_v37 = vld [vmem:[%s19326_s10 + $0x418] sm:$0xff] }
 0x1ba   : > { %3859 = vmatpush1.bf16.msra.mxu0 %v16501_v56  ;;  %4023 = vmatpush1.bf16.msra.mxu1 %v16503_v9  ;;  %v505_v56 = vld [vmem:[%s19326_s10 + $0x2f8] sm:$0xff]  ;;  %v16557_v9 = vcombine.low %v492_v43, %v496_v45  ;;  %v548_v45 = vld [vmem:[%s19326_s10 + $0x450] sm:$0xff] }
 0x1bb   : > { %3860 = vmatprep.subr.bf16.mxu0 %v16510_v57  ;;  %4024 = vmatprep.subr.bf16.mxu1 %v16512_v58  ;;  %v16559_v57 = vcombine.low %v493_v46, %v497_v47  ;;  %v16566_v58 = vcombine.high %v500_v52, %v504_v54  ;;  %v16568_v60 = vcombine.high %v501_v23, %v505_v56  ;;  %v552_v46 = vld [vmem:[%s19326_s10 + $0x470] sm:$0xff]  ;;  %v549_v47 = vld [vmem:[%s19326_s10 + $0x458] sm:$0xff] }
 0x1be   : > { %3861 = vmatpush1.bf16.msra.mxu0 %v16509_v1  ;;  %4025 = vmatpush1.bf16.msra.mxu1 %v16511_v3  ;;  %v513_v1 = vld [vmem:[%s19326_s10 + $0x338] sm:$0xff]  ;;  %v16565_v3 = vcombine.low %v500_v52, %v504_v54  ;;  %v556_v54 = vld [vmem:[%s19326_s10 + $0x490] sm:$0xff] }
 0x1bf   : > { %3862 = vmatprep.subr.bf16.mxu0 %v16518_v4  ;;  %4026 = vmatprep.subr.bf16.mxu1 %v16520_v5  ;;  %v16567_v4 = vcombine.low %v501_v23, %v505_v56  ;;  %v16574_v5 = vcombine.high %v508_v61, %v512_v62  ;;  %v16576_v6 = vcombine.high %v509_v0, %v513_v1  ;;  %v560_v23 = vld [vmem:[%s19326_s10 + $0x4b0] sm:$0xff]  ;;  %v557_v56 = vld [vmem:[%s19326_s10 + $0x498] sm:$0xff] }
 0x1c2   : > { %3863 = vmatpush1.bf16.msra.mxu0 %v16517_v11  ;;  %4027 = vmatpush1.bf16.msra.mxu1 %v16519_v31  ;;  %v521_v11 = vld [vmem:[%s19326_s10 + $0x378] sm:$0xff]  ;;  %v16573_v31 = vcombine.low %v508_v61, %v512_v62  ;;  %v564_v62 = vld [vmem:[%s19326_s10 + $0x4d0] sm:$0xff] }
 0x1c3   : > { %3864 = vmatprep.subr.bf16.mxu0 %v16526_v13  ;;  %4028 = vmatprep.subr.bf16.mxu1 %v16528_v14  ;;  %v16575_v13 = vcombine.low %v509_v0, %v513_v1  ;;  %v16582_v14 = vcombine.high %v516_v7, %v520_v8  ;;  %v16584_v15 = vcombine.high %v517_v10, %v521_v11  ;;  %v568_v0 = vld [vmem:[%s19326_s10 + $0x4f0] sm:$0xff]  ;;  %v565_v1 = vld [vmem:[%s19326_s10 + $0x4d8] sm:$0xff] }
 0x1c6   : > { %3865 = vmatpush1.bf16.msra.mxu0 %v16525_v19  ;;  %4029 = vmatpush1.bf16.msra.mxu1 %v16527_v20  ;;  %v529_v19 = vld [vmem:[%s19326_s10 + $0x3b8] sm:$0xff]  ;;  %v16581_v20 = vcombine.low %v516_v7, %v520_v8  ;;  %v572_v7 = vld [vmem:[%s19326_s10 + $0x510] sm:$0xff] }
 0x1c7   : > { %3866 = vmatprep.subr.bf16.mxu0 %v16534_v21  ;;  %4030 = vmatprep.subr.bf16.mxu1 %v16536_v22  ;;  %v16583_v21 = vcombine.low %v517_v10, %v521_v11  ;;  %v16590_v22 = vcombine.high %v524_v59, %v528_v17  ;;  %v16592_v24 = vcombine.high %v525_v18, %v529_v19  ;;  %v576_v8 = vld [vmem:[%s19326_s10 + $0x530] sm:$0xff]  ;;  %v573_v10 = vld [vmem:[%s19326_s10 + $0x518] sm:$0xff] }
 0x1c8   : > { %v577_v11 = vld [vmem:[%s19326_s10 + $0x538] sm:$0xff] }
 0x1ca   : > { %3867 = vmatpush1.bf16.msra.mxu0 %v16533_v30  ;;  %4031 = vmatpush1.bf16.msra.mxu1 %v16535_v32  ;;  %v537_v30 = vld [vmem:[%s19326_s10 + $0x3f8] sm:$0xff]  ;;  %v16589_v32 = vcombine.low %v524_v59, %v528_v17  ;;  %v584_v59 = vld [vmem:[%s19326_s10 + $0x570] sm:$0xff] }
 0x1cb   : > { %3868 = vmatprep.subr.bf16.mxu0 %v16542_v33  ;;  %4032 = vmatprep.subr.bf16.mxu1 %v16544_v63  ;;  %v16591_v33 = vcombine.low %v525_v18, %v529_v19  ;;  %v16598_v63 = vcombine.high %v532_v27, %v536_v28  ;;  %v16600_v35 = vcombine.high %v533_v29, %v537_v30  ;;  %v581_v17 = vld [vmem:[%s19326_s10 + $0x558] sm:$0xff] }
 0x1cc   : > { %v585_v18 = vld [vmem:[%s19326_s10 + $0x578] sm:$0xff]  ;;  %v16637_v19 = vcombine.low %v572_v7, %v576_v8 }
 0x1ce   : > { %3869 = vmatpush1.bf16.msra.mxu0 %v16541_v38  ;;  %4033 = vmatpush1.bf16.msra.mxu1 %v16543_v39  ;;  %v545_v38 = vld [vmem:[%s19326_s10 + $0x438] sm:$0xff]  ;;  %v16597_v39 = vcombine.low %v532_v27, %v536_v28  ;;  %v592_v27 = vld [vmem:[%s19326_s10 + $0x5b0] sm:$0xff] }
 0x1cf   : > { %3870 = vmatprep.subr.bf16.mxu0 %v16550_v40  ;;  %4034 = vmatprep.subr.bf16.mxu1 %v16552_v42  ;;  %v16599_v40 = vcombine.low %v533_v29, %v537_v30  ;;  %v16606_v42 = vcombine.high %v540_v55, %v544_v36  ;;  %v16608_v43 = vcombine.high %v541_v37, %v545_v38  ;;  %v589_v28 = vld [vmem:[%s19326_s10 + $0x598] sm:$0xff] }
 0x1d0   : > { %v593_v29 = vld [vmem:[%s19326_s10 + $0x5b8] sm:$0xff] }
 0x1d2   : > { %3871 = vmatpush1.bf16.msra.mxu0 %v16549_v48  ;;  %4035 = vmatpush1.bf16.msra.mxu1 %v16551_v49  ;;  %v553_v48 = vld [vmem:[%s19326_s10 + $0x478] sm:$0xff]  ;;  %v16605_v49 = vcombine.low %v540_v55, %v544_v36  ;;  %v600_v55 = vld [vmem:[%s19326_s10 + $0x5f0] sm:$0xff] }
 0x1d3   : > { %3872 = vmatprep.subr.bf16.mxu0 %v16558_v50  ;;  %4036 = vmatprep.subr.bf16.mxu1 %v16560_v16  ;;  %v16607_v50 = vcombine.low %v541_v37, %v545_v38  ;;  %v16614_v16 = vcombine.high %v548_v45, %v552_v46  ;;  %v16616_v52 = vcombine.high %v549_v47, %v553_v48  ;;  %v597_v36 = vld [vmem:[%s19326_s10 + $0x5d8] sm:$0xff] }
 0x1d4   : > { %v601_v37 = vld [vmem:[%s19326_s10 + $0x5f8] sm:$0xff] }
 0x1d6   : > { %3873 = vmatpush1.bf16.msra.mxu0 %v16557_v9  ;;  %4037 = vmatpush1.bf16.msra.mxu1 %v16559_v57  ;;  %v561_v9 = vld [vmem:[%s19326_s10 + $0x4b8] sm:$0xff]  ;;  %v16613_v57 = vcombine.low %v548_v45, %v552_v46  ;;  %v608_v45 = vld [vmem:[%s19326_s10 + $0x630] sm:$0xff] }
 0x1d7   : > { %3874 = vmatprep.subr.bf16.mxu0 %v16566_v58  ;;  %4038 = vmatprep.subr.bf16.mxu1 %v16568_v60  ;;  %v16615_v58 = vcombine.low %v549_v47, %v553_v48  ;;  %v16622_v60 = vcombine.high %v556_v54, %v560_v23  ;;  %v16624_v61 = vcombine.high %v557_v56, %v561_v9  ;;  %v605_v46 = vld [vmem:[%s19326_s10 + $0x618] sm:$0xff] }
 0x1d8   : > { %v609_v47 = vld [vmem:[%s19326_s10 + $0x638] sm:$0xff] }
 0x1da   : > { %3875 = vmatpush1.bf16.msra.mxu0 %v16565_v3  ;;  %4039 = vmatpush1.bf16.msra.mxu1 %v16567_v4  ;;  %v569_v3 = vld [vmem:[%s19326_s10 + $0x4f8] sm:$0xff]  ;;  %v16623_v4 = vcombine.low %v557_v56, %v561_v9 }
 0x1db   : > { %3876 = vmatprep.subr.bf16.mxu0 %v16574_v5  ;;  %4040 = vmatprep.subr.bf16.mxu1 %v16576_v6  ;;  %v16630_v5 = vcombine.high %v564_v62, %v568_v0  ;;  %v16632_v6 = vcombine.high %v565_v1, %v569_v3  ;;  %v617_v56 = vld [vmem:[%s19326_s10 + $0x678] sm:$0xff] }
 0x1de   : > { %3877 = vmatpush1.bf16.msra.mxu0 %v16573_v31  ;;  %4041 = vmatpush1.bf16.msra.mxu1 %v16575_v13  ;;  %v16629_v31 = vcombine.low %v564_v62, %v568_v0  ;;  %v16638_v13 = vcombine.high %v572_v7, %v576_v8  ;;  %v624_v62 = vld [vmem:[%s19326_s10 + $0x6b0] sm:$0xff]  ;;  %v621_v0 = vld [vmem:[%s19326_s10 + $0x698] sm:$0xff] }
 0x1df   : > { %3878 = vmatprep.subr.bf16.mxu0 %v16582_v14  ;;  %4042 = vmatprep.subr.bf16.mxu1 %v16584_v15  ;;  %v16640_v14 = vcombine.high %v573_v10, %v577_v11  ;;  %v580_v15 = vld [vmem:[%s19326_s10 + $0x550] sm:$0xff]  ;;  %v629_v8 = vld [vmem:[%s19326_s10 + $0x6d8] sm:$0xff] }
 0x1e0   : > { %v16645_v30 = vcombine.low %v580_v15, %v584_v59  ;;  %v632_v7 = vld [vmem:[%s19326_s10 + $0x6f0] sm:$0xff] }
 0x1e2   : > { %3879 = vmatpush1.bf16.msra.mxu0 %v16581_v20  ;;  %4043 = vmatpush1.bf16.msra.mxu1 %v16583_v21  ;;  %v16639_v20 = vcombine.low %v573_v10, %v577_v11  ;;  %v16646_v21 = vcombine.high %v580_v15, %v584_v59  ;;  %v633_v10 = vld [vmem:[%s19326_s10 + $0x6f8] sm:$0xff]  ;;  %v640_v15 = vld [vmem:[%s19326_s10 + $0x730] sm:$0xff] }
 0x1e3   : > { %3880 = vmatprep.subr.bf16.mxu0 %v16590_v22  ;;  %4044 = vmatprep.subr.bf16.mxu1 %v16592_v24  ;;  %v16648_v22 = vcombine.high %v581_v17, %v585_v18  ;;  %v588_v24 = vld [vmem:[%s19326_s10 + $0x590] sm:$0xff]  ;;  %v637_v59 = vld [vmem:[%s19326_s10 + $0x718] sm:$0xff] }
 0x1e4   : > { %v16653_v38 = vcombine.low %v588_v24, %v592_v27 }
 0x1e6   : > { %3881 = vmatpush1.bf16.msra.mxu0 %v16589_v32  ;;  %4045 = vmatpush1.bf16.msra.mxu1 %v16591_v33  ;;  %v16647_v32 = vcombine.low %v581_v17, %v585_v18  ;;  %v16654_v33 = vcombine.high %v588_v24, %v592_v27  ;;  %v641_v17 = vld [vmem:[%s19326_s10 + $0x738] sm:$0xff]  ;;  %v648_v24 = vld [vmem:[%s19326_s10 + $0x770] sm:$0xff] }
 0x1e7   : > { %3882 = vmatprep.subr.bf16.mxu0 %v16598_v63  ;;  %4046 = vmatprep.subr.bf16.mxu1 %v16600_v35  ;;  %v16656_v63 = vcombine.high %v589_v28, %v593_v29  ;;  %v596_v35 = vld [vmem:[%s19326_s10 + $0x5d0] sm:$0xff]  ;;  %v645_v27 = vld [vmem:[%s19326_s10 + $0x758] sm:$0xff] }
 0x1e8   : > { %v16661_v48 = vcombine.low %v596_v35, %v600_v55 }
 0x1ea   : > { %3883 = vmatpush1.bf16.msra.mxu0 %v16597_v39  ;;  %4047 = vmatpush1.bf16.msra.mxu1 %v16599_v40  ;;  %v16655_v39 = vcombine.low %v589_v28, %v593_v29  ;;  %v16662_v40 = vcombine.high %v596_v35, %v600_v55  ;;  %v649_v28 = vld [vmem:[%s19326_s10 + $0x778] sm:$0xff]  ;;  %v656_v35 = vld [vmem:[%s19326_s10 + $0x7b0] sm:$0xff] }
 0x1eb   : > { %3893 = vmatprep.subr.bf16.mxu0 %v16606_v42  ;;  %4057 = vmatprep.subr.bf16.mxu1 %v16608_v43  ;;  %v16664_v42 = vcombine.high %v597_v36, %v601_v37  ;;  %v604_v43 = vld [vmem:[%s19326_s10 + $0x610] sm:$0xff]  ;;  %v653_v55 = vld [vmem:[%s19326_s10 + $0x798] sm:$0xff] }
 0x1ec   : > { %v16669_v9 = vcombine.low %v604_v43, %v608_v45 }
 0x1ed   : > { %3885 = vmatmul.mubr.bf16.vlgmr.msra.gmra.mrb[4].mxu0 %v19440_v25  ;;  %4049 = vmatmul.mubr.bf16.vlgmr.msra.gmra.mrb[4].mxu1 %v19440_v25  ;;  %v16621_v25 = vcombine.low %v556_v54, %v560_v23  ;;  %v616_v54 = vld [vmem:[%s19326_s10 + $0x670] sm:$0xff]  ;;  %v613_v23 = vld [vmem:[%s19326_s10 + $0x658] sm:$0xff] }
 0x1ee   : > { %3894 = vmatpush1.bf16.msra.mxu0 %v16605_v49  ;;  %4058 = vmatpush1.bf16.msra.mxu1 %v16607_v50  ;;  %v16663_v49 = vcombine.low %v597_v36, %v601_v37  ;;  %v16670_v50 = vcombine.high %v604_v43, %v608_v45  ;;  %v657_v36 = vld [vmem:[%s19326_s10 + $0x7b8] sm:$0xff]  ;;  %v664_v43 = vld [vmem:[%s19326_s10 + $0x7f0] sm:$0xff] }
 0x1ef   : > { %3895 = vmatprep.subr.bf16.mxu0 %v16614_v16  ;;  %4059 = vmatprep.subr.bf16.mxu1 %v16616_v52  ;;  %v16672_v16 = vcombine.high %v605_v46, %v609_v47  ;;  %v612_v52 = vld [vmem:[%s19326_s10 + $0x650] sm:$0xff]  ;;  %v661_v45 = vld [vmem:[%s19326_s10 + $0x7d8] sm:$0xff] }
 0x1f0   : > { %3925 = vmatprep.mubr.bf16.mxu0 %v19446_v34  ;;  %4089 = vmatprep.mubr.bf16.mxu1 %v19446_v34  ;;  %v16631_v34 = vcombine.low %v565_v1, %v569_v3  ;;  %v625_v1 = vld [vmem:[%s19326_s10 + $0x6b8] sm:$0xff]  ;;  %v16677_v3 = vcombine.low %v612_v52, %v616_v54 }
 0x1f2   : > { %3896 = vmatpush1.bf16.msra.mxu0 %v16613_v57  ;;  %4060 = vmatpush1.bf16.msra.mxu1 %v16615_v58  ;;  %v16671_v57 = vcombine.low %v605_v46, %v609_v47  ;;  %v16678_v58 = vcombine.high %v612_v52, %v616_v54  ;;  %v665_v46 = vld [vmem:[%s19326_s10 + $0x7f8] sm:$0xff]  ;;  %v672_v52 = vld [vmem:[%s19326_s10 + $0x830] sm:$0xff] }
 0x1f3   : > { %3897 = vmatprep.subr.bf16.mxu0 %v16622_v60  ;;  %4061 = vmatprep.subr.bf16.mxu1 %v16624_v61  ;;  %v16680_v60 = vcombine.high %v613_v23, %v617_v56  ;;  %v620_v61 = vld [vmem:[%s19326_s10 + $0x690] sm:$0xff]  ;;  %v669_v54 = vld [vmem:[%s19326_s10 + $0x818] sm:$0xff] }
 0x1f4   : > { %v16685_v11 = vcombine.low %v620_v61, %v624_v62 }
 0x1f6   : > { %3898 = vmatpush1.bf16.msra.mxu0 %v16621_v25  ;;  %4062 = vmatpush1.bf16.msra.mxu1 %v16623_v4  ;;  %v16679_v25 = vcombine.low %v613_v23, %v617_v56  ;;  %v16686_v4 = vcombine.high %v620_v61, %v624_v62  ;;  %v673_v23 = vld [vmem:[%s19326_s10 + $0x838] sm:$0xff]  ;;  %v680_v61 = vld [vmem:[%s19326_s10 + $0x870] sm:$0xff] }
 0x1f7   : > { %3899 = vmatprep.subr.bf16.mxu0 %v16630_v5  ;;  %4063 = vmatprep.subr.bf16.mxu1 %v16632_v6  ;;  %v16688_v5 = vcombine.high %v621_v0, %v625_v1  ;;  %v628_v6 = vld [vmem:[%s19326_s10 + $0x6d0] sm:$0xff]  ;;  %v677_v62 = vld [vmem:[%s19326_s10 + $0x858] sm:$0xff] }
 0x1f8   : > { %v16693_v18 = vcombine.low %v628_v6, %v632_v7 }
 0x1fa   : > { %3900 = vmatpush1.bf16.msra.mxu0 %v16629_v31  ;;  %4064 = vmatpush1.bf16.msra.mxu1 %v16631_v34  ;;  %v16687_v31 = vcombine.low %v621_v0, %v625_v1  ;;  %v16694_v34 = vcombine.high %v628_v6, %v632_v7  ;;  %v681_v0 = vld [vmem:[%s19326_s10 + $0x878] sm:$0xff]  ;;  %v688_v6 = vld [vmem:[%s19326_s10 + $0x8b0] sm:$0xff] }
 0x1fb   : > { %3901 = vmatprep.subr.bf16.mxu0 %v16638_v13  ;;  %4065 = vmatprep.subr.bf16.mxu1 %v16640_v14  ;;  %v16696_v13 = vcombine.high %v629_v8, %v633_v10  ;;  %v636_v14 = vld [vmem:[%s19326_s10 + $0x710] sm:$0xff]  ;;  %v685_v7 = vld [vmem:[%s19326_s10 + $0x898] sm:$0xff] }
 0x1fc   : > { %v16701_v29 = vcombine.low %v636_v14, %v640_v15 }
 0x1fe   : > { %3902 = vmatpush1.bf16.msra.mxu0 %v16637_v19  ;;  %4066 = vmatpush1.bf16.msra.mxu1 %v16639_v20  ;;  %v16695_v19 = vcombine.low %v629_v8, %v633_v10  ;;  %v16702_v20 = vcombine.high %v636_v14, %v640_v15  ;;  %v689_v8 = vld [vmem:[%s19326_s10 + $0x8b8] sm:$0xff]  ;;  %v696_v14 = vld [vmem:[%s19326_s10 + $0x8f0] sm:$0xff] }
 0x1ff   : > { %3903 = vmatprep.subr.bf16.mxu0 %v16646_v21  ;;  %4067 = vmatprep.subr.bf16.mxu1 %v16648_v22  ;;  %v16704_v21 = vcombine.high %v637_v59, %v641_v17  ;;  %v644_v22 = vld [vmem:[%s19326_s10 + $0x750] sm:$0xff]  ;;  %v693_v15 = vld [vmem:[%s19326_s10 + $0x8d8] sm:$0xff] }
 0x200   : > { %v16709_v37 = vcombine.low %v644_v22, %v648_v24 }
 0x202   : > { %3904 = vmatpush1.bf16.msra.mxu0 %v16645_v30  ;;  %4068 = vmatpush1.bf16.msra.mxu1 %v16647_v32  ;;  %v16703_v30 = vcombine.low %v637_v59, %v641_v17  ;;  %v16710_v32 = vcombine.high %v644_v22, %v648_v24  ;;  %v697_v59 = vld [vmem:[%s19326_s10 + $0x8f8] sm:$0xff]  ;;  %v16751_v17 = vcombine.low %v685_v7, %v689_v8 }
 0x203   : > { %3905 = vmatprep.subr.bf16.mxu0 %v16654_v33  ;;  %4069 = vmatprep.subr.bf16.mxu1 %v16656_v63  ;;  %v16712_v33 = vcombine.high %v645_v27, %v649_v28  ;;  %v652_v63 = vld [vmem:[%s19326_s10 + $0x790] sm:$0xff]  ;;  %v701_v22 = vld [vmem:[%s19326_s10 + $0x918] sm:$0xff] }
 0x204   : > { %v16717_v47 = vcombine.low %v652_v63, %v656_v35  ;;  %v705_v24 = vld [vmem:[%s19326_s10 + $0x938] sm:$0xff] }
 0x206   : > { %3906 = vmatpush1.bf16.msra.mxu0 %v16653_v38  ;;  %4070 = vmatpush1.bf16.msra.mxu1 %v16655_v39  ;;  %v16711_v38 = vcombine.low %v645_v27, %v649_v28  ;;  %v16718_v39 = vcombine.high %v652_v63, %v656_v35  ;;  %v713_v63 = vld [vmem:[%s19326_s10 + $0x978] sm:$0xff] }
 0x207   : > { %3907 = vmatprep.subr.bf16.mxu0 %v16662_v40  ;;  %4071 = vmatprep.subr.bf16.mxu1 %v16664_v42  ;;  %v16720_v40 = vcombine.high %v653_v55, %v657_v36  ;;  %v660_v42 = vld [vmem:[%s19326_s10 + $0x7d0] sm:$0xff] }
 0x208   : > { %v16725_v56 = vcombine.low %v660_v42, %v664_v43 }
 0x20a   : > { %3908 = vmatpush1.bf16.msra.mxu0 %v16661_v48  ;;  %4072 = vmatpush1.bf16.msra.mxu1 %v16663_v49  ;;  %v16719_v48 = vcombine.low %v653_v55, %v657_v36  ;;  %v16726_v49 = vcombine.high %v660_v42, %v664_v43  ;;  %v16767_v55 = vcombine.low %v701_v22, %v705_v24  ;;  %v721_v42 = vld [vmem:[%s19326_s10 + $0x9b8] sm:$0xff] }
 0x20b   : > { %3909 = vmatprep.subr.bf16.mxu0 %v16670_v50  ;;  %4073 = vmatprep.subr.bf16.mxu1 %v16672_v16  ;;  %v16728_v50 = vcombine.high %v661_v45, %v665_v46  ;;  %v668_v16 = vld [vmem:[%s19326_s10 + $0x810] sm:$0xff] }
 0x20c   : > { %v16733_v1 = vcombine.low %v668_v16, %v672_v52 }
 0x20e   : > { %3910 = vmatpush1.bf16.msra.mxu0 %v16669_v9  ;;  %4074 = vmatpush1.bf16.msra.mxu1 %v16671_v57  ;;  %v16727_v9 = vcombine.low %v661_v45, %v665_v46  ;;  %v16734_v57 = vcombine.high %v668_v16, %v672_v52  ;;  %v729_v16 = vld [vmem:[%s19326_s10 + $0x9f8] sm:$0xff] }
 0x20f   : > { %3911 = vmatprep.subr.bf16.mxu0 %v16678_v58  ;;  %4075 = vmatprep.subr.bf16.mxu1 %v16680_v60  ;;  %v16736_v58 = vcombine.high %v669_v54, %v673_v23  ;;  %v676_v60 = vld [vmem:[%s19326_s10 + $0x850] sm:$0xff] }
 0x210   : > { %v16741_v10 = vcombine.low %v676_v60, %v680_v61 }
 0x212   : > { %3912 = vmatpush1.bf16.msra.mxu0 %v16677_v3  ;;  %4076 = vmatpush1.bf16.msra.mxu1 %v16679_v25  ;;  %v16735_v3 = vcombine.low %v669_v54, %v673_v23  ;;  %v16742_v25 = vcombine.high %v676_v60, %v680_v61  ;;  %v737_v60 = vld [vmem:[%s19326_s10 + $0xa38] sm:$0xff] }
 0x213   : > { %3913 = vmatprep.subr.bf16.mxu0 %v16686_v4  ;;  %4077 = vmatprep.subr.bf16.mxu1 %v16688_v5  ;;  %v16744_v4 = vcombine.high %v677_v62, %v681_v0  ;;  %v684_v5 = vld [vmem:[%s19326_s10 + $0x890] sm:$0xff] }
 0x216   : > { %3914 = vmatpush1.bf16.msra.mxu0 %v16685_v11  ;;  %4078 = vmatpush1.bf16.msra.mxu1 %v16687_v31  ;;  %v16743_v11 = vcombine.low %v677_v62, %v681_v0  ;;  %v16750_v31 = vcombine.high %v684_v5, %v688_v6 }
 0x217   : > { %3915 = vmatprep.subr.bf16.mxu0 %v16694_v34  ;;  %4079 = vmatprep.subr.bf16.mxu1 %v16696_v13  ;;  %v16752_v34 = vcombine.high %v685_v7, %v689_v8  ;;  %v692_v13 = vld [vmem:[%s19326_s10 + $0x8d0] sm:$0xff] }
 0x218   : > { %v16757_v27 = vcombine.low %v692_v13, %v696_v14 }
 0x21a   : > { %3916 = vmatpush1.bf16.msra.mxu0 %v16693_v18  ;;  %4080 = vmatpush1.bf16.msra.mxu1 %v16695_v19  ;;  %v16758_v18 = vcombine.high %v692_v13, %v696_v14  ;;  %v16760_v19 = vcombine.high %v693_v15, %v697_v59  ;;  %v753_v13 = vld [vmem:[%s19326_s10 + $0xab8] sm:$0xff] }
 0x21b   : > { %3917 = vmatprep.subr.bf16.mxu0 %v16702_v20  ;;  %4081 = vmatprep.subr.bf16.mxu1 %v16704_v21  ;;  %v700_v20 = vld [vmem:[%s19326_s10 + $0x910] sm:$0xff] }
 0x21c   : > { %v704_v21 = vld [vmem:[%s19326_s10 + $0x930] sm:$0xff] }
 0x21d   : > { %v16766_v28 = vcombine.high %v700_v20, %v704_v21  ;;  %v16765_v35 = vcombine.low %v700_v20, %v704_v21  ;;  %v761_v20 = vld [vmem:[%s19326_s10 + $0xaf8] sm:$0xff] }
 0x21e   : > { %3918 = vmatpush1.bf16.msra.mxu0 %v16701_v29  ;;  %4082 = vmatpush1.bf16.msra.mxu1 %v16703_v30  ;;  %v16768_v29 = vcombine.high %v701_v22, %v705_v24  ;;  %v708_v30 = vld [vmem:[%s19326_s10 + $0x950] sm:$0xff] }
 0x21f   : > { %3919 = vmatprep.subr.bf16.mxu0 %v16710_v32  ;;  %4083 = vmatprep.subr.bf16.mxu1 %v16712_v33  ;;  %v712_v32 = vld [vmem:[%s19326_s10 + $0x970] sm:$0xff]  ;;  %v709_v33 = vld [vmem:[%s19326_s10 + $0x958] sm:$0xff] }
 0x220   : > { %v16774_v36 = vcombine.high %v708_v30, %v712_v32  ;;  %v16773_v43 = vcombine.low %v708_v30, %v712_v32  ;;  %v16775_v45 = vcombine.low %v709_v33, %v713_v63  ;;  %v769_v30 = vld [vmem:[%s19326_s10 + $0xb38] sm:$0xff] }
 0x222   : > { %3920 = vmatpush1.bf16.msra.mxu0 %v16709_v37  ;;  %4084 = vmatpush1.bf16.msra.mxu1 %v16711_v38  ;;  %v16776_v37 = vcombine.high %v709_v33, %v713_v63  ;;  %v716_v38 = vld [vmem:[%s19326_s10 + $0x990] sm:$0xff] }
 0x223   : > { %3921 = vmatprep.subr.bf16.mxu0 %v16718_v39  ;;  %4085 = vmatprep.subr.bf16.mxu1 %v16720_v40  ;;  %v720_v39 = vld [vmem:[%s19326_s10 + $0x9b0] sm:$0xff]  ;;  %v717_v40 = vld [vmem:[%s19326_s10 + $0x998] sm:$0xff] }
 0x224   : > { %v16782_v46 = vcombine.high %v716_v38, %v720_v39  ;;  %v16781_v52 = vcombine.low %v716_v38, %v720_v39  ;;  %v16783_v54 = vcombine.low %v717_v40, %v721_v42  ;;  %v777_v38 = vld [vmem:[%s19326_s10 + $0xb78] sm:$0xff] }
 0x226   : > { %3922 = vmatpush1.bf16.msra.mxu0 %v16717_v47  ;;  %4086 = vmatpush1.bf16.msra.mxu1 %v16719_v48  ;;  %v16784_v47 = vcombine.high %v717_v40, %v721_v42  ;;  %v724_v48 = vld [vmem:[%s19326_s10 + $0x9d0] sm:$0xff] }
 0x227   : > { %3923 = vmatprep.subr.bf16.mxu0 %v16726_v49  ;;  %4087 = vmatprep.subr.bf16.mxu1 %v16728_v50  ;;  %v728_v49 = vld [vmem:[%s19326_s10 + $0x9f0] sm:$0xff]  ;;  %v725_v50 = vld [vmem:[%s19326_s10 + $0x9d8] sm:$0xff] }
 0x228   : > { %v16790_v23 = vcombine.high %v724_v48, %v728_v49  ;;  %v16789_v61 = vcombine.low %v724_v48, %v728_v49  ;;  %v16791_v62 = vcombine.low %v725_v50, %v729_v16  ;;  %v785_v48 = vld [vmem:[%s19326_s10 + $0xbb8] sm:$0xff] }
 0x22a   : > { %3924 = vmatpush1.bf16.msra.mxu0 %v16725_v56  ;;  %4088 = vmatpush1.bf16.msra.mxu1 %v16727_v9  ;;  %v16792_v56 = vcombine.high %v725_v50, %v729_v16  ;;  %v732_v9 = vld [vmem:[%s19326_s10 + $0xa10] sm:$0xff] }
 0x22b   : > { %3934 = vmatprep.subr.bf16.mxu0 %v16734_v57  ;;  %4098 = vmatprep.subr.bf16.mxu1 %v16736_v58  ;;  %v736_v57 = vld [vmem:[%s19326_s10 + $0xa30] sm:$0xff]  ;;  %v733_v58 = vld [vmem:[%s19326_s10 + $0xa18] sm:$0xff] }
 0x22c   : > { %v16798_v0 = vcombine.high %v732_v9, %v736_v57  ;;  %v16799_v7 = vcombine.low %v733_v58, %v737_v60 }
 0x22d   : > { %3926 = vmatmul.mubr.bf16.vlgmr.msra.gmra.mrb[4].mxu0 %v19522_v41  ;;  %4090 = vmatmul.mubr.bf16.vlgmr.msra.gmra.mrb[4].mxu1 %v19522_v41  ;;  %v16749_v41 = vcombine.low %v684_v5, %v688_v6  ;;  %v745_v5 = vld [vmem:[%s19326_s10 + $0xa78] sm:$0xff]  ;;  %v16797_v6 = vcombine.low %v732_v9, %v736_v57 }
 0x22e   : > { %3935 = vmatpush1.bf16.msra.mxu0 %v16733_v1  ;;  %4099 = vmatpush1.bf16.msra.mxu1 %v16735_v3  ;;  %v16800_v1 = vcombine.high %v733_v58, %v737_v60  ;;  %v740_v3 = vld [vmem:[%s19326_s10 + $0xa50] sm:$0xff]  ;;  %v793_v9 = vld [vmem:[%s19326_s10 + $0xbf8] sm:$0xff] }
 0x22f   : > { %3936 = vmatprep.subr.bf16.mxu0 %v16742_v25  ;;  %4100 = vmatprep.subr.bf16.mxu1 %v16744_v4  ;;  %v744_v25 = vld [vmem:[%s19326_s10 + $0xa70] sm:$0xff]  ;;  %v741_v4 = vld [vmem:[%s19326_s10 + $0xa58] sm:$0xff] }
 0x230   : > { %3966 = vmatprep.mubr.bf16.mxu0 %v19528_v51  ;;  %4130 = vmatprep.mubr.bf16.mxu1 %v19528_v51  ;;  %v16759_v51 = vcombine.low %v693_v15, %v697_v59  ;;  %v16806_v8 = vcombine.high %v740_v3, %v744_v25  ;;  %v16805_v14 = vcombine.low %v740_v3, %v744_v25  ;;  %v801_v3 = vld [vmem:[%s19326_s10 + $0xc38] sm:$0xff] }
 0x231   : > { %v16807_v15 = vcombine.low %v741_v4, %v745_v5 }
 0x232   : > { %3937 = vmatpush1.bf16.msra.mxu0 %v16741_v10  ;;  %4101 = vmatpush1.bf16.msra.mxu1 %v16743_v11  ;;  %v16808_v10 = vcombine.high %v741_v4, %v745_v5  ;;  %v748_v11 = vld [vmem:[%s19326_s10 + $0xa90] sm:$0xff] }
 0x233   : > { %3938 = vmatprep.subr.bf16.mxu0 %v16750_v31  ;;  %4102 = vmatprep.subr.bf16.mxu1 %v16752_v34  ;;  %v752_v31 = vld [vmem:[%s19326_s10 + $0xab0] sm:$0xff]  ;;  %v749_v34 = vld [vmem:[%s19326_s10 + $0xa98] sm:$0xff] }
 0x234   : > { %v16814_v59 = vcombine.high %v748_v11, %v752_v31  ;;  %v16813_v21 = vcombine.low %v748_v11, %v752_v31  ;;  %v16815_v22 = vcombine.low %v749_v34, %v753_v13  ;;  %v809_v11 = vld [vmem:[%s19326_s10 + $0xc78] sm:$0xff] }
 0x236   : > { %3939 = vmatpush1.bf16.msra.mxu0 %v16749_v41  ;;  %4103 = vmatpush1.bf16.msra.mxu1 %v16751_v17  ;;  %v16816_v41 = vcombine.high %v749_v34, %v753_v13  ;;  %v756_v17 = vld [vmem:[%s19326_s10 + $0xad0] sm:$0xff] }
 0x237   : > { %3940 = vmatprep.subr.bf16.mxu0 %v16758_v18  ;;  %4104 = vmatprep.subr.bf16.mxu1 %v16760_v19  ;;  %v760_v18 = vld [vmem:[%s19326_s10 + $0xaf0] sm:$0xff]  ;;  %v757_v19 = vld [vmem:[%s19326_s10 + $0xad8] sm:$0xff] }
 0x238   : > { %v16822_v24 = vcombine.high %v756_v17, %v760_v18  ;;  %v16821_v32 = vcombine.low %v756_v17, %v760_v18  ;;  %v16823_v33 = vcombine.low %v757_v19, %v761_v20  ;;  %v817_v17 = vld [vmem:[%s19326_s10 + $0xcb8] sm:$0xff] }
 0x23a   : > { %3941 = vmatpush1.bf16.msra.mxu0 %v16757_v27  ;;  %4105 = vmatpush1.bf16.msra.mxu1 %v16759_v51  ;;  %v16824_v27 = vcombine.high %v757_v19, %v761_v20  ;;  %v764_v51 = vld [vmem:[%s19326_s10 + $0xb10] sm:$0xff] }
 0x23b   : > { %3942 = vmatprep.subr.bf16.mxu0 %v16766_v28  ;;  %4106 = vmatprep.subr.bf16.mxu1 %v16768_v29  ;;  %v768_v28 = vld [vmem:[%s19326_s10 + $0xb30] sm:$0xff]  ;;  %v765_v29 = vld [vmem:[%s19326_s10 + $0xb18] sm:$0xff] }
 0x23c   : > { %v16830_v63 = vcombine.high %v764_v51, %v768_v28  ;;  %v16829_v39 = vcombine.low %v764_v51, %v768_v28  ;;  %v16831_v40 = vcombine.low %v765_v29, %v769_v30  ;;  %v825_v51 = vld [vmem:[%s19326_s10 + $0xcf8] sm:$0xff] }
 0x23e   : > { %3943 = vmatpush1.bf16.msra.mxu0 %v16765_v35  ;;  %4107 = vmatpush1.bf16.msra.mxu1 %v16767_v55  ;;  %v16832_v35 = vcombine.high %v765_v29, %v769_v30  ;;  %v772_v55 = vld [vmem:[%s19326_s10 + $0xb50] sm:$0xff] }
 0x23f   : > { %3944 = vmatprep.subr.bf16.mxu0 %v16774_v36  ;;  %4108 = vmatprep.subr.bf16.mxu1 %v16776_v37  ;;  %v776_v36 = vld [vmem:[%s19326_s10 + $0xb70] sm:$0xff]  ;;  %v773_v37 = vld [vmem:[%s19326_s10 + $0xb58] sm:$0xff] }
 0x240   : > { %v16838_v42 = vcombine.high %v772_v55, %v776_v36  ;;  %v16837_v49 = vcombine.low %v772_v55, %v776_v36  ;;  %v16839_v50 = vcombine.low %v773_v37, %v777_v38 }
 0x242   : > { %3945 = vmatpush1.bf16.msra.mxu0 %v16773_v43  ;;  %4109 = vmatpush1.bf16.msra.mxu1 %v16775_v45  ;;  %v16840_v43 = vcombine.high %v773_v37, %v777_v38  ;;  %v780_v45 = vld [vmem:[%s19326_s10 + $0xb90] sm:$0xff] }
 0x243   : > { %3946 = vmatprep.subr.bf16.mxu0 %v16782_v46  ;;  %4110 = vmatprep.subr.bf16.mxu1 %v16784_v47  ;;  %v784_v46 = vld [vmem:[%s19326_s10 + $0xbb0] sm:$0xff]  ;;  %v781_v47 = vld [vmem:[%s19326_s10 + $0xb98] sm:$0xff] }
 0x244   : > { %v16846_v16 = vcombine.high %v780_v45, %v784_v46  ;;  %v16845_v57 = vcombine.low %v780_v45, %v784_v46  ;;  %v16847_v58 = vcombine.low %v781_v47, %v785_v48  ;;  %v836_v38 = vld [vmem:[%s19326_s10 + $0xd50] sm:$0xff]  ;;  %v19907_v46 = vld [vmem:[%s19332_s9] sm:$0xff] }
 0x246   : > { %3947 = vmatpush1.bf16.msra.mxu0 %v16781_v52  ;;  %4111 = vmatpush1.bf16.msra.mxu1 %v16783_v54  ;;  %v16848_v52 = vcombine.high %v781_v47, %v785_v48  ;;  %v788_v54 = vld [vmem:[%s19326_s10 + $0xbd0] sm:$0xff]  ;;  %v934_v47 = vsub.s32 2, %v19366_v44  ;;  %v930_v48 = vsub.s32 1, %v19366_v44 }
 0x247   : > { %3948 = vmatprep.subr.bf16.mxu0 %v16790_v23  ;;  %4112 = vmatprep.subr.bf16.mxu1 %v16792_v56  ;;  %v792_v23 = vld [vmem:[%s19326_s10 + $0xbf0] sm:$0xff]  ;;  %v789_v56 = vld [vmem:[%s19326_s10 + $0xbd8] sm:$0xff] }
 0x248   : > { %v16854_v60 = vcombine.high %v788_v54, %v792_v23  ;;  %v16853_v25 = vcombine.low %v788_v54, %v792_v23  ;;  %v16855_v4 = vcombine.low %v789_v56, %v793_v9  ;;  %v844_v54 = vld [vmem:[%s19326_s10 + $0xd90] sm:$0xff] }
 0x249   : > { %v848_v23 = vld [vmem:[%s19326_s10 + $0xdb0] sm:$0xff] }
 0x24a   : > { %3949 = vmatpush1.bf16.msra.mxu0 %v16789_v61  ;;  %4113 = vmatpush1.bf16.msra.mxu1 %v16791_v62  ;;  %v16856_v61 = vcombine.high %v789_v56, %v793_v9  ;;  %v796_v62 = vld [vmem:[%s19326_s10 + $0xc10] sm:$0xff]  ;;  %v845_v9 = vld [vmem:[%s19326_s10 + $0xd98] sm:$0xff] }
 0x24b   : > { %3950 = vmatprep.subr.bf16.mxu0 %v16798_v0  ;;  %4114 = vmatprep.subr.bf16.mxu1 %v16800_v1  ;;  %v800_v0 = vld [vmem:[%s19326_s10 + $0xc30] sm:$0xff]  ;;  %v797_v1 = vld [vmem:[%s19326_s10 + $0xc18] sm:$0xff] }
 0x24c   : > { %v16862_v5 = vcombine.high %v796_v62, %v800_v0  ;;  %v16861_v31 = vcombine.low %v796_v62, %v800_v0  ;;  %v16863_v34 = vcombine.low %v797_v1, %v801_v3 }
 0x24e   : > { %3951 = vmatpush1.bf16.msra.mxu0 %v16797_v6  ;;  %4115 = vmatpush1.bf16.msra.mxu1 %v16799_v7  ;;  %v16864_v6 = vcombine.high %v797_v1, %v801_v3  ;;  %v804_v7 = vld [vmem:[%s19326_s10 + $0xc50] sm:$0xff]  ;;  %v16910_v1 = vcombine.high %v844_v54, %v848_v23 }
 0x24f   : > { %3952 = vmatprep.subr.bf16.mxu0 %v16806_v8  ;;  %4116 = vmatprep.subr.bf16.mxu1 %v16808_v10  ;;  %v808_v8 = vld [vmem:[%s19326_s10 + $0xc70] sm:$0xff]  ;;  %v805_v10 = vld [vmem:[%s19326_s10 + $0xc58] sm:$0xff] }
 0x250   : > { %v16870_v13 = vcombine.high %v804_v7, %v808_v8  ;;  %v16869_v18 = vcombine.low %v804_v7, %v808_v8  ;;  %v16871_v19 = vcombine.low %v805_v10, %v809_v11 }
 0x252   : > { %3953 = vmatpush1.bf16.msra.mxu0 %v16805_v14  ;;  %4117 = vmatpush1.bf16.msra.mxu1 %v16807_v15  ;;  %v16872_v14 = vcombine.high %v805_v10, %v809_v11  ;;  %v812_v15 = vld [vmem:[%s19326_s10 + $0xc90] sm:$0xff]  ;;  %v853_v10 = vld [vmem:[%s19326_s10 + $0xdd8] sm:$0xff] }
 0x253   : > { %3954 = vmatprep.subr.bf16.mxu0 %v16814_v59  ;;  %4118 = vmatprep.subr.bf16.mxu1 %v16816_v41  ;;  %v816_v59 = vld [vmem:[%s19326_s10 + $0xcb0] sm:$0xff]  ;;  %v813_v41 = vld [vmem:[%s19326_s10 + $0xc98] sm:$0xff] }
 0x254   : > { %v16878_v20 = vcombine.high %v812_v15, %v816_v59  ;;  %v16879_v28 = vcombine.low %v813_v41, %v817_v17  ;;  %v857_v11 = vld [vmem:[%s19326_s10 + $0xdf8] sm:$0xff] }
 0x256   : > { %3955 = vmatpush1.bf16.msra.mxu0 %v16813_v21  ;;  %4119 = vmatpush1.bf16.msra.mxu1 %v16815_v22  ;;  %v16880_v21 = vcombine.high %v813_v41, %v817_v17  ;;  %v820_v22 = vld [vmem:[%s19326_s10 + $0xcd0] sm:$0xff] }
 0x257   : > { %3956 = vmatprep.subr.bf16.mxu0 %v16822_v24  ;;  %4120 = vmatprep.subr.bf16.mxu1 %v16824_v27  ;;  %v824_v24 = vld [vmem:[%s19326_s10 + $0xcf0] sm:$0xff]  ;;  %v821_v27 = vld [vmem:[%s19326_s10 + $0xcd8] sm:$0xff] }
 0x258   : > { %v16886_v29 = vcombine.high %v820_v22, %v824_v24  ;;  %v16888_v30 = vcombine.high %v821_v27, %v825_v51  ;;  %v16885_v55 = vcombine.low %v820_v22, %v824_v24  ;;  %v16920_v22 = vcombine.high %v853_v10, %v857_v11  ;;  %v860_v24 = vld [vmem:[%s19326_s10 + $0xe10] sm:$0xff] }
 0x25a   : > { %3957 = vmatpush1.bf16.msra.mxu0 %v16821_v32  ;;  %4121 = vmatpush1.bf16.msra.mxu1 %v16823_v33  ;;  %v828_v32 = vld [vmem:[%s19326_s10 + $0xd10] sm:$0xff] }
 0x25b   : > { %3958 = vmatprep.subr.bf16.mxu0 %v16830_v63  ;;  %4122 = vmatprep.subr.bf16.mxu1 %v16832_v35  ;;  %v832_v33 = vld [vmem:[%s19326_s10 + $0xd30] sm:$0xff]  ;;  %v829_v63 = vld [vmem:[%s19326_s10 + $0xd18] sm:$0xff] }
 0x25c   : > { %v833_v35 = vld [vmem:[%s19326_s10 + $0xd38] sm:$0xff]  ;;  %v16894_v36 = vcombine.high %v828_v32, %v832_v33  ;;  %v16893_v45 = vcombine.low %v828_v32, %v832_v33  ;;  %v16919_v33 = vcombine.low %v853_v10, %v857_v11  ;;  %v904_v10 = vld [vmem:[%s19326_s10 + $0xf70] sm:$0xff] }
 0x25d   : > { %v16896_v37 = vcombine.high %v829_v63, %v833_v35  ;;  %v901_v11 = vld [vmem:[%s19326_s10 + $0xf58] sm:$0xff] }
 0x25e   : > { %3959 = vmatpush1.bf16.msra.mxu0 %v16829_v39  ;;  %4123 = vmatpush1.bf16.msra.mxu1 %v16831_v40  ;;  %v840_v39 = vld [vmem:[%s19326_s10 + $0xd70] sm:$0xff]  ;;  %v926_v40 = vsub.s32 0, %v19366_v44 }
 0x25f   : > { %3960 = vmatprep.subr.bf16.mxu0 %v16838_v42  ;;  %4124 = vmatprep.subr.bf16.mxu1 %v16840_v43  ;;  %v837_v42 = vld [vmem:[%s19326_s10 + $0xd58] sm:$0xff] }
 0x260   : > { %v841_v43 = vld [vmem:[%s19326_s10 + $0xd78] sm:$0xff]  ;;  %v927_v56 = vrot.slane %v19907_v46, %v926_v40 }
 0x261   : > { %v16903_v0 = vcombine.low %v837_v42, %v841_v43 }
 0x262   : > { %3961 = vmatpush1.bf16.msra.mxu0 %v16837_v49  ;;  %4125 = vmatpush1.bf16.msra.mxu1 %v16839_v50  ;;  %v16895_v49 = vcombine.low %v829_v63, %v833_v35  ;;  %v938_v50 = vsub.s32 3, %v19366_v44 }
 0x263   : > { %3962 = vmatprep.subr.bf16.mxu0 %v16846_v16  ;;  %4126 = vmatprep.subr.bf16.mxu1 %v16848_v52  ;;  %v16902_v16 = vcombine.high %v836_v38, %v840_v39  ;;  %v16904_v52 = vcombine.high %v837_v42, %v841_v43 }
 0x264   : > { %v939_v62 = vrot.slane %v19907_v46, %v938_v50 }
 0x266   : > { %3963 = vmatpush1.bf16.msra.mxu0 %v16845_v57  ;;  %4127 = vmatpush1.bf16.msra.mxu1 %v16847_v58  ;;  %v849_v57 = vld [vmem:[%s19326_s10 + $0xdb8] sm:$0xff]  ;;  %v935_v58 = vrot.slane %v19907_v46, %v934_v47  ;;  %v880_v47 = vld [vmem:[%s19326_s10 + $0xeb0] sm:$0xff] }
 0x267   : > { %3964 = vmatprep.subr.bf16.mxu0 %v16854_v60  ;;  %4128 = vmatprep.subr.bf16.mxu1 %v16856_v61  ;;  %v931_v60 = vrot.slane %v19907_v46, %v930_v48  ;;  %v16901_v61 = vcombine.low %v836_v38, %v840_v39  ;;  %v873_v38 = vld [vmem:[%s19326_s10 + $0xe78] sm:$0xff] }
 0x268   : > { %v877_v48 = vld [vmem:[%s19326_s10 + $0xe98] sm:$0xff] }
 0x26a   : > { %3965 = vmatpush1.bf16.msra.mxu0 %v16853_v25  ;;  %4129 = vmatpush1.bf16.msra.mxu1 %v16855_v4  ;;  %v16912_v25 = vcombine.high %v845_v9, %v849_v57  ;;  %v852_v4 = vld [vmem:[%s19326_s10 + $0xdd0] sm:$0xff] }
 0x26b   : > { %3975 = vmatprep.subr.bf16.mxu0 %v16862_v5  ;;  %4139 = vmatprep.subr.bf16.mxu1 %v16864_v6  ;;  %v856_v5 = vld [vmem:[%s19326_s10 + $0xdf0] sm:$0xff] }
 0x26d   : > { %3967 = vmatmul.mubr.bf16.vlgmr.msra.gmra.mrb[4].mxu0 %v19603_v2  ;;  %4131 = vmatmul.mubr.bf16.vlgmr.msra.gmra.mrb[4].mxu1 %v19603_v2  ;;  %v16877_v2 = vcombine.low %v812_v15, %v816_v59  ;;  %v16909_v15 = vcombine.low %v844_v54, %v848_v23  ;;  %v884_v23 = vld [vmem:[%s19326_s10 + $0xed0] sm:$0xff] }
 0x26e   : > { %3976 = vmatpush1.bf16.msra.mxu0 %v16861_v31  ;;  %4140 = vmatpush1.bf16.msra.mxu1 %v16863_v34 }
 0x26f   : > { %3977 = vmatprep.subr.bf16.mxu0 %v16870_v13  ;;  %4141 = vmatprep.subr.bf16.mxu1 %v16872_v14 }
 0x270   : > { %4007 = vmatprep.mubr.bf16.mxu0 %v19609_v12  ;;  %4171 = vmatprep.mubr.bf16.mxu1 %v19609_v12  ;;  %v16887_v12 = vcombine.low %v821_v27, %v825_v51  ;;  %v864_v27 = vld [vmem:[%s19326_s10 + $0xe30] sm:$0xff] }
 0x271   : > { %v16926_v63 = vcombine.high %v860_v24, %v864_v27  ;;  %v16925_v39 = vcombine.low %v860_v24, %v864_v27  ;;  %v916_v24 = vld [vmem:[%s19326_s10 + $0xfd0] sm:$0xff] }
 0x272   : > { %3978 = vmatpush1.bf16.msra.mxu0 %v16869_v18  ;;  %4142 = vmatpush1.bf16.msra.mxu1 %v16871_v19  ;;  %v16911_v18 = vcombine.low %v845_v9, %v849_v57  ;;  %v16918_v19 = vcombine.high %v852_v4, %v856_v5  ;;  %v885_v9 = vld [vmem:[%s19326_s10 + $0xed8] sm:$0xff]  ;;  %v920_v27 = vld [vmem:[%s19326_s10 + $0xff0] sm:$0xff] }
 0x273   : > { %3979 = vmatprep.subr.bf16.mxu0 %v16878_v20  ;;  %4143 = vmatprep.subr.bf16.mxu1 %v16880_v21  ;;  %v889_v57 = vld [vmem:[%s19326_s10 + $0xef8] sm:$0xff] }
 0x276   : > { %3980 = vmatpush1.bf16.msra.mxu0 %v16877_v2  ;;  %4144 = vmatpush1.bf16.msra.mxu1 %v16879_v28  ;;  %v861_v2 = vld [vmem:[%s19326_s10 + $0xe18] sm:$0xff] }
 0x277   : > { %3981 = vmatprep.subr.bf16.mxu0 %v16886_v29  ;;  %4145 = vmatprep.subr.bf16.mxu1 %v16888_v30  ;;  %v865_v28 = vld [vmem:[%s19326_s10 + $0xe38] sm:$0xff]  ;;  %v16917_v30 = vcombine.low %v852_v4, %v856_v5  ;;  %v16951_v5 = vcombine.low %v885_v9, %v889_v57 }
 0x278   : > { %v16928_v35 = vcombine.high %v861_v2, %v865_v28  ;;  %v16927_v40 = vcombine.low %v861_v2, %v865_v28  ;;  %v921_v2 = vld [vmem:[%s19326_s10 + $0xff8] sm:$0xff] }
 0x27a   : > { %3982 = vmatpush1.bf16.msra.mxu0 %v16885_v55  ;;  %4146 = vmatpush1.bf16.msra.mxu1 %v16887_v12  ;;  %v868_v55 = vld [vmem:[%s19326_s10 + $0xe50] sm:$0xff] }
 0x27b   : > { %3983 = vmatprep.subr.bf16.mxu0 %v16894_v36  ;;  %4147 = vmatprep.subr.bf16.mxu1 %v16896_v37  ;;  %v872_v12 = vld [vmem:[%s19326_s10 + $0xe70] sm:$0xff]  ;;  %v869_v37 = vld [vmem:[%s19326_s10 + $0xe58] sm:$0xff] }
 0x27c   : > { %v16934_v42 = vcombine.high %v868_v55, %v872_v12  ;;  %v16936_v43 = vcombine.high %v869_v37, %v873_v38  ;;  %v16933_v50 = vcombine.low %v868_v55, %v872_v12  ;;  %v950_v55 = vsub.s32 6, %v19366_v44 }
 0x27d   : > { %v946_v12 = vsub.s32 5, %v19366_v44 }
 0x27e   : > { %3984 = vmatpush1.bf16.msra.mxu0 %v16893_v45  ;;  %4148 = vmatpush1.bf16.msra.mxu1 %v16895_v49  ;;  %v876_v45 = vld [vmem:[%s19326_s10 + $0xe90] sm:$0xff]  ;;  %v881_v49 = vld [vmem:[%s19326_s10 + $0xeb8] sm:$0xff] }
 0x27f   : > { %3985 = vmatprep.subr.bf16.mxu0 %v16902_v16  ;;  %4149 = vmatprep.subr.bf16.mxu1 %v16904_v52  ;;  %v16935_v16 = vcombine.low %v869_v37, %v873_v38  ;;  %v16942_v52 = vcombine.high %v876_v45, %v880_v47  ;;  %v16944_v54 = vcombine.high %v877_v48, %v881_v49 }
 0x280   : > { %v3681_v3 = vpop.f32.mrb[0].mxu0  ;;  %v3845_v7 = vpop.f32.mrb[0].mxu1  ;;  %v951_v38 = vrot.slane %v19907_v46, %v950_v55 }
 0x281   : > { %v18533_v6 = vadd.f32 %v3681_v3, %v927_v56  ;;  %v3683_v8 = vpop.f32.mrb[1].mxu0  ;;  %v18535_v31 = vadd.f32 %v3845_v7, %v935_v58  ;;  %v3847_v13 = vpop.f32.mrb[1].mxu1  ;;  %v888_v56 = vld [vmem:[%s19326_s10 + $0xef0] sm:$0xff]  ;;  %v16941_v58 = vcombine.low %v876_v45, %v880_v47  ;;  %v893_v3 = vld [vmem:[%s19326_s10 + $0xf18] sm:$0xff] }
 0x282   : > { %v18534_v34 = vadd.f32 %v3683_v8, %v931_v60  ;;  %v3685_v14 = vpop.f32.mrb[2].mxu0  ;;  %3986 = vmatpush1.bf16.msra.mxu0 %v16901_v61  ;;  %v18536_v59 = vadd.f32 %v3847_v13, %v939_v62  ;;  %v3849_v41 = vpop.f32.mrb[2].mxu1  ;;  %4150 = vmatpush1.bf16.msra.mxu1 %v16903_v0  ;;  %v16943_v60 = vcombine.low %v877_v48, %v881_v49  ;;  %v892_v0 = vld [vmem:[%s19326_s10 + $0xf10] sm:$0xff] }
 0x283   : > { %v3686_v17 = vpop.f32.mrb[3].mxu0  ;;  %3987 = vmatprep.subr.bf16.mxu0 %v16910_v1  ;;  %v3850_v21 = vpop.f32.mrb[3].mxu1  ;;  %4151 = vmatprep.subr.bf16.mxu1 %v16912_v25  ;;  %v16950_v61 = vcombine.high %v884_v23, %v888_v56  ;;  %v16952_v62 = vcombine.high %v885_v9, %v889_v57  ;;  %v896_v1 = vld [vmem:[%s19326_s10 + $0xf30] sm:$0xff]  ;;  %v897_v25 = vld [vmem:[%s19326_s10 + $0xf38] sm:$0xff]  ;;  %v16949_v4 = vcombine.low %v884_v23, %v888_v56 }
 0x284   : > { %v4188_v20 = vcombine.low %v18533_v6, %v18534_v34  ;;  %v4189_v51 = vcombine.low %v18535_v31, %v18536_v59  ;;  %v16958_v6 = vcombine.high %v892_v0, %v896_v1  ;;  %v16960_v7 = vcombine.high %v893_v3, %v897_v25  ;;  %v900_v8 = vld [vmem:[%s19326_s10 + $0xf50] sm:$0xff]  ;;  %v905_v31 = vld [vmem:[%s19326_s10 + $0xf78] sm:$0xff] }
 0x285   : > { %v16957_v34 = vcombine.low %v892_v0, %v896_v1  ;;  %v16959_v13 = vcombine.low %v893_v3, %v897_v25  ;;  %v16966_v14 = vcombine.high %v900_v8, %v904_v10  ;;  %v908_v59 = vld [vmem:[%s19326_s10 + $0xf90] sm:$0xff]  ;;  %v909_v17 = vld [vmem:[%s19326_s10 + $0xf98] sm:$0xff] }
 0x286   : > { %v4196_v29 = vrot.slane %v4188_v20, %v19373_v53  ;;  %3988 = vmatpush1.bf16.msra.mxu0 %v16909_v15  ;;  %v4203_v32 = vrot.slane %v4189_v51, %v19373_v53  ;;  %4152 = vmatpush1.bf16.msra.mxu1 %v16911_v18  ;;  %v16968_v15 = vcombine.high %v901_v11, %v905_v31  ;;  %v912_v41 = vld [vmem:[%s19326_s10 + $0xfb0] sm:$0xff]  ;;  %v913_v18 = vld [vmem:[%s19326_s10 + $0xfb8] sm:$0xff] }
 0x287   : > { %3989 = vmatprep.subr.bf16.mxu0 %v16918_v19  ;;  %4153 = vmatprep.subr.bf16.mxu1 %v16920_v22  ;;  %v16965_v19 = vcombine.low %v900_v8, %v904_v10  ;;  %v16967_v20 = vcombine.low %v901_v11, %v905_v31  ;;  %v16974_v21 = vcombine.high %v908_v59, %v912_v41  ;;  %v917_v51 = vld [vmem:[%s19326_s10 + $0xfd8] sm:$0xff] }
 0x288   : > { %v4204_v36 = vcombine.low %v4196_v29, %v4203_v32  ;;  %v16976_v22 = vcombine.high %v909_v17, %v913_v18  ;;  %v16973_v28 = vcombine.low %v908_v59, %v912_v41  ;;  %v16975_v29 = vcombine.low %v909_v17, %v913_v18 }
 0x289   : > { %v16984_v32 = vcombine.high %v917_v51, %v921_v2 }
 0x28a   : > { %3990 = vmatpush1.bf16.msra.mxu0 %v16917_v30  ;;  %4224 = vst [vmem:[#allocation2] sm:$0xff] %v4204_v36  ;;  %4154 = vmatpush1.bf16.msra.mxu1 %v16919_v33  ;;  %v16982_v30 = vcombine.high %v916_v24, %v920_v27  ;;  %v16981_v33 = vcombine.low %v916_v24, %v920_v27  ;;  %v954_v36 = vsub.s32 7, %v19366_v44 }
 0x28b   : > { %3991 = vmatprep.subr.bf16.mxu0 %v16926_v63  ;;  %4155 = vmatprep.subr.bf16.mxu1 %v16928_v35  ;;  %v16983_v63 = vcombine.low %v917_v51, %v921_v2  ;;  %v942_v35 = vsub.s32 4, %v19366_v44 }
 0x28d   : > { %v943_v37 = vrot.slane %v19907_v46, %v942_v35 }
 0x28e   : > { %3992 = vmatpush1.bf16.msra.mxu0 %v16925_v39  ;;  %4156 = vmatpush1.bf16.msra.mxu1 %v16927_v40  ;;  %v947_v39 = vrot.slane %v19907_v46, %v946_v12  ;;  %v955_v40 = vrot.slane %v19907_v46, %v954_v36 }
 0x28f   : > { %3993 = vmatprep.subr.bf16.mxu0 %v16934_v42  ;;  %4157 = vmatprep.subr.bf16.mxu1 %v16936_v43 }
 0x292   : > { %3994 = vmatpush1.bf16.msra.mxu0 %v16933_v50  ;;  %4158 = vmatpush1.bf16.msra.mxu1 %v16935_v16 }
 0x293   : > { %3995 = vmatprep.subr.bf16.mxu0 %v16942_v52  ;;  %4159 = vmatprep.subr.bf16.mxu1 %v16944_v54 }
 0x296   : > { %3996 = vmatpush1.bf16.msra.mxu0 %v16941_v58  ;;  %4160 = vmatpush1.bf16.msra.mxu1 %v16943_v60 }
 0x297   : > { %3997 = vmatprep.subr.bf16.mxu0 %v16950_v61  ;;  %4161 = vmatprep.subr.bf16.mxu1 %v16952_v62 }
 0x29a   : > { %3998 = vmatpush1.bf16.msra.mxu0 %v16949_v4  ;;  %4162 = vmatpush1.bf16.msra.mxu1 %v16951_v5 }
 0x29b   : > { %3999 = vmatprep.subr.bf16.mxu0 %v16958_v6  ;;  %4163 = vmatprep.subr.bf16.mxu1 %v16960_v7 }
 0x29e   : > { %4000 = vmatpush1.bf16.msra.mxu0 %v16957_v34  ;;  %4164 = vmatpush1.bf16.msra.mxu1 %v16959_v13 }
 0x29f   : > { %4001 = vmatprep.subr.bf16.mxu0 %v16966_v14  ;;  %4165 = vmatprep.subr.bf16.mxu1 %v16968_v15 }
 0x2a2   : > { %4002 = vmatpush1.bf16.msra.mxu0 %v16965_v19  ;;  %4166 = vmatpush1.bf16.msra.mxu1 %v16967_v20 }
 0x2a3   : > { %4003 = vmatprep.subr.bf16.mxu0 %v16974_v21  ;;  %4167 = vmatprep.subr.bf16.mxu1 %v16976_v22 }
 0x2a6   : > { %4004 = vmatpush1.bf16.msra.mxu0 %v16973_v28  ;;  %4168 = vmatpush1.bf16.msra.mxu1 %v16975_v29 }
 0x2a7   : > { %4005 = vmatprep.subr.bf16.mxu0 %v16982_v30  ;;  %4169 = vmatprep.subr.bf16.mxu1 %v16984_v32 }
 0x2aa   : > { %4006 = vmatpush1.bf16.msra.mxu0 %v16981_v33  ;;  %4170 = vmatpush1.bf16.msra.mxu1 %v16983_v63 }
 0x2ad   : > { %4008 = vmatmul.mubr.bf16.vlgmr.msra.gmra.mrb[4].mxu0 %v19677_v26  ;;  %4172 = vmatmul.mubr.bf16.vlgmr.msra.gmra.mrb[4].mxu1 %v19677_v26 }
 0x380   : > { %v4009_v42 = vpop.f32.mrb[4].mxu0  ;;  %v4173_v45 = vpop.f32.mrb[4].mxu1 }
 0x381   : > { %v18537_v43 = vadd.f32 %v4009_v42, %v943_v37  ;;  %v4011_v26 = vpop.f32.mrb[5].mxu0  ;;  %v18539_v47 = vadd.f32 %v4173_v45, %v951_v38  ;;  %v4175_v49 = vpop.f32.mrb[5].mxu1 }
 0x382   : > { %v18538_v48 = vadd.f32 %v4011_v26, %v947_v39  ;;  %v4013_v50 = vpop.f32.mrb[6].mxu0  ;;  %v18540_v16 = vadd.f32 %v4175_v49, %v955_v40  ;;  %v4177_v52 = vpop.f32.mrb[6].mxu1 }
 0x383   : > { %v4014_v54 = vpop.f32.mrb[7].mxu0  ;;  %v4178_v23 = vpop.f32.mrb[7].mxu1 }
 0x384   : > { %v4205_v44 = vcombine.low %v18537_v43, %v18538_v48  ;;  %v4206_v56 = vcombine.low %v18539_v47, %v18540_v16 }
 0x386   : > { %v4213_v9 = vrot.slane %v4205_v44, %v19373_v53  ;;  %v4220_v57 = vrot.slane %v4206_v56, %v19373_v53 }
 0x388   : > { %v4221_v58 = vcombine.low %v4213_v9, %v4220_v57 }
 0x38a   : > { %4225 = vst [vmem:[#allocation2 + $0x8] sm:$0xff] %v4221_v58 }
 0x38b PF: > { %p4226_p3 = scmp.lt.s32.totalorder %s19219_s23, 0  ;;  %s4227_s27 = ssub.s32 0, %s19219_s23 }
 0x38c   : > { %s16985_s6 = smin.u32 %s19219_s23, %s4227_s27  ;;  %p4239_p9 = scmp.ne.s32.totalorder %s19219_s23, 9 }
 0x38d   : > { %s4229_s17 = sand.u32 1, %s16985_s6  }
 0x38e   : > { %s4230_s18 = ssub.s32 0, %s4229_s17 }
 0x38f   : > { %s22160_s18 = smov (!%p4226_p3, %s4230_s18), %s4229_s17 }
 0x390   : > { %p16987_p10 = scmp.lt.s32.totalorder %s22160_s18, 0  ;;  %s4236_s24 = sadd.s32 2, %s22160_s18 }
 0x392   : > { %s22162_s24 = smov (!%p16987_p10, %s4236_s24), %s22160_s18 }
 0x393   : > { %p4238_p12 = scmp.eq.s32.totalorder %s22162_s24, 1 }
 0x395   : > { %p4240_p2 = pnand %p4239_p9, %p4238_p12 }
 0x396   : > { %v4448_v53 = vld [vmem:[%s19326_s10] sm:$0xff] (!%p4240_p2)  ;;  %v4449_v60 = vld [vmem:[%s19326_s10 + $0x8] sm:$0xff] (!%p4240_p2)  ;;  %v4248_v2 = vlaneseq (!%p4240_p2)  ;;  %v19067_v36 = vmov (!%p4240_p2), 1983009808   ;;  %v20022_v58 = vld [vmem:[%s19334_s15] sm:$0xff] (!%p4240_p2) }
 0x397   : > { %4243 = sbr.rel (%p4240_p2) target bundleno = 1656 (0x678), region = 68  ;;  %v4452_v46 = vld [vmem:[%s19326_s10 + $0x20] sm:$0xff] (!%p4240_p2)  ;;  %v4453_v62 = vld [vmem:[%s19326_s10 + $0x28] sm:$0xff] (!%p4240_p2)  ;;  %v4283_v37 = vunpack.c.l.s4 (!%p4240_p2), %v19067_v36 }
 0x398   : > { %v16989_v61 = vcombine.high (!%p4240_p2), %v4448_v53, %v4452_v46  ;;  %v16988_v0 = vcombine.low (!%p4240_p2), %v4448_v53, %v4452_v46  ;;  %v4456_v1 = vld [vmem:[%s19326_s10 + $0x40] sm:$0xff] (!%p4240_p2)  ;;  %v16991_v25 = vcombine.high (!%p4240_p2), %v4449_v60, %v4453_v62  ;;  %v16990_v4 = vcombine.low (!%p4240_p2), %v4449_v60, %v4453_v62  ;;  %v4457_v6 = vld [vmem:[%s19326_s10 + $0x48] sm:$0xff] (!%p4240_p2) }
 0x399   : > { %v4460_v3 = vld [vmem:[%s19326_s10 + $0x60] sm:$0xff] (!%p4240_p2)  ;;  %v4461_v7 = vld [vmem:[%s19326_s10 + $0x68] sm:$0xff] (!%p4240_p2)  ;;  %v20001_v12 = vshrl.u32 (!%p4240_p2), %v4248_v2, 7  ;;  %v4284_v50 = vunpack.c.0.s8 (!%p4240_p2), %v4283_v37 }
 0x39a   : > { %v16997_v5 = vcombine.high (!%p4240_p2), %v4456_v1, %v4460_v3  ;;  %v4464_v8 = vld [vmem:[%s19326_s10 + $0x80] sm:$0xff] (!%p4240_p2)  ;;  %7562 = vmatprep.subr.bf16.mxu0 (!%p4240_p2), %v16989_v61  ;;  %v16999_v10 = vcombine.high (!%p4240_p2), %v4457_v6, %v4461_v7  ;;  %v4465_v31 = vld [vmem:[%s19326_s10 + $0x88] sm:$0xff] (!%p4240_p2)  ;;  %7726 = vmatprep.subr.bf16.mxu1 (!%p4240_p2), %v16991_v25  ;;  %v16996_v13 = vcombine.low (!%p4240_p2), %v4456_v1, %v4460_v3 }
 0x39b   : > { %v4468_v11 = vld [vmem:[%s19326_s10 + $0xa0] sm:$0xff] (!%p4240_p2)  ;;  %v4469_v34 = vld [vmem:[%s19326_s10 + $0xa8] sm:$0xff] (!%p4240_p2)  ;;  %7563 = vmatpush1.bf16.msra.mxu0 (!%p4240_p2), %v16988_v0  ;;  %7727 = vmatpush1.bf16.msra.mxu1 (!%p4240_p2), %v16990_v4  ;;  %v16998_v14 = vcombine.low (!%p4240_p2), %v4457_v6, %v4461_v7  ;;  %v20008_v48 = vsub.s32 (!%p4240_p2), 0, %v20001_v12  ;;  %v20011_v49 = vsub.s32 (!%p4240_p2), 1, %v20001_v12  ;;  %v20016_v54 = vsub.s32 (!%p4240_p2), 2, %v20001_v12 }
 0x39c   : > { %7564 = vmatprep.subr.bf16.mxu0 (!%p4240_p2), %v16997_v5  ;;  %v17005_v15 = vcombine.high (!%p4240_p2), %v4464_v8, %v4468_v11  ;;  %7728 = vmatprep.subr.bf16.mxu1 (!%p4240_p2), %v16999_v10  ;;  %v17007_v59 = vcombine.high (!%p4240_p2), %v4465_v31, %v4469_v34  ;;  %v4472_v41 = vld [vmem:[%s19326_s10 + $0xc0] sm:$0xff] (!%p4240_p2)  ;;  %v4473_v18 = vld [vmem:[%s19326_s10 + $0xc8] sm:$0xff] (!%p4240_p2)  ;;  %v17004_v20 = vcombine.low (!%p4240_p2), %v4464_v8, %v4468_v11  ;;  %v20019_v44 = vsub.s32 (!%p4240_p2), 3, %v20001_v12 }
 0x39d   : > { %v4476_v17 = vld [vmem:[%s19326_s10 + $0xe0] sm:$0xff] (!%p4240_p2)  ;;  %v4477_v19 = vld [vmem:[%s19326_s10 + $0xe8] sm:$0xff] (!%p4240_p2)  ;;  %v17006_v21 = vcombine.low (!%p4240_p2), %v4465_v31, %v4469_v34  ;;  %v4251_v61 = vrot.slane (!%p4240_p2), %v20022_v58, %v20008_v48  ;;  %v4255_v62 = vrot.slane (!%p4240_p2), %v20022_v58, %v20011_v49  ;;  %v20031_v0 = vsub.s32 (!%p4240_p2), %v4284_v50, %v20001_v12 }
 0x39e   : > { %v17013_v22 = vcombine.high %v4472_v41, %v4476_v17  ;;  %v17015_v24 = vcombine.high %v4473_v18, %v4477_v19  ;;  %v4480_v27 = vld [vmem:[%s19326_s10 + $0x100] sm:$0xff]  ;;  %v4481_v28 = vld [vmem:[%s19326_s10 + $0x108] sm:$0xff]  ;;  %v17012_v30 = vcombine.low %v4472_v41, %v4476_v17  ;;  %v17014_v32 = vcombine.low %v4473_v18, %v4477_v19 }
 0x39f   : > { %7565 = vmatpush1.bf16.msra.mxu0 %v16996_v13  ;;  %7729 = vmatpush1.bf16.msra.mxu1 %v16998_v14  ;;  %v4484_v51 = vld [vmem:[%s19326_s10 + $0x120] sm:$0xff]  ;;  %v4485_v29 = vld [vmem:[%s19326_s10 + $0x128] sm:$0xff]  ;;  %v4259_v4 = vrot.slane %v20022_v58, %v20016_v54  ;;  %v4263_v5 = vrot.slane %v20022_v58, %v20019_v44  ;;  %v4280_v10 = vcombine.low %v4251_v61, %v4255_v62 }
 0x3a0   : > { %7566 = vmatprep.subr.bf16.mxu0 %v17005_v15  ;;  %7730 = vmatprep.subr.bf16.mxu1 %v17007_v59  ;;  %v17021_v33 = vcombine.high %v4480_v27, %v4484_v51  ;;  %v17023_v63 = vcombine.high %v4481_v28, %v4485_v29  ;;  %v4488_v35 = vld [vmem:[%s19326_s10 + $0x140] sm:$0xff]  ;;  %v4489_v38 = vld [vmem:[%s19326_s10 + $0x148] sm:$0xff]  ;;  %v17020_v40 = vcombine.low %v4480_v27, %v4484_v51  ;;  %v4244_v27 = vld [vmem:[#allocation2] sm:$0xff] }
 0x3a1   : > { %v4492_v55 = vld [vmem:[%s19326_s10 + $0x160] sm:$0xff]  ;;  %v4493_v39 = vld [vmem:[%s19326_s10 + $0x168] sm:$0xff]  ;;  %v17022_v42 = vcombine.low %v4481_v28, %v4485_v29  ;;  %v4281_v13 = vcombine.low %v4259_v4, %v4263_v5  ;;  %v4288_v17 = vrot.slane %v4280_v10, %v20031_v0 }
 0x3a2   : > { %v17029_v43 = vcombine.high %v4488_v35, %v4492_v55  ;;  %v17031_v45 = vcombine.high %v4489_v38, %v4493_v39  ;;  %v4496_v26 = vld [vmem:[%s19326_s10 + $0x180] sm:$0xff]  ;;  %v4497_v16 = vld [vmem:[%s19326_s10 + $0x188] sm:$0xff]  ;;  %v17028_v23 = vcombine.low %v4488_v35, %v4492_v55  ;;  %v17030_v56 = vcombine.low %v4489_v38, %v4493_v39 }
 0x3a3   : > { %7567 = vmatpush1.bf16.msra.mxu0 %v17004_v20  ;;  %7731 = vmatpush1.bf16.msra.mxu1 %v17006_v21  ;;  %v4500_v47 = vld [vmem:[%s19326_s10 + $0x1a0] sm:$0xff]  ;;  %v4501_v52 = vld [vmem:[%s19326_s10 + $0x1a8] sm:$0xff]  ;;  %v4295_v21 = vrot.slane %v4281_v13, %v20031_v0 }
 0x3a4   : > { %7568 = vmatprep.subr.bf16.mxu0 %v17013_v22  ;;  %7732 = vmatprep.subr.bf16.mxu1 %v17015_v24  ;;  %v17037_v9 = vcombine.high %v4496_v26, %v4500_v47  ;;  %v17036_v57 = vcombine.low %v4496_v26, %v4500_v47  ;;  %v17039_v53 = vcombine.high %v4497_v16, %v4501_v52  ;;  %v4504_v46 = vld [vmem:[%s19326_s10 + $0x1c0] sm:$0xff]  ;;  %v4505_v3 = vld [vmem:[%s19326_s10 + $0x1c8] sm:$0xff] }
 0x3a5   : > { %v4508_v60 = vld [vmem:[%s19326_s10 + $0x1e0] sm:$0xff]  ;;  %v4509_v25 = vld [vmem:[%s19326_s10 + $0x1e8] sm:$0xff]  ;;  %v17038_v8 = vcombine.low %v4497_v16, %v4501_v52  ;;  %v4296_v29 = vcombine.low %v4288_v17, %v4295_v21 }
 0x3a6   : > { %v20034_v1 = vld [vmem:[%s19340_s16] sm:$0xff]  ;;  %v17045_v34 = vcombine.high %v4504_v46, %v4508_v60  ;;  %v17047_v15 = vcombine.high %v4505_v3, %v4509_v25  ;;  %v17044_v24 = vcombine.low %v4504_v46, %v4508_v60  ;;  %v17046_v2 = vcombine.low %v4505_v3, %v4509_v25 }
 0x3a7   : > { %7569 = vmatpush1.bf16.msra.mxu0 %v17012_v30  ;;  %7733 = vmatpush1.bf16.msra.mxu1 %v17014_v32  ;;  %v4323_v6 = vrot.slane %v20034_v1, %v20008_v48  ;;  %v4327_v7 = vrot.slane %v20034_v1, %v20011_v49  ;;  %v4331_v11 = vrot.slane %v20034_v1, %v20016_v54  ;;  %v4512_v59 = vld [vmem:[%s19326_s10 + $0x200] sm:$0xff]  ;;  %v4513_v19 = vld [vmem:[%s19326_s10 + $0x208] sm:$0xff] }
 0x3a8   : > { %7570 = vmatprep.subr.bf16.mxu0 %v17021_v33  ;;  %7734 = vmatprep.subr.bf16.mxu1 %v17023_v63  ;;  %v4335_v31 = vrot.slane %v20034_v1, %v20019_v44  ;;  %v4516_v41 = vld [vmem:[%s19326_s10 + $0x220] sm:$0xff]  ;;  %v4517_v20 = vld [vmem:[%s19326_s10 + $0x228] sm:$0xff]  ;;  %v4316_v36 = vmul.f32 %v4296_v29, %v4244_v27 }
 0x3a9   : > { %v4352_v14 = vcombine.low %v4323_v6, %v4327_v7  ;;  %v17053_v28 = vcombine.high %v4512_v59, %v4516_v41  ;;  %v17055_v30 = vcombine.high %v4513_v19, %v4517_v20  ;;  %v4520_v32 = vld [vmem:[%s19326_s10 + $0x240] sm:$0xff]  ;;  %v4521_v35 = vld [vmem:[%s19326_s10 + $0x248] sm:$0xff]  ;;  %v17052_v37 = vcombine.low %v4512_v59, %v4516_v41 }
 0x3aa   : > { %v4353_v18 = vcombine.low %v4331_v11, %v4335_v31  ;;  %v4524_v33 = vld [vmem:[%s19326_s10 + $0x260] sm:$0xff]  ;;  %v4525_v55 = vld [vmem:[%s19326_s10 + $0x268] sm:$0xff]  ;;  %v17054_v38 = vcombine.low %v4513_v19, %v4517_v20 }
 0x3ab   : > { %7571 = vmatpush1.bf16.msra.mxu0 %v17020_v40  ;;  %7735 = vmatpush1.bf16.msra.mxu1 %v17022_v42  ;;  %v4360_v22 = vrot.slane %v4352_v14, %v20031_v0  ;;  %v17061_v39 = vcombine.high %v4520_v32, %v4524_v33  ;;  %v17063_v42 = vcombine.high %v4521_v35, %v4525_v55  ;;  %v4529_v26 = vld [vmem:[%s19326_s10 + $0x288] sm:$0xff]  ;;  %v4544_v6 = vld [vmem:[%s19326_s10 + $0x300] sm:$0xff] }
 0x3ac   : > { %7572 = vmatprep.subr.bf16.mxu0 %v17029_v43  ;;  %7736 = vmatprep.subr.bf16.mxu1 %v17031_v45  ;;  %v4367_v51 = vrot.slane %v4353_v18, %v20031_v0  ;;  %v4528_v43 = vld [vmem:[%s19326_s10 + $0x280] sm:$0xff]  ;;  %v4533_v47 = vld [vmem:[%s19326_s10 + $0x2a8] sm:$0xff]  ;;  %v17060_v16 = vcombine.low %v4520_v32, %v4524_v33  ;;  %v17062_v52 = vcombine.low %v4521_v35, %v4525_v55 }
 0x3ad   : > { %v4532_v45 = vld [vmem:[%s19326_s10 + $0x2a0] sm:$0xff]  ;;  %v4537_v60 = vld [vmem:[%s19326_s10 + $0x2c8] sm:$0xff]  ;;  %v17070_v25 = vcombine.low %v4529_v26, %v4533_v47 }
 0x3ae   : > { %v4368_v63 = vcombine.low %v4360_v22, %v4367_v51  ;;  %v4541_v61 = vld [vmem:[%s19326_s10 + $0x2e8] sm:$0xff]  ;;  %v17068_v62 = vcombine.low %v4528_v43, %v4532_v45  ;;  %v4548_v7 = vld [vmem:[%s19326_s10 + $0x320] sm:$0xff] }
 0x3af   : > { %7573 = vmatpush1.bf16.msra.mxu0 %v17028_v23  ;;  %7737 = vmatpush1.bf16.msra.mxu1 %v17030_v56  ;;  %v17069_v23 = vcombine.high %v4528_v43, %v4532_v45  ;;  %v17079_v5 = vcombine.high %v4537_v60, %v4541_v61  ;;  %v4545_v10 = vld [vmem:[%s19326_s10 + $0x308] sm:$0xff]  ;;  %v17085_v13 = vcombine.high %v4544_v6, %v4548_v7  ;;  %v4556_v59 = vld [vmem:[%s19326_s10 + $0x360] sm:$0xff] }
 0x3b0   : > { %7574 = vmatprep.subr.bf16.mxu0 %v17037_v9  ;;  %7738 = vmatprep.subr.bf16.mxu1 %v17039_v53  ;;  %v4388_v40 = vadd.f32 %v4368_v63, %v4316_v36  ;;  %v17071_v9 = vcombine.high %v4529_v26, %v4533_v47  ;;  %v4540_v53 = vld [vmem:[%s19326_s10 + $0x2e0] sm:$0xff]  ;;  %v4549_v11 = vld [vmem:[%s19326_s10 + $0x328] sm:$0xff]  ;;  %v17084_v18 = vcombine.low %v4544_v6, %v4548_v7 }
 0x3b1   : > { %v17087_v14 = vcombine.high %v4545_v10, %v4549_v11  ;;  %v4553_v41 = vld [vmem:[%s19326_s10 + $0x348] sm:$0xff]  ;;  %v17086_v19 = vcombine.low %v4545_v10, %v4549_v11  ;;  %v4560_v22 = vld [vmem:[%s19326_s10 + $0x380] sm:$0xff] }
 0x3b2   : > { %vm4390_vm0 = vcmp.gt.f32.partialorder %v4388_v40, 0.0  ;;  %v4392_v50 = vmul.f32 0.2, %v4388_v40  ;;  %v4557_v17 = vld [vmem:[%s19326_s10 + $0x368] sm:$0xff]  ;;  %v4568_v32 = vld [vmem:[%s19326_s10 + $0x3c0] sm:$0xff] }
 0x3b3   : > { %7575 = vmatpush1.bf16.msra.mxu0 %v17036_v57  ;;  %7739 = vmatpush1.bf16.msra.mxu1 %v17038_v8  ;;  %v4536_v57 = vld [vmem:[%s19326_s10 + $0x2c0] sm:$0xff]  ;;  %v17095_v21 = vcombine.high %v4553_v41, %v4557_v17  ;;  %v4561_v27 = vld [vmem:[%s19326_s10 + $0x388] sm:$0xff] }
 0x3b4   : > { %7576 = vmatprep.subr.bf16.mxu0 %v17045_v34  ;;  %7740 = vmatprep.subr.bf16.mxu1 %v17047_v15  ;;  %v20066_v56 = vsel %vm4390_vm0, %v4388_v40, %v4392_v50  ;;  %v17077_v4 = vcombine.high %v4536_v57, %v4540_v53  ;;  %v17076_v31 = vcombine.low %v4536_v57, %v4540_v53  ;;  %v4552_v15 = vld [vmem:[%s19326_s10 + $0x340] sm:$0xff]  ;;  %v4565_v51 = vld [vmem:[%s19326_s10 + $0x3a8] sm:$0xff]  ;;  %v20108_v50 = vsub.s32 4, %v20001_v12 }
 0x3b5   : > { %v20072_v46 = vrot.slane %v20066_v56, %v20031_v0  ;;  %v17078_v34 = vcombine.low %v4537_v60, %v4541_v61  ;;  %v17093_v20 = vcombine.high %v4552_v15, %v4556_v59  ;;  %v4572_v33 = vld [vmem:[%s19326_s10 + $0x3e0] sm:$0xff]  ;;  %v4398_v63 = vcombine.high %v20066_v56, %v20066_v56  ;;  %v4569_v35 = vld [vmem:[%s19326_s10 + $0x3c8] sm:$0xff] }
 0x3b6   : > { %v4573_v55 = vld [vmem:[%s19326_s10 + $0x3e8] sm:$0xff]  ;;  %v4576_v40 = vld [vmem:[%s19326_s10 + $0x400] sm:$0xff]  ;;  %v17108_v47 = vcombine.low %v4568_v32, %v4572_v33  ;;  %v4267_v6 = vrot.slane %v20022_v58, %v20108_v50 }
 0x3b7   : > { %7577 = vmatpush1.bf16.msra.mxu0 %v17044_v24  ;;  %7741 = vmatpush1.bf16.msra.mxu1 %v17046_v2  ;;  %v4413_v3 = vcombine.high %v20072_v46, %v20072_v46  ;;  %v4564_v24 = vld [vmem:[%s19326_s10 + $0x3a0] sm:$0xff]  ;;  %v17092_v2 = vcombine.low %v4552_v15, %v4556_v59  ;;  %v20103_v43 = vrot.slane %v4398_v63, %v20031_v0  ;;  %v4577_v45 = vld [vmem:[%s19326_s10 + $0x408] sm:$0xff] }
 0x3b8   : > { %7578 = vmatprep.subr.bf16.mxu0 %v17053_v28  ;;  %7742 = vmatprep.subr.bf16.mxu1 %v17055_v30  ;;  %v17094_v28 = vcombine.low %v4553_v41, %v4557_v17  ;;  %v17101_v29 = vcombine.high %v4560_v22, %v4564_v24  ;;  %v17103_v30 = vcombine.high %v4561_v27, %v4565_v51  ;;  %v4581_v26 = vld [vmem:[%s19326_s10 + $0x428] sm:$0xff]  ;;  %v4584_v56 = vld [vmem:[%s19326_s10 + $0x440] sm:$0xff] }
 0x3b9   : > { %v20080_v8 = vpack.c.bf16 %v4413_v3, %v4413_v3  ;;  %v17100_v36 = vcombine.low %v4560_v22, %v4564_v24  ;;  %v4588_v57 = vld [vmem:[%s19326_s10 + $0x460] sm:$0xff]  ;;  %v4585_v53 = vld [vmem:[%s19326_s10 + $0x448] sm:$0xff]  ;;  %v4414_v61 = vcombine.high %v20103_v43, %v20103_v43  ;;  %v20123_v3 = vsub.s32 7, %v20001_v12 }
 0x3ba   : > { %v4589_v60 = vld [vmem:[%s19326_s10 + $0x468] sm:$0xff]  ;;  %v17124_v10 = vcombine.low %v4584_v56, %v4588_v57  ;;  %v4339_v17 = vrot.slane %v20034_v1, %v20108_v50 }
 0x3bb   : > { %7579 = vmatpush1.bf16.msra.mxu0 %v17052_v37  ;;  %7743 = vmatpush1.bf16.msra.mxu1 %v17054_v38  ;;  %v17102_v37 = vcombine.low %v4561_v27, %v4565_v51  ;;  %v17109_v38 = vcombine.high %v4568_v32, %v4572_v33  ;;  %v17127_v11 = vcombine.high %v4585_v53, %v4589_v60  ;;  %v4593_v59 = vld [vmem:[%s19326_s10 + $0x488] sm:$0xff]  ;;  %v4245_v33 = vld [vmem:[#allocation2 + $0x8] sm:$0xff] }
 0x3bc   : > { %7580 = vmatprep.subr.bf16.mxu0 %v17061_v39  ;;  %7744 = vmatprep.subr.bf16.mxu1 %v17063_v42  ;;  %v17111_v39 = vcombine.high %v4569_v35, %v4573_v55  ;;  %v4580_v42 = vld [vmem:[%s19326_s10 + $0x420] sm:$0xff]  ;;  %v4597_v41 = vld [vmem:[%s19326_s10 + $0x4a8] sm:$0xff] }
 0x3bd   : > { %7594 = vmatprep.mubr.bf16.mxu0 %v20080_v8  ;;  %7758 = vmatprep.mubr.bf16.mxu1 %v20080_v8  ;;  %v4605_v32 = vld [vmem:[%s19326_s10 + $0x4e8] sm:$0xff] }
 0x3bf   : > { %7581 = vmatpush1.bf16.msra.mxu0 %v17060_v16  ;;  %7745 = vmatpush1.bf16.msra.mxu1 %v17062_v52  ;;  %v20111_v16 = vsub.s32 5, %v20001_v12  ;;  %v17110_v52 = vcombine.low %v4569_v35, %v4573_v55 }
 0x3c0   : > { %7582 = vmatprep.subr.bf16.mxu0 %v17069_v23  ;;  %7746 = vmatprep.subr.bf16.mxu1 %v17071_v9  ;;  %v17117_v23 = vcombine.high %v4576_v40, %v4580_v42  ;;  %v17119_v9 = vcombine.high %v4577_v45, %v4581_v26 }
 0x3c1   : > { %v4271_v7 = vrot.slane %v20022_v58, %v20111_v16 }
 0x3c3   : > { %7583 = vmatpush1.bf16.msra.mxu0 %v17068_v62  ;;  %7747 = vmatpush1.bf16.msra.mxu1 %v17070_v25  ;;  %v20120_v62 = vsub.s32 6, %v20001_v12  ;;  %v20127_v25 = vpack.c.bf16 %v20072_v46, %v20072_v46  ;;  %v17125_v12 = vcombine.high %v4584_v56, %v4588_v57  ;;  %v4596_v46 = vld [vmem:[%s19326_s10 + $0x4a0] sm:$0xff]  ;;  %v4297_v15 = vcombine.low %v4267_v6, %v4271_v7 }
 0x3c4   : > { %7584 = vmatprep.subr.bf16.mxu0 %v17077_v4  ;;  %7748 = vmatprep.subr.bf16.mxu1 %v17079_v5  ;;  %v17116_v4 = vcombine.low %v4576_v40, %v4580_v42  ;;  %v17118_v5 = vcombine.low %v4577_v45, %v4581_v26  ;;  %v4608_v42 = vld [vmem:[%s19326_s10 + $0x500] sm:$0xff] }
 0x3c5   : > { %v4305_v22 = vrot.slane %v4297_v15, %v20031_v0  ;;  %v4612_v45 = vld [vmem:[%s19326_s10 + $0x520] sm:$0xff] }
 0x3c6   : > { %v17149_v57 = vcombine.high %v4608_v42, %v4612_v45  ;;  %v17148_v6 = vcombine.low %v4608_v42, %v4612_v45  ;;  %v4660_v42 = vld [vmem:[%s19326_s10 + $0x6a0] sm:$0xff]  ;;  %v4657_v45 = vld [vmem:[%s19326_s10 + $0x688] sm:$0xff] }
 0x3c7   : > { %7585 = vmatpush1.bf16.msra.mxu0 %v17076_v31  ;;  %7749 = vmatpush1.bf16.msra.mxu1 %v17078_v34  ;;  %v4592_v31 = vld [vmem:[%s19326_s10 + $0x480] sm:$0xff]  ;;  %v20135_v34 = vpack.c.bf16 %v4414_v61, %v4414_v61 }
 0x3c8   : > { %7586 = vmatprep.subr.bf16.mxu0 %v17085_v13  ;;  %7750 = vmatprep.subr.bf16.mxu1 %v17087_v14  ;;  %v4275_v13 = vrot.slane %v20022_v58, %v20120_v62  ;;  %v4279_v14 = vrot.slane %v20022_v58, %v20123_v3  ;;  %v17126_v58 = vcombine.low %v4585_v53, %v4589_v60  ;;  %v4616_v60 = vld [vmem:[%s19326_s10 + $0x540] sm:$0xff] }
 0x3c9   : > { %v17133_v24 = vcombine.high %v4592_v31, %v4596_v46  ;;  %v17132_v55 = vcombine.low %v4592_v31, %v4596_v46  ;;  %v4620_v61 = vld [vmem:[%s19326_s10 + $0x560] sm:$0xff]  ;;  %v4625_v46 = vld [vmem:[%s19326_s10 + $0x588] sm:$0xff] }
 0x3ca   : > { %v4628_v31 = vld [vmem:[%s19326_s10 + $0x5a0] sm:$0xff] }
 0x3cb   : > { %7587 = vmatpush1.bf16.msra.mxu0 %v17084_v18  ;;  %7751 = vmatpush1.bf16.msra.mxu1 %v17086_v19  ;;  %v4343_v18 = vrot.slane %v20034_v1, %v20111_v16  ;;  %v4347_v19 = vrot.slane %v20034_v1, %v20120_v62 }
 0x3cc   : > { %7588 = vmatprep.subr.bf16.mxu0 %v17093_v20  ;;  %7752 = vmatprep.subr.bf16.mxu1 %v17095_v21  ;;  %v4351_v20 = vrot.slane %v20034_v1, %v20123_v3  ;;  %v4298_v21 = vcombine.low %v4275_v13, %v4279_v14  ;;  %v4629_v13 = vld [vmem:[%s19326_s10 + $0x5a8] sm:$0xff]  ;;  %v17156_v14 = vcombine.low %v4616_v60, %v4620_v61 }
 0x3cd   : > { %v4369_v27 = vcombine.low %v4339_v17, %v4343_v18  ;;  %v4632_v17 = vld [vmem:[%s19326_s10 + $0x5c0] sm:$0xff] }
 0x3ce   : > { %v4370_v51 = vcombine.low %v4347_v19, %v4351_v20  ;;  %v4312_v1 = vrot.slane %v4298_v21, %v20031_v0  ;;  %v4636_v18 = vld [vmem:[%s19326_s10 + $0x5e0] sm:$0xff]  ;;  %v4633_v19 = vld [vmem:[%s19326_s10 + $0x5c8] sm:$0xff]  ;;  %v17166_v21 = vcombine.low %v4625_v46, %v4629_v13 }
 0x3cf   : > { %7589 = vmatpush1.bf16.msra.mxu0 %v17092_v2  ;;  %7753 = vmatpush1.bf16.msra.mxu1 %v17094_v28  ;;  %v17135_v2 = vcombine.high %v4593_v59, %v4597_v41  ;;  %v4600_v28 = vld [vmem:[%s19326_s10 + $0x4c0] sm:$0xff]  ;;  %v4377_v63 = vrot.slane %v4369_v27, %v20031_v0  ;;  %v4637_v20 = vld [vmem:[%s19326_s10 + $0x5e8] sm:$0xff] }
 0x3d0   : > { %7590 = vmatprep.subr.bf16.mxu0 %v17101_v29  ;;  %7754 = vmatprep.subr.bf16.mxu1 %v17103_v30  ;;  %v4604_v29 = vld [vmem:[%s19326_s10 + $0x4e0] sm:$0xff]  ;;  %v4601_v30 = vld [vmem:[%s19326_s10 + $0x4c8] sm:$0xff]  ;;  %v4384_v35 = vrot.slane %v4370_v51, %v20031_v0 }
 0x3d1   : > { %v17143_v40 = vcombine.high %v4601_v30, %v4605_v32  ;;  %v4640_v27 = vld [vmem:[%s19326_s10 + $0x600] sm:$0xff] }
 0x3d2   : > { %v4644_v51 = vld [vmem:[%s19326_s10 + $0x620] sm:$0xff] }
 0x3d3   : > { %7591 = vmatpush1.bf16.msra.mxu0 %v17100_v36  ;;  %7755 = vmatpush1.bf16.msra.mxu1 %v17102_v37  ;;  %v4313_v36 = vcombine.low %v4305_v22, %v4312_v1  ;;  %v17134_v37 = vcombine.low %v4593_v59, %v4597_v41  ;;  %v17167_v41 = vcombine.high %v4625_v46, %v4629_v13 }
 0x3d4   : > { %7592 = vmatprep.subr.bf16.mxu0 %v17109_v38  ;;  %7756 = vmatprep.subr.bf16.mxu1 %v17111_v39  ;;  %v17141_v38 = vcombine.high %v4600_v28, %v4604_v29  ;;  %v4385_v39 = vcombine.low %v4377_v63, %v4384_v35  ;;  %v17173_v22 = vcombine.high %v4632_v17, %v4636_v18  ;;  %v4652_v63 = vld [vmem:[%s19326_s10 + $0x660] sm:$0xff]  ;;  %v4649_v35 = vld [vmem:[%s19326_s10 + $0x648] sm:$0xff] }
 0x3d5   : > { %v4317_v26 = vmul.f32 %v4313_v36, %v4245_v33  ;;  %v17174_v1 = vcombine.low %v4633_v19, %v4637_v20  ;;  %v4648_v33 = vld [vmem:[%s19326_s10 + $0x640] sm:$0xff]  ;;  %v17180_v36 = vcombine.low %v4640_v27, %v4644_v51 }
 0x3d7   : > { %7593 = vmatpush1.bf16.msra.mxu0 %v17108_v47  ;;  %7757 = vmatpush1.bf16.msra.mxu1 %v17110_v52  ;;  %v4609_v47 = vld [vmem:[%s19326_s10 + $0x508] sm:$0xff]  ;;  %v20167_v56 = vadd.f32 %v4385_v39, %v4317_v26 }
 0x3d8   : > { %7603 = vmatprep.subr.bf16.mxu0 %v17117_v23  ;;  %7767 = vmatprep.subr.bf16.mxu1 %v17119_v9  ;;  %v4613_v52 = vld [vmem:[%s19326_s10 + $0x528] sm:$0xff]  ;;  %v17140_v23 = vcombine.low %v4600_v28, %v4604_v29  ;;  %v17142_v9 = vcombine.low %v4601_v30, %v4605_v32  ;;  %v17172_v29 = vcombine.low %v4632_v17, %v4636_v18 }
 0x3d9   : > { %v17151_v53 = vcombine.high %v4609_v47, %v4613_v52  ;;  %v17150_v7 = vcombine.low %v4609_v47, %v4613_v52  ;;  %v4645_v28 = vld [vmem:[%s19326_s10 + $0x628] sm:$0xff]  ;;  %v17181_v30 = vcombine.high %v4640_v27, %v4644_v51  ;;  %v17188_v47 = vcombine.low %v4648_v33, %v4652_v63 }
 0x3da   : > { %7595 = vmatmul.mubr.bf16.vlgmr.msra.gmra.mrb[0].mxu0 %v20127_v25  ;;  %7759 = vmatmul.mubr.bf16.vlgmr.msra.gmra.mrb[0].mxu1 %v20127_v25  ;;  %v4661_v26 = vld [vmem:[%s19326_s10 + $0x6a8] sm:$0xff]  ;;  %vm4391_vm1 = vcmp.gt.f32.partialorder %v20167_v56, 0.0 }
 0x3db   : > { %7604 = vmatpush1.bf16.msra.mxu0 %v17116_v4  ;;  %7768 = vmatpush1.bf16.msra.mxu1 %v17118_v5  ;;  %v4617_v4 = vld [vmem:[%s19326_s10 + $0x548] sm:$0xff] }
 0x3dc   : > { %7605 = vmatprep.subr.bf16.mxu0 %v17125_v12  ;;  %7769 = vmatprep.subr.bf16.mxu1 %v17127_v11  ;;  %v4621_v5 = vld [vmem:[%s19326_s10 + $0x568] sm:$0xff]  ;;  %v4624_v11 = vld [vmem:[%s19326_s10 + $0x580] sm:$0xff] }
 0x3dd   : > { %7635 = vmatprep.mubr.bf16.mxu0 %v20135_v34  ;;  %7799 = vmatprep.mubr.bf16.mxu1 %v20135_v34  ;;  %v17159_v12 = vcombine.high %v4617_v4, %v4621_v5  ;;  %v17158_v15 = vcombine.low %v4617_v4, %v4621_v5  ;;  %v17165_v59 = vcombine.high %v4624_v11, %v4628_v31  ;;  %v4681_v17 = vld [vmem:[%s19326_s10 + $0x748] sm:$0xff] }
 0x3de   : > { %v17198_v5 = vcombine.low %v4657_v45, %v4661_v26  ;;  %v4685_v18 = vld [vmem:[%s19326_s10 + $0x768] sm:$0xff] }
 0x3df   : > { %7606 = vmatpush1.bf16.msra.mxu0 %v17124_v10  ;;  %7770 = vmatpush1.bf16.msra.mxu1 %v17126_v58  ;;  %v17157_v10 = vcombine.high %v4616_v60, %v4620_v61  ;;  %v17164_v58 = vcombine.low %v4624_v11, %v4628_v31  ;;  %v4665_v60 = vld [vmem:[%s19326_s10 + $0x6c8] sm:$0xff] }
 0x3e0   : > { %7607 = vmatprep.subr.bf16.mxu0 %v17133_v24  ;;  %7771 = vmatprep.subr.bf16.mxu1 %v17135_v2  ;;  %v17175_v24 = vcombine.high %v4633_v19, %v4637_v20  ;;  %v4641_v2 = vld [vmem:[%s19326_s10 + $0x608] sm:$0xff] }
 0x3e1   : > { %v17183_v32 = vcombine.high %v4641_v2, %v4645_v28  ;;  %v4669_v61 = vld [vmem:[%s19326_s10 + $0x6e8] sm:$0xff] }
 0x3e2   : > { %v4673_v11 = vld [vmem:[%s19326_s10 + $0x708] sm:$0xff]  ;;  %v17206_v13 = vcombine.low %v4665_v60, %v4669_v61 }
 0x3e3   : > { %7608 = vmatpush1.bf16.msra.mxu0 %v17132_v55  ;;  %7772 = vmatpush1.bf16.msra.mxu1 %v17134_v37  ;;  %v4653_v55 = vld [vmem:[%s19326_s10 + $0x668] sm:$0xff]  ;;  %v17182_v37 = vcombine.low %v4641_v2, %v4645_v28  ;;  %v4393_v2 = vmul.f32 0.2, %v20167_v56 }
 0x3e4   : > { %7609 = vmatprep.subr.bf16.mxu0 %v17141_v38  ;;  %7773 = vmatprep.subr.bf16.mxu1 %v17143_v40  ;;  %v17189_v38 = vcombine.high %v4648_v33, %v4652_v63  ;;  %v17191_v39 = vcombine.high %v4649_v35, %v4653_v55  ;;  %v4656_v40 = vld [vmem:[%s19326_s10 + $0x680] sm:$0xff]  ;;  %v17190_v52 = vcombine.low %v4649_v35, %v4653_v55  ;;  %v4677_v31 = vld [vmem:[%s19326_s10 + $0x728] sm:$0xff] }
 0x3e5   : > { %v17196_v4 = vcombine.low %v4656_v40, %v4660_v42  ;;  %v17214_v20 = vcombine.low %v4673_v11, %v4677_v31  ;;  %v4689_v27 = vld [vmem:[%s19326_s10 + $0x788] sm:$0xff]  ;;  %v4700_v33 = vld [vmem:[%s19326_s10 + $0x7e0] sm:$0xff]  ;;  %v20216_v55 = vsel %vm4391_vm1, %v20167_v56, %v4393_v2 }
 0x3e6   : > { %v4693_v51 = vld [vmem:[%s19326_s10 + $0x7a8] sm:$0xff] }
 0x3e7   : > { %7610 = vmatpush1.bf16.msra.mxu0 %v17140_v23  ;;  %7774 = vmatpush1.bf16.msra.mxu1 %v17142_v9  ;;  %v17197_v23 = vcombine.high %v4656_v40, %v4660_v42  ;;  %v17199_v9 = vcombine.high %v4657_v45, %v4661_v26  ;;  %v4697_v63 = vld [vmem:[%s19326_s10 + $0x7c8] sm:$0xff]  ;;  %v4704_v40 = vld [vmem:[%s19326_s10 + $0x800] sm:$0xff]  ;;  %v20222_v45 = vrot.slane %v20216_v55, %v20031_v0 }
 0x3e8   : > { %7611 = vmatprep.subr.bf16.mxu0 %v17149_v57  ;;  %7775 = vmatprep.subr.bf16.mxu1 %v17151_v53  ;;  %v4664_v57 = vld [vmem:[%s19326_s10 + $0x6c0] sm:$0xff]  ;;  %v4701_v35 = vld [vmem:[%s19326_s10 + $0x7e8] sm:$0xff] }
 0x3e9   : > { %v4668_v53 = vld [vmem:[%s19326_s10 + $0x6e0] sm:$0xff]  ;;  %v4705_v56 = vld [vmem:[%s19326_s10 + $0x808] sm:$0xff] }
 0x3ea   : > { %v17204_v46 = vcombine.low %v4664_v57, %v4668_v53  ;;  %v4708_v42 = vld [vmem:[%s19326_s10 + $0x820] sm:$0xff]  ;;  %v4709_v26 = vld [vmem:[%s19326_s10 + $0x828] sm:$0xff] }
 0x3eb   : > { %7612 = vmatpush1.bf16.msra.mxu0 %v17148_v6  ;;  %7776 = vmatpush1.bf16.msra.mxu1 %v17150_v7  ;;  %v17205_v6 = vcombine.high %v4664_v57, %v4668_v53  ;;  %v17207_v7 = vcombine.high %v4665_v60, %v4669_v61  ;;  %v4712_v57 = vld [vmem:[%s19326_s10 + $0x840] sm:$0xff]  ;;  %v4430_v60 = vcombine.high %v20222_v45, %v20222_v45  ;;  %v4737_v2 = vld [vmem:[%s19326_s10 + $0x908] sm:$0xff] }
 0x3ec   : > { %7613 = vmatprep.subr.bf16.mxu0 %v17157_v10  ;;  %7777 = vmatprep.subr.bf16.mxu1 %v17159_v12  ;;  %v4672_v10 = vld [vmem:[%s19326_s10 + $0x700] sm:$0xff]  ;;  %v20232_v61 = vpack.c.bf16 %v20103_v43, %v20103_v43  ;;  %v4721_v43 = vld [vmem:[%s19326_s10 + $0x888] sm:$0xff] }
 0x3ed   : > { %v4676_v12 = vld [vmem:[%s19326_s10 + $0x720] sm:$0xff] }
 0x3ee   : > { %v17212_v19 = vcombine.low %v4672_v10, %v4676_v12  ;;  %v4716_v53 = vld [vmem:[%s19326_s10 + $0x860] sm:$0xff] }
 0x3ef   : > { %7614 = vmatpush1.bf16.msra.mxu0 %v17156_v14  ;;  %7778 = vmatpush1.bf16.msra.mxu1 %v17158_v15  ;;  %v17213_v14 = vcombine.high %v4672_v10, %v4676_v12  ;;  %v17215_v15 = vcombine.high %v4673_v11, %v4677_v31  ;;  %v17253_v10 = vcombine.high %v4712_v57, %v4716_v53  ;;  %v4720_v11 = vld [vmem:[%s19326_s10 + $0x880] sm:$0xff] }
 0x3f0   : > { %7615 = vmatprep.subr.bf16.mxu0 %v17165_v59  ;;  %7779 = vmatprep.subr.bf16.mxu1 %v17167_v41  ;;  %v4680_v59 = vld [vmem:[%s19326_s10 + $0x740] sm:$0xff] }
 0x3f1   : > { %v4684_v41 = vld [vmem:[%s19326_s10 + $0x760] sm:$0xff] }
 0x3f2   : > { %v17220_v28 = vcombine.low %v4680_v59, %v4684_v41  ;;  %v4724_v31 = vld [vmem:[%s19326_s10 + $0x8a0] sm:$0xff] }
 0x3f3   : > { %7616 = vmatpush1.bf16.msra.mxu0 %v17164_v58  ;;  %7780 = vmatpush1.bf16.msra.mxu1 %v17166_v21  ;;  %v17221_v58 = vcombine.high %v4680_v59, %v4684_v41  ;;  %v17223_v21 = vcombine.high %v4681_v17, %v4685_v18  ;;  %v17261_v59 = vcombine.high %v4720_v11, %v4724_v31 }
 0x3f4   : > { %7617 = vmatprep.subr.bf16.mxu0 %v17173_v22  ;;  %7781 = vmatprep.subr.bf16.mxu1 %v17175_v24  ;;  %v4688_v22 = vld [vmem:[%s19326_s10 + $0x780] sm:$0xff] }
 0x3f5   : > { %v4692_v24 = vld [vmem:[%s19326_s10 + $0x7a0] sm:$0xff] }
 0x3f7   : > { %7618 = vmatpush1.bf16.msra.mxu0 %v17172_v29  ;;  %7782 = vmatpush1.bf16.msra.mxu1 %v17174_v1  ;;  %v17222_v29 = vcombine.low %v4681_v17, %v4685_v18  ;;  %v17229_v1 = vcombine.high %v4688_v22, %v4692_v24  ;;  %v4728_v17 = vld [vmem:[%s19326_s10 + $0x8c0] sm:$0xff] }
 0x3f8   : > { %7619 = vmatprep.subr.bf16.mxu0 %v17181_v30  ;;  %7783 = vmatprep.subr.bf16.mxu1 %v17183_v32  ;;  %v17231_v30 = vcombine.high %v4689_v27, %v4693_v51  ;;  %v4696_v32 = vld [vmem:[%s19326_s10 + $0x7c0] sm:$0xff] }
 0x3f9   : > { %v4732_v18 = vld [vmem:[%s19326_s10 + $0x8e0] sm:$0xff] }
 0x3fb   : > { %7620 = vmatpush1.bf16.msra.mxu0 %v17180_v36  ;;  %7784 = vmatpush1.bf16.msra.mxu1 %v17182_v37  ;;  %v17228_v36 = vcombine.low %v4688_v22, %v4692_v24  ;;  %v17230_v37 = vcombine.low %v4689_v27, %v4693_v51  ;;  %v17269_v22 = vcombine.high %v4728_v17, %v4732_v18  ;;  %v4736_v27 = vld [vmem:[%s19326_s10 + $0x900] sm:$0xff] }
 0x3fc   : > { %7621 = vmatprep.subr.bf16.mxu0 %v17189_v38  ;;  %7785 = vmatprep.subr.bf16.mxu1 %v17191_v39  ;;  %v17237_v38 = vcombine.high %v4696_v32, %v4700_v33  ;;  %v17239_v39 = vcombine.high %v4697_v63, %v4701_v35  ;;  %v4740_v51 = vld [vmem:[%s19326_s10 + $0x920] sm:$0xff] }
 0x3ff   : > { %7622 = vmatpush1.bf16.msra.mxu0 %v17188_v47  ;;  %7786 = vmatpush1.bf16.msra.mxu1 %v17190_v52  ;;  %v17236_v47 = vcombine.low %v4696_v32, %v4700_v33  ;;  %v17238_v52 = vcombine.low %v4697_v63, %v4701_v35  ;;  %v4744_v33 = vld [vmem:[%s19326_s10 + $0x940] sm:$0xff]  ;;  %v4745_v35 = vld [vmem:[%s19326_s10 + $0x948] sm:$0xff] }
 0x400   : > { %7623 = vmatprep.subr.bf16.mxu0 %v17197_v23  ;;  %7787 = vmatprep.subr.bf16.mxu1 %v17199_v9  ;;  %v17245_v23 = vcombine.high %v4704_v40, %v4708_v42  ;;  %v17247_v9 = vcombine.high %v4705_v56, %v4709_v26  ;;  %v4748_v63 = vld [vmem:[%s19326_s10 + $0x960] sm:$0xff] }
 0x403   : > { %7624 = vmatpush1.bf16.msra.mxu0 %v17196_v4  ;;  %7788 = vmatpush1.bf16.msra.mxu1 %v17198_v5  ;;  %v4713_v4 = vld [vmem:[%s19326_s10 + $0x848] sm:$0xff] }
 0x404   : > { %7625 = vmatprep.subr.bf16.mxu0 %v17205_v6  ;;  %7789 = vmatprep.subr.bf16.mxu1 %v17207_v7  ;;  %v4717_v5 = vld [vmem:[%s19326_s10 + $0x868] sm:$0xff]  ;;  %v17244_v6 = vcombine.low %v4704_v40, %v4708_v42  ;;  %v17246_v7 = vcombine.low %v4705_v56, %v4709_v26  ;;  %v4752_v42 = vld [vmem:[%s19326_s10 + $0x980] sm:$0xff] }
 0x405   : > { %v17255_v12 = vcombine.high %v4713_v4, %v4717_v5  ;;  %v4756_v56 = vld [vmem:[%s19326_s10 + $0x9a0] sm:$0xff]  ;;  %v4753_v26 = vld [vmem:[%s19326_s10 + $0x988] sm:$0xff] }
 0x407   : > { %7626 = vmatpush1.bf16.msra.mxu0 %v17204_v46  ;;  %7790 = vmatpush1.bf16.msra.mxu1 %v17206_v13  ;;  %v20238_v46 = vpack.c.bf16 %v4430_v60, %v4430_v60  ;;  %v4725_v13 = vld [vmem:[%s19326_s10 + $0x8a8] sm:$0xff]  ;;  %v4764_v60 = vld [vmem:[%s19326_s10 + $0x9e0] sm:$0xff] }
 0x408   : > { %7627 = vmatprep.subr.bf16.mxu0 %v17213_v14  ;;  %7791 = vmatprep.subr.bf16.mxu1 %v17215_v15  ;;  %v17252_v14 = vcombine.low %v4712_v57, %v4716_v53  ;;  %v17254_v15 = vcombine.low %v4713_v4, %v4717_v5  ;;  %v17263_v41 = vcombine.high %v4721_v43, %v4725_v13  ;;  %v4760_v53 = vld [vmem:[%s19326_s10 + $0x9c0] sm:$0xff]  ;;  %v4761_v4 = vld [vmem:[%s19326_s10 + $0x9c8] sm:$0xff] }
 0x409   : > { %v4765_v5 = vld [vmem:[%s19326_s10 + $0x9e8] sm:$0xff] }
 0x40b   : > { %7628 = vmatpush1.bf16.msra.mxu0 %v17212_v19  ;;  %7792 = vmatpush1.bf16.msra.mxu1 %v17214_v20  ;;  %v4729_v19 = vld [vmem:[%s19326_s10 + $0x8c8] sm:$0xff] }
 0x40c   : > { %7629 = vmatprep.subr.bf16.mxu0 %v17221_v58  ;;  %7793 = vmatprep.subr.bf16.mxu1 %v17223_v21  ;;  %v4733_v20 = vld [vmem:[%s19326_s10 + $0x8e8] sm:$0xff]  ;;  %v17260_v58 = vcombine.low %v4720_v11, %v4724_v31  ;;  %v17262_v21 = vcombine.low %v4721_v43, %v4725_v13  ;;  %v4768_v11 = vld [vmem:[%s19326_s10 + $0xa00] sm:$0xff] }
 0x40d   : > { %v17271_v24 = vcombine.high %v4729_v19, %v4733_v20  ;;  %v4772_v31 = vld [vmem:[%s19326_s10 + $0xa20] sm:$0xff]  ;;  %v4769_v43 = vld [vmem:[%s19326_s10 + $0xa08] sm:$0xff] }
 0x40e   : > { %v4773_v13 = vld [vmem:[%s19326_s10 + $0xa28] sm:$0xff] }
 0x40f   : > { %7630 = vmatpush1.bf16.msra.mxu0 %v17220_v28  ;;  %7794 = vmatpush1.bf16.msra.mxu1 %v17222_v29  ;;  %v4741_v28 = vld [vmem:[%s19326_s10 + $0x928] sm:$0xff]  ;;  %v17268_v29 = vcombine.low %v4728_v17, %v4732_v18  ;;  %v4776_v17 = vld [vmem:[%s19326_s10 + $0xa40] sm:$0xff] }
 0x410   : > { %7631 = vmatprep.subr.bf16.mxu0 %v17229_v1  ;;  %7795 = vmatprep.subr.bf16.mxu1 %v17231_v30  ;;  %v17270_v1 = vcombine.low %v4729_v19, %v4733_v20  ;;  %v17277_v30 = vcombine.high %v4736_v27, %v4740_v51  ;;  %v17279_v32 = vcombine.high %v4737_v2, %v4741_v28  ;;  %v4780_v18 = vld [vmem:[%s19326_s10 + $0xa60] sm:$0xff]  ;;  %v4777_v19 = vld [vmem:[%s19326_s10 + $0xa48] sm:$0xff] }
 0x411   : > { %v4781_v20 = vld [vmem:[%s19326_s10 + $0xa68] sm:$0xff] }
 0x413   : > { %7632 = vmatpush1.bf16.msra.mxu0 %v17228_v36  ;;  %7796 = vmatpush1.bf16.msra.mxu1 %v17230_v37  ;;  %v4749_v36 = vld [vmem:[%s19326_s10 + $0x968] sm:$0xff]  ;;  %v17276_v37 = vcombine.low %v4736_v27, %v4740_v51  ;;  %v4784_v27 = vld [vmem:[%s19326_s10 + $0xa80] sm:$0xff] }
 0x414   : > { %7633 = vmatprep.subr.bf16.mxu0 %v17237_v38  ;;  %7797 = vmatprep.subr.bf16.mxu1 %v17239_v39  ;;  %v17278_v38 = vcombine.low %v4737_v2, %v4741_v28  ;;  %v17285_v39 = vcombine.high %v4744_v33, %v4748_v63  ;;  %v17287_v40 = vcombine.high %v4745_v35, %v4749_v36  ;;  %v4788_v51 = vld [vmem:[%s19326_s10 + $0xaa0] sm:$0xff]  ;;  %v4785_v2 = vld [vmem:[%s19326_s10 + $0xa88] sm:$0xff] }
 0x415   : > { %v4789_v28 = vld [vmem:[%s19326_s10 + $0xaa8] sm:$0xff] }
 0x417   : > { %7634 = vmatpush1.bf16.msra.mxu0 %v17236_v47  ;;  %7798 = vmatpush1.bf16.msra.mxu1 %v17238_v52  ;;  %v4757_v47 = vld [vmem:[%s19326_s10 + $0x9a8] sm:$0xff]  ;;  %v17284_v52 = vcombine.low %v4744_v33, %v4748_v63  ;;  %v4792_v33 = vld [vmem:[%s19326_s10 + $0xac0] sm:$0xff] }
 0x418   : > { %7644 = vmatprep.subr.bf16.mxu0 %v17245_v23  ;;  %7808 = vmatprep.subr.bf16.mxu1 %v17247_v9  ;;  %v17286_v23 = vcombine.low %v4745_v35, %v4749_v36  ;;  %v17293_v9 = vcombine.high %v4752_v42, %v4756_v56  ;;  %v17295_v57 = vcombine.high %v4753_v26, %v4757_v47  ;;  %v4796_v63 = vld [vmem:[%s19326_s10 + $0xae0] sm:$0xff]  ;;  %v4793_v35 = vld [vmem:[%s19326_s10 + $0xac8] sm:$0xff] }
 0x419   : > { %v4797_v36 = vld [vmem:[%s19326_s10 + $0xae8] sm:$0xff] }
 0x41a   : > { %7636 = vmatmul.mubr.bf16.vlgmr.msra.gmra.mrb[0].mxu0 %v20232_v61  ;;  %7800 = vmatmul.mubr.bf16.vlgmr.msra.gmra.mrb[0].mxu1 %v20232_v61 }
 0x41b   : > { %7645 = vmatpush1.bf16.msra.mxu0 %v17244_v6  ;;  %7809 = vmatpush1.bf16.msra.mxu1 %v17246_v7  ;;  %v17292_v6 = vcombine.low %v4752_v42, %v4756_v56  ;;  %v17294_v7 = vcombine.low %v4753_v26, %v4757_v47  ;;  %v4800_v42 = vld [vmem:[%s19326_s10 + $0xb00] sm:$0xff]  ;;  %v4801_v26 = vld [vmem:[%s19326_s10 + $0xb08] sm:$0xff] }
 0x41c   : > { %7646 = vmatprep.subr.bf16.mxu0 %v17253_v10  ;;  %7810 = vmatprep.subr.bf16.mxu1 %v17255_v12  ;;  %v17301_v10 = vcombine.high %v4760_v53, %v4764_v60  ;;  %v17303_v12 = vcombine.high %v4761_v4, %v4765_v5  ;;  %v4804_v56 = vld [vmem:[%s19326_s10 + $0xb20] sm:$0xff]  ;;  %v4805_v47 = vld [vmem:[%s19326_s10 + $0xb28] sm:$0xff] }
 0x41d   : > { %7676 = vmatprep.mubr.bf16.mxu0 %v20238_v46  ;;  %7840 = vmatprep.mubr.bf16.mxu1 %v20238_v46 }
 0x41f   : > { %7647 = vmatpush1.bf16.msra.mxu0 %v17252_v14  ;;  %7811 = vmatpush1.bf16.msra.mxu1 %v17254_v15  ;;  %v17300_v14 = vcombine.low %v4760_v53, %v4764_v60  ;;  %v17302_v15 = vcombine.low %v4761_v4, %v4765_v5  ;;  %v4808_v53 = vld [vmem:[%s19326_s10 + $0xb40] sm:$0xff]  ;;  %v4809_v4 = vld [vmem:[%s19326_s10 + $0xb48] sm:$0xff] }
 0x420   : > { %7648 = vmatprep.subr.bf16.mxu0 %v17261_v59  ;;  %7812 = vmatprep.subr.bf16.mxu1 %v17263_v41  ;;  %v17309_v59 = vcombine.high %v4768_v11, %v4772_v31  ;;  %v17311_v41 = vcombine.high %v4769_v43, %v4773_v13  ;;  %v4812_v60 = vld [vmem:[%s19326_s10 + $0xb60] sm:$0xff]  ;;  %v4813_v5 = vld [vmem:[%s19326_s10 + $0xb68] sm:$0xff] }
 0x423   : > { %7649 = vmatpush1.bf16.msra.mxu0 %v17260_v58  ;;  %7813 = vmatpush1.bf16.msra.mxu1 %v17262_v21  ;;  %v17308_v58 = vcombine.low %v4768_v11, %v4772_v31  ;;  %v17310_v21 = vcombine.low %v4769_v43, %v4773_v13  ;;  %v4816_v11 = vld [vmem:[%s19326_s10 + $0xb80] sm:$0xff]  ;;  %v4817_v43 = vld [vmem:[%s19326_s10 + $0xb88] sm:$0xff] }
 0x424   : > { %7650 = vmatprep.subr.bf16.mxu0 %v17269_v22  ;;  %7814 = vmatprep.subr.bf16.mxu1 %v17271_v24  ;;  %v17317_v22 = vcombine.high %v4776_v17, %v4780_v18  ;;  %v17319_v24 = vcombine.high %v4777_v19, %v4781_v20  ;;  %v4820_v31 = vld [vmem:[%s19326_s10 + $0xba0] sm:$0xff]  ;;  %v4821_v13 = vld [vmem:[%s19326_s10 + $0xba8] sm:$0xff] }
 0x427   : > { %7651 = vmatpush1.bf16.msra.mxu0 %v17268_v29  ;;  %7815 = vmatpush1.bf16.msra.mxu1 %v17270_v1  ;;  %v17316_v29 = vcombine.low %v4776_v17, %v4780_v18  ;;  %v17318_v1 = vcombine.low %v4777_v19, %v4781_v20  ;;  %v4824_v17 = vld [vmem:[%s19326_s10 + $0xbc0] sm:$0xff]  ;;  %v4415_v19 = vcombine.high %v20216_v55, %v20216_v55  ;;  %v4825_v20 = vld [vmem:[%s19326_s10 + $0xbc8] sm:$0xff] }
 0x428   : > { %7652 = vmatprep.subr.bf16.mxu0 %v17277_v30  ;;  %7816 = vmatprep.subr.bf16.mxu1 %v17279_v32  ;;  %v17325_v30 = vcombine.high %v4784_v27, %v4788_v51  ;;  %v17327_v32 = vcombine.high %v4785_v2, %v4789_v28  ;;  %v4828_v18 = vld [vmem:[%s19326_s10 + $0xbe0] sm:$0xff]  ;;  %v4833_v55 = vld [vmem:[%s19326_s10 + $0xc08] sm:$0xff] }
 0x42b   : > { %7653 = vmatpush1.bf16.msra.mxu0 %v17276_v37  ;;  %7817 = vmatpush1.bf16.msra.mxu1 %v17278_v38  ;;  %v17324_v37 = vcombine.low %v4784_v27, %v4788_v51  ;;  %v17326_v38 = vcombine.low %v4785_v2, %v4789_v28  ;;  %v4832_v51 = vld [vmem:[%s19326_s10 + $0xc00] sm:$0xff]  ;;  %v20303_v28 = vrot.slane %v4415_v19, %v20031_v0 }
 0x42c   : > { %7654 = vmatprep.subr.bf16.mxu0 %v17285_v39  ;;  %7818 = vmatprep.subr.bf16.mxu1 %v17287_v40  ;;  %v17333_v39 = vcombine.high %v4792_v33, %v4796_v63  ;;  %v17335_v40 = vcombine.high %v4793_v35, %v4797_v36  ;;  %v4836_v2 = vld [vmem:[%s19326_s10 + $0xc20] sm:$0xff] }
 0x42f   : > { %7655 = vmatpush1.bf16.msra.mxu0 %v17284_v52  ;;  %7819 = vmatpush1.bf16.msra.mxu1 %v17286_v23  ;;  %v17332_v52 = vcombine.low %v4792_v33, %v4796_v63  ;;  %v17334_v23 = vcombine.low %v4793_v35, %v4797_v36  ;;  %v4840_v63 = vld [vmem:[%s19326_s10 + $0xc40] sm:$0xff]  ;;  %v4431_v36 = vcombine.high %v20303_v28, %v20303_v28 }
 0x430   : > { %7656 = vmatprep.subr.bf16.mxu0 %v17293_v9  ;;  %7820 = vmatprep.subr.bf16.mxu1 %v17295_v57  ;;  %v17341_v9 = vcombine.high %v4800_v42, %v4804_v56  ;;  %v17343_v57 = vcombine.high %v4801_v26, %v4805_v47  ;;  %v4844_v35 = vld [vmem:[%s19326_s10 + $0xc60] sm:$0xff] }
 0x433   : > { %7657 = vmatpush1.bf16.msra.mxu0 %v17292_v6  ;;  %7821 = vmatpush1.bf16.msra.mxu1 %v17294_v7  ;;  %v17340_v6 = vcombine.low %v4800_v42, %v4804_v56  ;;  %v17342_v7 = vcombine.low %v4801_v26, %v4805_v47  ;;  %v17381_v56 = vcombine.high %v4840_v63, %v4844_v35  ;;  %v4848_v47 = vld [vmem:[%s19326_s10 + $0xc80] sm:$0xff] }
 0x434   : > { %7658 = vmatprep.subr.bf16.mxu0 %v17301_v10  ;;  %7822 = vmatprep.subr.bf16.mxu1 %v17303_v12  ;;  %v17349_v10 = vcombine.high %v4808_v53, %v4812_v60  ;;  %v17351_v12 = vcombine.high %v4809_v4, %v4813_v5 }
 0x437   : > { %7659 = vmatpush1.bf16.msra.mxu0 %v17300_v14  ;;  %7823 = vmatpush1.bf16.msra.mxu1 %v17302_v15  ;;  %v17348_v14 = vcombine.low %v4808_v53, %v4812_v60  ;;  %v17350_v15 = vcombine.low %v4809_v4, %v4813_v5  ;;  %v4856_v5 = vld [vmem:[%s19326_s10 + $0xcc0] sm:$0xff] }
 0x438   : > { %7660 = vmatprep.subr.bf16.mxu0 %v17309_v59  ;;  %7824 = vmatprep.subr.bf16.mxu1 %v17311_v41  ;;  %v17357_v59 = vcombine.high %v4816_v11, %v4820_v31  ;;  %v17359_v41 = vcombine.high %v4817_v43, %v4821_v13 }
 0x43b   : > { %7661 = vmatpush1.bf16.msra.mxu0 %v17308_v58  ;;  %7825 = vmatpush1.bf16.msra.mxu1 %v17310_v21  ;;  %v4829_v58 = vld [vmem:[%s19326_s10 + $0xbe8] sm:$0xff]  ;;  %v17356_v21 = vcombine.low %v4816_v11, %v4820_v31 }
 0x43c   : > { %7662 = vmatprep.subr.bf16.mxu0 %v17317_v22  ;;  %7826 = vmatprep.subr.bf16.mxu1 %v17319_v24  ;;  %v17358_v22 = vcombine.low %v4817_v43, %v4821_v13  ;;  %v17365_v24 = vcombine.high %v4824_v17, %v4828_v18  ;;  %v17367_v27 = vcombine.high %v4825_v20, %v4829_v58  ;;  %v4864_v13 = vld [vmem:[%s19326_s10 + $0xd00] sm:$0xff] }
 0x43f   : > { %7663 = vmatpush1.bf16.msra.mxu0 %v17316_v29  ;;  %7827 = vmatpush1.bf16.msra.mxu1 %v17318_v1  ;;  %v4837_v29 = vld [vmem:[%s19326_s10 + $0xc28] sm:$0xff]  ;;  %v17364_v1 = vcombine.low %v4824_v17, %v4828_v18 }
 0x440   : > { %7664 = vmatprep.subr.bf16.mxu0 %v17325_v30  ;;  %7828 = vmatprep.subr.bf16.mxu1 %v17327_v32  ;;  %v17366_v30 = vcombine.low %v4825_v20, %v4829_v58  ;;  %v17373_v32 = vcombine.high %v4832_v51, %v4836_v2  ;;  %v17375_v33 = vcombine.high %v4833_v55, %v4837_v29  ;;  %v4872_v20 = vld [vmem:[%s19326_s10 + $0xd40] sm:$0xff] }
 0x441   : > { %v17374_v42 = vcombine.low %v4833_v55, %v4837_v29  ;;  %v4876_v58 = vld [vmem:[%s19326_s10 + $0xd60] sm:$0xff] }
 0x442   : > { %v4880_v55 = vld [vmem:[%s19326_s10 + $0xd80] sm:$0xff] }
 0x443   : > { %7665 = vmatpush1.bf16.msra.mxu0 %v17324_v37  ;;  %7829 = vmatpush1.bf16.msra.mxu1 %v17326_v38  ;;  %v20313_v37 = vpack.c.bf16 %v20222_v45, %v20222_v45  ;;  %v4841_v38 = vld [vmem:[%s19326_s10 + $0xc48] sm:$0xff]  ;;  %v4884_v29 = vld [vmem:[%s19326_s10 + $0xda0] sm:$0xff] }
 0x444   : > { %7666 = vmatprep.subr.bf16.mxu0 %v17333_v39  ;;  %7830 = vmatprep.subr.bf16.mxu1 %v17335_v40  ;;  %v4845_v39 = vld [vmem:[%s19326_s10 + $0xc68] sm:$0xff]  ;;  %v17372_v40 = vcombine.low %v4832_v51, %v4836_v2  ;;  %v17413_v51 = vcombine.high %v4872_v20, %v4876_v58 }
 0x445   : > { %v17383_v26 = vcombine.high %v4841_v38, %v4845_v39  ;;  %v4849_v45 = vld [vmem:[%s19326_s10 + $0xc88] sm:$0xff]  ;;  %v17382_v53 = vcombine.low %v4841_v38, %v4845_v39  ;;  %v4892_v38 = vld [vmem:[%s19326_s10 + $0xde0] sm:$0xff] }
 0x446   : > { %v4889_v39 = vld [vmem:[%s19326_s10 + $0xdc8] sm:$0xff] }
 0x447   : > { %7667 = vmatpush1.bf16.msra.mxu0 %v17332_v52  ;;  %7831 = vmatpush1.bf16.msra.mxu1 %v17334_v23  ;;  %v4852_v52 = vld [vmem:[%s19326_s10 + $0xca0] sm:$0xff]  ;;  %v20319_v23 = vpack.c.bf16 %v4431_v36, %v4431_v36 }
 0x448   : > { %7668 = vmatprep.subr.bf16.mxu0 %v17341_v9  ;;  %7832 = vmatprep.subr.bf16.mxu1 %v17343_v57  ;;  %v4853_v9 = vld [vmem:[%s19326_s10 + $0xca8] sm:$0xff]  ;;  %v17380_v57 = vcombine.low %v4840_v63, %v4844_v35  ;;  %v17389_v60 = vcombine.high %v4848_v47, %v4852_v52  ;;  %v17421_v63 = vcombine.high %v4880_v55, %v4884_v29  ;;  %v4888_v36 = vld [vmem:[%s19326_s10 + $0xdc0] sm:$0xff] }
 0x449   : > { %v17391_v4 = vcombine.high %v4849_v45, %v4853_v9  ;;  %v17390_v11 = vcombine.low %v4849_v45, %v4853_v9  ;;  %v4900_v45 = vld [vmem:[%s19326_s10 + $0xe20] sm:$0xff]  ;;  %v4897_v9 = vld [vmem:[%s19326_s10 + $0xe08] sm:$0xff] }
 0x44b   : > { %7669 = vmatpush1.bf16.msra.mxu0 %v17340_v6  ;;  %7833 = vmatpush1.bf16.msra.mxu1 %v17342_v7  ;;  %v4860_v6 = vld [vmem:[%s19326_s10 + $0xce0] sm:$0xff]  ;;  %v4857_v7 = vld [vmem:[%s19326_s10 + $0xcc8] sm:$0xff] }
 0x44c   : > { %7670 = vmatprep.subr.bf16.mxu0 %v17349_v10  ;;  %7834 = vmatprep.subr.bf16.mxu1 %v17351_v12  ;;  %v4861_v10 = vld [vmem:[%s19326_s10 + $0xce8] sm:$0xff]  ;;  %v17388_v12 = vcombine.low %v4848_v47, %v4852_v52  ;;  %v17397_v31 = vcombine.high %v4856_v5, %v4860_v6  ;;  %v4896_v52 = vld [vmem:[%s19326_s10 + $0xe00] sm:$0xff] }
 0x44d   : > { %v17399_v43 = vcombine.high %v4857_v7, %v4861_v10  ;;  %v17398_v17 = vcombine.low %v4857_v7, %v4861_v10  ;;  %v4908_v7 = vld [vmem:[%s19326_s10 + $0xe60] sm:$0xff]  ;;  %v4905_v10 = vld [vmem:[%s19326_s10 + $0xe48] sm:$0xff] }
 0x44f   : > { %7671 = vmatpush1.bf16.msra.mxu0 %v17348_v14  ;;  %7835 = vmatpush1.bf16.msra.mxu1 %v17350_v15  ;;  %v4868_v14 = vld [vmem:[%s19326_s10 + $0xd20] sm:$0xff]  ;;  %v4865_v15 = vld [vmem:[%s19326_s10 + $0xd08] sm:$0xff] }
 0x450   : > { %7672 = vmatprep.subr.bf16.mxu0 %v17357_v59  ;;  %7836 = vmatprep.subr.bf16.mxu1 %v17359_v41  ;;  %v4869_v59 = vld [vmem:[%s19326_s10 + $0xd28] sm:$0xff]  ;;  %v17396_v41 = vcombine.low %v4856_v5, %v4860_v6  ;;  %v17405_v18 = vcombine.high %v4864_v13, %v4868_v14  ;;  %v4904_v6 = vld [vmem:[%s19326_s10 + $0xe40] sm:$0xff] }
 0x451   : > { %v17407_v19 = vcombine.high %v4865_v15, %v4869_v59 }
 0x453   : > { %7673 = vmatpush1.bf16.msra.mxu0 %v17356_v21  ;;  %7837 = vmatpush1.bf16.msra.mxu1 %v17358_v22  ;;  %v4873_v21 = vld [vmem:[%s19326_s10 + $0xd48] sm:$0xff] }
 0x454   : > { %7674 = vmatprep.subr.bf16.mxu0 %v17365_v24  ;;  %7838 = vmatprep.subr.bf16.mxu1 %v17367_v27  ;;  %v4877_v22 = vld [vmem:[%s19326_s10 + $0xd68] sm:$0xff]  ;;  %v17404_v24 = vcombine.low %v4864_v13, %v4868_v14  ;;  %v17406_v27 = vcombine.low %v4865_v15, %v4869_v59  ;;  %v4912_v14 = vld [vmem:[%s19326_s10 + $0xe80] sm:$0xff] }
 0x455   : > { %v17415_v2 = vcombine.high %v4873_v21, %v4877_v22  ;;  %v4916_v15 = vld [vmem:[%s19326_s10 + $0xea0] sm:$0xff]  ;;  %v4913_v59 = vld [vmem:[%s19326_s10 + $0xe88] sm:$0xff] }
 0x457   : > { %7675 = vmatpush1.bf16.msra.mxu0 %v17364_v1  ;;  %7839 = vmatpush1.bf16.msra.mxu1 %v17366_v30  ;;  %v4881_v1 = vld [vmem:[%s19326_s10 + $0xd88] sm:$0xff] }
 0x458   : > { %7685 = vmatprep.subr.bf16.mxu0 %v17373_v32  ;;  %7849 = vmatprep.subr.bf16.mxu1 %v17375_v33  ;;  %v4885_v30 = vld [vmem:[%s19326_s10 + $0xda8] sm:$0xff]  ;;  %v17412_v32 = vcombine.low %v4872_v20, %v4876_v58  ;;  %v17414_v33 = vcombine.low %v4873_v21, %v4877_v22  ;;  %v4920_v58 = vld [vmem:[%s19326_s10 + $0xec0] sm:$0xff] }
 0x459   : > { %v17423_v35 = vcombine.high %v4881_v1, %v4885_v30  ;;  %v4924_v21 = vld [vmem:[%s19326_s10 + $0xee0] sm:$0xff]  ;;  %v4921_v22 = vld [vmem:[%s19326_s10 + $0xec8] sm:$0xff] }
 0x45a   : > { %7677 = vmatmul.mubr.bf16.vlgmr.msra.gmra.mrb[0].mxu0 %v20313_v37  ;;  %7841 = vmatmul.mubr.bf16.vlgmr.msra.gmra.mrb[0].mxu1 %v20313_v37 }
 0x45b   : > { %7686 = vmatpush1.bf16.msra.mxu0 %v17372_v40  ;;  %7850 = vmatpush1.bf16.msra.mxu1 %v17374_v42  ;;  %v4893_v40 = vld [vmem:[%s19326_s10 + $0xde8] sm:$0xff]  ;;  %v17420_v42 = vcombine.low %v4880_v55, %v4884_v29  ;;  %v4928_v29 = vld [vmem:[%s19326_s10 + $0xf00] sm:$0xff] }
 0x45c   : > { %7687 = vmatprep.subr.bf16.mxu0 %v17381_v56  ;;  %7851 = vmatprep.subr.bf16.mxu1 %v17383_v26  ;;  %v17422_v56 = vcombine.low %v4881_v1, %v4885_v30  ;;  %v17429_v26 = vcombine.high %v4888_v36, %v4892_v38  ;;  %v17431_v47 = vcombine.high %v4889_v39, %v4893_v40  ;;  %v4932_v1 = vld [vmem:[%s19326_s10 + $0xf20] sm:$0xff]  ;;  %v4929_v30 = vld [vmem:[%s19326_s10 + $0xf08] sm:$0xff] }
 0x45d   : > { %7717 = vmatprep.mubr.bf16.mxu0 %v20319_v23  ;;  %7881 = vmatprep.mubr.bf16.mxu1 %v20319_v23 }
 0x45f   : > { %7688 = vmatpush1.bf16.msra.mxu0 %v17380_v57  ;;  %7852 = vmatpush1.bf16.msra.mxu1 %v17382_v53  ;;  %v4901_v57 = vld [vmem:[%s19326_s10 + $0xe28] sm:$0xff]  ;;  %v17428_v53 = vcombine.low %v4888_v36, %v4892_v38  ;;  %v4936_v38 = vld [vmem:[%s19326_s10 + $0xf40] sm:$0xff] }
 0x460   : > { %7689 = vmatprep.subr.bf16.mxu0 %v17389_v60  ;;  %7853 = vmatprep.subr.bf16.mxu1 %v17391_v4  ;;  %v17430_v60 = vcombine.low %v4889_v39, %v4893_v40  ;;  %v17437_v4 = vcombine.high %v4896_v52, %v4900_v45  ;;  %v17439_v5 = vcombine.high %v4897_v9, %v4901_v57  ;;  %v4940_v39 = vld [vmem:[%s19326_s10 + $0xf60] sm:$0xff]  ;;  %v4937_v40 = vld [vmem:[%s19326_s10 + $0xf48] sm:$0xff] }
 0x463   : > { %7690 = vmatpush1.bf16.msra.mxu0 %v17388_v12  ;;  %7854 = vmatpush1.bf16.msra.mxu1 %v17390_v11  ;;  %v4909_v12 = vld [vmem:[%s19326_s10 + $0xe68] sm:$0xff]  ;;  %v17436_v11 = vcombine.low %v4896_v52, %v4900_v45  ;;  %v4944_v45 = vld [vmem:[%s19326_s10 + $0xf80] sm:$0xff] }
 0x464   : > { %7691 = vmatprep.subr.bf16.mxu0 %v17397_v31  ;;  %7855 = vmatprep.subr.bf16.mxu1 %v17399_v43  ;;  %v17438_v31 = vcombine.low %v4897_v9, %v4901_v57  ;;  %v17445_v43 = vcombine.high %v4904_v6, %v4908_v7  ;;  %v17447_v13 = vcombine.high %v4905_v10, %v4909_v12  ;;  %v4948_v9 = vld [vmem:[%s19326_s10 + $0xfa0] sm:$0xff]  ;;  %v4945_v57 = vld [vmem:[%s19326_s10 + $0xf88] sm:$0xff] }
 0x467   : > { %7692 = vmatpush1.bf16.msra.mxu0 %v17396_v41  ;;  %7856 = vmatpush1.bf16.msra.mxu1 %v17398_v17  ;;  %v4917_v41 = vld [vmem:[%s19326_s10 + $0xea8] sm:$0xff]  ;;  %v17444_v17 = vcombine.low %v4904_v6, %v4908_v7  ;;  %v4952_v7 = vld [vmem:[%s19326_s10 + $0xfc0] sm:$0xff] }
 0x468   : > { %7693 = vmatprep.subr.bf16.mxu0 %v17405_v18  ;;  %7857 = vmatprep.subr.bf16.mxu1 %v17407_v19  ;;  %v17446_v18 = vcombine.low %v4905_v10, %v4909_v12  ;;  %v17453_v19 = vcombine.high %v4912_v14, %v4916_v15  ;;  %v17455_v20 = vcombine.high %v4913_v59, %v4917_v41  ;;  %v4956_v10 = vld [vmem:[%s19326_s10 + $0xfe0] sm:$0xff]  ;;  %v4953_v12 = vld [vmem:[%s19326_s10 + $0xfc8] sm:$0xff] }
 0x46b   : > { %7694 = vmatpush1.bf16.msra.mxu0 %v17404_v24  ;;  %7858 = vmatpush1.bf16.msra.mxu1 %v17406_v27  ;;  %v4925_v24 = vld [vmem:[%s19326_s10 + $0xee8] sm:$0xff]  ;;  %v17452_v27 = vcombine.low %v4912_v14, %v4916_v15  ;;  %v4450_v15 = vld [vmem:[%s19326_s10 + $0x10] sm:$0xff] }
 0x46c   : > { %7695 = vmatprep.subr.bf16.mxu0 %v17413_v51  ;;  %7859 = vmatprep.subr.bf16.mxu1 %v17415_v2  ;;  %v17454_v51 = vcombine.low %v4913_v59, %v4917_v41  ;;  %v17461_v2 = vcombine.high %v4920_v58, %v4924_v21  ;;  %v17463_v55 = vcombine.high %v4921_v22, %v4925_v24  ;;  %v4454_v59 = vld [vmem:[%s19326_s10 + $0x30] sm:$0xff]  ;;  %v4451_v41 = vld [vmem:[%s19326_s10 + $0x18] sm:$0xff] }
 0x46f   : > { %7696 = vmatpush1.bf16.msra.mxu0 %v17412_v32  ;;  %7860 = vmatpush1.bf16.msra.mxu1 %v17414_v33  ;;  %v4933_v32 = vld [vmem:[%s19326_s10 + $0xf28] sm:$0xff]  ;;  %v17460_v33 = vcombine.low %v4920_v58, %v4924_v21  ;;  %v4458_v21 = vld [vmem:[%s19326_s10 + $0x50] sm:$0xff] }
 0x470   : > { %7697 = vmatprep.subr.bf16.mxu0 %v17421_v63  ;;  %7861 = vmatprep.subr.bf16.mxu1 %v17423_v35  ;;  %v17462_v63 = vcombine.low %v4921_v22, %v4925_v24  ;;  %v17469_v35 = vcombine.high %v4928_v29, %v4932_v1  ;;  %v17471_v36 = vcombine.high %v4929_v30, %v4933_v32  ;;  %v4462_v22 = vld [vmem:[%s19326_s10 + $0x70] sm:$0xff] }
 0x471   : > { %v20387_v24 = vpack.c.bf16 %v20303_v28, %v20303_v28  ;;  %v4467_v28 = vld [vmem:[%s19326_s10 + $0x98] sm:$0xff] }
 0x473   : > { %7698 = vmatpush1.bf16.msra.mxu0 %v17420_v42  ;;  %7862 = vmatpush1.bf16.msra.mxu1 %v17422_v56  ;;  %v4941_v42 = vld [vmem:[%s19326_s10 + $0xf68] sm:$0xff]  ;;  %v17468_v56 = vcombine.low %v4928_v29, %v4932_v1  ;;  %v17001_v29 = vcombine.high %v4458_v21, %v4462_v22 }
 0x474   : > { %7699 = vmatprep.subr.bf16.mxu0 %v17429_v26  ;;  %7863 = vmatprep.subr.bf16.mxu1 %v17431_v47  ;;  %v17470_v26 = vcombine.low %v4929_v30, %v4933_v32  ;;  %v17477_v47 = vcombine.high %v4936_v38, %v4940_v39  ;;  %v17479_v52 = vcombine.high %v4937_v40, %v4941_v42  ;;  %v4466_v30 = vld [vmem:[%s19326_s10 + $0x90] sm:$0xff] }
 0x475   : > { %v4470_v32 = vld [vmem:[%s19326_s10 + $0xb0] sm:$0xff] }
 0x477   : > { %7700 = vmatpush1.bf16.msra.mxu0 %v17428_v53  ;;  %7864 = vmatpush1.bf16.msra.mxu1 %v17430_v60  ;;  %v4949_v53 = vld [vmem:[%s19326_s10 + $0xfa8] sm:$0xff]  ;;  %v17476_v60 = vcombine.low %v4936_v38, %v4940_v39  ;;  %v4474_v39 = vld [vmem:[%s19326_s10 + $0xd0] sm:$0xff] }
 0x478   : > { %7701 = vmatprep.subr.bf16.mxu0 %v17437_v4  ;;  %7865 = vmatprep.subr.bf16.mxu1 %v17439_v5  ;;  %v17478_v4 = vcombine.low %v4937_v40, %v4941_v42  ;;  %v17485_v5 = vcombine.high %v4944_v45, %v4948_v9  ;;  %v17487_v6 = vcombine.high %v4945_v57, %v4949_v53  ;;  %v4478_v40 = vld [vmem:[%s19326_s10 + $0xf0] sm:$0xff]  ;;  %v4475_v42 = vld [vmem:[%s19326_s10 + $0xd8] sm:$0xff] }
 0x47b   : > { %7702 = vmatpush1.bf16.msra.mxu0 %v17436_v11  ;;  %7866 = vmatpush1.bf16.msra.mxu1 %v17438_v31  ;;  %v4957_v11 = vld [vmem:[%s19326_s10 + $0xfe8] sm:$0xff]  ;;  %v17484_v31 = vcombine.low %v4944_v45, %v4948_v9  ;;  %v4482_v9 = vld [vmem:[%s19326_s10 + $0x110] sm:$0xff] }
 0x47c   : > { %7703 = vmatprep.subr.bf16.mxu0 %v17445_v43  ;;  %7867 = vmatprep.subr.bf16.mxu1 %v17447_v13  ;;  %v17486_v43 = vcombine.low %v4945_v57, %v4949_v53  ;;  %v17493_v13 = vcombine.high %v4952_v7, %v4956_v10  ;;  %v17495_v14 = vcombine.high %v4953_v12, %v4957_v11  ;;  %v4486_v57 = vld [vmem:[%s19326_s10 + $0x130] sm:$0xff]  ;;  %v4483_v53 = vld [vmem:[%s19326_s10 + $0x118] sm:$0xff] }
 0x47f   : > { %7704 = vmatpush1.bf16.msra.mxu0 %v17444_v17  ;;  %7868 = vmatpush1.bf16.msra.mxu1 %v17446_v18  ;;  %v4455_v17 = vld [vmem:[%s19326_s10 + $0x38] sm:$0xff]  ;;  %v17492_v18 = vcombine.low %v4952_v7, %v4956_v10  ;;  %v4490_v7 = vld [vmem:[%s19326_s10 + $0x150] sm:$0xff] }
 0x480   : > { %7705 = vmatprep.subr.bf16.mxu0 %v17453_v19  ;;  %7869 = vmatprep.subr.bf16.mxu1 %v17455_v20  ;;  %v17494_v19 = vcombine.low %v4953_v12, %v4957_v11  ;;  %v16993_v20 = vcombine.high %v4450_v15, %v4454_v59  ;;  %v16995_v58 = vcombine.high %v4451_v41, %v4455_v17  ;;  %v4494_v10 = vld [vmem:[%s19326_s10 + $0x170] sm:$0xff]  ;;  %v4491_v12 = vld [vmem:[%s19326_s10 + $0x158] sm:$0xff] }
 0x481   : > { %v4495_v11 = vld [vmem:[%s19326_s10 + $0x178] sm:$0xff] }
 0x483   : > { %7706 = vmatpush1.bf16.msra.mxu0 %v17452_v27  ;;  %7870 = vmatpush1.bf16.msra.mxu1 %v17454_v51  ;;  %v4459_v27 = vld [vmem:[%s19326_s10 + $0x58] sm:$0xff] }
 0x484   : > { %7707 = vmatprep.subr.bf16.mxu0 %v17461_v2  ;;  %7871 = vmatprep.subr.bf16.mxu1 %v17463_v55  ;;  %v4463_v51 = vld [vmem:[%s19326_s10 + $0x78] sm:$0xff]  ;;  %v16992_v2 = vcombine.low %v4450_v15, %v4454_v59  ;;  %v16994_v55 = vcombine.low %v4451_v41, %v4455_v17  ;;  %v4498_v15 = vld [vmem:[%s19326_s10 + $0x190] sm:$0xff] }
 0x485   : > { %v17003_v1 = vcombine.high %v4459_v27, %v4463_v51  ;;  %v4502_v59 = vld [vmem:[%s19326_s10 + $0x1b0] sm:$0xff]  ;;  %v4499_v41 = vld [vmem:[%s19326_s10 + $0x198] sm:$0xff] }
 0x486   : > { %v4503_v17 = vld [vmem:[%s19326_s10 + $0x1b8] sm:$0xff] }
 0x487   : > { %7708 = vmatpush1.bf16.msra.mxu0 %v17460_v33  ;;  %7872 = vmatpush1.bf16.msra.mxu1 %v17462_v63  ;;  %v4471_v33 = vld [vmem:[%s19326_s10 + $0xb8] sm:$0xff]  ;;  %v17000_v63 = vcombine.low %v4458_v21, %v4462_v22  ;;  %v4506_v21 = vld [vmem:[%s19326_s10 + $0x1d0] sm:$0xff] }
 0x488   : > { %7709 = vmatprep.subr.bf16.mxu0 %v17469_v35  ;;  %7873 = vmatprep.subr.bf16.mxu1 %v17471_v36  ;;  %v17002_v35 = vcombine.low %v4459_v27, %v4463_v51  ;;  %v17009_v36 = vcombine.high %v4466_v30, %v4470_v32  ;;  %v17011_v38 = vcombine.high %v4467_v28, %v4471_v33  ;;  %v4510_v22 = vld [vmem:[%s19326_s10 + $0x1f0] sm:$0xff]  ;;  %v4507_v27 = vld [vmem:[%s19326_s10 + $0x1d8] sm:$0xff] }
 0x489   : > { %v4511_v51 = vld [vmem:[%s19326_s10 + $0x1f8] sm:$0xff] }
 0x48b   : > { %7710 = vmatpush1.bf16.msra.mxu0 %v17468_v56  ;;  %7874 = vmatpush1.bf16.msra.mxu1 %v17470_v26  ;;  %v4479_v56 = vld [vmem:[%s19326_s10 + $0xf8] sm:$0xff]  ;;  %v17008_v26 = vcombine.low %v4466_v30, %v4470_v32  ;;  %v4514_v30 = vld [vmem:[%s19326_s10 + $0x210] sm:$0xff] }
 0x48c   : > { %7711 = vmatprep.subr.bf16.mxu0 %v17477_v47  ;;  %7875 = vmatprep.subr.bf16.mxu1 %v17479_v52  ;;  %v17010_v47 = vcombine.low %v4467_v28, %v4471_v33  ;;  %v17017_v52 = vcombine.high %v4474_v39, %v4478_v40  ;;  %v17019_v45 = vcombine.high %v4475_v42, %v4479_v56  ;;  %v4518_v32 = vld [vmem:[%s19326_s10 + $0x230] sm:$0xff]  ;;  %v4515_v28 = vld [vmem:[%s19326_s10 + $0x218] sm:$0xff] }
 0x48d   : > { %v4519_v33 = vld [vmem:[%s19326_s10 + $0x238] sm:$0xff] }
 0x48f   : > { %7712 = vmatpush1.bf16.msra.mxu0 %v17476_v60  ;;  %7876 = vmatpush1.bf16.msra.mxu1 %v17478_v4  ;;  %v4487_v60 = vld [vmem:[%s19326_s10 + $0x138] sm:$0xff]  ;;  %v17016_v4 = vcombine.low %v4474_v39, %v4478_v40  ;;  %v4522_v39 = vld [vmem:[%s19326_s10 + $0x250] sm:$0xff] }
 0x490   : > { %7713 = vmatprep.subr.bf16.mxu0 %v17485_v5  ;;  %7877 = vmatprep.subr.bf16.mxu1 %v17487_v6  ;;  %v17025_v5 = vcombine.high %v4482_v9, %v4486_v57  ;;  %v17027_v6 = vcombine.high %v4483_v53, %v4487_v60  ;;  %v4526_v40 = vld [vmem:[%s19326_s10 + $0x270] sm:$0xff] }
 0x493   : > { %7714 = vmatpush1.bf16.msra.mxu0 %v17484_v31  ;;  %7878 = vmatpush1.bf16.msra.mxu1 %v17486_v43  ;;  %v17024_v31 = vcombine.low %v4482_v9, %v4486_v57  ;;  %v17026_v43 = vcombine.low %v4483_v53, %v4487_v60  ;;  %v4530_v9 = vld [vmem:[%s19326_s10 + $0x290] sm:$0xff]  ;;  %v4531_v53 = vld [vmem:[%s19326_s10 + $0x298] sm:$0xff] }
 0x494   : > { %7715 = vmatprep.subr.bf16.mxu0 %v17493_v13  ;;  %7879 = vmatprep.subr.bf16.mxu1 %v17495_v14  ;;  %v17033_v13 = vcombine.high %v4490_v7, %v4494_v10  ;;  %v17035_v14 = vcombine.high %v4491_v12, %v4495_v11  ;;  %v4534_v57 = vld [vmem:[%s19326_s10 + $0x2b0] sm:$0xff]  ;;  %v4535_v60 = vld [vmem:[%s19326_s10 + $0x2b8] sm:$0xff] }
 0x497   : > { %7716 = vmatpush1.bf16.msra.mxu0 %v17492_v18  ;;  %7880 = vmatpush1.bf16.msra.mxu1 %v17494_v19  ;;  %v17032_v18 = vcombine.low %v4490_v7, %v4494_v10  ;;  %v17034_v19 = vcombine.low %v4491_v12, %v4495_v11  ;;  %v4538_v7 = vld [vmem:[%s19326_s10 + $0x2d0] sm:$0xff]  ;;  %v4539_v12 = vld [vmem:[%s19326_s10 + $0x2d8] sm:$0xff] }
 0x498   : > { %7890 = vmatprep.subr.bf16.mxu0 %v16993_v20  ;;  %8054 = vmatprep.subr.bf16.mxu1 %v16995_v58  ;;  %v17041_v20 = vcombine.high %v4498_v15, %v4502_v59  ;;  %v17043_v58 = vcombine.high %v4499_v41, %v4503_v17  ;;  %v4542_v10 = vld [vmem:[%s19326_s10 + $0x2f0] sm:$0xff]  ;;  %v4543_v11 = vld [vmem:[%s19326_s10 + $0x2f8] sm:$0xff] }
 0x49a   : > { %7718 = vmatmul.mubr.bf16.vlgmr.msra.gmra.mrb[0].mxu0 %v20387_v24  ;;  %7882 = vmatmul.mubr.bf16.vlgmr.msra.gmra.mrb[0].mxu1 %v20387_v24 }
 0x49b   : > { %7891 = vmatpush1.bf16.msra.mxu0 %v16992_v2  ;;  %8055 = vmatpush1.bf16.msra.mxu1 %v16994_v55  ;;  %v17040_v2 = vcombine.low %v4498_v15, %v4502_v59  ;;  %v17042_v55 = vcombine.low %v4499_v41, %v4503_v17  ;;  %v4546_v15 = vld [vmem:[%s19326_s10 + $0x310] sm:$0xff]  ;;  %v4547_v41 = vld [vmem:[%s19326_s10 + $0x318] sm:$0xff] }
 0x49c   : > { %7892 = vmatprep.subr.bf16.mxu0 %v17001_v29  ;;  %8056 = vmatprep.subr.bf16.mxu1 %v17003_v1  ;;  %v17049_v29 = vcombine.high %v4506_v21, %v4510_v22  ;;  %v17051_v1 = vcombine.high %v4507_v27, %v4511_v51  ;;  %v4550_v59 = vld [vmem:[%s19326_s10 + $0x330] sm:$0xff]  ;;  %v4551_v17 = vld [vmem:[%s19326_s10 + $0x338] sm:$0xff] }
 0x49d   : > { %7922 = vmatprep.mubr.bf16.mxu0 %v20080_v8  ;;  %8086 = vmatprep.mubr.bf16.mxu1 %v20080_v8  ;;  %v17018_v8 = vcombine.low %v4475_v42, %v4479_v56  ;;  %v4523_v42 = vld [vmem:[%s19326_s10 + $0x258] sm:$0xff] }
 0x49e   : > { %v4527_v56 = vld [vmem:[%s19326_s10 + $0x278] sm:$0xff] }
 0x49f   : > { %7893 = vmatpush1.bf16.msra.mxu0 %v17000_v63  ;;  %8057 = vmatpush1.bf16.msra.mxu1 %v17002_v35  ;;  %v17048_v63 = vcombine.low %v4506_v21, %v4510_v22  ;;  %v17050_v35 = vcombine.low %v4507_v27, %v4511_v51  ;;  %v4554_v21 = vld [vmem:[%s19326_s10 + $0x350] sm:$0xff]  ;;  %v4555_v27 = vld [vmem:[%s19326_s10 + $0x358] sm:$0xff] }
 0x4a0   : > { %7894 = vmatprep.subr.bf16.mxu0 %v17009_v36  ;;  %8058 = vmatprep.subr.bf16.mxu1 %v17011_v38  ;;  %v17057_v36 = vcombine.high %v4514_v30, %v4518_v32  ;;  %v17059_v38 = vcombine.high %v4515_v28, %v4519_v33  ;;  %v4558_v22 = vld [vmem:[%s19326_s10 + $0x370] sm:$0xff]  ;;  %v4559_v51 = vld [vmem:[%s19326_s10 + $0x378] sm:$0xff] }
 0x4a3   : > { %7895 = vmatpush1.bf16.msra.mxu0 %v17008_v26  ;;  %8059 = vmatpush1.bf16.msra.mxu1 %v17010_v47  ;;  %v17056_v26 = vcombine.low %v4514_v30, %v4518_v32  ;;  %v17058_v47 = vcombine.low %v4515_v28, %v4519_v33  ;;  %v4562_v30 = vld [vmem:[%s19326_s10 + $0x390] sm:$0xff]  ;;  %v4563_v28 = vld [vmem:[%s19326_s10 + $0x398] sm:$0xff] }
 0x4a4   : > { %7896 = vmatprep.subr.bf16.mxu0 %v17017_v52  ;;  %8060 = vmatprep.subr.bf16.mxu1 %v17019_v45  ;;  %v17065_v52 = vcombine.high %v4522_v39, %v4526_v40  ;;  %v17067_v45 = vcombine.high %v4523_v42, %v4527_v56  ;;  %v4566_v32 = vld [vmem:[%s19326_s10 + $0x3b0] sm:$0xff]  ;;  %v4567_v33 = vld [vmem:[%s19326_s10 + $0x3b8] sm:$0xff] }
 0x4a7   : > { %7897 = vmatpush1.bf16.msra.mxu0 %v17016_v4  ;;  %8061 = vmatpush1.bf16.msra.mxu1 %v17018_v8  ;;  %v17064_v4 = vcombine.low %v4522_v39, %v4526_v40  ;;  %v17066_v8 = vcombine.low %v4523_v42, %v4527_v56  ;;  %v4570_v39 = vld [vmem:[%s19326_s10 + $0x3d0] sm:$0xff]  ;;  %v4571_v42 = vld [vmem:[%s19326_s10 + $0x3d8] sm:$0xff] }
 0x4a8   : > { %7898 = vmatprep.subr.bf16.mxu0 %v17025_v5  ;;  %8062 = vmatprep.subr.bf16.mxu1 %v17027_v6  ;;  %v17073_v5 = vcombine.high %v4530_v9, %v4534_v57  ;;  %v17075_v6 = vcombine.high %v4531_v53, %v4535_v60  ;;  %v4574_v40 = vld [vmem:[%s19326_s10 + $0x3f0] sm:$0xff]  ;;  %v4575_v56 = vld [vmem:[%s19326_s10 + $0x3f8] sm:$0xff] }
 0x4ab   : > { %7899 = vmatpush1.bf16.msra.mxu0 %v17024_v31  ;;  %8063 = vmatpush1.bf16.msra.mxu1 %v17026_v43  ;;  %v17072_v31 = vcombine.low %v4530_v9, %v4534_v57  ;;  %v17074_v43 = vcombine.low %v4531_v53, %v4535_v60  ;;  %v4578_v9 = vld [vmem:[%s19326_s10 + $0x410] sm:$0xff]  ;;  %v4579_v53 = vld [vmem:[%s19326_s10 + $0x418] sm:$0xff] }
 0x4ac   : > { %7900 = vmatprep.subr.bf16.mxu0 %v17033_v13  ;;  %8064 = vmatprep.subr.bf16.mxu1 %v17035_v14  ;;  %v17081_v13 = vcombine.high %v4538_v7, %v4542_v10  ;;  %v17083_v14 = vcombine.high %v4539_v12, %v4543_v11  ;;  %v4582_v57 = vld [vmem:[%s19326_s10 + $0x430] sm:$0xff]  ;;  %v4583_v60 = vld [vmem:[%s19326_s10 + $0x438] sm:$0xff] }
 0x4af   : > { %7901 = vmatpush1.bf16.msra.mxu0 %v17032_v18  ;;  %8065 = vmatpush1.bf16.msra.mxu1 %v17034_v19  ;;  %v17080_v18 = vcombine.low %v4538_v7, %v4542_v10  ;;  %v17082_v19 = vcombine.low %v4539_v12, %v4543_v11  ;;  %v4586_v7 = vld [vmem:[%s19326_s10 + $0x450] sm:$0xff]  ;;  %v4587_v12 = vld [vmem:[%s19326_s10 + $0x458] sm:$0xff] }
 0x4b0   : > { %7902 = vmatprep.subr.bf16.mxu0 %v17041_v20  ;;  %8066 = vmatprep.subr.bf16.mxu1 %v17043_v58  ;;  %v17089_v20 = vcombine.high %v4546_v15, %v4550_v59  ;;  %v17091_v58 = vcombine.high %v4547_v41, %v4551_v17  ;;  %v4590_v10 = vld [vmem:[%s19326_s10 + $0x470] sm:$0xff]  ;;  %v4591_v11 = vld [vmem:[%s19326_s10 + $0x478] sm:$0xff] }
 0x4b3   : > { %7903 = vmatpush1.bf16.msra.mxu0 %v17040_v2  ;;  %8067 = vmatpush1.bf16.msra.mxu1 %v17042_v55  ;;  %v17088_v2 = vcombine.low %v4546_v15, %v4550_v59  ;;  %v17090_v55 = vcombine.low %v4547_v41, %v4551_v17  ;;  %v4594_v15 = vld [vmem:[%s19326_s10 + $0x490] sm:$0xff]  ;;  %v4595_v41 = vld [vmem:[%s19326_s10 + $0x498] sm:$0xff] }
 0x4b4   : > { %7904 = vmatprep.subr.bf16.mxu0 %v17049_v29  ;;  %8068 = vmatprep.subr.bf16.mxu1 %v17051_v1  ;;  %v17097_v29 = vcombine.high %v4554_v21, %v4558_v22  ;;  %v17099_v1 = vcombine.high %v4555_v27, %v4559_v51  ;;  %v4598_v59 = vld [vmem:[%s19326_s10 + $0x4b0] sm:$0xff]  ;;  %v4599_v17 = vld [vmem:[%s19326_s10 + $0x4b8] sm:$0xff] }
 0x4b7   : > { %7905 = vmatpush1.bf16.msra.mxu0 %v17048_v63  ;;  %8069 = vmatpush1.bf16.msra.mxu1 %v17050_v35  ;;  %v17096_v63 = vcombine.low %v4554_v21, %v4558_v22  ;;  %v17098_v35 = vcombine.low %v4555_v27, %v4559_v51  ;;  %v4602_v21 = vld [vmem:[%s19326_s10 + $0x4d0] sm:$0xff]  ;;  %v4603_v27 = vld [vmem:[%s19326_s10 + $0x4d8] sm:$0xff] }
 0x4b8   : > { %7906 = vmatprep.subr.bf16.mxu0 %v17057_v36  ;;  %8070 = vmatprep.subr.bf16.mxu1 %v17059_v38  ;;  %v17105_v36 = vcombine.high %v4562_v30, %v4566_v32  ;;  %v17107_v38 = vcombine.high %v4563_v28, %v4567_v33  ;;  %v4606_v22 = vld [vmem:[%s19326_s10 + $0x4f0] sm:$0xff]  ;;  %v4607_v51 = vld [vmem:[%s19326_s10 + $0x4f8] sm:$0xff] }
 0x4bb   : > { %7907 = vmatpush1.bf16.msra.mxu0 %v17056_v26  ;;  %8071 = vmatpush1.bf16.msra.mxu1 %v17058_v47  ;;  %v17104_v26 = vcombine.low %v4562_v30, %v4566_v32  ;;  %v17106_v47 = vcombine.low %v4563_v28, %v4567_v33  ;;  %v4614_v30 = vld [vmem:[%s19326_s10 + $0x530] sm:$0xff]  ;;  %v4611_v32 = vld [vmem:[%s19326_s10 + $0x518] sm:$0xff]  ;;  %v17144_v33 = vcombine.low %v4602_v21, %v4606_v22 }
 0x4bc   : > { %7908 = vmatprep.subr.bf16.mxu0 %v17065_v52  ;;  %8072 = vmatprep.subr.bf16.mxu1 %v17067_v45  ;;  %v17113_v52 = vcombine.high %v4570_v39, %v4574_v40  ;;  %v17115_v45 = vcombine.high %v4571_v42, %v4575_v56  ;;  %v4615_v28 = vld [vmem:[%s19326_s10 + $0x538] sm:$0xff] }
 0x4bf   : > { %7909 = vmatpush1.bf16.msra.mxu0 %v17064_v4  ;;  %8073 = vmatpush1.bf16.msra.mxu1 %v17066_v8  ;;  %v17112_v4 = vcombine.low %v4570_v39, %v4574_v40  ;;  %v17114_v8 = vcombine.low %v4571_v42, %v4575_v56  ;;  %v4619_v39 = vld [vmem:[%s19326_s10 + $0x558] sm:$0xff]  ;;  %v17154_v56 = vcombine.low %v4611_v32, %v4615_v28 }
 0x4c0   : > { %7910 = vmatprep.subr.bf16.mxu0 %v17073_v5  ;;  %8074 = vmatprep.subr.bf16.mxu1 %v17075_v6  ;;  %v17121_v5 = vcombine.high %v4578_v9, %v4582_v57  ;;  %v17123_v6 = vcombine.high %v4579_v53, %v4583_v60  ;;  %v4623_v40 = vld [vmem:[%s19326_s10 + $0x578] sm:$0xff] }
 0x4c3   : > { %7911 = vmatpush1.bf16.msra.mxu0 %v17072_v31  ;;  %8075 = vmatpush1.bf16.msra.mxu1 %v17074_v43  ;;  %v17120_v31 = vcombine.low %v4578_v9, %v4582_v57  ;;  %v17122_v43 = vcombine.low %v4579_v53, %v4583_v60  ;;  %v4627_v9 = vld [vmem:[%s19326_s10 + $0x598] sm:$0xff]  ;;  %v17162_v60 = vcombine.low %v4619_v39, %v4623_v40 }
 0x4c4   : > { %7912 = vmatprep.subr.bf16.mxu0 %v17081_v13  ;;  %8076 = vmatprep.subr.bf16.mxu1 %v17083_v14  ;;  %v17129_v13 = vcombine.high %v4586_v7, %v4590_v10  ;;  %v17131_v14 = vcombine.high %v4587_v12, %v4591_v11  ;;  %v4631_v57 = vld [vmem:[%s19326_s10 + $0x5b8] sm:$0xff] }
 0x4c7   : > { %7913 = vmatpush1.bf16.msra.mxu0 %v17080_v18  ;;  %8077 = vmatpush1.bf16.msra.mxu1 %v17082_v19  ;;  %v17128_v18 = vcombine.low %v4586_v7, %v4590_v10  ;;  %v17130_v19 = vcombine.low %v4587_v12, %v4591_v11  ;;  %v4635_v7 = vld [vmem:[%s19326_s10 + $0x5d8] sm:$0xff]  ;;  %v17170_v11 = vcombine.low %v4627_v9, %v4631_v57 }
 0x4c8   : > { %7914 = vmatprep.subr.bf16.mxu0 %v17089_v20  ;;  %8078 = vmatprep.subr.bf16.mxu1 %v17091_v58  ;;  %v17137_v20 = vcombine.high %v4594_v15, %v4598_v59  ;;  %v17139_v58 = vcombine.high %v4595_v41, %v4599_v17  ;;  %v4639_v10 = vld [vmem:[%s19326_s10 + $0x5f8] sm:$0xff] }
 0x4cb   : > { %7915 = vmatpush1.bf16.msra.mxu0 %v17088_v2  ;;  %8079 = vmatpush1.bf16.msra.mxu1 %v17090_v55  ;;  %v17138_v2 = vcombine.low %v4595_v41, %v4599_v17  ;;  %v17145_v55 = vcombine.high %v4602_v21, %v4606_v22  ;;  %v17178_v17 = vcombine.low %v4635_v7, %v4639_v10  ;;  %v4651_v21 = vld [vmem:[%s19326_s10 + $0x658] sm:$0xff] }
 0x4cc   : > { %7916 = vmatprep.subr.bf16.mxu0 %v17097_v29  ;;  %8080 = vmatprep.subr.bf16.mxu1 %v17099_v1  ;;  %v17147_v29 = vcombine.high %v4603_v27, %v4607_v51  ;;  %v4610_v1 = vld [vmem:[%s19326_s10 + $0x510] sm:$0xff]  ;;  %v4655_v22 = vld [vmem:[%s19326_s10 + $0x678] sm:$0xff] }
 0x4cd   : > { %v17152_v42 = vcombine.low %v4610_v1, %v4614_v30 }
 0x4cf   : > { %7917 = vmatpush1.bf16.msra.mxu0 %v17096_v63  ;;  %8081 = vmatpush1.bf16.msra.mxu1 %v17098_v35  ;;  %v17153_v63 = vcombine.high %v4610_v1, %v4614_v30  ;;  %v17155_v35 = vcombine.high %v4611_v32, %v4615_v28  ;;  %v4659_v1 = vld [vmem:[%s19326_s10 + $0x698] sm:$0xff]  ;;  %v17194_v28 = vcombine.low %v4651_v21, %v4655_v22 }
 0x4d0   : > { %7918 = vmatprep.subr.bf16.mxu0 %v17105_v36  ;;  %8082 = vmatprep.subr.bf16.mxu1 %v17107_v38  ;;  %v4618_v36 = vld [vmem:[%s19326_s10 + $0x550] sm:$0xff]  ;;  %v4663_v30 = vld [vmem:[%s19326_s10 + $0x6b8] sm:$0xff] }
 0x4d1   : > { %v4622_v38 = vld [vmem:[%s19326_s10 + $0x570] sm:$0xff] }
 0x4d2   : > { %v17160_v53 = vcombine.low %v4618_v36, %v4622_v38 }
 0x4d3   : > { %7919 = vmatpush1.bf16.msra.mxu0 %v17104_v26  ;;  %8083 = vmatpush1.bf16.msra.mxu1 %v17106_v47  ;;  %v17161_v26 = vcombine.high %v4618_v36, %v4622_v38  ;;  %v17163_v47 = vcombine.high %v4619_v39, %v4623_v40  ;;  %v4667_v36 = vld [vmem:[%s19326_s10 + $0x6d8] sm:$0xff]  ;;  %v17202_v40 = vcombine.low %v4659_v1, %v4663_v30 }
 0x4d4   : > { %7920 = vmatprep.subr.bf16.mxu0 %v17113_v52  ;;  %8084 = vmatprep.subr.bf16.mxu1 %v17115_v45  ;;  %v4626_v52 = vld [vmem:[%s19326_s10 + $0x590] sm:$0xff]  ;;  %v4671_v38 = vld [vmem:[%s19326_s10 + $0x6f8] sm:$0xff] }
 0x4d5   : > { %v4630_v45 = vld [vmem:[%s19326_s10 + $0x5b0] sm:$0xff] }
 0x4d6   : > { %v17168_v12 = vcombine.low %v4626_v52, %v4630_v45 }
 0x4d7   : > { %7921 = vmatpush1.bf16.msra.mxu0 %v17112_v4  ;;  %8085 = vmatpush1.bf16.msra.mxu1 %v17114_v8  ;;  %v17169_v4 = vcombine.high %v4626_v52, %v4630_v45  ;;  %v17171_v8 = vcombine.high %v4627_v9, %v4631_v57  ;;  %v4675_v52 = vld [vmem:[%s19326_s10 + $0x718] sm:$0xff]  ;;  %v17210_v57 = vcombine.low %v4667_v36, %v4671_v38 }
 0x4d8   : > { %7931 = vmatprep.subr.bf16.mxu0 %v17121_v5  ;;  %8095 = vmatprep.subr.bf16.mxu1 %v17123_v6  ;;  %v4634_v5 = vld [vmem:[%s19326_s10 + $0x5d0] sm:$0xff]  ;;  %v4679_v45 = vld [vmem:[%s19326_s10 + $0x738] sm:$0xff] }
 0x4d9   : > { %v4638_v6 = vld [vmem:[%s19326_s10 + $0x5f0] sm:$0xff] }
 0x4da   : > { %7923 = vmatmul.mubr.bf16.vlgmr.msra.gmra.mrb[4].mxu0 %v20127_v25  ;;  %8087 = vmatmul.mubr.bf16.vlgmr.msra.gmra.mrb[4].mxu1 %v20127_v25  ;;  %v17136_v25 = vcombine.low %v4594_v15, %v4598_v59  ;;  %v4643_v15 = vld [vmem:[%s19326_s10 + $0x618] sm:$0xff]  ;;  %v17176_v41 = vcombine.low %v4634_v5, %v4638_v6 }
 0x4db   : > { %7932 = vmatpush1.bf16.msra.mxu0 %v17120_v31  ;;  %8096 = vmatpush1.bf16.msra.mxu1 %v17122_v43  ;;  %v17177_v31 = vcombine.high %v4634_v5, %v4638_v6  ;;  %v17179_v43 = vcombine.high %v4635_v7, %v4639_v10  ;;  %v4647_v59 = vld [vmem:[%s19326_s10 + $0x638] sm:$0xff]  ;;  %v17218_v10 = vcombine.low %v4675_v52, %v4679_v45 }
 0x4dc   : > { %7933 = vmatprep.subr.bf16.mxu0 %v17129_v13  ;;  %8097 = vmatprep.subr.bf16.mxu1 %v17131_v14  ;;  %v4642_v13 = vld [vmem:[%s19326_s10 + $0x610] sm:$0xff]  ;;  %v4683_v5 = vld [vmem:[%s19326_s10 + $0x758] sm:$0xff] }
 0x4dd   : > { %7963 = vmatprep.mubr.bf16.mxu0 %v20135_v34  ;;  %8127 = vmatprep.mubr.bf16.mxu1 %v20135_v34  ;;  %v17146_v34 = vcombine.low %v4603_v27, %v4607_v51  ;;  %v4646_v14 = vld [vmem:[%s19326_s10 + $0x630] sm:$0xff]  ;;  %v17186_v51 = vcombine.low %v4643_v15, %v4647_v59  ;;  %v4687_v6 = vld [vmem:[%s19326_s10 + $0x778] sm:$0xff] }
 0x4de   : > { %v17184_v27 = vcombine.low %v4642_v13, %v4646_v14 }
 0x4df   : > { %7934 = vmatpush1.bf16.msra.mxu0 %v17128_v18  ;;  %8098 = vmatpush1.bf16.msra.mxu1 %v17130_v19  ;;  %v17185_v18 = vcombine.high %v4642_v13, %v4646_v14  ;;  %v17187_v19 = vcombine.high %v4643_v15, %v4647_v59  ;;  %v4691_v13 = vld [vmem:[%s19326_s10 + $0x798] sm:$0xff]  ;;  %v17226_v59 = vcombine.low %v4683_v5, %v4687_v6 }
 0x4e0   : > { %7935 = vmatprep.subr.bf16.mxu0 %v17137_v20  ;;  %8099 = vmatprep.subr.bf16.mxu1 %v17139_v58  ;;  %v4650_v20 = vld [vmem:[%s19326_s10 + $0x650] sm:$0xff]  ;;  %v4695_v14 = vld [vmem:[%s19326_s10 + $0x7b8] sm:$0xff] }
 0x4e1   : > { %v4654_v58 = vld [vmem:[%s19326_s10 + $0x670] sm:$0xff] }
 0x4e2   : > { %v17192_v32 = vcombine.low %v4650_v20, %v4654_v58 }
 0x4e3   : > { %7936 = vmatpush1.bf16.msra.mxu0 %v17136_v25  ;;  %8100 = vmatpush1.bf16.msra.mxu1 %v17138_v2  ;;  %v17193_v25 = vcombine.high %v4650_v20, %v4654_v58  ;;  %v17195_v2 = vcombine.high %v4651_v21, %v4655_v22  ;;  %v4699_v20 = vld [vmem:[%s19326_s10 + $0x7d8] sm:$0xff]  ;;  %v17234_v22 = vcombine.low %v4691_v13, %v4695_v14 }
 0x4e4   : > { %7937 = vmatprep.subr.bf16.mxu0 %v17145_v55  ;;  %8101 = vmatprep.subr.bf16.mxu1 %v17147_v29  ;;  %v4658_v55 = vld [vmem:[%s19326_s10 + $0x690] sm:$0xff]  ;;  %v4703_v58 = vld [vmem:[%s19326_s10 + $0x7f8] sm:$0xff] }
 0x4e5   : > { %v4662_v29 = vld [vmem:[%s19326_s10 + $0x6b0] sm:$0xff] }
 0x4e6   : > { %v17200_v39 = vcombine.low %v4658_v55, %v4662_v29 }
 0x4e7   : > { %7938 = vmatpush1.bf16.msra.mxu0 %v17144_v33  ;;  %8102 = vmatpush1.bf16.msra.mxu1 %v17146_v34  ;;  %v17201_v33 = vcombine.high %v4658_v55, %v4662_v29  ;;  %v17203_v34 = vcombine.high %v4659_v1, %v4663_v30  ;;  %v4707_v55 = vld [vmem:[%s19326_s10 + $0x818] sm:$0xff]  ;;  %v17242_v30 = vcombine.low %v4699_v20, %v4703_v58 }
 0x4e8   : > { %7939 = vmatprep.subr.bf16.mxu0 %v17153_v63  ;;  %8103 = vmatprep.subr.bf16.mxu1 %v17155_v35  ;;  %v4666_v63 = vld [vmem:[%s19326_s10 + $0x6d0] sm:$0xff]  ;;  %v4711_v29 = vld [vmem:[%s19326_s10 + $0x838] sm:$0xff] }
 0x4e9   : > { %v4670_v35 = vld [vmem:[%s19326_s10 + $0x6f0] sm:$0xff] }
 0x4ea   : > { %v17208_v9 = vcombine.low %v4666_v63, %v4670_v35 }
 0x4eb   : > { %7940 = vmatpush1.bf16.msra.mxu0 %v17152_v42  ;;  %8104 = vmatpush1.bf16.msra.mxu1 %v17154_v56  ;;  %v17209_v42 = vcombine.high %v4666_v63, %v4670_v35  ;;  %v17211_v56 = vcombine.high %v4667_v36, %v4671_v38  ;;  %v4715_v63 = vld [vmem:[%s19326_s10 + $0x858] sm:$0xff]  ;;  %v17250_v38 = vcombine.low %v4707_v55, %v4711_v29 }
 0x4ec   : > { %7941 = vmatprep.subr.bf16.mxu0 %v17161_v26  ;;  %8105 = vmatprep.subr.bf16.mxu1 %v17163_v47  ;;  %v4674_v26 = vld [vmem:[%s19326_s10 + $0x710] sm:$0xff]  ;;  %v4719_v35 = vld [vmem:[%s19326_s10 + $0x878] sm:$0xff] }
 0x4ed   : > { %v4678_v47 = vld [vmem:[%s19326_s10 + $0x730] sm:$0xff] }
 0x4ee   : > { %v17216_v7 = vcombine.low %v4674_v26, %v4678_v47 }
 0x4ef   : > { %7942 = vmatpush1.bf16.msra.mxu0 %v17160_v53  ;;  %8106 = vmatpush1.bf16.msra.mxu1 %v17162_v60  ;;  %v17217_v53 = vcombine.high %v4674_v26, %v4678_v47  ;;  %v17219_v60 = vcombine.high %v4675_v52, %v4679_v45  ;;  %v4723_v26 = vld [vmem:[%s19326_s10 + $0x898] sm:$0xff]  ;;  %v17258_v45 = vcombine.low %v4715_v63, %v4719_v35 }
 0x4f0   : > { %7943 = vmatprep.subr.bf16.mxu0 %v17169_v4  ;;  %8107 = vmatprep.subr.bf16.mxu1 %v17171_v8  ;;  %v4682_v4 = vld [vmem:[%s19326_s10 + $0x750] sm:$0xff]  ;;  %v4727_v47 = vld [vmem:[%s19326_s10 + $0x8b8] sm:$0xff] }
 0x4f1   : > { %v4686_v8 = vld [vmem:[%s19326_s10 + $0x770] sm:$0xff] }
 0x4f2   : > { %v17224_v15 = vcombine.low %v4682_v4, %v4686_v8 }
 0x4f3   : > { %7944 = vmatpush1.bf16.msra.mxu0 %v17168_v12  ;;  %8108 = vmatpush1.bf16.msra.mxu1 %v17170_v11  ;;  %v17225_v12 = vcombine.high %v4682_v4, %v4686_v8  ;;  %v17227_v11 = vcombine.high %v4683_v5, %v4687_v6  ;;  %v4731_v4 = vld [vmem:[%s19326_s10 + $0x8d8] sm:$0xff]  ;;  %v17266_v5 = vcombine.low %v4723_v26, %v4727_v47 }
 0x4f4   : > { %7945 = vmatprep.subr.bf16.mxu0 %v17177_v31  ;;  %8109 = vmatprep.subr.bf16.mxu1 %v17179_v43  ;;  %v4690_v31 = vld [vmem:[%s19326_s10 + $0x790] sm:$0xff]  ;;  %v4735_v8 = vld [vmem:[%s19326_s10 + $0x8f8] sm:$0xff] }
 0x4f5   : > { %v4694_v43 = vld [vmem:[%s19326_s10 + $0x7b0] sm:$0xff] }
 0x4f6   : > { %v17232_v21 = vcombine.low %v4690_v31, %v4694_v43 }
 0x4f7   : > { %7946 = vmatpush1.bf16.msra.mxu0 %v17176_v41  ;;  %8110 = vmatpush1.bf16.msra.mxu1 %v17178_v17  ;;  %v17233_v41 = vcombine.high %v4690_v31, %v4694_v43  ;;  %v17235_v17 = vcombine.high %v4691_v13, %v4695_v14  ;;  %v4743_v31 = vld [vmem:[%s19326_s10 + $0x938] sm:$0xff] }
 0x4f8   : > { %7947 = vmatprep.subr.bf16.mxu0 %v17185_v18  ;;  %8111 = vmatprep.subr.bf16.mxu1 %v17187_v19  ;;  %v4698_v18 = vld [vmem:[%s19326_s10 + $0x7d0] sm:$0xff] }
 0x4f9   : > { %v4702_v19 = vld [vmem:[%s19326_s10 + $0x7f0] sm:$0xff] }
 0x4fa   : > { %v17240_v1 = vcombine.low %v4698_v18, %v4702_v19 }
 0x4fb   : > { %7948 = vmatpush1.bf16.msra.mxu0 %v17184_v27  ;;  %8112 = vmatpush1.bf16.msra.mxu1 %v17186_v51  ;;  %v17241_v27 = vcombine.high %v4698_v18, %v4702_v19  ;;  %v17243_v51 = vcombine.high %v4699_v20, %v4703_v58 }
 0x4fc   : > { %7949 = vmatprep.subr.bf16.mxu0 %v17193_v25  ;;  %8113 = vmatprep.subr.bf16.mxu1 %v17195_v2  ;;  %v4706_v25 = vld [vmem:[%s19326_s10 + $0x810] sm:$0xff] }
 0x4fd   : > { %v4710_v2 = vld [vmem:[%s19326_s10 + $0x830] sm:$0xff] }
 0x4fe   : > { %v17248_v36 = vcombine.low %v4706_v25, %v4710_v2 }
 0x4ff   : > { %7950 = vmatpush1.bf16.msra.mxu0 %v17192_v32  ;;  %8114 = vmatpush1.bf16.msra.mxu1 %v17194_v28  ;;  %v17249_v32 = vcombine.high %v4706_v25, %v4710_v2  ;;  %v17251_v28 = vcombine.high %v4707_v55, %v4711_v29 }
 0x500   : > { %7951 = vmatprep.subr.bf16.mxu0 %v17201_v33  ;;  %8115 = vmatprep.subr.bf16.mxu1 %v17203_v34  ;;  %v4714_v33 = vld [vmem:[%s19326_s10 + $0x850] sm:$0xff] }
 0x501   : > { %v4718_v34 = vld [vmem:[%s19326_s10 + $0x870] sm:$0xff] }
 0x502   : > { %v17256_v52 = vcombine.low %v4714_v33, %v4718_v34 }
 0x503   : > { %7952 = vmatpush1.bf16.msra.mxu0 %v17200_v39  ;;  %8116 = vmatpush1.bf16.msra.mxu1 %v17202_v40  ;;  %v17257_v39 = vcombine.high %v4714_v33, %v4718_v34  ;;  %v17259_v40 = vcombine.high %v4715_v63, %v4719_v35 }
 0x504   : > { %7953 = vmatprep.subr.bf16.mxu0 %v17209_v42  ;;  %8117 = vmatprep.subr.bf16.mxu1 %v17211_v56  ;;  %v4722_v42 = vld [vmem:[%s19326_s10 + $0x890] sm:$0xff] }
 0x505   : > { %v4726_v56 = vld [vmem:[%s19326_s10 + $0x8b0] sm:$0xff] }
 0x507   : > { %7954 = vmatpush1.bf16.msra.mxu0 %v17208_v9  ;;  %8118 = vmatpush1.bf16.msra.mxu1 %v17210_v57  ;;  %v17265_v9 = vcombine.high %v4722_v42, %v4726_v56  ;;  %v17267_v57 = vcombine.high %v4723_v26, %v4727_v47 }
 0x508   : > { %7955 = vmatprep.subr.bf16.mxu0 %v17217_v53  ;;  %8119 = vmatprep.subr.bf16.mxu1 %v17219_v60  ;;  %v4730_v53 = vld [vmem:[%s19326_s10 + $0x8d0] sm:$0xff] }
 0x509   : > { %v4734_v60 = vld [vmem:[%s19326_s10 + $0x8f0] sm:$0xff] }
 0x50a   : > { %v17273_v6 = vcombine.high %v4730_v53, %v4734_v60  ;;  %v17272_v43 = vcombine.low %v4730_v53, %v4734_v60 }
 0x50b   : > { %7956 = vmatpush1.bf16.msra.mxu0 %v17216_v7  ;;  %8120 = vmatpush1.bf16.msra.mxu1 %v17218_v10  ;;  %v17275_v7 = vcombine.high %v4731_v4, %v4735_v8  ;;  %v4738_v10 = vld [vmem:[%s19326_s10 + $0x910] sm:$0xff] }
 0x50c   : > { %7957 = vmatprep.subr.bf16.mxu0 %v17225_v12  ;;  %8121 = vmatprep.subr.bf16.mxu1 %v17227_v11  ;;  %v4742_v12 = vld [vmem:[%s19326_s10 + $0x930] sm:$0xff]  ;;  %v4739_v11 = vld [vmem:[%s19326_s10 + $0x918] sm:$0xff] }
 0x50d   : > { %v17281_v13 = vcombine.high %v4738_v10, %v4742_v12  ;;  %v17283_v14 = vcombine.high %v4739_v11, %v4743_v31  ;;  %v17280_v18 = vcombine.low %v4738_v10, %v4742_v12  ;;  %v17282_v19 = vcombine.low %v4739_v11, %v4743_v31 }
 0x50f   : > { %7958 = vmatpush1.bf16.msra.mxu0 %v17224_v15  ;;  %8122 = vmatpush1.bf16.msra.mxu1 %v17226_v59  ;;  %v4746_v15 = vld [vmem:[%s19326_s10 + $0x950] sm:$0xff] }
 0x510   : > { %7959 = vmatprep.subr.bf16.mxu0 %v17233_v41  ;;  %8123 = vmatprep.subr.bf16.mxu1 %v17235_v17  ;;  %v4750_v59 = vld [vmem:[%s19326_s10 + $0x970] sm:$0xff]  ;;  %v4747_v41 = vld [vmem:[%s19326_s10 + $0x958] sm:$0xff] }
 0x511   : > { %v4751_v17 = vld [vmem:[%s19326_s10 + $0x978] sm:$0xff]  ;;  %v17289_v20 = vcombine.high %v4746_v15, %v4750_v59  ;;  %v17288_v25 = vcombine.low %v4746_v15, %v4750_v59 }
 0x512   : > { %v17291_v58 = vcombine.high %v4747_v41, %v4751_v17  ;;  %v17290_v2 = vcombine.low %v4747_v41, %v4751_v17 }
 0x513   : > { %7960 = vmatpush1.bf16.msra.mxu0 %v17232_v21  ;;  %8124 = vmatpush1.bf16.msra.mxu1 %v17234_v22  ;;  %v4754_v21 = vld [vmem:[%s19326_s10 + $0x990] sm:$0xff] }
 0x514   : > { %7961 = vmatprep.subr.bf16.mxu0 %v17241_v27  ;;  %8125 = vmatprep.subr.bf16.mxu1 %v17243_v51  ;;  %v4758_v22 = vld [vmem:[%s19326_s10 + $0x9b0] sm:$0xff]  ;;  %v4755_v27 = vld [vmem:[%s19326_s10 + $0x998] sm:$0xff] }
 0x515   : > { %v4759_v51 = vld [vmem:[%s19326_s10 + $0x9b8] sm:$0xff]  ;;  %v17297_v55 = vcombine.high %v4754_v21, %v4758_v22  ;;  %v17296_v33 = vcombine.low %v4754_v21, %v4758_v22 }
 0x516   : > { %v17299_v29 = vcombine.high %v4755_v27, %v4759_v51  ;;  %v17298_v34 = vcombine.low %v4755_v27, %v4759_v51 }
 0x517   : > { %7962 = vmatpush1.bf16.msra.mxu0 %v17240_v1  ;;  %8126 = vmatpush1.bf16.msra.mxu1 %v17242_v30  ;;  %v4762_v1 = vld [vmem:[%s19326_s10 + $0x9d0] sm:$0xff] }
 0x518   : > { %7972 = vmatprep.subr.bf16.mxu0 %v17249_v32  ;;  %8136 = vmatprep.subr.bf16.mxu1 %v17251_v28  ;;  %v4766_v30 = vld [vmem:[%s19326_s10 + $0x9f0] sm:$0xff]  ;;  %v4763_v32 = vld [vmem:[%s19326_s10 + $0x9d8] sm:$0xff] }
 0x519   : > { %v4767_v28 = vld [vmem:[%s19326_s10 + $0x9f8] sm:$0xff]  ;;  %v17305_v63 = vcombine.high %v4762_v1, %v4766_v30 }
 0x51a   : > { %7964 = vmatmul.mubr.bf16.vlgmr.msra.gmra.mrb[4].mxu0 %v20232_v61  ;;  %8128 = vmatmul.mubr.bf16.vlgmr.msra.gmra.mrb[4].mxu1 %v20232_v61  ;;  %v17264_v61 = vcombine.low %v4722_v42, %v4726_v56  ;;  %v17307_v35 = vcombine.high %v4763_v32, %v4767_v28  ;;  %v17304_v42 = vcombine.low %v4762_v1, %v4766_v30 }
 0x51b   : > { %7973 = vmatpush1.bf16.msra.mxu0 %v17248_v36  ;;  %8137 = vmatpush1.bf16.msra.mxu1 %v17250_v38  ;;  %v4770_v36 = vld [vmem:[%s19326_s10 + $0xa10] sm:$0xff]  ;;  %v17306_v56 = vcombine.low %v4763_v32, %v4767_v28 }
 0x51c   : > { %7974 = vmatprep.subr.bf16.mxu0 %v17257_v39  ;;  %8138 = vmatprep.subr.bf16.mxu1 %v17259_v40  ;;  %v4774_v38 = vld [vmem:[%s19326_s10 + $0xa30] sm:$0xff]  ;;  %v4771_v39 = vld [vmem:[%s19326_s10 + $0xa18] sm:$0xff] }
 0x51d   : > { %8004 = vmatprep.mubr.bf16.mxu0 %v20238_v46  ;;  %8168 = vmatprep.mubr.bf16.mxu1 %v20238_v46  ;;  %v17274_v46 = vcombine.low %v4731_v4, %v4735_v8  ;;  %v4775_v40 = vld [vmem:[%s19326_s10 + $0xa38] sm:$0xff]  ;;  %v17313_v26 = vcombine.high %v4770_v36, %v4774_v38  ;;  %v17312_v53 = vcombine.low %v4770_v36, %v4774_v38 }
 0x51e   : > { %v17315_v47 = vcombine.high %v4771_v39, %v4775_v40  ;;  %v17314_v60 = vcombine.low %v4771_v39, %v4775_v40 }
 0x51f   : > { %7975 = vmatpush1.bf16.msra.mxu0 %v17256_v52  ;;  %8139 = vmatpush1.bf16.msra.mxu1 %v17258_v45  ;;  %v4778_v52 = vld [vmem:[%s19326_s10 + $0xa50] sm:$0xff] }
 0x520   : > { %7976 = vmatprep.subr.bf16.mxu0 %v17265_v9  ;;  %8140 = vmatprep.subr.bf16.mxu1 %v17267_v57  ;;  %v4782_v45 = vld [vmem:[%s19326_s10 + $0xa70] sm:$0xff]  ;;  %v4779_v9 = vld [vmem:[%s19326_s10 + $0xa58] sm:$0xff] }
 0x521   : > { %v4783_v57 = vld [vmem:[%s19326_s10 + $0xa78] sm:$0xff]  ;;  %v17321_v4 = vcombine.high %v4778_v52, %v4782_v45  ;;  %v17320_v10 = vcombine.low %v4778_v52, %v4782_v45 }
 0x522   : > { %v17323_v8 = vcombine.high %v4779_v9, %v4783_v57  ;;  %v17322_v12 = vcombine.low %v4779_v9, %v4783_v57 }
 0x523   : > { %7977 = vmatpush1.bf16.msra.mxu0 %v17264_v61  ;;  %8141 = vmatpush1.bf16.msra.mxu1 %v17266_v5  ;;  %v4786_v61 = vld [vmem:[%s19326_s10 + $0xa90] sm:$0xff] }
 0x524   : > { %7978 = vmatprep.subr.bf16.mxu0 %v17273_v6  ;;  %8142 = vmatprep.subr.bf16.mxu1 %v17275_v7  ;;  %v4790_v5 = vld [vmem:[%s19326_s10 + $0xab0] sm:$0xff]  ;;  %v4787_v6 = vld [vmem:[%s19326_s10 + $0xa98] sm:$0xff] }
 0x525   : > { %v4791_v7 = vld [vmem:[%s19326_s10 + $0xab8] sm:$0xff]  ;;  %v17329_v11 = vcombine.high %v4786_v61, %v4790_v5  ;;  %v17328_v15 = vcombine.low %v4786_v61, %v4790_v5 }
 0x526   : > { %v17331_v31 = vcombine.high %v4787_v6, %v4791_v7  ;;  %v17330_v59 = vcombine.low %v4787_v6, %v4791_v7 }
 0x527   : > { %7979 = vmatpush1.bf16.msra.mxu0 %v17272_v43  ;;  %8143 = vmatpush1.bf16.msra.mxu1 %v17274_v46  ;;  %v4794_v43 = vld [vmem:[%s19326_s10 + $0xad0] sm:$0xff] }
 0x528   : > { %7980 = vmatprep.subr.bf16.mxu0 %v17281_v13  ;;  %8144 = vmatprep.subr.bf16.mxu1 %v17283_v14  ;;  %v4798_v46 = vld [vmem:[%s19326_s10 + $0xaf0] sm:$0xff]  ;;  %v4795_v13 = vld [vmem:[%s19326_s10 + $0xad8] sm:$0xff] }
 0x529   : > { %v4799_v14 = vld [vmem:[%s19326_s10 + $0xaf8] sm:$0xff]  ;;  %v17337_v41 = vcombine.high %v4794_v43, %v4798_v46  ;;  %v17336_v21 = vcombine.low %v4794_v43, %v4798_v46 }
 0x52a   : > { %v17339_v17 = vcombine.high %v4795_v13, %v4799_v14  ;;  %v17338_v22 = vcombine.low %v4795_v13, %v4799_v14 }
 0x52b   : > { %7981 = vmatpush1.bf16.msra.mxu0 %v17280_v18  ;;  %8145 = vmatpush1.bf16.msra.mxu1 %v17282_v19  ;;  %v4802_v18 = vld [vmem:[%s19326_s10 + $0xb10] sm:$0xff] }
 0x52c   : > { %7982 = vmatprep.subr.bf16.mxu0 %v17289_v20  ;;  %8146 = vmatprep.subr.bf16.mxu1 %v17291_v58  ;;  %v4806_v19 = vld [vmem:[%s19326_s10 + $0xb30] sm:$0xff]  ;;  %v4803_v20 = vld [vmem:[%s19326_s10 + $0xb18] sm:$0xff] }
 0x52d   : > { %v4807_v58 = vld [vmem:[%s19326_s10 + $0xb38] sm:$0xff]  ;;  %v17345_v27 = vcombine.high %v4802_v18, %v4806_v19  ;;  %v17344_v1 = vcombine.low %v4802_v18, %v4806_v19 }
 0x52e   : > { %v17347_v51 = vcombine.high %v4803_v20, %v4807_v58  ;;  %v17346_v30 = vcombine.low %v4803_v20, %v4807_v58 }
 0x52f   : > { %7983 = vmatpush1.bf16.msra.mxu0 %v17288_v25  ;;  %8147 = vmatpush1.bf16.msra.mxu1 %v17290_v2  ;;  %v4810_v25 = vld [vmem:[%s19326_s10 + $0xb50] sm:$0xff] }
 0x530   : > { %7984 = vmatprep.subr.bf16.mxu0 %v17297_v55  ;;  %8148 = vmatprep.subr.bf16.mxu1 %v17299_v29  ;;  %v4814_v2 = vld [vmem:[%s19326_s10 + $0xb70] sm:$0xff]  ;;  %v4811_v55 = vld [vmem:[%s19326_s10 + $0xb58] sm:$0xff] }
 0x531   : > { %v4815_v29 = vld [vmem:[%s19326_s10 + $0xb78] sm:$0xff]  ;;  %v17353_v32 = vcombine.high %v4810_v25, %v4814_v2  ;;  %v17352_v36 = vcombine.low %v4810_v25, %v4814_v2 }
 0x532   : > { %v17355_v28 = vcombine.high %v4811_v55, %v4815_v29  ;;  %v17354_v38 = vcombine.low %v4811_v55, %v4815_v29  ;;  %v4866_v29 = vld [vmem:[%s19326_s10 + $0xd10] sm:$0xff] }
 0x533   : > { %7985 = vmatpush1.bf16.msra.mxu0 %v17296_v33  ;;  %8149 = vmatpush1.bf16.msra.mxu1 %v17298_v34  ;;  %v4818_v33 = vld [vmem:[%s19326_s10 + $0xb90] sm:$0xff] }
 0x534   : > { %7986 = vmatprep.subr.bf16.mxu0 %v17305_v63  ;;  %8150 = vmatprep.subr.bf16.mxu1 %v17307_v35  ;;  %v4822_v34 = vld [vmem:[%s19326_s10 + $0xbb0] sm:$0xff]  ;;  %v4819_v63 = vld [vmem:[%s19326_s10 + $0xb98] sm:$0xff] }
 0x535   : > { %v4823_v35 = vld [vmem:[%s19326_s10 + $0xbb8] sm:$0xff]  ;;  %v17361_v39 = vcombine.high %v4818_v33, %v4822_v34  ;;  %v17360_v52 = vcombine.low %v4818_v33, %v4822_v34 }
 0x536   : > { %v17363_v40 = vcombine.high %v4819_v63, %v4823_v35  ;;  %v17362_v45 = vcombine.low %v4819_v63, %v4823_v35  ;;  %v4874_v63 = vld [vmem:[%s19326_s10 + $0xd50] sm:$0xff] }
 0x537   : > { %7987 = vmatpush1.bf16.msra.mxu0 %v17304_v42  ;;  %8151 = vmatpush1.bf16.msra.mxu1 %v17306_v56  ;;  %v4826_v42 = vld [vmem:[%s19326_s10 + $0xbd0] sm:$0xff] }
 0x538   : > { %7988 = vmatprep.subr.bf16.mxu0 %v17313_v26  ;;  %8152 = vmatprep.subr.bf16.mxu1 %v17315_v47  ;;  %v4830_v56 = vld [vmem:[%s19326_s10 + $0xbf0] sm:$0xff]  ;;  %v4827_v26 = vld [vmem:[%s19326_s10 + $0xbd8] sm:$0xff] }
 0x539   : > { %v4831_v47 = vld [vmem:[%s19326_s10 + $0xbf8] sm:$0xff]  ;;  %v17369_v9 = vcombine.high %v4826_v42, %v4830_v56  ;;  %v17368_v61 = vcombine.low %v4826_v42, %v4830_v56  ;;  %v4878_v35 = vld [vmem:[%s19326_s10 + $0xd70] sm:$0xff] }
 0x53a   : > { %v17371_v57 = vcombine.high %v4827_v26, %v4831_v47  ;;  %v17370_v5 = vcombine.low %v4827_v26, %v4831_v47  ;;  %v17417_v56 = vcombine.high %v4874_v63, %v4878_v35  ;;  %v4882_v47 = vld [vmem:[%s19326_s10 + $0xd90] sm:$0xff] }
 0x53b   : > { %7989 = vmatpush1.bf16.msra.mxu0 %v17312_v53  ;;  %8153 = vmatpush1.bf16.msra.mxu1 %v17314_v60  ;;  %v4834_v53 = vld [vmem:[%s19326_s10 + $0xc10] sm:$0xff] }
 0x53c   : > { %7990 = vmatprep.subr.bf16.mxu0 %v17321_v4  ;;  %8154 = vmatprep.subr.bf16.mxu1 %v17323_v8  ;;  %v4838_v60 = vld [vmem:[%s19326_s10 + $0xc30] sm:$0xff]  ;;  %v4835_v4 = vld [vmem:[%s19326_s10 + $0xc18] sm:$0xff] }
 0x53d   : > { %v4839_v8 = vld [vmem:[%s19326_s10 + $0xc38] sm:$0xff]  ;;  %v17377_v6 = vcombine.high %v4834_v53, %v4838_v60  ;;  %v17376_v43 = vcombine.low %v4834_v53, %v4838_v60 }
 0x53e   : > { %v17379_v7 = vcombine.high %v4835_v4, %v4839_v8  ;;  %v17378_v46 = vcombine.low %v4835_v4, %v4839_v8  ;;  %v17416_v4 = vcombine.low %v4874_v63, %v4878_v35 }
 0x53f   : > { %7991 = vmatpush1.bf16.msra.mxu0 %v17320_v10  ;;  %8155 = vmatpush1.bf16.msra.mxu1 %v17322_v12  ;;  %v4842_v10 = vld [vmem:[%s19326_s10 + $0xc50] sm:$0xff] }
 0x540   : > { %7992 = vmatprep.subr.bf16.mxu0 %v17329_v11  ;;  %8156 = vmatprep.subr.bf16.mxu1 %v17331_v31  ;;  %v4846_v12 = vld [vmem:[%s19326_s10 + $0xc70] sm:$0xff]  ;;  %v4843_v11 = vld [vmem:[%s19326_s10 + $0xc58] sm:$0xff] }
 0x541   : > { %v4847_v31 = vld [vmem:[%s19326_s10 + $0xc78] sm:$0xff]  ;;  %v17385_v13 = vcombine.high %v4842_v10, %v4846_v12  ;;  %v17384_v18 = vcombine.low %v4842_v10, %v4846_v12  ;;  %v4894_v10 = vld [vmem:[%s19326_s10 + $0xdf0] sm:$0xff] }
 0x542   : > { %v17387_v14 = vcombine.high %v4843_v11, %v4847_v31  ;;  %v17386_v19 = vcombine.low %v4843_v11, %v4847_v31  ;;  %v4891_v31 = vld [vmem:[%s19326_s10 + $0xdd8] sm:$0xff] }
 0x543   : > { %7993 = vmatpush1.bf16.msra.mxu0 %v17328_v15  ;;  %8157 = vmatpush1.bf16.msra.mxu1 %v17330_v59  ;;  %v4850_v15 = vld [vmem:[%s19326_s10 + $0xc90] sm:$0xff] }
 0x544   : > { %7994 = vmatprep.subr.bf16.mxu0 %v17337_v41  ;;  %8158 = vmatprep.subr.bf16.mxu1 %v17339_v17  ;;  %v4854_v59 = vld [vmem:[%s19326_s10 + $0xcb0] sm:$0xff]  ;;  %v4851_v41 = vld [vmem:[%s19326_s10 + $0xc98] sm:$0xff] }
 0x545   : > { %v4855_v17 = vld [vmem:[%s19326_s10 + $0xcb8] sm:$0xff]  ;;  %v17393_v20 = vcombine.high %v4850_v15, %v4854_v59 }
 0x546   : > { %v17395_v58 = vcombine.high %v4851_v41, %v4855_v17  ;;  %v17394_v25 = vcombine.low %v4851_v41, %v4855_v17 }
 0x547   : > { %7995 = vmatpush1.bf16.msra.mxu0 %v17336_v21  ;;  %8159 = vmatpush1.bf16.msra.mxu1 %v17338_v22  ;;  %v4858_v21 = vld [vmem:[%s19326_s10 + $0xcd0] sm:$0xff] }
 0x548   : > { %7996 = vmatprep.subr.bf16.mxu0 %v17345_v27  ;;  %8160 = vmatprep.subr.bf16.mxu1 %v17347_v51  ;;  %v4862_v22 = vld [vmem:[%s19326_s10 + $0xcf0] sm:$0xff]  ;;  %v4859_v27 = vld [vmem:[%s19326_s10 + $0xcd8] sm:$0xff] }
 0x549   : > { %v4863_v51 = vld [vmem:[%s19326_s10 + $0xcf8] sm:$0xff]  ;;  %v17401_v2 = vcombine.high %v4858_v21, %v4862_v22 }
 0x54a   : > { %v17403_v55 = vcombine.high %v4859_v27, %v4863_v51 }
 0x54b   : > { %7997 = vmatpush1.bf16.msra.mxu0 %v17344_v1  ;;  %8161 = vmatpush1.bf16.msra.mxu1 %v17346_v30  ;;  %v4870_v1 = vld [vmem:[%s19326_s10 + $0xd30] sm:$0xff]  ;;  %v4867_v30 = vld [vmem:[%s19326_s10 + $0xd18] sm:$0xff] }
 0x54c   : > { %7998 = vmatprep.subr.bf16.mxu0 %v17353_v32  ;;  %8162 = vmatprep.subr.bf16.mxu1 %v17355_v28  ;;  %v4871_v32 = vld [vmem:[%s19326_s10 + $0xd38] sm:$0xff]  ;;  %v17400_v28 = vcombine.low %v4858_v21, %v4862_v22  ;;  %v17409_v33 = vcombine.high %v4866_v29, %v4870_v1  ;;  %v4898_v21 = vld [vmem:[%s19326_s10 + $0xe10] sm:$0xff] }
 0x54d   : > { %v17411_v34 = vcombine.high %v4867_v30, %v4871_v32  ;;  %v17410_v42 = vcombine.low %v4867_v30, %v4871_v32  ;;  %v4902_v22 = vld [vmem:[%s19326_s10 + $0xe30] sm:$0xff] }
 0x54e   : > { %v4906_v32 = vld [vmem:[%s19326_s10 + $0xe50] sm:$0xff]  ;;  %v17440_v63 = vcombine.low %v4898_v21, %v4902_v22 }
 0x54f   : > { %7999 = vmatpush1.bf16.msra.mxu0 %v17352_v36  ;;  %8163 = vmatpush1.bf16.msra.mxu1 %v17354_v38  ;;  %v4875_v36 = vld [vmem:[%s19326_s10 + $0xd58] sm:$0xff] }
 0x550   : > { %8000 = vmatprep.subr.bf16.mxu0 %v17361_v39  ;;  %8164 = vmatprep.subr.bf16.mxu1 %v17363_v40  ;;  %v4879_v38 = vld [vmem:[%s19326_s10 + $0xd78] sm:$0xff]  ;;  %v17408_v39 = vcombine.low %v4866_v29, %v4870_v1  ;;  %v20616_v40 = vld [vmem:[%s19332_s9] sm:$0xff]  ;;  %v17441_v1 = vcombine.high %v4898_v21, %v4902_v22 }
 0x551   : > { %v17419_v26 = vcombine.high %v4875_v36, %v4879_v38  ;;  %v4973_v53 = vrot.slane %v20616_v40, %v20016_v54  ;;  %v4969_v60 = vrot.slane %v20616_v40, %v20011_v49  ;;  %v4977_v8 = vrot.slane %v20616_v40, %v20019_v44 }
 0x553   : > { %8001 = vmatpush1.bf16.msra.mxu0 %v17360_v52  ;;  %8165 = vmatpush1.bf16.msra.mxu1 %v17362_v45  ;;  %v4886_v52 = vld [vmem:[%s19326_s10 + $0xdb0] sm:$0xff]  ;;  %v4965_v45 = vrot.slane %v20616_v40, %v20008_v48 }
 0x554   : > { %8002 = vmatprep.subr.bf16.mxu0 %v17369_v9  ;;  %8166 = vmatprep.subr.bf16.mxu1 %v17371_v57  ;;  %v4883_v9 = vld [vmem:[%s19326_s10 + $0xd98] sm:$0xff]  ;;  %v17425_v48 = vcombine.high %v4882_v47, %v4886_v52  ;;  %v17424_v44 = vcombine.low %v4882_v47, %v4886_v52 }
 0x555   : > { %v4887_v57 = vld [vmem:[%s19326_s10 + $0xdb8] sm:$0xff] }
 0x556   : > { %v17426_v17 = vcombine.low %v4883_v9, %v4887_v57 }
 0x557   : > { %8003 = vmatpush1.bf16.msra.mxu0 %v17368_v61  ;;  %8167 = vmatpush1.bf16.msra.mxu1 %v17370_v5  ;;  %v17418_v61 = vcombine.low %v4875_v36, %v4879_v38 }
 0x558   : > { %8013 = vmatprep.subr.bf16.mxu0 %v17377_v6  ;;  %8177 = vmatprep.subr.bf16.mxu1 %v17379_v7  ;;  %v17427_v6 = vcombine.high %v4883_v9, %v4887_v57  ;;  %v4890_v7 = vld [vmem:[%s19326_s10 + $0xdd0] sm:$0xff] }
 0x559   : > { %v4922_v57 = vld [vmem:[%s19326_s10 + $0xed0] sm:$0xff] }
 0x55a   : > { %8005 = vmatmul.mubr.bf16.vlgmr.msra.gmra.mrb[4].mxu0 %v20313_v37  ;;  %8169 = vmatmul.mubr.bf16.vlgmr.msra.gmra.mrb[4].mxu1 %v20313_v37  ;;  %v17392_v37 = vcombine.low %v4850_v15, %v4854_v59 }
 0x55b   : > { %8014 = vmatpush1.bf16.msra.mxu0 %v17376_v43  ;;  %8178 = vmatpush1.bf16.msra.mxu1 %v17378_v46  ;;  %v4895_v43 = vld [vmem:[%s19326_s10 + $0xdf8] sm:$0xff] }
 0x55c   : > { %8015 = vmatprep.subr.bf16.mxu0 %v17385_v13  ;;  %8179 = vmatprep.subr.bf16.mxu1 %v17387_v14  ;;  %v17434_v29 = vcombine.low %v4891_v31, %v4895_v43 }
 0x55d   : > { %8045 = vmatprep.mubr.bf16.mxu0 %v20319_v23  ;;  %8209 = vmatprep.mubr.bf16.mxu1 %v20319_v23  ;;  %v17402_v23 = vcombine.low %v4859_v27, %v4863_v51  ;;  %v4899_v51 = vld [vmem:[%s19326_s10 + $0xe18] sm:$0xff] }
 0x55f   : > { %8016 = vmatpush1.bf16.msra.mxu0 %v17384_v18  ;;  %8180 = vmatpush1.bf16.msra.mxu1 %v17386_v19  ;;  %v17433_v18 = vcombine.high %v4890_v7, %v4894_v10 }
 0x560   : > { %8017 = vmatprep.subr.bf16.mxu0 %v17393_v20  ;;  %8181 = vmatprep.subr.bf16.mxu1 %v17395_v58  ;;  %v17435_v58 = vcombine.high %v4891_v31, %v4895_v43 }
 0x563   : > { %8018 = vmatpush1.bf16.msra.mxu0 %v17392_v37  ;;  %8182 = vmatpush1.bf16.msra.mxu1 %v17394_v25  ;;  %v4903_v37 = vld [vmem:[%s19326_s10 + $0xe38] sm:$0xff] }
 0x564   : > { %8019 = vmatprep.subr.bf16.mxu0 %v17401_v2  ;;  %8183 = vmatprep.subr.bf16.mxu1 %v17403_v55  ;;  %v17432_v2 = vcombine.low %v4890_v7, %v4894_v10  ;;  %v17443_v30 = vcombine.high %v4899_v51, %v4903_v37  ;;  %v17442_v35 = vcombine.low %v4899_v51, %v4903_v37  ;;  %v4934_v7 = vld [vmem:[%s19326_s10 + $0xf30] sm:$0xff]  ;;  %v4931_v10 = vld [vmem:[%s19326_s10 + $0xf18] sm:$0xff] }
 0x565   : > { %v4954_v51 = vld [vmem:[%s19326_s10 + $0xfd0] sm:$0xff] }
 0x566   : > { %v4958_v37 = vld [vmem:[%s19326_s10 + $0xff0] sm:$0xff] }
 0x567   : > { %8020 = vmatpush1.bf16.msra.mxu0 %v17400_v28  ;;  %8184 = vmatpush1.bf16.msra.mxu1 %v17402_v23  ;;  %v4910_v28 = vld [vmem:[%s19326_s10 + $0xe70] sm:$0xff] }
 0x568   : > { %8021 = vmatprep.subr.bf16.mxu0 %v17409_v33  ;;  %8185 = vmatprep.subr.bf16.mxu1 %v17411_v34  ;;  %v4907_v33 = vld [vmem:[%s19326_s10 + $0xe58] sm:$0xff]  ;;  %v17449_v36 = vcombine.high %v4906_v32, %v4910_v28  ;;  %v17448_v47 = vcombine.low %v4906_v32, %v4910_v28  ;;  %v17496_v32 = vcombine.low %v4954_v51, %v4958_v37 }
 0x569   : > { %v4911_v34 = vld [vmem:[%s19326_s10 + $0xe78] sm:$0xff] }
 0x56a   : > { %v17451_v38 = vcombine.high %v4907_v33, %v4911_v34  ;;  %v17450_v52 = vcombine.low %v4907_v33, %v4911_v34  ;;  %v4989_v33 = vrot.slane %v20616_v40, %v20120_v62  ;;  %v4985_v34 = vrot.slane %v20616_v40, %v20111_v16 }
 0x56b   : > { %8022 = vmatpush1.bf16.msra.mxu0 %v17408_v39  ;;  %8186 = vmatpush1.bf16.msra.mxu1 %v17410_v42  ;;  %v4914_v39 = vld [vmem:[%s19326_s10 + $0xe90] sm:$0xff] }
 0x56c   : > { %8023 = vmatprep.subr.bf16.mxu0 %v17417_v56  ;;  %8187 = vmatprep.subr.bf16.mxu1 %v17419_v26  ;;  %v4918_v42 = vld [vmem:[%s19326_s10 + $0xeb0] sm:$0xff]  ;;  %v4915_v56 = vld [vmem:[%s19326_s10 + $0xe98] sm:$0xff] }
 0x56d   : > { %v7719_v5 = vpop.f32.mrb[0].mxu0  ;;  %v7883_v54 = vpop.f32.mrb[0].mxu1  ;;  %v4919_v26 = vld [vmem:[%s19326_s10 + $0xeb8] sm:$0xff] }
 0x56e   : > { %v18589_v12 = vadd.f32 %v7719_v5, %v4965_v45  ;;  %v7721_v11 = vpop.f32.mrb[1].mxu0  ;;  %v18591_v49 = vadd.f32 %v7883_v54, %v4973_v53  ;;  %v7885_v13 = vpop.f32.mrb[1].mxu1  ;;  %v17457_v45 = vcombine.high %v4914_v39, %v4918_v42  ;;  %v17459_v9 = vcombine.high %v4915_v56, %v4919_v26  ;;  %v4926_v53 = vld [vmem:[%s19326_s10 + $0xef0] sm:$0xff] }
 0x56f   : > { %v18590_v46 = vadd.f32 %v7721_v11, %v4969_v60  ;;  %v7723_v14 = vpop.f32.mrb[2].mxu0  ;;  %8024 = vmatpush1.bf16.msra.mxu0 %v17416_v4  ;;  %v18592_v15 = vadd.f32 %v7885_v13, %v4977_v8  ;;  %v7887_v59 = vpop.f32.mrb[2].mxu1  ;;  %8188 = vmatpush1.bf16.msra.mxu1 %v17418_v61  ;;  %v4923_v60 = vld [vmem:[%s19326_s10 + $0xed8] sm:$0xff]  ;;  %v17456_v8 = vcombine.low %v4914_v39, %v4918_v42 }
 0x570   : > { %v7724_v41 = vpop.f32.mrb[3].mxu0  ;;  %8025 = vmatprep.subr.bf16.mxu0 %v17425_v48  ;;  %v7888_v20 = vpop.f32.mrb[3].mxu1  ;;  %8189 = vmatprep.subr.bf16.mxu1 %v17427_v6  ;;  %v4927_v4 = vld [vmem:[%s19326_s10 + $0xef8] sm:$0xff]  ;;  %v17458_v61 = vcombine.low %v4915_v56, %v4919_v26  ;;  %v17465_v48 = vcombine.high %v4922_v57, %v4926_v53  ;;  %v4930_v6 = vld [vmem:[%s19326_s10 + $0xf10] sm:$0xff]  ;;  %v17464_v54 = vcombine.low %v4922_v57, %v4926_v53 }
 0x571   : > { %v8226_v19 = vcombine.low %v18589_v12, %v18590_v46  ;;  %v8227_v27 = vcombine.low %v18591_v49, %v18592_v15  ;;  %v17467_v5 = vcombine.high %v4923_v60, %v4927_v4  ;;  %v4935_v12 = vld [vmem:[%s19326_s10 + $0xf38] sm:$0xff]  ;;  %v17466_v11 = vcombine.low %v4923_v60, %v4927_v4  ;;  %v4938_v49 = vld [vmem:[%s19326_s10 + $0xf50] sm:$0xff] }
 0x572   : > { %v17473_v31 = vcombine.high %v4930_v6, %v4934_v7  ;;  %v17475_v43 = vcombine.high %v4931_v10, %v4935_v12  ;;  %v4942_v46 = vld [vmem:[%s19326_s10 + $0xf70] sm:$0xff]  ;;  %v4939_v13 = vld [vmem:[%s19326_s10 + $0xf58] sm:$0xff]  ;;  %v17474_v15 = vcombine.low %v4931_v10, %v4935_v12 }
 0x573   : > { %v8234_v25 = vrot.slane %v8226_v19, %v20031_v0  ;;  %8026 = vmatpush1.bf16.msra.mxu0 %v17424_v44  ;;  %v8241_v55 = vrot.slane %v8227_v27, %v20031_v0  ;;  %8190 = vmatpush1.bf16.msra.mxu1 %v17426_v17  ;;  %v4943_v14 = vld [vmem:[%s19326_s10 + $0xf78] sm:$0xff]  ;;  %v17472_v44 = vcombine.low %v4930_v6, %v4934_v7  ;;  %v4946_v17 = vld [vmem:[%s19326_s10 + $0xf90] sm:$0xff] }
 0x574   : > { %8027 = vmatprep.subr.bf16.mxu0 %v17433_v18  ;;  %8191 = vmatprep.subr.bf16.mxu1 %v17435_v58  ;;  %v17481_v59 = vcombine.high %v4938_v49, %v4942_v46  ;;  %v17483_v41 = vcombine.high %v4939_v13, %v4943_v14  ;;  %v4950_v18 = vld [vmem:[%s19326_s10 + $0xfb0] sm:$0xff]  ;;  %v4947_v19 = vld [vmem:[%s19326_s10 + $0xf98] sm:$0xff]  ;;  %v17480_v58 = vcombine.low %v4938_v49, %v4942_v46 }
 0x575   : > { %v8242_v23 = vcombine.low %v8234_v25, %v8241_v55  ;;  %v4951_v20 = vld [vmem:[%s19326_s10 + $0xfb8] sm:$0xff]  ;;  %v17482_v21 = vcombine.low %v4939_v13, %v4943_v14  ;;  %v17489_v22 = vcombine.high %v4946_v17, %v4950_v18  ;;  %v17488_v55 = vcombine.low %v4946_v17, %v4950_v18 }
 0x576   : > { %v17491_v27 = vcombine.high %v4947_v19, %v4951_v20  ;;  %v4955_v25 = vld [vmem:[%s19326_s10 + $0xfd8] sm:$0xff] }
 0x577   : > { %8028 = vmatpush1.bf16.msra.mxu0 %v17432_v2  ;;  %8262 = vst [vmem:[#allocation3] sm:$0xff] %v8242_v23  ;;  %8192 = vmatpush1.bf16.msra.mxu1 %v17434_v29  ;;  %v4959_v2 = vld [vmem:[%s19326_s10 + $0xff8] sm:$0xff]  ;;  %v17490_v29 = vcombine.low %v4947_v19, %v4951_v20  ;;  %v4981_v23 = vrot.slane %v20616_v40, %v20108_v50 }
 0x578   : > { %8029 = vmatprep.subr.bf16.mxu0 %v17441_v1  ;;  %8193 = vmatprep.subr.bf16.mxu1 %v17443_v30  ;;  %v17497_v1 = vcombine.high %v4954_v51, %v4958_v37  ;;  %v17499_v30 = vcombine.high %v4955_v25, %v4959_v2  ;;  %v17498_v28 = vcombine.low %v4955_v25, %v4959_v2 }
 0x57b   : > { %8030 = vmatpush1.bf16.msra.mxu0 %v17440_v63  ;;  %8194 = vmatpush1.bf16.msra.mxu1 %v17442_v35  ;;  %v4993_v63 = vrot.slane %v20616_v40, %v20123_v3 }
 0x57c   : > { %8031 = vmatprep.subr.bf16.mxu0 %v17449_v36  ;;  %8195 = vmatprep.subr.bf16.mxu1 %v17451_v38 }
 0x57f   : > { %8032 = vmatpush1.bf16.msra.mxu0 %v17448_v47  ;;  %8196 = vmatpush1.bf16.msra.mxu1 %v17450_v52 }
 0x580   : > { %8033 = vmatprep.subr.bf16.mxu0 %v17457_v45  ;;  %8197 = vmatprep.subr.bf16.mxu1 %v17459_v9 }
 0x583   : > { %8034 = vmatpush1.bf16.msra.mxu0 %v17456_v8  ;;  %8198 = vmatpush1.bf16.msra.mxu1 %v17458_v61 }
 0x584   : > { %8035 = vmatprep.subr.bf16.mxu0 %v17465_v48  ;;  %8199 = vmatprep.subr.bf16.mxu1 %v17467_v5 }
 0x587   : > { %8036 = vmatpush1.bf16.msra.mxu0 %v17464_v54  ;;  %8200 = vmatpush1.bf16.msra.mxu1 %v17466_v11 }
 0x588   : > { %8037 = vmatprep.subr.bf16.mxu0 %v17473_v31  ;;  %8201 = vmatprep.subr.bf16.mxu1 %v17475_v43 }
 0x58b   : > { %8038 = vmatpush1.bf16.msra.mxu0 %v17472_v44  ;;  %8202 = vmatpush1.bf16.msra.mxu1 %v17474_v15 }
 0x58c   : > { %8039 = vmatprep.subr.bf16.mxu0 %v17481_v59  ;;  %8203 = vmatprep.subr.bf16.mxu1 %v17483_v41 }
 0x58f   : > { %8040 = vmatpush1.bf16.msra.mxu0 %v17480_v58  ;;  %8204 = vmatpush1.bf16.msra.mxu1 %v17482_v21 }
 0x590   : > { %8041 = vmatprep.subr.bf16.mxu0 %v17489_v22  ;;  %8205 = vmatprep.subr.bf16.mxu1 %v17491_v27 }
 0x593   : > { %8042 = vmatpush1.bf16.msra.mxu0 %v17488_v55  ;;  %8206 = vmatpush1.bf16.msra.mxu1 %v17490_v29 }
 0x594   : > { %8043 = vmatprep.subr.bf16.mxu0 %v17497_v1  ;;  %8207 = vmatprep.subr.bf16.mxu1 %v17499_v30 }
 0x597   : > { %8044 = vmatpush1.bf16.msra.mxu0 %v17496_v32  ;;  %8208 = vmatpush1.bf16.msra.mxu1 %v17498_v28 }
 0x59a   : > { %8046 = vmatmul.mubr.bf16.vlgmr.msra.gmra.mrb[4].mxu0 %v20387_v24  ;;  %8210 = vmatmul.mubr.bf16.vlgmr.msra.gmra.mrb[4].mxu1 %v20387_v24 }
 0x66d   : > { %v8047_v35 = vpop.f32.mrb[4].mxu0  ;;  %v8211_v38 = vpop.f32.mrb[4].mxu1 }
 0x66e   : > { %v18593_v36 = vadd.f32 %v8047_v35, %v4981_v23  ;;  %v8049_v39 = vpop.f32.mrb[5].mxu0  ;;  %v18595_v42 = vadd.f32 %v8211_v38, %v4989_v33  ;;  %v8213_v26 = vpop.f32.mrb[5].mxu1 }
 0x66f   : > { %v18594_v56 = vadd.f32 %v8049_v39, %v4985_v34  ;;  %v8051_v24 = vpop.f32.mrb[6].mxu0  ;;  %v18596_v47 = vadd.f32 %v8213_v26, %v4993_v63  ;;  %v8215_v52 = vpop.f32.mrb[6].mxu1 }
 0x670   : > { %v8052_v50 = vpop.f32.mrb[7].mxu0  ;;  %v8216_v9 = vpop.f32.mrb[7].mxu1 }
 0x671   : > { %v8243_v45 = vcombine.low %v18593_v36, %v18594_v56  ;;  %v8244_v62 = vcombine.low %v18595_v42, %v18596_v47 }
 0x673   : > { %v8251_v57 = vrot.slane %v8243_v45, %v20031_v0  ;;  %v8258_v16 = vrot.slane %v8244_v62, %v20031_v0 }
 0x675   : > { %v8259_v53 = vcombine.low %v8251_v57, %v8258_v16 }
 0x677   : > { %8263 = vst [vmem:[#allocation3 + $0x8] sm:$0xff] %v8259_v53 }
 0x678 PF: > { %p8264_p7 = scmp.eq.s32.totalorder %s22162_s24, 0  ;;  %p22154_p13 = scmp.ne.s32.totalorder %s19219_s23, 0 }
 0x67a   : > { %p8266_p0 = pnand %p22154_p13, %p8264_p7 }
 0x67b   : > { %v8476_v3 = vld [vmem:[%s19326_s10] sm:$0xff] (!%p8266_p0)  ;;  %v8477_v40 = vld [vmem:[%s19326_s10 + $0x8] sm:$0xff] (!%p8266_p0)  ;;  %v8276_v27 = vlaneseq (!%p8266_p0)  ;;  %v19068_v28 = vmov (!%p8266_p0), 1983009808   ;;  %v20726_v53 = vld [vmem:[%s19334_s15] sm:$0xff] (!%p8266_p0) }
 0x67c   : > { %8269 = sbr.rel (%p8266_p0) target bundleno = 2399 (0x95f), region = 72  ;;  %v8480_v0 = vld [vmem:[%s19326_s10 + $0x20] sm:$0xff] (!%p8266_p0)  ;;  %v8481_v4 = vld [vmem:[%s19326_s10 + $0x28] sm:$0xff] (!%p8266_p0)  ;;  %v8311_v23 = vunpack.c.l.s4 (!%p8266_p0), %v19068_v28 }
 0x67d   : > { %v17501_v60 = vcombine.high (!%p8266_p0), %v8476_v3, %v8480_v0  ;;  %v17500_v8 = vcombine.low (!%p8266_p0), %v8476_v3, %v8480_v0  ;;  %v8484_v61 = vld [vmem:[%s19326_s10 + $0x40] sm:$0xff] (!%p8266_p0)  ;;  %v17503_v5 = vcombine.high (!%p8266_p0), %v8477_v40, %v8481_v4  ;;  %v17502_v6 = vcombine.low (!%p8266_p0), %v8477_v40, %v8481_v4  ;;  %v8485_v10 = vld [vmem:[%s19326_s10 + $0x48] sm:$0xff] (!%p8266_p0) }
 0x67e   : > { %v8488_v48 = vld [vmem:[%s19326_s10 + $0x60] sm:$0xff] (!%p8266_p0)  ;;  %v8489_v12 = vld [vmem:[%s19326_s10 + $0x68] sm:$0xff] (!%p8266_p0)  ;;  %v20705_v32 = vshrl.u32 (!%p8266_p0), %v8276_v27, 7  ;;  %v8312_v24 = vunpack.c.0.s8 (!%p8266_p0), %v8311_v23 }
 0x67f   : > { %v17509_v7 = vcombine.high (!%p8266_p0), %v8484_v61, %v8488_v48  ;;  %v8492_v54 = vld [vmem:[%s19326_s10 + $0x80] sm:$0xff] (!%p8266_p0)  ;;  %11590 = vmatprep.subr.bf16.mxu0 (!%p8266_p0), %v17501_v60  ;;  %v17511_v11 = vcombine.high (!%p8266_p0), %v8485_v10, %v8489_v12  ;;  %v8493_v43 = vld [vmem:[%s19326_s10 + $0x88] sm:$0xff] (!%p8266_p0)  ;;  %11754 = vmatprep.subr.bf16.mxu1 (!%p8266_p0), %v17503_v5  ;;  %v17508_v46 = vcombine.low (!%p8266_p0), %v8484_v61, %v8488_v48 }
 0x680   : > { %v8496_v31 = vld [vmem:[%s19326_s10 + $0xa0] sm:$0xff] (!%p8266_p0)  ;;  %v8497_v49 = vld [vmem:[%s19326_s10 + $0xa8] sm:$0xff] (!%p8266_p0)  ;;  %11591 = vmatpush1.bf16.msra.mxu0 (!%p8266_p0), %v17500_v8  ;;  %11755 = vmatpush1.bf16.msra.mxu1 (!%p8266_p0), %v17502_v6  ;;  %v17510_v13 = vcombine.low (!%p8266_p0), %v8485_v10, %v8489_v12  ;;  %v20712_v56 = vsub.s32 (!%p8266_p0), 0, %v20705_v32  ;;  %v20715_v26 = vsub.s32 (!%p8266_p0), 1, %v20705_v32  ;;  %v20720_v50 = vsub.s32 (!%p8266_p0), 2, %v20705_v32 }
 0x681   : > { %11592 = vmatprep.subr.bf16.mxu0 (!%p8266_p0), %v17509_v7  ;;  %v17517_v14 = vcombine.high (!%p8266_p0), %v8492_v54, %v8496_v31  ;;  %11756 = vmatprep.subr.bf16.mxu1 (!%p8266_p0), %v17511_v11  ;;  %v17519_v44 = vcombine.high (!%p8266_p0), %v8493_v43, %v8497_v49  ;;  %v8500_v15 = vld [vmem:[%s19326_s10 + $0xc0] sm:$0xff] (!%p8266_p0)  ;;  %v8501_v41 = vld [vmem:[%s19326_s10 + $0xc8] sm:$0xff] (!%p8266_p0)  ;;  %v17516_v18 = vcombine.low (!%p8266_p0), %v8492_v54, %v8496_v31  ;;  %v20723_v45 = vsub.s32 (!%p8266_p0), 3, %v20705_v32 }
 0x682   : > { %v8504_v59 = vld [vmem:[%s19326_s10 + $0xe0] sm:$0xff] (!%p8266_p0)  ;;  %v8505_v17 = vld [vmem:[%s19326_s10 + $0xe8] sm:$0xff] (!%p8266_p0)  ;;  %v17518_v19 = vcombine.low (!%p8266_p0), %v8493_v43, %v8497_v49  ;;  %v8279_v60 = vrot.slane (!%p8266_p0), %v20726_v53, %v20712_v56  ;;  %v8283_v4 = vrot.slane (!%p8266_p0), %v20726_v53, %v20715_v26  ;;  %v20735_v8 = vsub.s32 (!%p8266_p0), %v8312_v24, %v20705_v32 }
 0x683   : > { %v17525_v20 = vcombine.high %v8500_v15, %v8504_v59  ;;  %v17527_v58 = vcombine.high %v8501_v41, %v8505_v17  ;;  %v8508_v21 = vld [vmem:[%s19326_s10 + $0x100] sm:$0xff]  ;;  %v8509_v51 = vld [vmem:[%s19326_s10 + $0x108] sm:$0xff]  ;;  %v17524_v25 = vcombine.low %v8500_v15, %v8504_v59  ;;  %v17526_v2 = vcombine.low %v8501_v41, %v8505_v17 }
 0x684   : > { %11593 = vmatpush1.bf16.msra.mxu0 %v17508_v46  ;;  %11757 = vmatpush1.bf16.msra.mxu1 %v17510_v13  ;;  %v8512_v22 = vld [vmem:[%s19326_s10 + $0x120] sm:$0xff]  ;;  %v8513_v37 = vld [vmem:[%s19326_s10 + $0x128] sm:$0xff]  ;;  %v8287_v6 = vrot.slane %v20726_v53, %v20720_v50  ;;  %v8291_v7 = vrot.slane %v20726_v53, %v20723_v45  ;;  %v8308_v11 = vcombine.low %v8279_v60, %v8283_v4 }
 0x685   : > { %11594 = vmatprep.subr.bf16.mxu0 %v17517_v14  ;;  %11758 = vmatprep.subr.bf16.mxu1 %v17519_v44  ;;  %v17533_v55 = vcombine.high %v8508_v21, %v8512_v22  ;;  %v17535_v29 = vcombine.high %v8509_v51, %v8513_v37  ;;  %v8516_v1 = vld [vmem:[%s19326_s10 + $0x140] sm:$0xff]  ;;  %v8517_v33 = vld [vmem:[%s19326_s10 + $0x148] sm:$0xff]  ;;  %v17532_v63 = vcombine.low %v8508_v21, %v8512_v22 }
 0x686   : > { %v8520_v30 = vld [vmem:[%s19326_s10 + $0x160] sm:$0xff]  ;;  %v8521_v34 = vld [vmem:[%s19326_s10 + $0x168] sm:$0xff]  ;;  %v17534_v35 = vcombine.low %v8509_v51, %v8513_v37  ;;  %v8309_v46 = vcombine.low %v8287_v6, %v8291_v7  ;;  %v8316_v59 = vrot.slane %v8308_v11, %v20735_v8 }
 0x687   : > { %v17541_v36 = vcombine.high %v8516_v1, %v8520_v30  ;;  %v17543_v38 = vcombine.high %v8517_v33, %v8521_v34  ;;  %v8524_v39 = vld [vmem:[%s19326_s10 + $0x180] sm:$0xff]  ;;  %v8525_v47 = vld [vmem:[%s19326_s10 + $0x188] sm:$0xff]  ;;  %v17540_v9 = vcombine.low %v8516_v1, %v8520_v30  ;;  %v17542_v62 = vcombine.low %v8517_v33, %v8521_v34 }
 0x688   : > { %11595 = vmatpush1.bf16.msra.mxu0 %v17516_v18  ;;  %11759 = vmatpush1.bf16.msra.mxu1 %v17518_v19  ;;  %v8528_v42 = vld [vmem:[%s19326_s10 + $0x1a0] sm:$0xff]  ;;  %v8529_v52 = vld [vmem:[%s19326_s10 + $0x1a8] sm:$0xff]  ;;  %v8323_v19 = vrot.slane %v8309_v46, %v20735_v8 }
 0x689   : > { %11596 = vmatprep.subr.bf16.mxu0 %v17525_v20  ;;  %11760 = vmatprep.subr.bf16.mxu1 %v17527_v58  ;;  %v17549_v57 = vcombine.high %v8524_v39, %v8528_v42  ;;  %v17548_v16 = vcombine.low %v8524_v39, %v8528_v42  ;;  %v17551_v3 = vcombine.high %v8525_v47, %v8529_v52  ;;  %v8532_v0 = vld [vmem:[%s19326_s10 + $0x1c0] sm:$0xff]  ;;  %v8533_v48 = vld [vmem:[%s19326_s10 + $0x1c8] sm:$0xff] }
 0x68a   : > { %v8536_v40 = vld [vmem:[%s19326_s10 + $0x1e0] sm:$0xff]  ;;  %v8537_v5 = vld [vmem:[%s19326_s10 + $0x1e8] sm:$0xff]  ;;  %v17550_v54 = vcombine.low %v8525_v47, %v8529_v52  ;;  %v8324_v37 = vcombine.low %v8316_v59, %v8323_v19 }
 0x68b   : > { %v20738_v61 = vld [vmem:[%s19340_s16] sm:$0xff]  ;;  %v17557_v49 = vcombine.high %v8532_v0, %v8536_v40  ;;  %v17559_v14 = vcombine.high %v8533_v48, %v8537_v5  ;;  %v17556_v58 = vcombine.low %v8532_v0, %v8536_v40  ;;  %v17558_v27 = vcombine.low %v8533_v48, %v8537_v5 }
 0x68c   : > { %11597 = vmatpush1.bf16.msra.mxu0 %v17524_v25  ;;  %11761 = vmatpush1.bf16.msra.mxu1 %v17526_v2  ;;  %v8351_v10 = vrot.slane %v20738_v61, %v20712_v56  ;;  %v8355_v12 = vrot.slane %v20738_v61, %v20715_v26  ;;  %v8359_v31 = vrot.slane %v20738_v61, %v20720_v50  ;;  %v8540_v44 = vld [vmem:[%s19326_s10 + $0x200] sm:$0xff]  ;;  %v8541_v17 = vld [vmem:[%s19326_s10 + $0x208] sm:$0xff] }
 0x68d   : > { %11598 = vmatprep.subr.bf16.mxu0 %v17533_v55  ;;  %11762 = vmatprep.subr.bf16.mxu1 %v17535_v29  ;;  %v8363_v43 = vrot.slane %v20738_v61, %v20723_v45  ;;  %v8544_v15 = vld [vmem:[%s19326_s10 + $0x220] sm:$0xff]  ;;  %v8545_v18 = vld [vmem:[%s19326_s10 + $0x228] sm:$0xff] }
 0x68e   : > { %v8380_v13 = vcombine.low %v8351_v10, %v8355_v12  ;;  %v8272_v21 = vld [vmem:[#allocation3] sm:$0xff]  ;;  %v17565_v51 = vcombine.high %v8540_v44, %v8544_v15  ;;  %v17567_v25 = vcombine.high %v8541_v17, %v8545_v18  ;;  %v8549_v1 = vld [vmem:[%s19326_s10 + $0x248] sm:$0xff]  ;;  %v17564_v23 = vcombine.low %v8540_v44, %v8544_v15 }
 0x68f   : > { %v8381_v41 = vcombine.low %v8359_v31, %v8363_v43  ;;  %v8548_v2 = vld [vmem:[%s19326_s10 + $0x240] sm:$0xff]  ;;  %v8553_v30 = vld [vmem:[%s19326_s10 + $0x268] sm:$0xff]  ;;  %v8344_v28 = vmul.f32 %v8324_v37, %v8272_v21  ;;  %v17566_v33 = vcombine.low %v8541_v17, %v8545_v18 }
 0x690   : > { %11599 = vmatpush1.bf16.msra.mxu0 %v17532_v63  ;;  %11763 = vmatpush1.bf16.msra.mxu1 %v17534_v35  ;;  %v8388_v20 = vrot.slane %v8380_v13, %v20735_v8  ;;  %v8552_v55 = vld [vmem:[%s19326_s10 + $0x260] sm:$0xff]  ;;  %v17575_v35 = vcombine.high %v8549_v1, %v8553_v30  ;;  %v8557_v39 = vld [vmem:[%s19326_s10 + $0x288] sm:$0xff]  ;;  %v17574_v52 = vcombine.low %v8549_v1, %v8553_v30 }
 0x691   : > { %11600 = vmatprep.subr.bf16.mxu0 %v17541_v36  ;;  %11764 = vmatprep.subr.bf16.mxu1 %v17543_v38  ;;  %v8395_v22 = vrot.slane %v8381_v41, %v20735_v8  ;;  %v17573_v34 = vcombine.high %v8548_v2, %v8552_v55  ;;  %v8556_v36 = vld [vmem:[%s19326_s10 + $0x280] sm:$0xff]  ;;  %v8561_v42 = vld [vmem:[%s19326_s10 + $0x2a8] sm:$0xff]  ;;  %v17572_v47 = vcombine.low %v8548_v2, %v8552_v55 }
 0x692   : > { %v8560_v38 = vld [vmem:[%s19326_s10 + $0x2a0] sm:$0xff]  ;;  %v8565_v40 = vld [vmem:[%s19326_s10 + $0x2c8] sm:$0xff]  ;;  %v17582_v5 = vcombine.low %v8557_v39, %v8561_v42 }
 0x693   : > { %v8396_v29 = vcombine.low %v8388_v20, %v8395_v22  ;;  %v8569_v60 = vld [vmem:[%s19326_s10 + $0x2e8] sm:$0xff]  ;;  %v17580_v4 = vcombine.low %v8556_v36, %v8560_v38  ;;  %v8572_v10 = vld [vmem:[%s19326_s10 + $0x300] sm:$0xff] }
 0x694   : > { %11601 = vmatpush1.bf16.msra.mxu0 %v17540_v9  ;;  %11765 = vmatpush1.bf16.msra.mxu1 %v17542_v62  ;;  %v17581_v9 = vcombine.high %v8556_v36, %v8560_v38  ;;  %v17591_v7 = vcombine.high %v8565_v40, %v8569_v60  ;;  %v8576_v12 = vld [vmem:[%s19326_s10 + $0x320] sm:$0xff]  ;;  %v8573_v11 = vld [vmem:[%s19326_s10 + $0x308] sm:$0xff] }
 0x695   : > { %11602 = vmatprep.subr.bf16.mxu0 %v17549_v57  ;;  %11766 = vmatprep.subr.bf16.mxu1 %v17551_v3  ;;  %v8416_v63 = vadd.f32 %v8396_v29, %v8344_v28  ;;  %v17583_v57 = vcombine.high %v8557_v39, %v8561_v42  ;;  %v8568_v3 = vld [vmem:[%s19326_s10 + $0x2e0] sm:$0xff]  ;;  %v8577_v31 = vld [vmem:[%s19326_s10 + $0x328] sm:$0xff]  ;;  %v17597_v46 = vcombine.high %v8572_v10, %v8576_v12 }
 0x696   : > { %v17599_v13 = vcombine.high %v8573_v11, %v8577_v31  ;;  %v8584_v44 = vld [vmem:[%s19326_s10 + $0x360] sm:$0xff]  ;;  %v8581_v15 = vld [vmem:[%s19326_s10 + $0x348] sm:$0xff]  ;;  %v17596_v41 = vcombine.low %v8572_v10, %v8576_v12  ;;  %v17598_v17 = vcombine.low %v8573_v11, %v8577_v31 }
 0x697   : > { %vm8418_vm2 = vcmp.gt.f32.partialorder %v8416_v63, 0.0  ;;  %v8420_v24 = vmul.f32 0.2, %v8416_v63  ;;  %v8585_v59 = vld [vmem:[%s19326_s10 + $0x368] sm:$0xff]  ;;  %v8588_v20 = vld [vmem:[%s19326_s10 + $0x380] sm:$0xff] }
 0x698   : > { %11603 = vmatpush1.bf16.msra.mxu0 %v17548_v16  ;;  %11767 = vmatpush1.bf16.msra.mxu1 %v17550_v54  ;;  %v8564_v16 = vld [vmem:[%s19326_s10 + $0x2c0] sm:$0xff]  ;;  %v17607_v19 = vcombine.high %v8581_v15, %v8585_v59  ;;  %v8589_v21 = vld [vmem:[%s19326_s10 + $0x388] sm:$0xff] }
 0x699   : > { %11604 = vmatprep.subr.bf16.mxu0 %v17557_v49  ;;  %11768 = vmatprep.subr.bf16.mxu1 %v17559_v14  ;;  %v20770_v62 = vsel %vm8418_vm2, %v8416_v63, %v8420_v24  ;;  %v17589_v6 = vcombine.high %v8564_v16, %v8568_v3  ;;  %v17588_v43 = vcombine.low %v8564_v16, %v8568_v3  ;;  %v8580_v14 = vld [vmem:[%s19326_s10 + $0x340] sm:$0xff]  ;;  %v8593_v22 = vld [vmem:[%s19326_s10 + $0x3a8] sm:$0xff]  ;;  %v20812_v24 = vsub.s32 4, %v20705_v32 }
 0x69a   : > { %v20776_v0 = vrot.slane %v20770_v62, %v20735_v8  ;;  %v17590_v49 = vcombine.low %v8565_v40, %v8569_v60  ;;  %v17605_v18 = vcombine.high %v8580_v14, %v8584_v44  ;;  %v8596_v2 = vld [vmem:[%s19326_s10 + $0x3c0] sm:$0xff]  ;;  %v8426_v29 = vcombine.high %v20770_v62, %v20770_v62  ;;  %v8597_v1 = vld [vmem:[%s19326_s10 + $0x3c8] sm:$0xff] }
 0x69b   : > { %v8600_v55 = vld [vmem:[%s19326_s10 + $0x3e0] sm:$0xff]  ;;  %v8601_v30 = vld [vmem:[%s19326_s10 + $0x3e8] sm:$0xff]  ;;  %v8295_v10 = vrot.slane %v20726_v53, %v20812_v24 }
 0x69c   : > { %11605 = vmatpush1.bf16.msra.mxu0 %v17556_v58  ;;  %11769 = vmatpush1.bf16.msra.mxu1 %v17558_v27  ;;  %v8441_v48 = vcombine.high %v20776_v0, %v20776_v0  ;;  %v8592_v58 = vld [vmem:[%s19326_s10 + $0x3a0] sm:$0xff]  ;;  %v17604_v27 = vcombine.low %v8580_v14, %v8584_v44  ;;  %v20807_v36 = vrot.slane %v8426_v29, %v20735_v8  ;;  %v8605_v38 = vld [vmem:[%s19326_s10 + $0x408] sm:$0xff] }
 0x69d   : > { %11606 = vmatprep.subr.bf16.mxu0 %v17565_v51  ;;  %11770 = vmatprep.subr.bf16.mxu1 %v17567_v25  ;;  %v17606_v51 = vcombine.low %v8581_v15, %v8585_v59  ;;  %v17613_v37 = vcombine.high %v8588_v20, %v8592_v58  ;;  %v17615_v25 = vcombine.high %v8589_v21, %v8593_v22  ;;  %v8604_v63 = vld [vmem:[%s19326_s10 + $0x400] sm:$0xff]  ;;  %v8609_v39 = vld [vmem:[%s19326_s10 + $0x428] sm:$0xff] }
 0x69e   : > { %v20784_v54 = vpack.c.bf16 %v8441_v48, %v8441_v48  ;;  %v17612_v28 = vcombine.low %v8588_v20, %v8592_v58  ;;  %v17620_v42 = vcombine.low %v8596_v2, %v8600_v55  ;;  %v8612_v62 = vld [vmem:[%s19326_s10 + $0x440] sm:$0xff]  ;;  %v8613_v3 = vld [vmem:[%s19326_s10 + $0x448] sm:$0xff]  ;;  %v8442_v60 = vcombine.high %v20807_v36, %v20807_v36 }
 0x69f   : > { %v8616_v16 = vld [vmem:[%s19326_s10 + $0x460] sm:$0xff]  ;;  %v8617_v40 = vld [vmem:[%s19326_s10 + $0x468] sm:$0xff]  ;;  %v20827_v48 = vsub.s32 7, %v20705_v32  ;;  %v8367_v59 = vrot.slane %v20738_v61, %v20812_v24 }
 0x6a0   : > { %11607 = vmatpush1.bf16.msra.mxu0 %v17564_v23  ;;  %11771 = vmatpush1.bf16.msra.mxu1 %v17566_v33  ;;  %v17614_v23 = vcombine.low %v8589_v21, %v8593_v22  ;;  %v17621_v33 = vcombine.high %v8596_v2, %v8600_v55  ;;  %v17636_v11 = vcombine.low %v8612_v62, %v8616_v16  ;;  %v8621_v44 = vld [vmem:[%s19326_s10 + $0x488] sm:$0xff] }
 0x6a1   : > { %11608 = vmatprep.subr.bf16.mxu0 %v17573_v34  ;;  %11772 = vmatprep.subr.bf16.mxu1 %v17575_v35  ;;  %v17623_v34 = vcombine.high %v8597_v1, %v8601_v30  ;;  %v8608_v35 = vld [vmem:[%s19326_s10 + $0x420] sm:$0xff]  ;;  %v17639_v31 = vcombine.high %v8613_v3, %v8617_v40  ;;  %v8625_v15 = vld [vmem:[%s19326_s10 + $0x4a8] sm:$0xff] }
 0x6a2   : > { %11622 = vmatprep.mubr.bf16.mxu0 %v20784_v54  ;;  %11786 = vmatprep.mubr.bf16.mxu1 %v20784_v54  ;;  %v8633_v2 = vld [vmem:[%s19326_s10 + $0x4e8] sm:$0xff] }
 0x6a3   : > { %v8273_v55 = vld [vmem:[#allocation3 + $0x8] sm:$0xff] }
 0x6a4   : > { %11609 = vmatpush1.bf16.msra.mxu0 %v17572_v47  ;;  %11773 = vmatpush1.bf16.msra.mxu1 %v17574_v52  ;;  %v20815_v47 = vsub.s32 5, %v20705_v32  ;;  %v17622_v52 = vcombine.low %v8597_v1, %v8601_v30 }
 0x6a5   : > { %11610 = vmatprep.subr.bf16.mxu0 %v17581_v9  ;;  %11774 = vmatprep.subr.bf16.mxu1 %v17583_v57  ;;  %v17629_v9 = vcombine.high %v8604_v63, %v8608_v35  ;;  %v17631_v57 = vcombine.high %v8605_v38, %v8609_v39 }
 0x6a6   : > { %v8299_v12 = vrot.slane %v20726_v53, %v20815_v47 }
 0x6a8   : > { %11611 = vmatpush1.bf16.msra.mxu0 %v17580_v4  ;;  %11775 = vmatpush1.bf16.msra.mxu1 %v17582_v5  ;;  %v20824_v4 = vsub.s32 6, %v20705_v32  ;;  %v20831_v5 = vpack.c.bf16 %v20776_v0, %v20776_v0  ;;  %v17637_v32 = vcombine.high %v8612_v62, %v8616_v16  ;;  %v8624_v0 = vld [vmem:[%s19326_s10 + $0x4a0] sm:$0xff]  ;;  %v8325_v14 = vcombine.low %v8295_v10, %v8299_v12 }
 0x6a9   : > { %11612 = vmatprep.subr.bf16.mxu0 %v17589_v6  ;;  %11776 = vmatprep.subr.bf16.mxu1 %v17591_v7  ;;  %v17628_v6 = vcombine.low %v8604_v63, %v8608_v35  ;;  %v17630_v7 = vcombine.low %v8605_v38, %v8609_v39  ;;  %v8636_v35 = vld [vmem:[%s19326_s10 + $0x500] sm:$0xff] }
 0x6aa   : > { %v8333_v20 = vrot.slane %v8325_v14, %v20735_v8  ;;  %v8640_v38 = vld [vmem:[%s19326_s10 + $0x520] sm:$0xff] }
 0x6ab   : > { %v17661_v16 = vcombine.high %v8636_v35, %v8640_v38  ;;  %v17660_v10 = vcombine.low %v8636_v35, %v8640_v38  ;;  %v8688_v35 = vld [vmem:[%s19326_s10 + $0x6a0] sm:$0xff]  ;;  %v8685_v38 = vld [vmem:[%s19326_s10 + $0x688] sm:$0xff] }
 0x6ac   : > { %11613 = vmatpush1.bf16.msra.mxu0 %v17588_v43  ;;  %11777 = vmatpush1.bf16.msra.mxu1 %v17590_v49  ;;  %v8620_v43 = vld [vmem:[%s19326_s10 + $0x480] sm:$0xff]  ;;  %v20839_v49 = vpack.c.bf16 %v8442_v60, %v8442_v60 }
 0x6ad   : > { %11614 = vmatprep.subr.bf16.mxu0 %v17597_v46  ;;  %11778 = vmatprep.subr.bf16.mxu1 %v17599_v13  ;;  %v8303_v46 = vrot.slane %v20726_v53, %v20824_v4  ;;  %v8307_v13 = vrot.slane %v20726_v53, %v20827_v48  ;;  %v17638_v53 = vcombine.low %v8613_v3, %v8617_v40  ;;  %v8644_v40 = vld [vmem:[%s19326_s10 + $0x540] sm:$0xff] }
 0x6ae   : > { %v17645_v58 = vcombine.high %v8620_v43, %v8624_v0  ;;  %v17644_v30 = vcombine.low %v8620_v43, %v8624_v0  ;;  %v8648_v60 = vld [vmem:[%s19326_s10 + $0x560] sm:$0xff]  ;;  %v8653_v0 = vld [vmem:[%s19326_s10 + $0x588] sm:$0xff] }
 0x6af   : > { %v8656_v43 = vld [vmem:[%s19326_s10 + $0x5a0] sm:$0xff] }
 0x6b0   : > { %11615 = vmatpush1.bf16.msra.mxu0 %v17596_v41  ;;  %11779 = vmatpush1.bf16.msra.mxu1 %v17598_v17  ;;  %v8371_v41 = vrot.slane %v20738_v61, %v20815_v47  ;;  %v8375_v17 = vrot.slane %v20738_v61, %v20824_v4 }
 0x6b1   : > { %11616 = vmatprep.subr.bf16.mxu0 %v17605_v18  ;;  %11780 = vmatprep.subr.bf16.mxu1 %v17607_v19  ;;  %v8379_v18 = vrot.slane %v20738_v61, %v20827_v48  ;;  %v8326_v19 = vcombine.low %v8303_v46, %v8307_v13  ;;  %v8657_v46 = vld [vmem:[%s19326_s10 + $0x5a8] sm:$0xff]  ;;  %v17668_v13 = vcombine.low %v8644_v40, %v8648_v60 }
 0x6b2   : > { %v8397_v21 = vcombine.low %v8367_v59, %v8371_v41  ;;  %v8660_v59 = vld [vmem:[%s19326_s10 + $0x5c0] sm:$0xff] }
 0x6b3   : > { %v8398_v22 = vcombine.low %v8375_v17, %v8379_v18  ;;  %v8340_v61 = vrot.slane %v8326_v19, %v20735_v8  ;;  %v8664_v41 = vld [vmem:[%s19326_s10 + $0x5e0] sm:$0xff]  ;;  %v8661_v17 = vld [vmem:[%s19326_s10 + $0x5c8] sm:$0xff]  ;;  %v17678_v19 = vcombine.low %v8653_v0, %v8657_v46 }
 0x6b4   : > { %11617 = vmatpush1.bf16.msra.mxu0 %v17604_v27  ;;  %11781 = vmatpush1.bf16.msra.mxu1 %v17606_v51  ;;  %v17647_v27 = vcombine.high %v8621_v44, %v8625_v15  ;;  %v8628_v51 = vld [vmem:[%s19326_s10 + $0x4c0] sm:$0xff]  ;;  %v8405_v29 = vrot.slane %v8397_v21, %v20735_v8  ;;  %v8665_v18 = vld [vmem:[%s19326_s10 + $0x5e8] sm:$0xff] }
 0x6b5   : > { %11618 = vmatprep.subr.bf16.mxu0 %v17613_v37  ;;  %11782 = vmatprep.subr.bf16.mxu1 %v17615_v25  ;;  %v8632_v37 = vld [vmem:[%s19326_s10 + $0x4e0] sm:$0xff]  ;;  %v8629_v25 = vld [vmem:[%s19326_s10 + $0x4c8] sm:$0xff]  ;;  %v8412_v1 = vrot.slane %v8398_v22, %v20735_v8 }
 0x6b6   : > { %v17655_v63 = vcombine.high %v8629_v25, %v8633_v2  ;;  %v8668_v21 = vld [vmem:[%s19326_s10 + $0x600] sm:$0xff] }
 0x6b7   : > { %v8672_v22 = vld [vmem:[%s19326_s10 + $0x620] sm:$0xff] }
 0x6b8   : > { %11619 = vmatpush1.bf16.msra.mxu0 %v17612_v28  ;;  %11783 = vmatpush1.bf16.msra.mxu1 %v17614_v23  ;;  %v8341_v28 = vcombine.low %v8333_v20, %v8340_v61  ;;  %v17646_v23 = vcombine.low %v8621_v44, %v8625_v15  ;;  %v17679_v15 = vcombine.high %v8653_v0, %v8657_v46 }
 0x6b9   : > { %11620 = vmatprep.subr.bf16.mxu0 %v17621_v33  ;;  %11784 = vmatprep.subr.bf16.mxu1 %v17623_v34  ;;  %v17653_v33 = vcombine.high %v8628_v51, %v8632_v37  ;;  %v8413_v34 = vcombine.low %v8405_v29, %v8412_v1  ;;  %v17685_v20 = vcombine.high %v8660_v59, %v8664_v41  ;;  %v8680_v29 = vld [vmem:[%s19326_s10 + $0x660] sm:$0xff]  ;;  %v8677_v1 = vld [vmem:[%s19326_s10 + $0x648] sm:$0xff] }
 0x6ba   : > { %v8345_v39 = vmul.f32 %v8341_v28, %v8273_v55  ;;  %v17686_v61 = vcombine.low %v8661_v17, %v8665_v18  ;;  %v8676_v55 = vld [vmem:[%s19326_s10 + $0x640] sm:$0xff]  ;;  %v17692_v28 = vcombine.low %v8668_v21, %v8672_v22 }
 0x6bc   : > { %11621 = vmatpush1.bf16.msra.mxu0 %v17620_v42  ;;  %11785 = vmatpush1.bf16.msra.mxu1 %v17622_v52  ;;  %v8637_v42 = vld [vmem:[%s19326_s10 + $0x508] sm:$0xff]  ;;  %v20871_v62 = vadd.f32 %v8413_v34, %v8345_v39 }
 0x6bd   : > { %11631 = vmatprep.subr.bf16.mxu0 %v17629_v9  ;;  %11795 = vmatprep.subr.bf16.mxu1 %v17631_v57  ;;  %v8641_v52 = vld [vmem:[%s19326_s10 + $0x528] sm:$0xff]  ;;  %v17652_v9 = vcombine.low %v8628_v51, %v8632_v37  ;;  %v17654_v57 = vcombine.low %v8629_v25, %v8633_v2  ;;  %v17684_v37 = vcombine.low %v8660_v59, %v8664_v41 }
 0x6be   : > { %v17663_v3 = vcombine.high %v8637_v42, %v8641_v52  ;;  %v17662_v12 = vcombine.low %v8637_v42, %v8641_v52  ;;  %v8673_v51 = vld [vmem:[%s19326_s10 + $0x628] sm:$0xff]  ;;  %v17693_v25 = vcombine.high %v8668_v21, %v8672_v22  ;;  %v17700_v42 = vcombine.low %v8676_v55, %v8680_v29 }
 0x6bf   : > { %11623 = vmatmul.mubr.bf16.vlgmr.msra.gmra.mrb[0].mxu0 %v20831_v5  ;;  %11787 = vmatmul.mubr.bf16.vlgmr.msra.gmra.mrb[0].mxu1 %v20831_v5  ;;  %v8689_v39 = vld [vmem:[%s19326_s10 + $0x6a8] sm:$0xff]  ;;  %vm8419_vm3 = vcmp.gt.f32.partialorder %v20871_v62, 0.0 }
 0x6c0   : > { %11632 = vmatpush1.bf16.msra.mxu0 %v17628_v6  ;;  %11796 = vmatpush1.bf16.msra.mxu1 %v17630_v7  ;;  %v8645_v6 = vld [vmem:[%s19326_s10 + $0x548] sm:$0xff] }
 0x6c1   : > { %11633 = vmatprep.subr.bf16.mxu0 %v17637_v32  ;;  %11797 = vmatprep.subr.bf16.mxu1 %v17639_v31  ;;  %v8649_v7 = vld [vmem:[%s19326_s10 + $0x568] sm:$0xff]  ;;  %v8652_v31 = vld [vmem:[%s19326_s10 + $0x580] sm:$0xff] }
 0x6c2   : > { %11663 = vmatprep.mubr.bf16.mxu0 %v20839_v49  ;;  %11827 = vmatprep.mubr.bf16.mxu1 %v20839_v49  ;;  %v17671_v32 = vcombine.high %v8645_v6, %v8649_v7  ;;  %v17670_v14 = vcombine.low %v8645_v6, %v8649_v7  ;;  %v17677_v44 = vcombine.high %v8652_v31, %v8656_v43  ;;  %v8709_v59 = vld [vmem:[%s19326_s10 + $0x748] sm:$0xff] }
 0x6c3   : > { %v17710_v7 = vcombine.low %v8685_v38, %v8689_v39  ;;  %v8713_v41 = vld [vmem:[%s19326_s10 + $0x768] sm:$0xff] }
 0x6c4   : > { %11634 = vmatpush1.bf16.msra.mxu0 %v17636_v11  ;;  %11798 = vmatpush1.bf16.msra.mxu1 %v17638_v53  ;;  %v17669_v11 = vcombine.high %v8644_v40, %v8648_v60  ;;  %v17676_v53 = vcombine.low %v8652_v31, %v8656_v43  ;;  %v8693_v40 = vld [vmem:[%s19326_s10 + $0x6c8] sm:$0xff] }
 0x6c5   : > { %11635 = vmatprep.subr.bf16.mxu0 %v17645_v58  ;;  %11799 = vmatprep.subr.bf16.mxu1 %v17647_v27  ;;  %v17687_v58 = vcombine.high %v8661_v17, %v8665_v18  ;;  %v8669_v27 = vld [vmem:[%s19326_s10 + $0x608] sm:$0xff] }
 0x6c6   : > { %v17695_v2 = vcombine.high %v8669_v27, %v8673_v51  ;;  %v8697_v60 = vld [vmem:[%s19326_s10 + $0x6e8] sm:$0xff] }
 0x6c7   : > { %v8701_v31 = vld [vmem:[%s19326_s10 + $0x708] sm:$0xff]  ;;  %v17718_v46 = vcombine.low %v8693_v40, %v8697_v60 }
 0x6c8   : > { %11636 = vmatpush1.bf16.msra.mxu0 %v17644_v30  ;;  %11800 = vmatpush1.bf16.msra.mxu1 %v17646_v23  ;;  %v8681_v30 = vld [vmem:[%s19326_s10 + $0x668] sm:$0xff]  ;;  %v17694_v23 = vcombine.low %v8669_v27, %v8673_v51  ;;  %v8421_v27 = vmul.f32 0.2, %v20871_v62 }
 0x6c9   : > { %11637 = vmatprep.subr.bf16.mxu0 %v17653_v33  ;;  %11801 = vmatprep.subr.bf16.mxu1 %v17655_v63  ;;  %v17701_v33 = vcombine.high %v8676_v55, %v8680_v29  ;;  %v17703_v34 = vcombine.high %v8677_v1, %v8681_v30  ;;  %v8684_v63 = vld [vmem:[%s19326_s10 + $0x680] sm:$0xff]  ;;  %v17702_v52 = vcombine.low %v8677_v1, %v8681_v30  ;;  %v8705_v43 = vld [vmem:[%s19326_s10 + $0x728] sm:$0xff] }
 0x6ca   : > { %v17708_v6 = vcombine.low %v8684_v63, %v8688_v35  ;;  %v17726_v18 = vcombine.low %v8701_v31, %v8705_v43  ;;  %v8717_v21 = vld [vmem:[%s19326_s10 + $0x788] sm:$0xff]  ;;  %v8728_v55 = vld [vmem:[%s19326_s10 + $0x7e0] sm:$0xff]  ;;  %v20920_v30 = vsel %vm8419_vm3, %v20871_v62, %v8421_v27 }
 0x6cb   : > { %v8721_v22 = vld [vmem:[%s19326_s10 + $0x7a8] sm:$0xff] }
 0x6cc   : > { %11638 = vmatpush1.bf16.msra.mxu0 %v17652_v9  ;;  %11802 = vmatpush1.bf16.msra.mxu1 %v17654_v57  ;;  %v17709_v9 = vcombine.high %v8684_v63, %v8688_v35  ;;  %v17711_v57 = vcombine.high %v8685_v38, %v8689_v39  ;;  %v8725_v29 = vld [vmem:[%s19326_s10 + $0x7c8] sm:$0xff]  ;;  %v8732_v63 = vld [vmem:[%s19326_s10 + $0x800] sm:$0xff]  ;;  %v20926_v38 = vrot.slane %v20920_v30, %v20735_v8 }
 0x6cd   : > { %11639 = vmatprep.subr.bf16.mxu0 %v17661_v16  ;;  %11803 = vmatprep.subr.bf16.mxu1 %v17663_v3  ;;  %v8692_v16 = vld [vmem:[%s19326_s10 + $0x6c0] sm:$0xff]  ;;  %v8729_v1 = vld [vmem:[%s19326_s10 + $0x7e8] sm:$0xff] }
 0x6ce   : > { %v8696_v3 = vld [vmem:[%s19326_s10 + $0x6e0] sm:$0xff]  ;;  %v8733_v62 = vld [vmem:[%s19326_s10 + $0x808] sm:$0xff] }
 0x6cf   : > { %v17716_v0 = vcombine.low %v8692_v16, %v8696_v3  ;;  %v8736_v35 = vld [vmem:[%s19326_s10 + $0x820] sm:$0xff]  ;;  %v8737_v39 = vld [vmem:[%s19326_s10 + $0x828] sm:$0xff] }
 0x6d0   : > { %11640 = vmatpush1.bf16.msra.mxu0 %v17660_v10  ;;  %11804 = vmatpush1.bf16.msra.mxu1 %v17662_v12  ;;  %v17717_v10 = vcombine.high %v8692_v16, %v8696_v3  ;;  %v17719_v12 = vcombine.high %v8693_v40, %v8697_v60  ;;  %v8740_v16 = vld [vmem:[%s19326_s10 + $0x840] sm:$0xff]  ;;  %v8458_v40 = vcombine.high %v20926_v38, %v20926_v38  ;;  %v8765_v27 = vld [vmem:[%s19326_s10 + $0x908] sm:$0xff] }
 0x6d1   : > { %11641 = vmatprep.subr.bf16.mxu0 %v17669_v11  ;;  %11805 = vmatprep.subr.bf16.mxu1 %v17671_v32  ;;  %v8700_v11 = vld [vmem:[%s19326_s10 + $0x700] sm:$0xff]  ;;  %v20936_v60 = vpack.c.bf16 %v20807_v36, %v20807_v36  ;;  %v8749_v36 = vld [vmem:[%s19326_s10 + $0x888] sm:$0xff] }
 0x6d2   : > { %v8704_v32 = vld [vmem:[%s19326_s10 + $0x720] sm:$0xff] }
 0x6d3   : > { %v17724_v17 = vcombine.low %v8700_v11, %v8704_v32  ;;  %v8744_v3 = vld [vmem:[%s19326_s10 + $0x860] sm:$0xff] }
 0x6d4   : > { %11642 = vmatpush1.bf16.msra.mxu0 %v17668_v13  ;;  %11806 = vmatpush1.bf16.msra.mxu1 %v17670_v14  ;;  %v17725_v13 = vcombine.high %v8700_v11, %v8704_v32  ;;  %v17727_v14 = vcombine.high %v8701_v31, %v8705_v43  ;;  %v17765_v11 = vcombine.high %v8740_v16, %v8744_v3  ;;  %v8748_v31 = vld [vmem:[%s19326_s10 + $0x880] sm:$0xff] }
 0x6d5   : > { %11643 = vmatprep.subr.bf16.mxu0 %v17677_v44  ;;  %11807 = vmatprep.subr.bf16.mxu1 %v17679_v15  ;;  %v8708_v44 = vld [vmem:[%s19326_s10 + $0x740] sm:$0xff] }
 0x6d6   : > { %v8712_v15 = vld [vmem:[%s19326_s10 + $0x760] sm:$0xff] }
 0x6d7   : > { %v17732_v51 = vcombine.low %v8708_v44, %v8712_v15  ;;  %v8752_v43 = vld [vmem:[%s19326_s10 + $0x8a0] sm:$0xff] }
 0x6d8   : > { %11644 = vmatpush1.bf16.msra.mxu0 %v17676_v53  ;;  %11808 = vmatpush1.bf16.msra.mxu1 %v17678_v19  ;;  %v17733_v53 = vcombine.high %v8708_v44, %v8712_v15  ;;  %v17735_v19 = vcombine.high %v8709_v59, %v8713_v41  ;;  %v17773_v44 = vcombine.high %v8748_v31, %v8752_v43 }
 0x6d9   : > { %11645 = vmatprep.subr.bf16.mxu0 %v17685_v20  ;;  %11809 = vmatprep.subr.bf16.mxu1 %v17687_v58  ;;  %v8716_v20 = vld [vmem:[%s19326_s10 + $0x780] sm:$0xff] }
 0x6da   : > { %v8720_v58 = vld [vmem:[%s19326_s10 + $0x7a0] sm:$0xff] }
 0x6dc   : > { %11646 = vmatpush1.bf16.msra.mxu0 %v17684_v37  ;;  %11810 = vmatpush1.bf16.msra.mxu1 %v17686_v61  ;;  %v17734_v37 = vcombine.low %v8709_v59, %v8713_v41  ;;  %v17741_v61 = vcombine.high %v8716_v20, %v8720_v58  ;;  %v8756_v59 = vld [vmem:[%s19326_s10 + $0x8c0] sm:$0xff] }
 0x6dd   : > { %11647 = vmatprep.subr.bf16.mxu0 %v17693_v25  ;;  %11811 = vmatprep.subr.bf16.mxu1 %v17695_v2  ;;  %v17743_v25 = vcombine.high %v8717_v21, %v8721_v22  ;;  %v8724_v2 = vld [vmem:[%s19326_s10 + $0x7c0] sm:$0xff] }
 0x6de   : > { %v8760_v41 = vld [vmem:[%s19326_s10 + $0x8e0] sm:$0xff] }
 0x6e0   : > { %11648 = vmatpush1.bf16.msra.mxu0 %v17692_v28  ;;  %11812 = vmatpush1.bf16.msra.mxu1 %v17694_v23  ;;  %v17740_v28 = vcombine.low %v8716_v20, %v8720_v58  ;;  %v17742_v23 = vcombine.low %v8717_v21, %v8721_v22  ;;  %v17781_v20 = vcombine.high %v8756_v59, %v8760_v41  ;;  %v8764_v21 = vld [vmem:[%s19326_s10 + $0x900] sm:$0xff] }
 0x6e1   : > { %11649 = vmatprep.subr.bf16.mxu0 %v17701_v33  ;;  %11813 = vmatprep.subr.bf16.mxu1 %v17703_v34  ;;  %v17749_v33 = vcombine.high %v8724_v2, %v8728_v55  ;;  %v17751_v34 = vcombine.high %v8725_v29, %v8729_v1  ;;  %v8768_v22 = vld [vmem:[%s19326_s10 + $0x920] sm:$0xff] }
 0x6e4   : > { %11650 = vmatpush1.bf16.msra.mxu0 %v17700_v42  ;;  %11814 = vmatpush1.bf16.msra.mxu1 %v17702_v52  ;;  %v17748_v42 = vcombine.low %v8724_v2, %v8728_v55  ;;  %v17750_v52 = vcombine.low %v8725_v29, %v8729_v1  ;;  %v8772_v55 = vld [vmem:[%s19326_s10 + $0x940] sm:$0xff]  ;;  %v8773_v1 = vld [vmem:[%s19326_s10 + $0x948] sm:$0xff] }
 0x6e5   : > { %11651 = vmatprep.subr.bf16.mxu0 %v17709_v9  ;;  %11815 = vmatprep.subr.bf16.mxu1 %v17711_v57  ;;  %v17757_v9 = vcombine.high %v8732_v63, %v8736_v35  ;;  %v17759_v57 = vcombine.high %v8733_v62, %v8737_v39  ;;  %v8776_v29 = vld [vmem:[%s19326_s10 + $0x960] sm:$0xff] }
 0x6e8   : > { %11652 = vmatpush1.bf16.msra.mxu0 %v17708_v6  ;;  %11816 = vmatpush1.bf16.msra.mxu1 %v17710_v7  ;;  %v8741_v6 = vld [vmem:[%s19326_s10 + $0x848] sm:$0xff] }
 0x6e9   : > { %11653 = vmatprep.subr.bf16.mxu0 %v17717_v10  ;;  %11817 = vmatprep.subr.bf16.mxu1 %v17719_v12  ;;  %v8745_v7 = vld [vmem:[%s19326_s10 + $0x868] sm:$0xff]  ;;  %v17756_v10 = vcombine.low %v8732_v63, %v8736_v35  ;;  %v17758_v12 = vcombine.low %v8733_v62, %v8737_v39  ;;  %v8780_v35 = vld [vmem:[%s19326_s10 + $0x980] sm:$0xff] }
 0x6ea   : > { %v17767_v32 = vcombine.high %v8741_v6, %v8745_v7  ;;  %v8784_v62 = vld [vmem:[%s19326_s10 + $0x9a0] sm:$0xff]  ;;  %v8781_v39 = vld [vmem:[%s19326_s10 + $0x988] sm:$0xff] }
 0x6ec   : > { %11654 = vmatpush1.bf16.msra.mxu0 %v17716_v0  ;;  %11818 = vmatpush1.bf16.msra.mxu1 %v17718_v46  ;;  %v20942_v0 = vpack.c.bf16 %v8458_v40, %v8458_v40  ;;  %v8753_v46 = vld [vmem:[%s19326_s10 + $0x8a8] sm:$0xff]  ;;  %v8792_v40 = vld [vmem:[%s19326_s10 + $0x9e0] sm:$0xff] }
 0x6ed   : > { %11655 = vmatprep.subr.bf16.mxu0 %v17725_v13  ;;  %11819 = vmatprep.subr.bf16.mxu1 %v17727_v14  ;;  %v17764_v13 = vcombine.low %v8740_v16, %v8744_v3  ;;  %v17766_v14 = vcombine.low %v8741_v6, %v8745_v7  ;;  %v17775_v15 = vcombine.high %v8749_v36, %v8753_v46  ;;  %v8788_v3 = vld [vmem:[%s19326_s10 + $0x9c0] sm:$0xff]  ;;  %v8789_v6 = vld [vmem:[%s19326_s10 + $0x9c8] sm:$0xff] }
 0x6ee   : > { %v8793_v7 = vld [vmem:[%s19326_s10 + $0x9e8] sm:$0xff] }
 0x6f0   : > { %11656 = vmatpush1.bf16.msra.mxu0 %v17724_v17  ;;  %11820 = vmatpush1.bf16.msra.mxu1 %v17726_v18  ;;  %v8757_v17 = vld [vmem:[%s19326_s10 + $0x8c8] sm:$0xff] }
 0x6f1   : > { %11657 = vmatprep.subr.bf16.mxu0 %v17733_v53  ;;  %11821 = vmatprep.subr.bf16.mxu1 %v17735_v19  ;;  %v8761_v18 = vld [vmem:[%s19326_s10 + $0x8e8] sm:$0xff]  ;;  %v17772_v53 = vcombine.low %v8748_v31, %v8752_v43  ;;  %v17774_v19 = vcombine.low %v8749_v36, %v8753_v46  ;;  %v8796_v31 = vld [vmem:[%s19326_s10 + $0xa00] sm:$0xff] }
 0x6f2   : > { %v17783_v58 = vcombine.high %v8757_v17, %v8761_v18  ;;  %v8800_v43 = vld [vmem:[%s19326_s10 + $0xa20] sm:$0xff]  ;;  %v8797_v36 = vld [vmem:[%s19326_s10 + $0xa08] sm:$0xff] }
 0x6f3   : > { %v8801_v46 = vld [vmem:[%s19326_s10 + $0xa28] sm:$0xff] }
 0x6f4   : > { %11658 = vmatpush1.bf16.msra.mxu0 %v17732_v51  ;;  %11822 = vmatpush1.bf16.msra.mxu1 %v17734_v37  ;;  %v8769_v51 = vld [vmem:[%s19326_s10 + $0x928] sm:$0xff]  ;;  %v17780_v37 = vcombine.low %v8756_v59, %v8760_v41  ;;  %v8804_v59 = vld [vmem:[%s19326_s10 + $0xa40] sm:$0xff] }
 0x6f5   : > { %11659 = vmatprep.subr.bf16.mxu0 %v17741_v61  ;;  %11823 = vmatprep.subr.bf16.mxu1 %v17743_v25  ;;  %v17782_v61 = vcombine.low %v8757_v17, %v8761_v18  ;;  %v17789_v25 = vcombine.high %v8764_v21, %v8768_v22  ;;  %v17791_v2 = vcombine.high %v8765_v27, %v8769_v51  ;;  %v8808_v41 = vld [vmem:[%s19326_s10 + $0xa60] sm:$0xff]  ;;  %v8805_v17 = vld [vmem:[%s19326_s10 + $0xa48] sm:$0xff] }
 0x6f6   : > { %v8809_v18 = vld [vmem:[%s19326_s10 + $0xa68] sm:$0xff] }
 0x6f8   : > { %11660 = vmatpush1.bf16.msra.mxu0 %v17740_v28  ;;  %11824 = vmatpush1.bf16.msra.mxu1 %v17742_v23  ;;  %v8777_v28 = vld [vmem:[%s19326_s10 + $0x968] sm:$0xff]  ;;  %v17788_v23 = vcombine.low %v8764_v21, %v8768_v22  ;;  %v8812_v21 = vld [vmem:[%s19326_s10 + $0xa80] sm:$0xff] }
 0x6f9   : > { %11661 = vmatprep.subr.bf16.mxu0 %v17749_v33  ;;  %11825 = vmatprep.subr.bf16.mxu1 %v17751_v34  ;;  %v17790_v33 = vcombine.low %v8765_v27, %v8769_v51  ;;  %v17797_v34 = vcombine.high %v8772_v55, %v8776_v29  ;;  %v17799_v63 = vcombine.high %v8773_v1, %v8777_v28  ;;  %v8816_v22 = vld [vmem:[%s19326_s10 + $0xaa0] sm:$0xff]  ;;  %v8813_v27 = vld [vmem:[%s19326_s10 + $0xa88] sm:$0xff] }
 0x6fa   : > { %v8817_v51 = vld [vmem:[%s19326_s10 + $0xaa8] sm:$0xff] }
 0x6fc   : > { %11662 = vmatpush1.bf16.msra.mxu0 %v17748_v42  ;;  %11826 = vmatpush1.bf16.msra.mxu1 %v17750_v52  ;;  %v8785_v42 = vld [vmem:[%s19326_s10 + $0x9a8] sm:$0xff]  ;;  %v17796_v52 = vcombine.low %v8772_v55, %v8776_v29  ;;  %v8820_v55 = vld [vmem:[%s19326_s10 + $0xac0] sm:$0xff] }
 0x6fd   : > { %11672 = vmatprep.subr.bf16.mxu0 %v17757_v9  ;;  %11836 = vmatprep.subr.bf16.mxu1 %v17759_v57  ;;  %v17798_v9 = vcombine.low %v8773_v1, %v8777_v28  ;;  %v17805_v57 = vcombine.high %v8780_v35, %v8784_v62  ;;  %v17807_v16 = vcombine.high %v8781_v39, %v8785_v42  ;;  %v8824_v29 = vld [vmem:[%s19326_s10 + $0xae0] sm:$0xff]  ;;  %v8821_v1 = vld [vmem:[%s19326_s10 + $0xac8] sm:$0xff] }
 0x6fe   : > { %v8825_v28 = vld [vmem:[%s19326_s10 + $0xae8] sm:$0xff] }
 0x6ff   : > { %11664 = vmatmul.mubr.bf16.vlgmr.msra.gmra.mrb[0].mxu0 %v20936_v60  ;;  %11828 = vmatmul.mubr.bf16.vlgmr.msra.gmra.mrb[0].mxu1 %v20936_v60 }
 0x700   : > { %11673 = vmatpush1.bf16.msra.mxu0 %v17756_v10  ;;  %11837 = vmatpush1.bf16.msra.mxu1 %v17758_v12  ;;  %v17804_v10 = vcombine.low %v8780_v35, %v8784_v62  ;;  %v17806_v12 = vcombine.low %v8781_v39, %v8785_v42  ;;  %v8828_v35 = vld [vmem:[%s19326_s10 + $0xb00] sm:$0xff]  ;;  %v8829_v39 = vld [vmem:[%s19326_s10 + $0xb08] sm:$0xff] }
 0x701   : > { %11674 = vmatprep.subr.bf16.mxu0 %v17765_v11  ;;  %11838 = vmatprep.subr.bf16.mxu1 %v17767_v32  ;;  %v17813_v11 = vcombine.high %v8788_v3, %v8792_v40  ;;  %v17815_v32 = vcombine.high %v8789_v6, %v8793_v7  ;;  %v8832_v62 = vld [vmem:[%s19326_s10 + $0xb20] sm:$0xff]  ;;  %v8833_v42 = vld [vmem:[%s19326_s10 + $0xb28] sm:$0xff] }
 0x702   : > { %11704 = vmatprep.mubr.bf16.mxu0 %v20942_v0  ;;  %11868 = vmatprep.mubr.bf16.mxu1 %v20942_v0 }
 0x704   : > { %11675 = vmatpush1.bf16.msra.mxu0 %v17764_v13  ;;  %11839 = vmatpush1.bf16.msra.mxu1 %v17766_v14  ;;  %v17812_v13 = vcombine.low %v8788_v3, %v8792_v40  ;;  %v17814_v14 = vcombine.low %v8789_v6, %v8793_v7  ;;  %v8836_v3 = vld [vmem:[%s19326_s10 + $0xb40] sm:$0xff]  ;;  %v8837_v6 = vld [vmem:[%s19326_s10 + $0xb48] sm:$0xff] }
 0x705   : > { %11676 = vmatprep.subr.bf16.mxu0 %v17773_v44  ;;  %11840 = vmatprep.subr.bf16.mxu1 %v17775_v15  ;;  %v17821_v44 = vcombine.high %v8796_v31, %v8800_v43  ;;  %v17823_v15 = vcombine.high %v8797_v36, %v8801_v46  ;;  %v8840_v40 = vld [vmem:[%s19326_s10 + $0xb60] sm:$0xff]  ;;  %v8841_v7 = vld [vmem:[%s19326_s10 + $0xb68] sm:$0xff] }
 0x708   : > { %11677 = vmatpush1.bf16.msra.mxu0 %v17772_v53  ;;  %11841 = vmatpush1.bf16.msra.mxu1 %v17774_v19  ;;  %v17820_v53 = vcombine.low %v8796_v31, %v8800_v43  ;;  %v17822_v19 = vcombine.low %v8797_v36, %v8801_v46  ;;  %v8844_v31 = vld [vmem:[%s19326_s10 + $0xb80] sm:$0xff]  ;;  %v8845_v36 = vld [vmem:[%s19326_s10 + $0xb88] sm:$0xff] }
 0x709   : > { %11678 = vmatprep.subr.bf16.mxu0 %v17781_v20  ;;  %11842 = vmatprep.subr.bf16.mxu1 %v17783_v58  ;;  %v17829_v20 = vcombine.high %v8804_v59, %v8808_v41  ;;  %v17831_v58 = vcombine.high %v8805_v17, %v8809_v18  ;;  %v8848_v43 = vld [vmem:[%s19326_s10 + $0xba0] sm:$0xff]  ;;  %v8849_v46 = vld [vmem:[%s19326_s10 + $0xba8] sm:$0xff] }
 0x70c   : > { %11679 = vmatpush1.bf16.msra.mxu0 %v17780_v37  ;;  %11843 = vmatpush1.bf16.msra.mxu1 %v17782_v61  ;;  %v17828_v37 = vcombine.low %v8804_v59, %v8808_v41  ;;  %v17830_v61 = vcombine.low %v8805_v17, %v8809_v18  ;;  %v8852_v59 = vld [vmem:[%s19326_s10 + $0xbc0] sm:$0xff]  ;;  %v8443_v17 = vcombine.high %v20920_v30, %v20920_v30  ;;  %v8853_v18 = vld [vmem:[%s19326_s10 + $0xbc8] sm:$0xff] }
 0x70d   : > { %11680 = vmatprep.subr.bf16.mxu0 %v17789_v25  ;;  %11844 = vmatprep.subr.bf16.mxu1 %v17791_v2  ;;  %v17837_v25 = vcombine.high %v8812_v21, %v8816_v22  ;;  %v17839_v2 = vcombine.high %v8813_v27, %v8817_v51  ;;  %v8856_v41 = vld [vmem:[%s19326_s10 + $0xbe0] sm:$0xff]  ;;  %v8861_v30 = vld [vmem:[%s19326_s10 + $0xc08] sm:$0xff] }
 0x710   : > { %11681 = vmatpush1.bf16.msra.mxu0 %v17788_v23  ;;  %11845 = vmatpush1.bf16.msra.mxu1 %v17790_v33  ;;  %v17836_v23 = vcombine.low %v8812_v21, %v8816_v22  ;;  %v17838_v33 = vcombine.low %v8813_v27, %v8817_v51  ;;  %v8860_v22 = vld [vmem:[%s19326_s10 + $0xc00] sm:$0xff]  ;;  %v21007_v51 = vrot.slane %v8443_v17, %v20735_v8 }
 0x711   : > { %11682 = vmatprep.subr.bf16.mxu0 %v17797_v34  ;;  %11846 = vmatprep.subr.bf16.mxu1 %v17799_v63  ;;  %v17845_v34 = vcombine.high %v8820_v55, %v8824_v29  ;;  %v17847_v63 = vcombine.high %v8821_v1, %v8825_v28  ;;  %v8864_v27 = vld [vmem:[%s19326_s10 + $0xc20] sm:$0xff] }
 0x714   : > { %11683 = vmatpush1.bf16.msra.mxu0 %v17796_v52  ;;  %11847 = vmatpush1.bf16.msra.mxu1 %v17798_v9  ;;  %v17844_v52 = vcombine.low %v8820_v55, %v8824_v29  ;;  %v17846_v9 = vcombine.low %v8821_v1, %v8825_v28  ;;  %v8868_v29 = vld [vmem:[%s19326_s10 + $0xc40] sm:$0xff]  ;;  %v8459_v28 = vcombine.high %v21007_v51, %v21007_v51 }
 0x715   : > { %11684 = vmatprep.subr.bf16.mxu0 %v17805_v57  ;;  %11848 = vmatprep.subr.bf16.mxu1 %v17807_v16  ;;  %v17853_v57 = vcombine.high %v8828_v35, %v8832_v62  ;;  %v17855_v16 = vcombine.high %v8829_v39, %v8833_v42  ;;  %v8872_v1 = vld [vmem:[%s19326_s10 + $0xc60] sm:$0xff] }
 0x718   : > { %11685 = vmatpush1.bf16.msra.mxu0 %v17804_v10  ;;  %11849 = vmatpush1.bf16.msra.mxu1 %v17806_v12  ;;  %v17852_v10 = vcombine.low %v8828_v35, %v8832_v62  ;;  %v17854_v12 = vcombine.low %v8829_v39, %v8833_v42  ;;  %v17893_v62 = vcombine.high %v8868_v29, %v8872_v1  ;;  %v8876_v42 = vld [vmem:[%s19326_s10 + $0xc80] sm:$0xff] }
 0x719   : > { %11686 = vmatprep.subr.bf16.mxu0 %v17813_v11  ;;  %11850 = vmatprep.subr.bf16.mxu1 %v17815_v32  ;;  %v17861_v11 = vcombine.high %v8836_v3, %v8840_v40  ;;  %v17863_v32 = vcombine.high %v8837_v6, %v8841_v7 }
 0x71c   : > { %11687 = vmatpush1.bf16.msra.mxu0 %v17812_v13  ;;  %11851 = vmatpush1.bf16.msra.mxu1 %v17814_v14  ;;  %v17860_v13 = vcombine.low %v8836_v3, %v8840_v40  ;;  %v17862_v14 = vcombine.low %v8837_v6, %v8841_v7  ;;  %v8884_v7 = vld [vmem:[%s19326_s10 + $0xcc0] sm:$0xff] }
 0x71d   : > { %11688 = vmatprep.subr.bf16.mxu0 %v17821_v44  ;;  %11852 = vmatprep.subr.bf16.mxu1 %v17823_v15  ;;  %v17869_v44 = vcombine.high %v8844_v31, %v8848_v43  ;;  %v17871_v15 = vcombine.high %v8845_v36, %v8849_v46 }
 0x720   : > { %11689 = vmatpush1.bf16.msra.mxu0 %v17820_v53  ;;  %11853 = vmatpush1.bf16.msra.mxu1 %v17822_v19  ;;  %v8857_v53 = vld [vmem:[%s19326_s10 + $0xbe8] sm:$0xff]  ;;  %v17868_v19 = vcombine.low %v8844_v31, %v8848_v43 }
 0x721   : > { %11690 = vmatprep.subr.bf16.mxu0 %v17829_v20  ;;  %11854 = vmatprep.subr.bf16.mxu1 %v17831_v58  ;;  %v17870_v20 = vcombine.low %v8845_v36, %v8849_v46  ;;  %v17877_v58 = vcombine.high %v8852_v59, %v8856_v41  ;;  %v17879_v21 = vcombine.high %v8853_v18, %v8857_v53  ;;  %v8892_v46 = vld [vmem:[%s19326_s10 + $0xd00] sm:$0xff] }
 0x724   : > { %11691 = vmatpush1.bf16.msra.mxu0 %v17828_v37  ;;  %11855 = vmatpush1.bf16.msra.mxu1 %v17830_v61  ;;  %v8865_v37 = vld [vmem:[%s19326_s10 + $0xc28] sm:$0xff]  ;;  %v17876_v61 = vcombine.low %v8852_v59, %v8856_v41 }
 0x725   : > { %11692 = vmatprep.subr.bf16.mxu0 %v17837_v25  ;;  %11856 = vmatprep.subr.bf16.mxu1 %v17839_v2  ;;  %v17878_v25 = vcombine.low %v8853_v18, %v8857_v53  ;;  %v17885_v2 = vcombine.high %v8860_v22, %v8864_v27  ;;  %v17887_v55 = vcombine.high %v8861_v30, %v8865_v37  ;;  %v8900_v18 = vld [vmem:[%s19326_s10 + $0xd40] sm:$0xff] }
 0x726   : > { %v17886_v35 = vcombine.low %v8861_v30, %v8865_v37  ;;  %v8904_v53 = vld [vmem:[%s19326_s10 + $0xd60] sm:$0xff] }
 0x727   : > { %v8908_v30 = vld [vmem:[%s19326_s10 + $0xd80] sm:$0xff] }
 0x728   : > { %11693 = vmatpush1.bf16.msra.mxu0 %v17836_v23  ;;  %11857 = vmatpush1.bf16.msra.mxu1 %v17838_v33  ;;  %v21017_v23 = vpack.c.bf16 %v20926_v38, %v20926_v38  ;;  %v8869_v33 = vld [vmem:[%s19326_s10 + $0xc48] sm:$0xff]  ;;  %v8912_v37 = vld [vmem:[%s19326_s10 + $0xda0] sm:$0xff] }
 0x729   : > { %11694 = vmatprep.subr.bf16.mxu0 %v17845_v34  ;;  %11858 = vmatprep.subr.bf16.mxu1 %v17847_v63  ;;  %v8873_v34 = vld [vmem:[%s19326_s10 + $0xc68] sm:$0xff]  ;;  %v17884_v63 = vcombine.low %v8860_v22, %v8864_v27  ;;  %v17925_v22 = vcombine.high %v8900_v18, %v8904_v53 }
 0x72a   : > { %v17895_v39 = vcombine.high %v8869_v33, %v8873_v34  ;;  %v8877_v38 = vld [vmem:[%s19326_s10 + $0xc88] sm:$0xff]  ;;  %v17894_v3 = vcombine.low %v8869_v33, %v8873_v34  ;;  %v8920_v33 = vld [vmem:[%s19326_s10 + $0xde0] sm:$0xff] }
 0x72b   : > { %v8917_v34 = vld [vmem:[%s19326_s10 + $0xdc8] sm:$0xff] }
 0x72c   : > { %11695 = vmatpush1.bf16.msra.mxu0 %v17844_v52  ;;  %11859 = vmatpush1.bf16.msra.mxu1 %v17846_v9  ;;  %v8880_v52 = vld [vmem:[%s19326_s10 + $0xca0] sm:$0xff]  ;;  %v21023_v9 = vpack.c.bf16 %v8459_v28, %v8459_v28 }
 0x72d   : > { %11696 = vmatprep.subr.bf16.mxu0 %v17853_v57  ;;  %11860 = vmatprep.subr.bf16.mxu1 %v17855_v16  ;;  %v8881_v57 = vld [vmem:[%s19326_s10 + $0xca8] sm:$0xff]  ;;  %v17892_v16 = vcombine.low %v8868_v29, %v8872_v1  ;;  %v17901_v40 = vcombine.high %v8876_v42, %v8880_v52  ;;  %v17933_v29 = vcombine.high %v8908_v30, %v8912_v37  ;;  %v8916_v28 = vld [vmem:[%s19326_s10 + $0xdc0] sm:$0xff] }
 0x72e   : > { %v17903_v6 = vcombine.high %v8877_v38, %v8881_v57  ;;  %v17902_v31 = vcombine.low %v8877_v38, %v8881_v57  ;;  %v8928_v38 = vld [vmem:[%s19326_s10 + $0xe20] sm:$0xff]  ;;  %v8925_v57 = vld [vmem:[%s19326_s10 + $0xe08] sm:$0xff] }
 0x730   : > { %11697 = vmatpush1.bf16.msra.mxu0 %v17852_v10  ;;  %11861 = vmatpush1.bf16.msra.mxu1 %v17854_v12  ;;  %v8888_v10 = vld [vmem:[%s19326_s10 + $0xce0] sm:$0xff]  ;;  %v8885_v12 = vld [vmem:[%s19326_s10 + $0xcc8] sm:$0xff] }
 0x731   : > { %11698 = vmatprep.subr.bf16.mxu0 %v17861_v11  ;;  %11862 = vmatprep.subr.bf16.mxu1 %v17863_v32  ;;  %v8889_v11 = vld [vmem:[%s19326_s10 + $0xce8] sm:$0xff]  ;;  %v17900_v32 = vcombine.low %v8876_v42, %v8880_v52  ;;  %v17909_v43 = vcombine.high %v8884_v7, %v8888_v10  ;;  %v8924_v52 = vld [vmem:[%s19326_s10 + $0xe00] sm:$0xff] }
 0x732   : > { %v17911_v36 = vcombine.high %v8885_v12, %v8889_v11  ;;  %v17910_v59 = vcombine.low %v8885_v12, %v8889_v11  ;;  %v8936_v12 = vld [vmem:[%s19326_s10 + $0xe60] sm:$0xff]  ;;  %v8933_v11 = vld [vmem:[%s19326_s10 + $0xe48] sm:$0xff] }
 0x734   : > { %11699 = vmatpush1.bf16.msra.mxu0 %v17860_v13  ;;  %11863 = vmatpush1.bf16.msra.mxu1 %v17862_v14  ;;  %v8896_v13 = vld [vmem:[%s19326_s10 + $0xd20] sm:$0xff]  ;;  %v8893_v14 = vld [vmem:[%s19326_s10 + $0xd08] sm:$0xff] }
 0x735   : > { %11700 = vmatprep.subr.bf16.mxu0 %v17869_v44  ;;  %11864 = vmatprep.subr.bf16.mxu1 %v17871_v15  ;;  %v8897_v44 = vld [vmem:[%s19326_s10 + $0xd28] sm:$0xff]  ;;  %v17908_v15 = vcombine.low %v8884_v7, %v8888_v10  ;;  %v17917_v41 = vcombine.high %v8892_v46, %v8896_v13  ;;  %v8932_v10 = vld [vmem:[%s19326_s10 + $0xe40] sm:$0xff] }
 0x736   : > { %v17919_v17 = vcombine.high %v8893_v14, %v8897_v44 }
 0x738   : > { %11701 = vmatpush1.bf16.msra.mxu0 %v17868_v19  ;;  %11865 = vmatpush1.bf16.msra.mxu1 %v17870_v20  ;;  %v8901_v19 = vld [vmem:[%s19326_s10 + $0xd48] sm:$0xff] }
 0x739   : > { %11702 = vmatprep.subr.bf16.mxu0 %v17877_v58  ;;  %11866 = vmatprep.subr.bf16.mxu1 %v17879_v21  ;;  %v8905_v20 = vld [vmem:[%s19326_s10 + $0xd68] sm:$0xff]  ;;  %v17916_v58 = vcombine.low %v8892_v46, %v8896_v13  ;;  %v17918_v21 = vcombine.low %v8893_v14, %v8897_v44  ;;  %v8940_v13 = vld [vmem:[%s19326_s10 + $0xe80] sm:$0xff] }
 0x73a   : > { %v17927_v27 = vcombine.high %v8901_v19, %v8905_v20  ;;  %v8944_v14 = vld [vmem:[%s19326_s10 + $0xea0] sm:$0xff]  ;;  %v8941_v44 = vld [vmem:[%s19326_s10 + $0xe88] sm:$0xff] }
 0x73c   : > { %11703 = vmatpush1.bf16.msra.mxu0 %v17876_v61  ;;  %11867 = vmatpush1.bf16.msra.mxu1 %v17878_v25  ;;  %v8909_v61 = vld [vmem:[%s19326_s10 + $0xd88] sm:$0xff] }
 0x73d   : > { %11713 = vmatprep.subr.bf16.mxu0 %v17885_v2  ;;  %11877 = vmatprep.subr.bf16.mxu1 %v17887_v55  ;;  %v8913_v25 = vld [vmem:[%s19326_s10 + $0xda8] sm:$0xff]  ;;  %v17924_v2 = vcombine.low %v8900_v18, %v8904_v53  ;;  %v17926_v55 = vcombine.low %v8901_v19, %v8905_v20  ;;  %v8948_v53 = vld [vmem:[%s19326_s10 + $0xec0] sm:$0xff] }
 0x73e   : > { %v17935_v1 = vcombine.high %v8909_v61, %v8913_v25  ;;  %v8952_v19 = vld [vmem:[%s19326_s10 + $0xee0] sm:$0xff]  ;;  %v8949_v20 = vld [vmem:[%s19326_s10 + $0xec8] sm:$0xff] }
 0x73f   : > { %11705 = vmatmul.mubr.bf16.vlgmr.msra.gmra.mrb[0].mxu0 %v21017_v23  ;;  %11869 = vmatmul.mubr.bf16.vlgmr.msra.gmra.mrb[0].mxu1 %v21017_v23 }
 0x740   : > { %11714 = vmatpush1.bf16.msra.mxu0 %v17884_v63  ;;  %11878 = vmatpush1.bf16.msra.mxu1 %v17886_v35  ;;  %v8921_v63 = vld [vmem:[%s19326_s10 + $0xde8] sm:$0xff]  ;;  %v17932_v35 = vcombine.low %v8908_v30, %v8912_v37  ;;  %v8956_v37 = vld [vmem:[%s19326_s10 + $0xf00] sm:$0xff] }
 0x741   : > { %11715 = vmatprep.subr.bf16.mxu0 %v17893_v62  ;;  %11879 = vmatprep.subr.bf16.mxu1 %v17895_v39  ;;  %v17934_v62 = vcombine.low %v8909_v61, %v8913_v25  ;;  %v17941_v39 = vcombine.high %v8916_v28, %v8920_v33  ;;  %v17943_v42 = vcombine.high %v8917_v34, %v8921_v63  ;;  %v8960_v61 = vld [vmem:[%s19326_s10 + $0xf20] sm:$0xff]  ;;  %v8957_v25 = vld [vmem:[%s19326_s10 + $0xf08] sm:$0xff] }
 0x742   : > { %11745 = vmatprep.mubr.bf16.mxu0 %v21023_v9  ;;  %11909 = vmatprep.mubr.bf16.mxu1 %v21023_v9 }
 0x744   : > { %11716 = vmatpush1.bf16.msra.mxu0 %v17892_v16  ;;  %11880 = vmatpush1.bf16.msra.mxu1 %v17894_v3  ;;  %v8929_v16 = vld [vmem:[%s19326_s10 + $0xe28] sm:$0xff]  ;;  %v17940_v3 = vcombine.low %v8916_v28, %v8920_v33  ;;  %v8964_v33 = vld [vmem:[%s19326_s10 + $0xf40] sm:$0xff] }
 0x745   : > { %11717 = vmatprep.subr.bf16.mxu0 %v17901_v40  ;;  %11881 = vmatprep.subr.bf16.mxu1 %v17903_v6  ;;  %v17942_v40 = vcombine.low %v8917_v34, %v8921_v63  ;;  %v17949_v6 = vcombine.high %v8924_v52, %v8928_v38  ;;  %v17951_v7 = vcombine.high %v8925_v57, %v8929_v16  ;;  %v8968_v34 = vld [vmem:[%s19326_s10 + $0xf60] sm:$0xff]  ;;  %v8965_v63 = vld [vmem:[%s19326_s10 + $0xf48] sm:$0xff] }
 0x748   : > { %11718 = vmatpush1.bf16.msra.mxu0 %v17900_v32  ;;  %11882 = vmatpush1.bf16.msra.mxu1 %v17902_v31  ;;  %v8937_v32 = vld [vmem:[%s19326_s10 + $0xe68] sm:$0xff]  ;;  %v17948_v31 = vcombine.low %v8924_v52, %v8928_v38  ;;  %v8972_v38 = vld [vmem:[%s19326_s10 + $0xf80] sm:$0xff] }
 0x749   : > { %11719 = vmatprep.subr.bf16.mxu0 %v17909_v43  ;;  %11883 = vmatprep.subr.bf16.mxu1 %v17911_v36  ;;  %v17950_v43 = vcombine.low %v8925_v57, %v8929_v16  ;;  %v17957_v36 = vcombine.high %v8932_v10, %v8936_v12  ;;  %v17959_v46 = vcombine.high %v8933_v11, %v8937_v32  ;;  %v8976_v57 = vld [vmem:[%s19326_s10 + $0xfa0] sm:$0xff]  ;;  %v8973_v16 = vld [vmem:[%s19326_s10 + $0xf88] sm:$0xff] }
 0x74c   : > { %11720 = vmatpush1.bf16.msra.mxu0 %v17908_v15  ;;  %11884 = vmatpush1.bf16.msra.mxu1 %v17910_v59  ;;  %v8945_v15 = vld [vmem:[%s19326_s10 + $0xea8] sm:$0xff]  ;;  %v17956_v59 = vcombine.low %v8932_v10, %v8936_v12  ;;  %v8980_v12 = vld [vmem:[%s19326_s10 + $0xfc0] sm:$0xff] }
 0x74d   : > { %11721 = vmatprep.subr.bf16.mxu0 %v17917_v41  ;;  %11885 = vmatprep.subr.bf16.mxu1 %v17919_v17  ;;  %v17958_v41 = vcombine.low %v8933_v11, %v8937_v32  ;;  %v17965_v17 = vcombine.high %v8940_v13, %v8944_v14  ;;  %v17967_v18 = vcombine.high %v8941_v44, %v8945_v15  ;;  %v8984_v11 = vld [vmem:[%s19326_s10 + $0xfe0] sm:$0xff]  ;;  %v8981_v32 = vld [vmem:[%s19326_s10 + $0xfc8] sm:$0xff] }
 0x750   : > { %11722 = vmatpush1.bf16.msra.mxu0 %v17916_v58  ;;  %11886 = vmatpush1.bf16.msra.mxu1 %v17918_v21  ;;  %v8953_v58 = vld [vmem:[%s19326_s10 + $0xee8] sm:$0xff]  ;;  %v17964_v21 = vcombine.low %v8940_v13, %v8944_v14  ;;  %v8478_v14 = vld [vmem:[%s19326_s10 + $0x10] sm:$0xff] }
 0x751   : > { %11723 = vmatprep.subr.bf16.mxu0 %v17925_v22  ;;  %11887 = vmatprep.subr.bf16.mxu1 %v17927_v27  ;;  %v17966_v22 = vcombine.low %v8941_v44, %v8945_v15  ;;  %v17973_v27 = vcombine.high %v8948_v53, %v8952_v19  ;;  %v17975_v30 = vcombine.high %v8949_v20, %v8953_v58  ;;  %v8482_v44 = vld [vmem:[%s19326_s10 + $0x30] sm:$0xff]  ;;  %v8479_v15 = vld [vmem:[%s19326_s10 + $0x18] sm:$0xff] }
 0x754   : > { %11724 = vmatpush1.bf16.msra.mxu0 %v17924_v2  ;;  %11888 = vmatpush1.bf16.msra.mxu1 %v17926_v55  ;;  %v8961_v2 = vld [vmem:[%s19326_s10 + $0xf28] sm:$0xff]  ;;  %v17972_v55 = vcombine.low %v8948_v53, %v8952_v19  ;;  %v8486_v19 = vld [vmem:[%s19326_s10 + $0x50] sm:$0xff] }
 0x755   : > { %11725 = vmatprep.subr.bf16.mxu0 %v17933_v29  ;;  %11889 = vmatprep.subr.bf16.mxu1 %v17935_v1  ;;  %v17974_v29 = vcombine.low %v8949_v20, %v8953_v58  ;;  %v17981_v1 = vcombine.high %v8956_v37, %v8960_v61  ;;  %v17983_v28 = vcombine.high %v8957_v25, %v8961_v2  ;;  %v8490_v20 = vld [vmem:[%s19326_s10 + $0x70] sm:$0xff] }
 0x756   : > { %v21091_v58 = vpack.c.bf16 %v21007_v51, %v21007_v51  ;;  %v8495_v51 = vld [vmem:[%s19326_s10 + $0x98] sm:$0xff] }
 0x758   : > { %11726 = vmatpush1.bf16.msra.mxu0 %v17932_v35  ;;  %11890 = vmatpush1.bf16.msra.mxu1 %v17934_v62  ;;  %v8969_v35 = vld [vmem:[%s19326_s10 + $0xf68] sm:$0xff]  ;;  %v17980_v62 = vcombine.low %v8956_v37, %v8960_v61  ;;  %v17513_v37 = vcombine.high %v8486_v19, %v8490_v20 }
 0x759   : > { %11727 = vmatprep.subr.bf16.mxu0 %v17941_v39  ;;  %11891 = vmatprep.subr.bf16.mxu1 %v17943_v42  ;;  %v17982_v39 = vcombine.low %v8957_v25, %v8961_v2  ;;  %v17989_v42 = vcombine.high %v8964_v33, %v8968_v34  ;;  %v17991_v52 = vcombine.high %v8965_v63, %v8969_v35  ;;  %v8494_v25 = vld [vmem:[%s19326_s10 + $0x90] sm:$0xff] }
 0x75a   : > { %v8498_v2 = vld [vmem:[%s19326_s10 + $0xb0] sm:$0xff] }
 0x75c   : > { %11728 = vmatpush1.bf16.msra.mxu0 %v17940_v3  ;;  %11892 = vmatpush1.bf16.msra.mxu1 %v17942_v40  ;;  %v8977_v3 = vld [vmem:[%s19326_s10 + $0xfa8] sm:$0xff]  ;;  %v17988_v40 = vcombine.low %v8964_v33, %v8968_v34  ;;  %v8502_v34 = vld [vmem:[%s19326_s10 + $0xd0] sm:$0xff] }
 0x75d   : > { %11729 = vmatprep.subr.bf16.mxu0 %v17949_v6  ;;  %11893 = vmatprep.subr.bf16.mxu1 %v17951_v7  ;;  %v17990_v6 = vcombine.low %v8965_v63, %v8969_v35  ;;  %v17997_v7 = vcombine.high %v8972_v38, %v8976_v57  ;;  %v17999_v10 = vcombine.high %v8973_v16, %v8977_v3  ;;  %v8506_v63 = vld [vmem:[%s19326_s10 + $0xf0] sm:$0xff]  ;;  %v8503_v35 = vld [vmem:[%s19326_s10 + $0xd8] sm:$0xff] }
 0x760   : > { %11730 = vmatpush1.bf16.msra.mxu0 %v17948_v31  ;;  %11894 = vmatpush1.bf16.msra.mxu1 %v17950_v43  ;;  %v8985_v31 = vld [vmem:[%s19326_s10 + $0xfe8] sm:$0xff]  ;;  %v17996_v43 = vcombine.low %v8972_v38, %v8976_v57  ;;  %v8510_v57 = vld [vmem:[%s19326_s10 + $0x110] sm:$0xff] }
 0x761   : > { %11731 = vmatprep.subr.bf16.mxu0 %v17957_v36  ;;  %11895 = vmatprep.subr.bf16.mxu1 %v17959_v46  ;;  %v17998_v36 = vcombine.low %v8973_v16, %v8977_v3  ;;  %v18005_v46 = vcombine.high %v8980_v12, %v8984_v11  ;;  %v18007_v13 = vcombine.high %v8981_v32, %v8985_v31  ;;  %v8514_v16 = vld [vmem:[%s19326_s10 + $0x130] sm:$0xff]  ;;  %v8511_v3 = vld [vmem:[%s19326_s10 + $0x118] sm:$0xff] }
 0x764   : > { %11732 = vmatpush1.bf16.msra.mxu0 %v17956_v59  ;;  %11896 = vmatpush1.bf16.msra.mxu1 %v17958_v41  ;;  %v8483_v59 = vld [vmem:[%s19326_s10 + $0x38] sm:$0xff]  ;;  %v18004_v41 = vcombine.low %v8980_v12, %v8984_v11  ;;  %v8518_v12 = vld [vmem:[%s19326_s10 + $0x150] sm:$0xff] }
 0x765   : > { %11733 = vmatprep.subr.bf16.mxu0 %v17965_v17  ;;  %11897 = vmatprep.subr.bf16.mxu1 %v17967_v18  ;;  %v18006_v17 = vcombine.low %v8981_v32, %v8985_v31  ;;  %v17505_v18 = vcombine.high %v8478_v14, %v8482_v44  ;;  %v17507_v53 = vcombine.high %v8479_v15, %v8483_v59  ;;  %v8522_v11 = vld [vmem:[%s19326_s10 + $0x170] sm:$0xff]  ;;  %v8519_v32 = vld [vmem:[%s19326_s10 + $0x158] sm:$0xff] }
 0x766   : > { %v8523_v31 = vld [vmem:[%s19326_s10 + $0x178] sm:$0xff] }
 0x768   : > { %11734 = vmatpush1.bf16.msra.mxu0 %v17964_v21  ;;  %11898 = vmatpush1.bf16.msra.mxu1 %v17966_v22  ;;  %v8487_v21 = vld [vmem:[%s19326_s10 + $0x58] sm:$0xff] }
 0x769   : > { %11735 = vmatprep.subr.bf16.mxu0 %v17973_v27  ;;  %11899 = vmatprep.subr.bf16.mxu1 %v17975_v30  ;;  %v8491_v22 = vld [vmem:[%s19326_s10 + $0x78] sm:$0xff]  ;;  %v17504_v27 = vcombine.low %v8478_v14, %v8482_v44  ;;  %v17506_v30 = vcombine.low %v8479_v15, %v8483_v59  ;;  %v8526_v14 = vld [vmem:[%s19326_s10 + $0x190] sm:$0xff] }
 0x76a   : > { %v17515_v61 = vcombine.high %v8487_v21, %v8491_v22  ;;  %v8530_v44 = vld [vmem:[%s19326_s10 + $0x1b0] sm:$0xff]  ;;  %v8527_v15 = vld [vmem:[%s19326_s10 + $0x198] sm:$0xff] }
 0x76b   : > { %v8531_v59 = vld [vmem:[%s19326_s10 + $0x1b8] sm:$0xff] }
 0x76c   : > { %11736 = vmatpush1.bf16.msra.mxu0 %v17972_v55  ;;  %11900 = vmatpush1.bf16.msra.mxu1 %v17974_v29  ;;  %v8499_v55 = vld [vmem:[%s19326_s10 + $0xb8] sm:$0xff]  ;;  %v17512_v29 = vcombine.low %v8486_v19, %v8490_v20  ;;  %v8534_v19 = vld [vmem:[%s19326_s10 + $0x1d0] sm:$0xff] }
 0x76d   : > { %11737 = vmatprep.subr.bf16.mxu0 %v17981_v1  ;;  %11901 = vmatprep.subr.bf16.mxu1 %v17983_v28  ;;  %v17514_v1 = vcombine.low %v8487_v21, %v8491_v22  ;;  %v17521_v28 = vcombine.high %v8494_v25, %v8498_v2  ;;  %v17523_v33 = vcombine.high %v8495_v51, %v8499_v55  ;;  %v8538_v20 = vld [vmem:[%s19326_s10 + $0x1f0] sm:$0xff]  ;;  %v8535_v21 = vld [vmem:[%s19326_s10 + $0x1d8] sm:$0xff] }
 0x76e   : > { %v8539_v22 = vld [vmem:[%s19326_s10 + $0x1f8] sm:$0xff] }
 0x770   : > { %11738 = vmatpush1.bf16.msra.mxu0 %v17980_v62  ;;  %11902 = vmatpush1.bf16.msra.mxu1 %v17982_v39  ;;  %v8507_v62 = vld [vmem:[%s19326_s10 + $0xf8] sm:$0xff]  ;;  %v17520_v39 = vcombine.low %v8494_v25, %v8498_v2  ;;  %v8542_v25 = vld [vmem:[%s19326_s10 + $0x210] sm:$0xff] }
 0x771   : > { %11739 = vmatprep.subr.bf16.mxu0 %v17989_v42  ;;  %11903 = vmatprep.subr.bf16.mxu1 %v17991_v52  ;;  %v17522_v42 = vcombine.low %v8495_v51, %v8499_v55  ;;  %v17529_v52 = vcombine.high %v8502_v34, %v8506_v63  ;;  %v17531_v38 = vcombine.high %v8503_v35, %v8507_v62  ;;  %v8546_v2 = vld [vmem:[%s19326_s10 + $0x230] sm:$0xff]  ;;  %v8543_v51 = vld [vmem:[%s19326_s10 + $0x218] sm:$0xff] }
 0x772   : > { %v8547_v55 = vld [vmem:[%s19326_s10 + $0x238] sm:$0xff] }
 0x774   : > { %11740 = vmatpush1.bf16.msra.mxu0 %v17988_v40  ;;  %11904 = vmatpush1.bf16.msra.mxu1 %v17990_v6  ;;  %v8515_v40 = vld [vmem:[%s19326_s10 + $0x138] sm:$0xff]  ;;  %v17528_v6 = vcombine.low %v8502_v34, %v8506_v63  ;;  %v8550_v34 = vld [vmem:[%s19326_s10 + $0x250] sm:$0xff] }
 0x775   : > { %11741 = vmatprep.subr.bf16.mxu0 %v17997_v7  ;;  %11905 = vmatprep.subr.bf16.mxu1 %v17999_v10  ;;  %v17537_v7 = vcombine.high %v8510_v57, %v8514_v16  ;;  %v17539_v10 = vcombine.high %v8511_v3, %v8515_v40  ;;  %v8554_v63 = vld [vmem:[%s19326_s10 + $0x270] sm:$0xff] }
 0x778   : > { %11742 = vmatpush1.bf16.msra.mxu0 %v17996_v43  ;;  %11906 = vmatpush1.bf16.msra.mxu1 %v17998_v36  ;;  %v17536_v43 = vcombine.low %v8510_v57, %v8514_v16  ;;  %v17538_v36 = vcombine.low %v8511_v3, %v8515_v40  ;;  %v8558_v57 = vld [vmem:[%s19326_s10 + $0x290] sm:$0xff]  ;;  %v8559_v3 = vld [vmem:[%s19326_s10 + $0x298] sm:$0xff] }
 0x779   : > { %11743 = vmatprep.subr.bf16.mxu0 %v18005_v46  ;;  %11907 = vmatprep.subr.bf16.mxu1 %v18007_v13  ;;  %v17545_v46 = vcombine.high %v8518_v12, %v8522_v11  ;;  %v17547_v13 = vcombine.high %v8519_v32, %v8523_v31  ;;  %v8562_v16 = vld [vmem:[%s19326_s10 + $0x2b0] sm:$0xff]  ;;  %v8563_v40 = vld [vmem:[%s19326_s10 + $0x2b8] sm:$0xff] }
 0x77c   : > { %11744 = vmatpush1.bf16.msra.mxu0 %v18004_v41  ;;  %11908 = vmatpush1.bf16.msra.mxu1 %v18006_v17  ;;  %v17544_v41 = vcombine.low %v8518_v12, %v8522_v11  ;;  %v17546_v17 = vcombine.low %v8519_v32, %v8523_v31  ;;  %v8566_v12 = vld [vmem:[%s19326_s10 + $0x2d0] sm:$0xff]  ;;  %v8567_v32 = vld [vmem:[%s19326_s10 + $0x2d8] sm:$0xff] }
 0x77d   : > { %11918 = vmatprep.subr.bf16.mxu0 %v17505_v18  ;;  %12082 = vmatprep.subr.bf16.mxu1 %v17507_v53  ;;  %v17553_v18 = vcombine.high %v8526_v14, %v8530_v44  ;;  %v17555_v53 = vcombine.high %v8527_v15, %v8531_v59  ;;  %v8570_v11 = vld [vmem:[%s19326_s10 + $0x2f0] sm:$0xff]  ;;  %v8571_v31 = vld [vmem:[%s19326_s10 + $0x2f8] sm:$0xff] }
 0x77f   : > { %11746 = vmatmul.mubr.bf16.vlgmr.msra.gmra.mrb[0].mxu0 %v21091_v58  ;;  %11910 = vmatmul.mubr.bf16.vlgmr.msra.gmra.mrb[0].mxu1 %v21091_v58 }
 0x780   : > { %11919 = vmatpush1.bf16.msra.mxu0 %v17504_v27  ;;  %12083 = vmatpush1.bf16.msra.mxu1 %v17506_v30  ;;  %v17552_v27 = vcombine.low %v8526_v14, %v8530_v44  ;;  %v17554_v30 = vcombine.low %v8527_v15, %v8531_v59  ;;  %v8574_v14 = vld [vmem:[%s19326_s10 + $0x310] sm:$0xff]  ;;  %v8575_v15 = vld [vmem:[%s19326_s10 + $0x318] sm:$0xff] }
 0x781   : > { %11920 = vmatprep.subr.bf16.mxu0 %v17513_v37  ;;  %12084 = vmatprep.subr.bf16.mxu1 %v17515_v61  ;;  %v17561_v37 = vcombine.high %v8534_v19, %v8538_v20  ;;  %v17563_v61 = vcombine.high %v8535_v21, %v8539_v22  ;;  %v8578_v44 = vld [vmem:[%s19326_s10 + $0x330] sm:$0xff]  ;;  %v8579_v59 = vld [vmem:[%s19326_s10 + $0x338] sm:$0xff] }
 0x782   : > { %11950 = vmatprep.mubr.bf16.mxu0 %v20784_v54  ;;  %12114 = vmatprep.mubr.bf16.mxu1 %v20784_v54  ;;  %v17530_v54 = vcombine.low %v8503_v35, %v8507_v62  ;;  %v8551_v35 = vld [vmem:[%s19326_s10 + $0x258] sm:$0xff] }
 0x783   : > { %v8555_v62 = vld [vmem:[%s19326_s10 + $0x278] sm:$0xff] }
 0x784   : > { %11921 = vmatpush1.bf16.msra.mxu0 %v17512_v29  ;;  %12085 = vmatpush1.bf16.msra.mxu1 %v17514_v1  ;;  %v17560_v29 = vcombine.low %v8534_v19, %v8538_v20  ;;  %v17562_v1 = vcombine.low %v8535_v21, %v8539_v22  ;;  %v8582_v19 = vld [vmem:[%s19326_s10 + $0x350] sm:$0xff]  ;;  %v8583_v21 = vld [vmem:[%s19326_s10 + $0x358] sm:$0xff] }
 0x785   : > { %11922 = vmatprep.subr.bf16.mxu0 %v17521_v28  ;;  %12086 = vmatprep.subr.bf16.mxu1 %v17523_v33  ;;  %v17569_v28 = vcombine.high %v8542_v25, %v8546_v2  ;;  %v17571_v33 = vcombine.high %v8543_v51, %v8547_v55  ;;  %v8586_v20 = vld [vmem:[%s19326_s10 + $0x370] sm:$0xff]  ;;  %v8587_v22 = vld [vmem:[%s19326_s10 + $0x378] sm:$0xff] }
 0x788   : > { %11923 = vmatpush1.bf16.msra.mxu0 %v17520_v39  ;;  %12087 = vmatpush1.bf16.msra.mxu1 %v17522_v42  ;;  %v17568_v39 = vcombine.low %v8542_v25, %v8546_v2  ;;  %v17570_v42 = vcombine.low %v8543_v51, %v8547_v55  ;;  %v8590_v25 = vld [vmem:[%s19326_s10 + $0x390] sm:$0xff]  ;;  %v8591_v51 = vld [vmem:[%s19326_s10 + $0x398] sm:$0xff] }
 0x789   : > { %11924 = vmatprep.subr.bf16.mxu0 %v17529_v52  ;;  %12088 = vmatprep.subr.bf16.mxu1 %v17531_v38  ;;  %v17577_v52 = vcombine.high %v8550_v34, %v8554_v63  ;;  %v17579_v38 = vcombine.high %v8551_v35, %v8555_v62  ;;  %v8594_v2 = vld [vmem:[%s19326_s10 + $0x3b0] sm:$0xff]  ;;  %v8595_v55 = vld [vmem:[%s19326_s10 + $0x3b8] sm:$0xff] }
 0x78c   : > { %11925 = vmatpush1.bf16.msra.mxu0 %v17528_v6  ;;  %12089 = vmatpush1.bf16.msra.mxu1 %v17530_v54  ;;  %v17576_v6 = vcombine.low %v8550_v34, %v8554_v63  ;;  %v17578_v54 = vcombine.low %v8551_v35, %v8555_v62  ;;  %v8598_v34 = vld [vmem:[%s19326_s10 + $0x3d0] sm:$0xff]  ;;  %v8599_v35 = vld [vmem:[%s19326_s10 + $0x3d8] sm:$0xff] }
 0x78d   : > { %11926 = vmatprep.subr.bf16.mxu0 %v17537_v7  ;;  %12090 = vmatprep.subr.bf16.mxu1 %v17539_v10  ;;  %v17585_v7 = vcombine.high %v8558_v57, %v8562_v16  ;;  %v17587_v10 = vcombine.high %v8559_v3, %v8563_v40  ;;  %v8602_v63 = vld [vmem:[%s19326_s10 + $0x3f0] sm:$0xff]  ;;  %v8603_v62 = vld [vmem:[%s19326_s10 + $0x3f8] sm:$0xff] }
 0x790   : > { %11927 = vmatpush1.bf16.msra.mxu0 %v17536_v43  ;;  %12091 = vmatpush1.bf16.msra.mxu1 %v17538_v36  ;;  %v17584_v43 = vcombine.low %v8558_v57, %v8562_v16  ;;  %v17586_v36 = vcombine.low %v8559_v3, %v8563_v40  ;;  %v8606_v57 = vld [vmem:[%s19326_s10 + $0x410] sm:$0xff]  ;;  %v8607_v3 = vld [vmem:[%s19326_s10 + $0x418] sm:$0xff] }
 0x791   : > { %11928 = vmatprep.subr.bf16.mxu0 %v17545_v46  ;;  %12092 = vmatprep.subr.bf16.mxu1 %v17547_v13  ;;  %v17593_v46 = vcombine.high %v8566_v12, %v8570_v11  ;;  %v17595_v13 = vcombine.high %v8567_v32, %v8571_v31  ;;  %v8610_v16 = vld [vmem:[%s19326_s10 + $0x430] sm:$0xff]  ;;  %v8611_v40 = vld [vmem:[%s19326_s10 + $0x438] sm:$0xff] }
 0x794   : > { %11929 = vmatpush1.bf16.msra.mxu0 %v17544_v41  ;;  %12093 = vmatpush1.bf16.msra.mxu1 %v17546_v17  ;;  %v17592_v41 = vcombine.low %v8566_v12, %v8570_v11  ;;  %v17594_v17 = vcombine.low %v8567_v32, %v8571_v31  ;;  %v8614_v12 = vld [vmem:[%s19326_s10 + $0x450] sm:$0xff]  ;;  %v8615_v32 = vld [vmem:[%s19326_s10 + $0x458] sm:$0xff] }
 0x795   : > { %11930 = vmatprep.subr.bf16.mxu0 %v17553_v18  ;;  %12094 = vmatprep.subr.bf16.mxu1 %v17555_v53  ;;  %v17601_v18 = vcombine.high %v8574_v14, %v8578_v44  ;;  %v17603_v53 = vcombine.high %v8575_v15, %v8579_v59  ;;  %v8618_v11 = vld [vmem:[%s19326_s10 + $0x470] sm:$0xff]  ;;  %v8619_v31 = vld [vmem:[%s19326_s10 + $0x478] sm:$0xff] }
 0x798   : > { %11931 = vmatpush1.bf16.msra.mxu0 %v17552_v27  ;;  %12095 = vmatpush1.bf16.msra.mxu1 %v17554_v30  ;;  %v17600_v27 = vcombine.low %v8574_v14, %v8578_v44  ;;  %v17602_v30 = vcombine.low %v8575_v15, %v8579_v59  ;;  %v8622_v14 = vld [vmem:[%s19326_s10 + $0x490] sm:$0xff]  ;;  %v8623_v15 = vld [vmem:[%s19326_s10 + $0x498] sm:$0xff] }
 0x799   : > { %11932 = vmatprep.subr.bf16.mxu0 %v17561_v37  ;;  %12096 = vmatprep.subr.bf16.mxu1 %v17563_v61  ;;  %v17609_v37 = vcombine.high %v8582_v19, %v8586_v20  ;;  %v17611_v61 = vcombine.high %v8583_v21, %v8587_v22  ;;  %v8626_v44 = vld [vmem:[%s19326_s10 + $0x4b0] sm:$0xff]  ;;  %v8627_v59 = vld [vmem:[%s19326_s10 + $0x4b8] sm:$0xff] }
 0x79c   : > { %11933 = vmatpush1.bf16.msra.mxu0 %v17560_v29  ;;  %12097 = vmatpush1.bf16.msra.mxu1 %v17562_v1  ;;  %v17608_v29 = vcombine.low %v8582_v19, %v8586_v20  ;;  %v17610_v1 = vcombine.low %v8583_v21, %v8587_v22  ;;  %v8630_v19 = vld [vmem:[%s19326_s10 + $0x4d0] sm:$0xff]  ;;  %v8631_v21 = vld [vmem:[%s19326_s10 + $0x4d8] sm:$0xff] }
 0x79d   : > { %11934 = vmatprep.subr.bf16.mxu0 %v17569_v28  ;;  %12098 = vmatprep.subr.bf16.mxu1 %v17571_v33  ;;  %v17617_v28 = vcombine.high %v8590_v25, %v8594_v2  ;;  %v17619_v33 = vcombine.high %v8591_v51, %v8595_v55  ;;  %v8634_v20 = vld [vmem:[%s19326_s10 + $0x4f0] sm:$0xff]  ;;  %v8635_v22 = vld [vmem:[%s19326_s10 + $0x4f8] sm:$0xff] }
 0x7a0   : > { %11935 = vmatpush1.bf16.msra.mxu0 %v17568_v39  ;;  %12099 = vmatpush1.bf16.msra.mxu1 %v17570_v42  ;;  %v17616_v39 = vcombine.low %v8590_v25, %v8594_v2  ;;  %v17618_v42 = vcombine.low %v8591_v51, %v8595_v55  ;;  %v8642_v25 = vld [vmem:[%s19326_s10 + $0x530] sm:$0xff]  ;;  %v8639_v2 = vld [vmem:[%s19326_s10 + $0x518] sm:$0xff]  ;;  %v17656_v55 = vcombine.low %v8630_v19, %v8634_v20 }
 0x7a1   : > { %11936 = vmatprep.subr.bf16.mxu0 %v17577_v52  ;;  %12100 = vmatprep.subr.bf16.mxu1 %v17579_v38  ;;  %v17625_v52 = vcombine.high %v8598_v34, %v8602_v63  ;;  %v17627_v38 = vcombine.high %v8599_v35, %v8603_v62  ;;  %v8643_v51 = vld [vmem:[%s19326_s10 + $0x538] sm:$0xff] }
 0x7a4   : > { %11937 = vmatpush1.bf16.msra.mxu0 %v17576_v6  ;;  %12101 = vmatpush1.bf16.msra.mxu1 %v17578_v54  ;;  %v17624_v6 = vcombine.low %v8598_v34, %v8602_v63  ;;  %v17626_v54 = vcombine.low %v8599_v35, %v8603_v62  ;;  %v8647_v34 = vld [vmem:[%s19326_s10 + $0x558] sm:$0xff]  ;;  %v17666_v62 = vcombine.low %v8639_v2, %v8643_v51 }
 0x7a5   : > { %11938 = vmatprep.subr.bf16.mxu0 %v17585_v7  ;;  %12102 = vmatprep.subr.bf16.mxu1 %v17587_v10  ;;  %v17633_v7 = vcombine.high %v8606_v57, %v8610_v16  ;;  %v17635_v10 = vcombine.high %v8607_v3, %v8611_v40  ;;  %v8651_v63 = vld [vmem:[%s19326_s10 + $0x578] sm:$0xff] }
 0x7a8   : > { %11939 = vmatpush1.bf16.msra.mxu0 %v17584_v43  ;;  %12103 = vmatpush1.bf16.msra.mxu1 %v17586_v36  ;;  %v17632_v43 = vcombine.low %v8606_v57, %v8610_v16  ;;  %v17634_v36 = vcombine.low %v8607_v3, %v8611_v40  ;;  %v8655_v57 = vld [vmem:[%s19326_s10 + $0x598] sm:$0xff]  ;;  %v17674_v40 = vcombine.low %v8647_v34, %v8651_v63 }
 0x7a9   : > { %11940 = vmatprep.subr.bf16.mxu0 %v17593_v46  ;;  %12104 = vmatprep.subr.bf16.mxu1 %v17595_v13  ;;  %v17641_v46 = vcombine.high %v8614_v12, %v8618_v11  ;;  %v17643_v13 = vcombine.high %v8615_v32, %v8619_v31  ;;  %v8659_v16 = vld [vmem:[%s19326_s10 + $0x5b8] sm:$0xff] }
 0x7ac   : > { %11941 = vmatpush1.bf16.msra.mxu0 %v17592_v41  ;;  %12105 = vmatpush1.bf16.msra.mxu1 %v17594_v17  ;;  %v17640_v41 = vcombine.low %v8614_v12, %v8618_v11  ;;  %v17642_v17 = vcombine.low %v8615_v32, %v8619_v31  ;;  %v8663_v12 = vld [vmem:[%s19326_s10 + $0x5d8] sm:$0xff]  ;;  %v17682_v31 = vcombine.low %v8655_v57, %v8659_v16 }
 0x7ad   : > { %11942 = vmatprep.subr.bf16.mxu0 %v17601_v18  ;;  %12106 = vmatprep.subr.bf16.mxu1 %v17603_v53  ;;  %v17649_v18 = vcombine.high %v8622_v14, %v8626_v44  ;;  %v17651_v53 = vcombine.high %v8623_v15, %v8627_v59  ;;  %v8667_v11 = vld [vmem:[%s19326_s10 + $0x5f8] sm:$0xff] }
 0x7b0   : > { %11943 = vmatpush1.bf16.msra.mxu0 %v17600_v27  ;;  %12107 = vmatpush1.bf16.msra.mxu1 %v17602_v30  ;;  %v17650_v27 = vcombine.low %v8623_v15, %v8627_v59  ;;  %v17657_v30 = vcombine.high %v8630_v19, %v8634_v20  ;;  %v17690_v59 = vcombine.low %v8663_v12, %v8667_v11  ;;  %v8679_v19 = vld [vmem:[%s19326_s10 + $0x658] sm:$0xff] }
 0x7b1   : > { %11944 = vmatprep.subr.bf16.mxu0 %v17609_v37  ;;  %12108 = vmatprep.subr.bf16.mxu1 %v17611_v61  ;;  %v17659_v37 = vcombine.high %v8631_v21, %v8635_v22  ;;  %v8638_v61 = vld [vmem:[%s19326_s10 + $0x510] sm:$0xff]  ;;  %v8683_v20 = vld [vmem:[%s19326_s10 + $0x678] sm:$0xff] }
 0x7b2   : > { %v17664_v35 = vcombine.low %v8638_v61, %v8642_v25 }
 0x7b4   : > { %11945 = vmatpush1.bf16.msra.mxu0 %v17608_v29  ;;  %12109 = vmatpush1.bf16.msra.mxu1 %v17610_v1  ;;  %v17665_v29 = vcombine.high %v8638_v61, %v8642_v25  ;;  %v17667_v1 = vcombine.high %v8639_v2, %v8643_v51  ;;  %v8687_v61 = vld [vmem:[%s19326_s10 + $0x698] sm:$0xff]  ;;  %v17706_v51 = vcombine.low %v8679_v19, %v8683_v20 }
 0x7b5   : > { %11946 = vmatprep.subr.bf16.mxu0 %v17617_v28  ;;  %12110 = vmatprep.subr.bf16.mxu1 %v17619_v33  ;;  %v8646_v28 = vld [vmem:[%s19326_s10 + $0x550] sm:$0xff]  ;;  %v8691_v25 = vld [vmem:[%s19326_s10 + $0x6b8] sm:$0xff] }
 0x7b6   : > { %v8650_v33 = vld [vmem:[%s19326_s10 + $0x570] sm:$0xff] }
 0x7b7   : > { %v17672_v3 = vcombine.low %v8646_v28, %v8650_v33 }
 0x7b8   : > { %11947 = vmatpush1.bf16.msra.mxu0 %v17616_v39  ;;  %12111 = vmatpush1.bf16.msra.mxu1 %v17618_v42  ;;  %v17673_v39 = vcombine.high %v8646_v28, %v8650_v33  ;;  %v17675_v42 = vcombine.high %v8647_v34, %v8651_v63  ;;  %v8695_v28 = vld [vmem:[%s19326_s10 + $0x6d8] sm:$0xff]  ;;  %v17714_v63 = vcombine.low %v8687_v61, %v8691_v25 }
 0x7b9   : > { %11948 = vmatprep.subr.bf16.mxu0 %v17625_v52  ;;  %12112 = vmatprep.subr.bf16.mxu1 %v17627_v38  ;;  %v8654_v52 = vld [vmem:[%s19326_s10 + $0x590] sm:$0xff]  ;;  %v8699_v33 = vld [vmem:[%s19326_s10 + $0x6f8] sm:$0xff] }
 0x7ba   : > { %v8658_v38 = vld [vmem:[%s19326_s10 + $0x5b0] sm:$0xff] }
 0x7bb   : > { %v17680_v32 = vcombine.low %v8654_v52, %v8658_v38 }
 0x7bc   : > { %11949 = vmatpush1.bf16.msra.mxu0 %v17624_v6  ;;  %12113 = vmatpush1.bf16.msra.mxu1 %v17626_v54  ;;  %v17681_v6 = vcombine.high %v8654_v52, %v8658_v38  ;;  %v17683_v54 = vcombine.high %v8655_v57, %v8659_v16  ;;  %v8703_v52 = vld [vmem:[%s19326_s10 + $0x718] sm:$0xff]  ;;  %v17722_v16 = vcombine.low %v8695_v28, %v8699_v33 }
 0x7bd   : > { %11959 = vmatprep.subr.bf16.mxu0 %v17633_v7  ;;  %12123 = vmatprep.subr.bf16.mxu1 %v17635_v10  ;;  %v8662_v7 = vld [vmem:[%s19326_s10 + $0x5d0] sm:$0xff]  ;;  %v8707_v38 = vld [vmem:[%s19326_s10 + $0x738] sm:$0xff] }
 0x7be   : > { %v8666_v10 = vld [vmem:[%s19326_s10 + $0x5f0] sm:$0xff] }
 0x7bf   : > { %11951 = vmatmul.mubr.bf16.vlgmr.msra.gmra.mrb[4].mxu0 %v20831_v5  ;;  %12115 = vmatmul.mubr.bf16.vlgmr.msra.gmra.mrb[4].mxu1 %v20831_v5  ;;  %v17648_v5 = vcombine.low %v8622_v14, %v8626_v44  ;;  %v8671_v14 = vld [vmem:[%s19326_s10 + $0x618] sm:$0xff]  ;;  %v17688_v15 = vcombine.low %v8662_v7, %v8666_v10 }
 0x7c0   : > { %11960 = vmatpush1.bf16.msra.mxu0 %v17632_v43  ;;  %12124 = vmatpush1.bf16.msra.mxu1 %v17634_v36  ;;  %v17689_v43 = vcombine.high %v8662_v7, %v8666_v10  ;;  %v17691_v36 = vcombine.high %v8663_v12, %v8667_v11  ;;  %v8675_v44 = vld [vmem:[%s19326_s10 + $0x638] sm:$0xff]  ;;  %v17730_v11 = vcombine.low %v8703_v52, %v8707_v38 }
 0x7c1   : > { %11961 = vmatprep.subr.bf16.mxu0 %v17641_v46  ;;  %12125 = vmatprep.subr.bf16.mxu1 %v17643_v13  ;;  %v8670_v46 = vld [vmem:[%s19326_s10 + $0x610] sm:$0xff]  ;;  %v8711_v7 = vld [vmem:[%s19326_s10 + $0x758] sm:$0xff] }
 0x7c2   : > { %11991 = vmatprep.mubr.bf16.mxu0 %v20839_v49  ;;  %12155 = vmatprep.mubr.bf16.mxu1 %v20839_v49  ;;  %v17658_v49 = vcombine.low %v8631_v21, %v8635_v22  ;;  %v8674_v13 = vld [vmem:[%s19326_s10 + $0x630] sm:$0xff]  ;;  %v17698_v22 = vcombine.low %v8671_v14, %v8675_v44  ;;  %v8715_v10 = vld [vmem:[%s19326_s10 + $0x778] sm:$0xff] }
 0x7c3   : > { %v17696_v21 = vcombine.low %v8670_v46, %v8674_v13 }
 0x7c4   : > { %11962 = vmatpush1.bf16.msra.mxu0 %v17640_v41  ;;  %12126 = vmatpush1.bf16.msra.mxu1 %v17642_v17  ;;  %v17697_v41 = vcombine.high %v8670_v46, %v8674_v13  ;;  %v17699_v17 = vcombine.high %v8671_v14, %v8675_v44  ;;  %v8719_v46 = vld [vmem:[%s19326_s10 + $0x798] sm:$0xff]  ;;  %v17738_v44 = vcombine.low %v8711_v7, %v8715_v10 }
 0x7c5   : > { %11963 = vmatprep.subr.bf16.mxu0 %v17649_v18  ;;  %12127 = vmatprep.subr.bf16.mxu1 %v17651_v53  ;;  %v8678_v18 = vld [vmem:[%s19326_s10 + $0x650] sm:$0xff]  ;;  %v8723_v13 = vld [vmem:[%s19326_s10 + $0x7b8] sm:$0xff] }
 0x7c6   : > { %v8682_v53 = vld [vmem:[%s19326_s10 + $0x670] sm:$0xff] }
 0x7c7   : > { %v17704_v2 = vcombine.low %v8678_v18, %v8682_v53 }
 0x7c8   : > { %11964 = vmatpush1.bf16.msra.mxu0 %v17648_v5  ;;  %12128 = vmatpush1.bf16.msra.mxu1 %v17650_v27  ;;  %v17705_v5 = vcombine.high %v8678_v18, %v8682_v53  ;;  %v17707_v27 = vcombine.high %v8679_v19, %v8683_v20  ;;  %v8727_v18 = vld [vmem:[%s19326_s10 + $0x7d8] sm:$0xff]  ;;  %v17746_v20 = vcombine.low %v8719_v46, %v8723_v13 }
 0x7c9   : > { %11965 = vmatprep.subr.bf16.mxu0 %v17657_v30  ;;  %12129 = vmatprep.subr.bf16.mxu1 %v17659_v37  ;;  %v8686_v30 = vld [vmem:[%s19326_s10 + $0x690] sm:$0xff]  ;;  %v8731_v53 = vld [vmem:[%s19326_s10 + $0x7f8] sm:$0xff] }
 0x7ca   : > { %v8690_v37 = vld [vmem:[%s19326_s10 + $0x6b0] sm:$0xff] }
 0x7cb   : > { %v17712_v34 = vcombine.low %v8686_v30, %v8690_v37 }
 0x7cc   : > { %11966 = vmatpush1.bf16.msra.mxu0 %v17656_v55  ;;  %12130 = vmatpush1.bf16.msra.mxu1 %v17658_v49  ;;  %v17713_v55 = vcombine.high %v8686_v30, %v8690_v37  ;;  %v17715_v49 = vcombine.high %v8687_v61, %v8691_v25  ;;  %v8735_v30 = vld [vmem:[%s19326_s10 + $0x818] sm:$0xff]  ;;  %v17754_v25 = vcombine.low %v8727_v18, %v8731_v53 }
 0x7cd   : > { %11967 = vmatprep.subr.bf16.mxu0 %v17665_v29  ;;  %12131 = vmatprep.subr.bf16.mxu1 %v17667_v1  ;;  %v8694_v29 = vld [vmem:[%s19326_s10 + $0x6d0] sm:$0xff]  ;;  %v8739_v37 = vld [vmem:[%s19326_s10 + $0x838] sm:$0xff] }
 0x7ce   : > { %v8698_v1 = vld [vmem:[%s19326_s10 + $0x6f0] sm:$0xff] }
 0x7cf   : > { %v17720_v57 = vcombine.low %v8694_v29, %v8698_v1 }
 0x7d0   : > { %11968 = vmatpush1.bf16.msra.mxu0 %v17664_v35  ;;  %12132 = vmatpush1.bf16.msra.mxu1 %v17666_v62  ;;  %v17721_v35 = vcombine.high %v8694_v29, %v8698_v1  ;;  %v17723_v62 = vcombine.high %v8695_v28, %v8699_v33  ;;  %v8743_v29 = vld [vmem:[%s19326_s10 + $0x858] sm:$0xff]  ;;  %v17762_v33 = vcombine.low %v8735_v30, %v8739_v37 }
 0x7d1   : > { %11969 = vmatprep.subr.bf16.mxu0 %v17673_v39  ;;  %12133 = vmatprep.subr.bf16.mxu1 %v17675_v42  ;;  %v8702_v39 = vld [vmem:[%s19326_s10 + $0x710] sm:$0xff]  ;;  %v8747_v1 = vld [vmem:[%s19326_s10 + $0x878] sm:$0xff] }
 0x7d2   : > { %v8706_v42 = vld [vmem:[%s19326_s10 + $0x730] sm:$0xff] }
 0x7d3   : > { %v17728_v12 = vcombine.low %v8702_v39, %v8706_v42 }
 0x7d4   : > { %11970 = vmatpush1.bf16.msra.mxu0 %v17672_v3  ;;  %12134 = vmatpush1.bf16.msra.mxu1 %v17674_v40  ;;  %v17729_v3 = vcombine.high %v8702_v39, %v8706_v42  ;;  %v17731_v40 = vcombine.high %v8703_v52, %v8707_v38  ;;  %v8751_v39 = vld [vmem:[%s19326_s10 + $0x898] sm:$0xff]  ;;  %v17770_v38 = vcombine.low %v8743_v29, %v8747_v1 }
 0x7d5   : > { %11971 = vmatprep.subr.bf16.mxu0 %v17681_v6  ;;  %12135 = vmatprep.subr.bf16.mxu1 %v17683_v54  ;;  %v8710_v6 = vld [vmem:[%s19326_s10 + $0x750] sm:$0xff]  ;;  %v8755_v42 = vld [vmem:[%s19326_s10 + $0x8b8] sm:$0xff] }
 0x7d6   : > { %v8714_v54 = vld [vmem:[%s19326_s10 + $0x770] sm:$0xff] }
 0x7d7   : > { %v17736_v14 = vcombine.low %v8710_v6, %v8714_v54 }
 0x7d8   : > { %11972 = vmatpush1.bf16.msra.mxu0 %v17680_v32  ;;  %12136 = vmatpush1.bf16.msra.mxu1 %v17682_v31  ;;  %v17737_v32 = vcombine.high %v8710_v6, %v8714_v54  ;;  %v17739_v31 = vcombine.high %v8711_v7, %v8715_v10  ;;  %v8759_v6 = vld [vmem:[%s19326_s10 + $0x8d8] sm:$0xff]  ;;  %v17778_v7 = vcombine.low %v8751_v39, %v8755_v42 }
 0x7d9   : > { %11973 = vmatprep.subr.bf16.mxu0 %v17689_v43  ;;  %12137 = vmatprep.subr.bf16.mxu1 %v17691_v36  ;;  %v8718_v43 = vld [vmem:[%s19326_s10 + $0x790] sm:$0xff]  ;;  %v8763_v54 = vld [vmem:[%s19326_s10 + $0x8f8] sm:$0xff] }
 0x7da   : > { %v8722_v36 = vld [vmem:[%s19326_s10 + $0x7b0] sm:$0xff] }
 0x7db   : > { %v17744_v19 = vcombine.low %v8718_v43, %v8722_v36 }
 0x7dc   : > { %11974 = vmatpush1.bf16.msra.mxu0 %v17688_v15  ;;  %12138 = vmatpush1.bf16.msra.mxu1 %v17690_v59  ;;  %v17745_v15 = vcombine.high %v8718_v43, %v8722_v36  ;;  %v17747_v59 = vcombine.high %v8719_v46, %v8723_v13  ;;  %v8771_v43 = vld [vmem:[%s19326_s10 + $0x938] sm:$0xff] }
 0x7dd   : > { %11975 = vmatprep.subr.bf16.mxu0 %v17697_v41  ;;  %12139 = vmatprep.subr.bf16.mxu1 %v17699_v17  ;;  %v8726_v41 = vld [vmem:[%s19326_s10 + $0x7d0] sm:$0xff] }
 0x7de   : > { %v8730_v17 = vld [vmem:[%s19326_s10 + $0x7f0] sm:$0xff] }
 0x7df   : > { %v17752_v61 = vcombine.low %v8726_v41, %v8730_v17 }
 0x7e0   : > { %11976 = vmatpush1.bf16.msra.mxu0 %v17696_v21  ;;  %12140 = vmatpush1.bf16.msra.mxu1 %v17698_v22  ;;  %v17753_v21 = vcombine.high %v8726_v41, %v8730_v17  ;;  %v17755_v22 = vcombine.high %v8727_v18, %v8731_v53 }
 0x7e1   : > { %11977 = vmatprep.subr.bf16.mxu0 %v17705_v5  ;;  %12141 = vmatprep.subr.bf16.mxu1 %v17707_v27  ;;  %v8734_v5 = vld [vmem:[%s19326_s10 + $0x810] sm:$0xff] }
 0x7e2   : > { %v8738_v27 = vld [vmem:[%s19326_s10 + $0x830] sm:$0xff] }
 0x7e3   : > { %v17760_v28 = vcombine.low %v8734_v5, %v8738_v27 }
 0x7e4   : > { %11978 = vmatpush1.bf16.msra.mxu0 %v17704_v2  ;;  %12142 = vmatpush1.bf16.msra.mxu1 %v17706_v51  ;;  %v17761_v2 = vcombine.high %v8734_v5, %v8738_v27  ;;  %v17763_v51 = vcombine.high %v8735_v30, %v8739_v37 }
 0x7e5   : > { %11979 = vmatprep.subr.bf16.mxu0 %v17713_v55  ;;  %12143 = vmatprep.subr.bf16.mxu1 %v17715_v49  ;;  %v8742_v55 = vld [vmem:[%s19326_s10 + $0x850] sm:$0xff] }
 0x7e6   : > { %v8746_v49 = vld [vmem:[%s19326_s10 + $0x870] sm:$0xff] }
 0x7e7   : > { %v17768_v52 = vcombine.low %v8742_v55, %v8746_v49 }
 0x7e8   : > { %11980 = vmatpush1.bf16.msra.mxu0 %v17712_v34  ;;  %12144 = vmatpush1.bf16.msra.mxu1 %v17714_v63  ;;  %v17769_v34 = vcombine.high %v8742_v55, %v8746_v49  ;;  %v17771_v63 = vcombine.high %v8743_v29, %v8747_v1 }
 0x7e9   : > { %11981 = vmatprep.subr.bf16.mxu0 %v17721_v35  ;;  %12145 = vmatprep.subr.bf16.mxu1 %v17723_v62  ;;  %v8750_v35 = vld [vmem:[%s19326_s10 + $0x890] sm:$0xff] }
 0x7ea   : > { %v8754_v62 = vld [vmem:[%s19326_s10 + $0x8b0] sm:$0xff] }
 0x7ec   : > { %11982 = vmatpush1.bf16.msra.mxu0 %v17720_v57  ;;  %12146 = vmatpush1.bf16.msra.mxu1 %v17722_v16  ;;  %v17777_v57 = vcombine.high %v8750_v35, %v8754_v62  ;;  %v17779_v16 = vcombine.high %v8751_v39, %v8755_v42 }
 0x7ed   : > { %11983 = vmatprep.subr.bf16.mxu0 %v17729_v3  ;;  %12147 = vmatprep.subr.bf16.mxu1 %v17731_v40  ;;  %v8758_v3 = vld [vmem:[%s19326_s10 + $0x8d0] sm:$0xff] }
 0x7ee   : > { %v8762_v40 = vld [vmem:[%s19326_s10 + $0x8f0] sm:$0xff] }
 0x7ef   : > { %v17785_v10 = vcombine.high %v8758_v3, %v8762_v40  ;;  %v17784_v36 = vcombine.low %v8758_v3, %v8762_v40 }
 0x7f0   : > { %11984 = vmatpush1.bf16.msra.mxu0 %v17728_v12  ;;  %12148 = vmatpush1.bf16.msra.mxu1 %v17730_v11  ;;  %v17787_v12 = vcombine.high %v8759_v6, %v8763_v54  ;;  %v8766_v11 = vld [vmem:[%s19326_s10 + $0x910] sm:$0xff] }
 0x7f1   : > { %11985 = vmatprep.subr.bf16.mxu0 %v17737_v32  ;;  %12149 = vmatprep.subr.bf16.mxu1 %v17739_v31  ;;  %v8770_v32 = vld [vmem:[%s19326_s10 + $0x930] sm:$0xff]  ;;  %v8767_v31 = vld [vmem:[%s19326_s10 + $0x918] sm:$0xff] }
 0x7f2   : > { %v17793_v46 = vcombine.high %v8766_v11, %v8770_v32  ;;  %v17795_v13 = vcombine.high %v8767_v31, %v8771_v43  ;;  %v17792_v41 = vcombine.low %v8766_v11, %v8770_v32  ;;  %v17794_v17 = vcombine.low %v8767_v31, %v8771_v43 }
 0x7f4   : > { %11986 = vmatpush1.bf16.msra.mxu0 %v17736_v14  ;;  %12150 = vmatpush1.bf16.msra.mxu1 %v17738_v44  ;;  %v8774_v14 = vld [vmem:[%s19326_s10 + $0x950] sm:$0xff] }
 0x7f5   : > { %11987 = vmatprep.subr.bf16.mxu0 %v17745_v15  ;;  %12151 = vmatprep.subr.bf16.mxu1 %v17747_v59  ;;  %v8778_v44 = vld [vmem:[%s19326_s10 + $0x970] sm:$0xff]  ;;  %v8775_v15 = vld [vmem:[%s19326_s10 + $0x958] sm:$0xff] }
 0x7f6   : > { %v8779_v59 = vld [vmem:[%s19326_s10 + $0x978] sm:$0xff]  ;;  %v17801_v18 = vcombine.high %v8774_v14, %v8778_v44  ;;  %v17800_v5 = vcombine.low %v8774_v14, %v8778_v44 }
 0x7f7   : > { %v17803_v53 = vcombine.high %v8775_v15, %v8779_v59  ;;  %v17802_v27 = vcombine.low %v8775_v15, %v8779_v59 }
 0x7f8   : > { %11988 = vmatpush1.bf16.msra.mxu0 %v17744_v19  ;;  %12152 = vmatpush1.bf16.msra.mxu1 %v17746_v20  ;;  %v8782_v19 = vld [vmem:[%s19326_s10 + $0x990] sm:$0xff] }
 0x7f9   : > { %11989 = vmatprep.subr.bf16.mxu0 %v17753_v21  ;;  %12153 = vmatprep.subr.bf16.mxu1 %v17755_v22  ;;  %v8786_v20 = vld [vmem:[%s19326_s10 + $0x9b0] sm:$0xff]  ;;  %v8783_v21 = vld [vmem:[%s19326_s10 + $0x998] sm:$0xff] }
 0x7fa   : > { %v8787_v22 = vld [vmem:[%s19326_s10 + $0x9b8] sm:$0xff]  ;;  %v17809_v30 = vcombine.high %v8782_v19, %v8786_v20  ;;  %v17808_v55 = vcombine.low %v8782_v19, %v8786_v20 }
 0x7fb   : > { %v17811_v37 = vcombine.high %v8783_v21, %v8787_v22  ;;  %v17810_v49 = vcombine.low %v8783_v21, %v8787_v22 }
 0x7fc   : > { %11990 = vmatpush1.bf16.msra.mxu0 %v17752_v61  ;;  %12154 = vmatpush1.bf16.msra.mxu1 %v17754_v25  ;;  %v8790_v61 = vld [vmem:[%s19326_s10 + $0x9d0] sm:$0xff] }
 0x7fd   : > { %12000 = vmatprep.subr.bf16.mxu0 %v17761_v2  ;;  %12164 = vmatprep.subr.bf16.mxu1 %v17763_v51  ;;  %v8794_v25 = vld [vmem:[%s19326_s10 + $0x9f0] sm:$0xff]  ;;  %v8791_v2 = vld [vmem:[%s19326_s10 + $0x9d8] sm:$0xff] }
 0x7fe   : > { %v8795_v51 = vld [vmem:[%s19326_s10 + $0x9f8] sm:$0xff]  ;;  %v17817_v29 = vcombine.high %v8790_v61, %v8794_v25 }
 0x7ff   : > { %11992 = vmatmul.mubr.bf16.vlgmr.msra.gmra.mrb[4].mxu0 %v20936_v60  ;;  %12156 = vmatmul.mubr.bf16.vlgmr.msra.gmra.mrb[4].mxu1 %v20936_v60  ;;  %v17776_v60 = vcombine.low %v8750_v35, %v8754_v62  ;;  %v17819_v1 = vcombine.high %v8791_v2, %v8795_v51  ;;  %v17816_v35 = vcombine.low %v8790_v61, %v8794_v25 }
 0x800   : > { %12001 = vmatpush1.bf16.msra.mxu0 %v17760_v28  ;;  %12165 = vmatpush1.bf16.msra.mxu1 %v17762_v33  ;;  %v8798_v28 = vld [vmem:[%s19326_s10 + $0xa10] sm:$0xff]  ;;  %v17818_v62 = vcombine.low %v8791_v2, %v8795_v51 }
 0x801   : > { %12002 = vmatprep.subr.bf16.mxu0 %v17769_v34  ;;  %12166 = vmatprep.subr.bf16.mxu1 %v17771_v63  ;;  %v8802_v33 = vld [vmem:[%s19326_s10 + $0xa30] sm:$0xff]  ;;  %v8799_v34 = vld [vmem:[%s19326_s10 + $0xa18] sm:$0xff] }
 0x802   : > { %12032 = vmatprep.mubr.bf16.mxu0 %v20942_v0  ;;  %12196 = vmatprep.mubr.bf16.mxu1 %v20942_v0  ;;  %v17786_v0 = vcombine.low %v8759_v6, %v8763_v54  ;;  %v8803_v63 = vld [vmem:[%s19326_s10 + $0xa38] sm:$0xff]  ;;  %v17825_v39 = vcombine.high %v8798_v28, %v8802_v33  ;;  %v17824_v3 = vcombine.low %v8798_v28, %v8802_v33 }
 0x803   : > { %v17827_v42 = vcombine.high %v8799_v34, %v8803_v63  ;;  %v17826_v40 = vcombine.low %v8799_v34, %v8803_v63 }
 0x804   : > { %12003 = vmatpush1.bf16.msra.mxu0 %v17768_v52  ;;  %12167 = vmatpush1.bf16.msra.mxu1 %v17770_v38  ;;  %v8806_v52 = vld [vmem:[%s19326_s10 + $0xa50] sm:$0xff] }
 0x805   : > { %12004 = vmatprep.subr.bf16.mxu0 %v17777_v57  ;;  %12168 = vmatprep.subr.bf16.mxu1 %v17779_v16  ;;  %v8810_v38 = vld [vmem:[%s19326_s10 + $0xa70] sm:$0xff]  ;;  %v8807_v57 = vld [vmem:[%s19326_s10 + $0xa58] sm:$0xff] }
 0x806   : > { %v8811_v16 = vld [vmem:[%s19326_s10 + $0xa78] sm:$0xff]  ;;  %v17833_v6 = vcombine.high %v8806_v52, %v8810_v38  ;;  %v17832_v11 = vcombine.low %v8806_v52, %v8810_v38 }
 0x807   : > { %v17835_v54 = vcombine.high %v8807_v57, %v8811_v16  ;;  %v17834_v32 = vcombine.low %v8807_v57, %v8811_v16 }
 0x808   : > { %12005 = vmatpush1.bf16.msra.mxu0 %v17776_v60  ;;  %12169 = vmatpush1.bf16.msra.mxu1 %v17778_v7  ;;  %v8814_v60 = vld [vmem:[%s19326_s10 + $0xa90] sm:$0xff] }
 0x809   : > { %12006 = vmatprep.subr.bf16.mxu0 %v17785_v10  ;;  %12170 = vmatprep.subr.bf16.mxu1 %v17787_v12  ;;  %v8818_v7 = vld [vmem:[%s19326_s10 + $0xab0] sm:$0xff]  ;;  %v8815_v10 = vld [vmem:[%s19326_s10 + $0xa98] sm:$0xff] }
 0x80a   : > { %v8819_v12 = vld [vmem:[%s19326_s10 + $0xab8] sm:$0xff]  ;;  %v17841_v31 = vcombine.high %v8814_v60, %v8818_v7  ;;  %v17840_v14 = vcombine.low %v8814_v60, %v8818_v7 }
 0x80b   : > { %v17843_v43 = vcombine.high %v8815_v10, %v8819_v12  ;;  %v17842_v44 = vcombine.low %v8815_v10, %v8819_v12 }
 0x80c   : > { %12007 = vmatpush1.bf16.msra.mxu0 %v17784_v36  ;;  %12171 = vmatpush1.bf16.msra.mxu1 %v17786_v0  ;;  %v8822_v36 = vld [vmem:[%s19326_s10 + $0xad0] sm:$0xff] }
 0x80d   : > { %12008 = vmatprep.subr.bf16.mxu0 %v17793_v46  ;;  %12172 = vmatprep.subr.bf16.mxu1 %v17795_v13  ;;  %v8826_v0 = vld [vmem:[%s19326_s10 + $0xaf0] sm:$0xff]  ;;  %v8823_v46 = vld [vmem:[%s19326_s10 + $0xad8] sm:$0xff] }
 0x80e   : > { %v8827_v13 = vld [vmem:[%s19326_s10 + $0xaf8] sm:$0xff]  ;;  %v17849_v15 = vcombine.high %v8822_v36, %v8826_v0  ;;  %v17848_v19 = vcombine.low %v8822_v36, %v8826_v0 }
 0x80f   : > { %v17851_v59 = vcombine.high %v8823_v46, %v8827_v13  ;;  %v17850_v20 = vcombine.low %v8823_v46, %v8827_v13 }
 0x810   : > { %12009 = vmatpush1.bf16.msra.mxu0 %v17792_v41  ;;  %12173 = vmatpush1.bf16.msra.mxu1 %v17794_v17  ;;  %v8830_v41 = vld [vmem:[%s19326_s10 + $0xb10] sm:$0xff] }
 0x811   : > { %12010 = vmatprep.subr.bf16.mxu0 %v17801_v18  ;;  %12174 = vmatprep.subr.bf16.mxu1 %v17803_v53  ;;  %v8834_v17 = vld [vmem:[%s19326_s10 + $0xb30] sm:$0xff]  ;;  %v8831_v18 = vld [vmem:[%s19326_s10 + $0xb18] sm:$0xff] }
 0x812   : > { %v8835_v53 = vld [vmem:[%s19326_s10 + $0xb38] sm:$0xff]  ;;  %v17857_v21 = vcombine.high %v8830_v41, %v8834_v17  ;;  %v17856_v61 = vcombine.low %v8830_v41, %v8834_v17 }
 0x813   : > { %v17859_v22 = vcombine.high %v8831_v18, %v8835_v53  ;;  %v17858_v25 = vcombine.low %v8831_v18, %v8835_v53 }
 0x814   : > { %12011 = vmatpush1.bf16.msra.mxu0 %v17800_v5  ;;  %12175 = vmatpush1.bf16.msra.mxu1 %v17802_v27  ;;  %v8838_v5 = vld [vmem:[%s19326_s10 + $0xb50] sm:$0xff] }
 0x815   : > { %12012 = vmatprep.subr.bf16.mxu0 %v17809_v30  ;;  %12176 = vmatprep.subr.bf16.mxu1 %v17811_v37  ;;  %v8842_v27 = vld [vmem:[%s19326_s10 + $0xb70] sm:$0xff]  ;;  %v8839_v30 = vld [vmem:[%s19326_s10 + $0xb58] sm:$0xff] }
 0x816   : > { %v8843_v37 = vld [vmem:[%s19326_s10 + $0xb78] sm:$0xff]  ;;  %v17865_v2 = vcombine.high %v8838_v5, %v8842_v27  ;;  %v17864_v28 = vcombine.low %v8838_v5, %v8842_v27 }
 0x817   : > { %v17867_v51 = vcombine.high %v8839_v30, %v8843_v37  ;;  %v17866_v33 = vcombine.low %v8839_v30, %v8843_v37  ;;  %v8894_v37 = vld [vmem:[%s19326_s10 + $0xd10] sm:$0xff] }
 0x818   : > { %12013 = vmatpush1.bf16.msra.mxu0 %v17808_v55  ;;  %12177 = vmatpush1.bf16.msra.mxu1 %v17810_v49  ;;  %v8846_v55 = vld [vmem:[%s19326_s10 + $0xb90] sm:$0xff] }
 0x819   : > { %12014 = vmatprep.subr.bf16.mxu0 %v17817_v29  ;;  %12178 = vmatprep.subr.bf16.mxu1 %v17819_v1  ;;  %v8850_v49 = vld [vmem:[%s19326_s10 + $0xbb0] sm:$0xff]  ;;  %v8847_v29 = vld [vmem:[%s19326_s10 + $0xb98] sm:$0xff] }
 0x81a   : > { %v8851_v1 = vld [vmem:[%s19326_s10 + $0xbb8] sm:$0xff]  ;;  %v17873_v34 = vcombine.high %v8846_v55, %v8850_v49  ;;  %v17872_v52 = vcombine.low %v8846_v55, %v8850_v49 }
 0x81b   : > { %v17875_v63 = vcombine.high %v8847_v29, %v8851_v1  ;;  %v17874_v38 = vcombine.low %v8847_v29, %v8851_v1  ;;  %v8902_v29 = vld [vmem:[%s19326_s10 + $0xd50] sm:$0xff] }
 0x81c   : > { %12015 = vmatpush1.bf16.msra.mxu0 %v17816_v35  ;;  %12179 = vmatpush1.bf16.msra.mxu1 %v17818_v62  ;;  %v8854_v35 = vld [vmem:[%s19326_s10 + $0xbd0] sm:$0xff] }
 0x81d   : > { %12016 = vmatprep.subr.bf16.mxu0 %v17825_v39  ;;  %12180 = vmatprep.subr.bf16.mxu1 %v17827_v42  ;;  %v8858_v62 = vld [vmem:[%s19326_s10 + $0xbf0] sm:$0xff]  ;;  %v8855_v39 = vld [vmem:[%s19326_s10 + $0xbd8] sm:$0xff] }
 0x81e   : > { %v8859_v42 = vld [vmem:[%s19326_s10 + $0xbf8] sm:$0xff]  ;;  %v17881_v57 = vcombine.high %v8854_v35, %v8858_v62  ;;  %v17880_v60 = vcombine.low %v8854_v35, %v8858_v62  ;;  %v8906_v1 = vld [vmem:[%s19326_s10 + $0xd70] sm:$0xff] }
 0x81f   : > { %v17883_v16 = vcombine.high %v8855_v39, %v8859_v42  ;;  %v17882_v7 = vcombine.low %v8855_v39, %v8859_v42  ;;  %v17929_v62 = vcombine.high %v8902_v29, %v8906_v1  ;;  %v8910_v42 = vld [vmem:[%s19326_s10 + $0xd90] sm:$0xff] }
 0x820   : > { %12017 = vmatpush1.bf16.msra.mxu0 %v17824_v3  ;;  %12181 = vmatpush1.bf16.msra.mxu1 %v17826_v40  ;;  %v8862_v3 = vld [vmem:[%s19326_s10 + $0xc10] sm:$0xff] }
 0x821   : > { %12018 = vmatprep.subr.bf16.mxu0 %v17833_v6  ;;  %12182 = vmatprep.subr.bf16.mxu1 %v17835_v54  ;;  %v8866_v40 = vld [vmem:[%s19326_s10 + $0xc30] sm:$0xff]  ;;  %v8863_v6 = vld [vmem:[%s19326_s10 + $0xc18] sm:$0xff] }
 0x822   : > { %v8867_v54 = vld [vmem:[%s19326_s10 + $0xc38] sm:$0xff]  ;;  %v17889_v10 = vcombine.high %v8862_v3, %v8866_v40  ;;  %v17888_v36 = vcombine.low %v8862_v3, %v8866_v40 }
 0x823   : > { %v17891_v12 = vcombine.high %v8863_v6, %v8867_v54  ;;  %v17890_v0 = vcombine.low %v8863_v6, %v8867_v54  ;;  %v17928_v6 = vcombine.low %v8902_v29, %v8906_v1  ;;  %v8939_v29 = vld [vmem:[%s19326_s10 + $0xe78] sm:$0xff] }
 0x824   : > { %12019 = vmatpush1.bf16.msra.mxu0 %v17832_v11  ;;  %12183 = vmatpush1.bf16.msra.mxu1 %v17834_v32  ;;  %v8870_v11 = vld [vmem:[%s19326_s10 + $0xc50] sm:$0xff] }
 0x825   : > { %12020 = vmatprep.subr.bf16.mxu0 %v17841_v31  ;;  %12184 = vmatprep.subr.bf16.mxu1 %v17843_v43  ;;  %v8874_v32 = vld [vmem:[%s19326_s10 + $0xc70] sm:$0xff]  ;;  %v8871_v31 = vld [vmem:[%s19326_s10 + $0xc58] sm:$0xff] }
 0x826   : > { %v8875_v43 = vld [vmem:[%s19326_s10 + $0xc78] sm:$0xff]  ;;  %v17897_v46 = vcombine.high %v8870_v11, %v8874_v32  ;;  %v17896_v41 = vcombine.low %v8870_v11, %v8874_v32  ;;  %v8922_v11 = vld [vmem:[%s19326_s10 + $0xdf0] sm:$0xff] }
 0x827   : > { %v17899_v13 = vcombine.high %v8871_v31, %v8875_v43  ;;  %v17898_v17 = vcombine.low %v8871_v31, %v8875_v43  ;;  %v8919_v43 = vld [vmem:[%s19326_s10 + $0xdd8] sm:$0xff] }
 0x828   : > { %12021 = vmatpush1.bf16.msra.mxu0 %v17840_v14  ;;  %12185 = vmatpush1.bf16.msra.mxu1 %v17842_v44  ;;  %v8878_v14 = vld [vmem:[%s19326_s10 + $0xc90] sm:$0xff] }
 0x829   : > { %12022 = vmatprep.subr.bf16.mxu0 %v17849_v15  ;;  %12186 = vmatprep.subr.bf16.mxu1 %v17851_v59  ;;  %v8882_v44 = vld [vmem:[%s19326_s10 + $0xcb0] sm:$0xff]  ;;  %v8879_v15 = vld [vmem:[%s19326_s10 + $0xc98] sm:$0xff] }
 0x82a   : > { %v8883_v59 = vld [vmem:[%s19326_s10 + $0xcb8] sm:$0xff]  ;;  %v17905_v18 = vcombine.high %v8878_v14, %v8882_v44 }
 0x82b   : > { %v17907_v53 = vcombine.high %v8879_v15, %v8883_v59  ;;  %v17906_v5 = vcombine.low %v8879_v15, %v8883_v59 }
 0x82c   : > { %12023 = vmatpush1.bf16.msra.mxu0 %v17848_v19  ;;  %12187 = vmatpush1.bf16.msra.mxu1 %v17850_v20  ;;  %v8886_v19 = vld [vmem:[%s19326_s10 + $0xcd0] sm:$0xff] }
 0x82d   : > { %12024 = vmatprep.subr.bf16.mxu0 %v17857_v21  ;;  %12188 = vmatprep.subr.bf16.mxu1 %v17859_v22  ;;  %v8890_v20 = vld [vmem:[%s19326_s10 + $0xcf0] sm:$0xff]  ;;  %v8887_v21 = vld [vmem:[%s19326_s10 + $0xcd8] sm:$0xff] }
 0x82e   : > { %v8891_v22 = vld [vmem:[%s19326_s10 + $0xcf8] sm:$0xff]  ;;  %v17913_v27 = vcombine.high %v8886_v19, %v8890_v20 }
 0x82f   : > { %v17915_v30 = vcombine.high %v8887_v21, %v8891_v22 }
 0x830   : > { %12025 = vmatpush1.bf16.msra.mxu0 %v17856_v61  ;;  %12189 = vmatpush1.bf16.msra.mxu1 %v17858_v25  ;;  %v8898_v61 = vld [vmem:[%s19326_s10 + $0xd30] sm:$0xff]  ;;  %v8895_v25 = vld [vmem:[%s19326_s10 + $0xd18] sm:$0xff] }
 0x831   : > { %12026 = vmatprep.subr.bf16.mxu0 %v17865_v2  ;;  %12190 = vmatprep.subr.bf16.mxu1 %v17867_v51  ;;  %v8899_v2 = vld [vmem:[%s19326_s10 + $0xd38] sm:$0xff]  ;;  %v17912_v51 = vcombine.low %v8886_v19, %v8890_v20  ;;  %v17921_v55 = vcombine.high %v8894_v37, %v8898_v61  ;;  %v8926_v19 = vld [vmem:[%s19326_s10 + $0xe10] sm:$0xff] }
 0x832   : > { %v17923_v49 = vcombine.high %v8895_v25, %v8899_v2  ;;  %v17922_v35 = vcombine.low %v8895_v25, %v8899_v2  ;;  %v8930_v20 = vld [vmem:[%s19326_s10 + $0xe30] sm:$0xff] }
 0x833   : > { %v8270_v25 = vld [vmem:[#allocation2] sm:$0xff]  ;;  %v17952_v1 = vcombine.low %v8926_v19, %v8930_v20 }
 0x834   : > { %12027 = vmatpush1.bf16.msra.mxu0 %v17864_v28  ;;  %12191 = vmatpush1.bf16.msra.mxu1 %v17866_v33  ;;  %v8903_v28 = vld [vmem:[%s19326_s10 + $0xd58] sm:$0xff] }
 0x835   : > { %12028 = vmatprep.subr.bf16.mxu0 %v17873_v34  ;;  %12192 = vmatprep.subr.bf16.mxu1 %v17875_v63  ;;  %v8907_v33 = vld [vmem:[%s19326_s10 + $0xd78] sm:$0xff]  ;;  %v17920_v34 = vcombine.low %v8894_v37, %v8898_v61  ;;  %v21320_v63 = vld [vmem:[%s19332_s9] sm:$0xff]  ;;  %v17953_v61 = vcombine.high %v8926_v19, %v8930_v20 }
 0x836   : > { %v17931_v39 = vcombine.high %v8903_v28, %v8907_v33  ;;  %v9001_v3 = vrot.slane %v21320_v63, %v20720_v50  ;;  %v8997_v40 = vrot.slane %v21320_v63, %v20715_v26  ;;  %v9005_v54 = vrot.slane %v21320_v63, %v20723_v45  ;;  %v8979_v19 = vld [vmem:[%s19326_s10 + $0xfb8] sm:$0xff] }
 0x838   : > { %12029 = vmatpush1.bf16.msra.mxu0 %v17872_v52  ;;  %12193 = vmatpush1.bf16.msra.mxu1 %v17874_v38  ;;  %v8914_v52 = vld [vmem:[%s19326_s10 + $0xdb0] sm:$0xff]  ;;  %v8993_v38 = vrot.slane %v21320_v63, %v20712_v56 }
 0x839   : > { %12030 = vmatprep.subr.bf16.mxu0 %v17881_v57  ;;  %12194 = vmatprep.subr.bf16.mxu1 %v17883_v16  ;;  %v8911_v57 = vld [vmem:[%s19326_s10 + $0xd98] sm:$0xff]  ;;  %v17937_v56 = vcombine.high %v8910_v42, %v8914_v52  ;;  %v17936_v45 = vcombine.low %v8910_v42, %v8914_v52 }
 0x83a   : > { %v8915_v16 = vld [vmem:[%s19326_s10 + $0xdb8] sm:$0xff] }
 0x83b   : > { %v17938_v59 = vcombine.low %v8911_v57, %v8915_v16  ;;  %v8943_v42 = vld [vmem:[%s19326_s10 + $0xe98] sm:$0xff] }
 0x83c   : > { %12031 = vmatpush1.bf16.msra.mxu0 %v17880_v60  ;;  %12195 = vmatpush1.bf16.msra.mxu1 %v17882_v7  ;;  %v17930_v60 = vcombine.low %v8903_v28, %v8907_v33  ;;  %v8947_v52 = vld [vmem:[%s19326_s10 + $0xeb8] sm:$0xff] }
 0x83d   : > { %12041 = vmatprep.subr.bf16.mxu0 %v17889_v10  ;;  %12205 = vmatprep.subr.bf16.mxu1 %v17891_v12  ;;  %v17939_v10 = vcombine.high %v8911_v57, %v8915_v16  ;;  %v8918_v12 = vld [vmem:[%s19326_s10 + $0xdd0] sm:$0xff] }
 0x83f   : > { %12033 = vmatmul.mubr.bf16.vlgmr.msra.gmra.mrb[4].mxu0 %v21017_v23  ;;  %12197 = vmatmul.mubr.bf16.vlgmr.msra.gmra.mrb[4].mxu1 %v21017_v23  ;;  %v17904_v23 = vcombine.low %v8878_v14, %v8882_v44 }
 0x840   : > { %12042 = vmatpush1.bf16.msra.mxu0 %v17888_v36  ;;  %12206 = vmatpush1.bf16.msra.mxu1 %v17890_v0  ;;  %v8923_v36 = vld [vmem:[%s19326_s10 + $0xdf8] sm:$0xff] }
 0x841   : > { %12043 = vmatprep.subr.bf16.mxu0 %v17897_v46  ;;  %12207 = vmatprep.subr.bf16.mxu1 %v17899_v13  ;;  %v17946_v37 = vcombine.low %v8919_v43, %v8923_v36 }
 0x842   : > { %12073 = vmatprep.mubr.bf16.mxu0 %v21023_v9  ;;  %12237 = vmatprep.mubr.bf16.mxu1 %v21023_v9  ;;  %v17914_v9 = vcombine.low %v8887_v21, %v8891_v22  ;;  %v8927_v22 = vld [vmem:[%s19326_s10 + $0xe18] sm:$0xff] }
 0x844   : > { %12044 = vmatpush1.bf16.msra.mxu0 %v17896_v41  ;;  %12208 = vmatpush1.bf16.msra.mxu1 %v17898_v17  ;;  %v17945_v41 = vcombine.high %v8918_v12, %v8922_v11 }
 0x845   : > { %12045 = vmatprep.subr.bf16.mxu0 %v17905_v18  ;;  %12209 = vmatprep.subr.bf16.mxu1 %v17907_v53  ;;  %v17947_v53 = vcombine.high %v8919_v43, %v8923_v36 }
 0x848   : > { %12046 = vmatpush1.bf16.msra.mxu0 %v17904_v23  ;;  %12210 = vmatpush1.bf16.msra.mxu1 %v17906_v5  ;;  %v8931_v23 = vld [vmem:[%s19326_s10 + $0xe38] sm:$0xff] }
 0x849   : > { %12047 = vmatprep.subr.bf16.mxu0 %v17913_v27  ;;  %12211 = vmatprep.subr.bf16.mxu1 %v17915_v30  ;;  %v17944_v27 = vcombine.low %v8918_v12, %v8922_v11  ;;  %v17955_v2 = vcombine.high %v8927_v22, %v8931_v23  ;;  %v17954_v33 = vcombine.low %v8927_v22, %v8931_v23  ;;  %v8958_v11 = vld [vmem:[%s19326_s10 + $0xf10] sm:$0xff] }
 0x84c   : > { %12048 = vmatpush1.bf16.msra.mxu0 %v17912_v51  ;;  %12212 = vmatpush1.bf16.msra.mxu1 %v17914_v9  ;;  %v8934_v51 = vld [vmem:[%s19326_s10 + $0xe50] sm:$0xff] }
 0x84d   : > { %12049 = vmatprep.subr.bf16.mxu0 %v17921_v55  ;;  %12213 = vmatprep.subr.bf16.mxu1 %v17923_v49  ;;  %v8938_v9 = vld [vmem:[%s19326_s10 + $0xe70] sm:$0xff]  ;;  %v8935_v49 = vld [vmem:[%s19326_s10 + $0xe58] sm:$0xff] }
 0x84e   : > { %v17962_v57 = vcombine.low %v8935_v49, %v8939_v29 }
 0x850   : > { %12050 = vmatpush1.bf16.msra.mxu0 %v17920_v34  ;;  %12214 = vmatpush1.bf16.msra.mxu1 %v17922_v35  ;;  %v17961_v34 = vcombine.high %v8934_v51, %v8938_v9  ;;  %v17963_v35 = vcombine.high %v8935_v49, %v8939_v29  ;;  %v9009_v49 = vrot.slane %v21320_v63, %v20812_v24 }
 0x851   : > { %12051 = vmatprep.subr.bf16.mxu0 %v17929_v62  ;;  %12215 = vmatprep.subr.bf16.mxu1 %v17931_v39  ;;  %v8942_v62 = vld [vmem:[%s19326_s10 + $0xe90] sm:$0xff]  ;;  %v9017_v29 = vrot.slane %v21320_v63, %v20824_v4 }
 0x852   : > { %v11747_v7 = vpop.f32.mrb[0].mxu0  ;;  %v11911_v50 = vpop.f32.mrb[0].mxu1  ;;  %v8946_v39 = vld [vmem:[%s19326_s10 + $0xeb0] sm:$0xff] }
 0x853   : > { %v18645_v32 = vadd.f32 %v11747_v7, %v8993_v38  ;;  %v11749_v31 = vpop.f32.mrb[1].mxu0  ;;  %v18647_v26 = vadd.f32 %v11911_v50, %v9001_v3  ;;  %v11913_v46 = vpop.f32.mrb[1].mxu1  ;;  %v17960_v38 = vcombine.low %v8934_v51, %v8938_v9  ;;  %v17969_v16 = vcombine.high %v8942_v62, %v8946_v39  ;;  %v8959_v50 = vld [vmem:[%s19326_s10 + $0xf18] sm:$0xff] }
 0x854   : > { %v18646_v0 = vadd.f32 %v11749_v31, %v8997_v40  ;;  %v11751_v13 = vpop.f32.mrb[2].mxu0  ;;  %12052 = vmatpush1.bf16.msra.mxu0 %v17928_v6  ;;  %v18648_v14 = vadd.f32 %v11913_v46, %v9005_v54  ;;  %v11915_v44 = vpop.f32.mrb[2].mxu1  ;;  %12216 = vmatpush1.bf16.msra.mxu1 %v17930_v60  ;;  %v17971_v3 = vcombine.high %v8943_v42, %v8947_v52  ;;  %v8950_v40 = vld [vmem:[%s19326_s10 + $0xed0] sm:$0xff]  ;;  %v8951_v54 = vld [vmem:[%s19326_s10 + $0xed8] sm:$0xff] }
 0x855   : > { %v11752_v15 = vpop.f32.mrb[3].mxu0  ;;  %12053 = vmatprep.subr.bf16.mxu0 %v17937_v56  ;;  %v11916_v18 = vpop.f32.mrb[3].mxu1  ;;  %12217 = vmatprep.subr.bf16.mxu1 %v17939_v10  ;;  %v8954_v6 = vld [vmem:[%s19326_s10 + $0xef0] sm:$0xff]  ;;  %v8955_v60 = vld [vmem:[%s19326_s10 + $0xef8] sm:$0xff]  ;;  %v17968_v56 = vcombine.low %v8942_v62, %v8946_v39  ;;  %v17970_v7 = vcombine.low %v8943_v42, %v8947_v52 }
 0x856   : > { %v12254_v17 = vcombine.low %v18645_v32, %v18646_v0  ;;  %v12255_v21 = vcombine.low %v18647_v26, %v18648_v14  ;;  %v17977_v10 = vcombine.high %v8950_v40, %v8954_v6  ;;  %v17979_v12 = vcombine.high %v8951_v54, %v8955_v60  ;;  %v8962_v32 = vld [vmem:[%s19326_s10 + $0xf30] sm:$0xff]  ;;  %v8963_v31 = vld [vmem:[%s19326_s10 + $0xf38] sm:$0xff] }
 0x857   : > { %v17976_v43 = vcombine.low %v8950_v40, %v8954_v6  ;;  %v17978_v36 = vcombine.low %v8951_v54, %v8955_v60  ;;  %v17985_v26 = vcombine.high %v8958_v11, %v8962_v32  ;;  %v17987_v0 = vcombine.high %v8959_v50, %v8963_v31  ;;  %v8966_v46 = vld [vmem:[%s19326_s10 + $0xf50] sm:$0xff]  ;;  %v8971_v14 = vld [vmem:[%s19326_s10 + $0xf78] sm:$0xff] }
 0x858   : > { %v12262_v5 = vrot.slane %v12254_v17, %v20735_v8  ;;  %12054 = vmatpush1.bf16.msra.mxu0 %v17936_v45  ;;  %v12269_v30 = vrot.slane %v12255_v21, %v20735_v8  ;;  %12218 = vmatpush1.bf16.msra.mxu1 %v17938_v59  ;;  %v8970_v13 = vld [vmem:[%s19326_s10 + $0xf70] sm:$0xff]  ;;  %v8967_v45 = vld [vmem:[%s19326_s10 + $0xf58] sm:$0xff]  ;;  %v17984_v44 = vcombine.low %v8958_v11, %v8962_v32 }
 0x859   : > { %12055 = vmatprep.subr.bf16.mxu0 %v17945_v41  ;;  %12219 = vmatprep.subr.bf16.mxu1 %v17947_v53  ;;  %v17986_v15 = vcombine.low %v8959_v50, %v8963_v31  ;;  %v17993_v59 = vcombine.high %v8966_v46, %v8970_v13  ;;  %v17995_v41 = vcombine.high %v8967_v45, %v8971_v14  ;;  %v8974_v17 = vld [vmem:[%s19326_s10 + $0xf90] sm:$0xff]  ;;  %v8975_v53 = vld [vmem:[%s19326_s10 + $0xf98] sm:$0xff] }
 0x85a   : > { %v12270_v55 = vcombine.low %v12262_v5, %v12269_v30  ;;  %v8978_v18 = vld [vmem:[%s19326_s10 + $0xfb0] sm:$0xff]  ;;  %v17992_v20 = vcombine.low %v8966_v46, %v8970_v13  ;;  %v17994_v21 = vcombine.low %v8967_v45, %v8971_v14  ;;  %v18003_v23 = vcombine.high %v8975_v53, %v8979_v19  ;;  %v8983_v30 = vld [vmem:[%s19326_s10 + $0xfd8] sm:$0xff] }
 0x85b   : > { %v18001_v22 = vcombine.high %v8974_v17, %v8978_v18  ;;  %v8982_v5 = vld [vmem:[%s19326_s10 + $0xfd0] sm:$0xff]  ;;  %v8271_v6 = vld [vmem:[#allocation2 + $0x8] sm:$0xff] }
 0x85c   : > { %12056 = vmatpush1.bf16.msra.mxu0 %v17944_v27  ;;  %v12290_v28 = vadd.f32 %v12270_v55, %v8270_v25  ;;  %12220 = vmatpush1.bf16.msra.mxu1 %v17946_v37  ;;  %v8986_v27 = vld [vmem:[%s19326_s10 + $0xff0] sm:$0xff]  ;;  %v8987_v37 = vld [vmem:[%s19326_s10 + $0xff8] sm:$0xff]  ;;  %v18002_v25 = vcombine.low %v8975_v53, %v8979_v19 }
 0x85d   : > { %12057 = vmatprep.subr.bf16.mxu0 %v17953_v61  ;;  %12221 = vmatprep.subr.bf16.mxu1 %v17955_v2  ;;  %v18000_v61 = vcombine.low %v8974_v17, %v8978_v18  ;;  %v18009_v2 = vcombine.high %v8982_v5, %v8986_v27  ;;  %v18011_v51 = vcombine.high %v8983_v30, %v8987_v37 }
 0x85e   : > { %12292 = vst [vmem:[#allocation2] sm:$0xff] %v12290_v28  ;;  %v18008_v9 = vcombine.low %v8982_v5, %v8986_v27  ;;  %v18010_v55 = vcombine.low %v8983_v30, %v8987_v37  ;;  %v9021_v28 = vrot.slane %v21320_v63, %v20827_v48 }
 0x860   : > { %12058 = vmatpush1.bf16.msra.mxu0 %v17952_v1  ;;  %12222 = vmatpush1.bf16.msra.mxu1 %v17954_v33  ;;  %v9013_v1 = vrot.slane %v21320_v63, %v20815_v47 }
 0x861   : > { %12059 = vmatprep.subr.bf16.mxu0 %v17961_v34  ;;  %12223 = vmatprep.subr.bf16.mxu1 %v17963_v35 }
 0x864   : > { %12060 = vmatpush1.bf16.msra.mxu0 %v17960_v38  ;;  %12224 = vmatpush1.bf16.msra.mxu1 %v17962_v57 }
 0x865   : > { %12061 = vmatprep.subr.bf16.mxu0 %v17969_v16  ;;  %12225 = vmatprep.subr.bf16.mxu1 %v17971_v3 }
 0x868   : > { %12062 = vmatpush1.bf16.msra.mxu0 %v17968_v56  ;;  %12226 = vmatpush1.bf16.msra.mxu1 %v17970_v7 }
 0x869   : > { %12063 = vmatprep.subr.bf16.mxu0 %v17977_v10  ;;  %12227 = vmatprep.subr.bf16.mxu1 %v17979_v12 }
 0x86c   : > { %12064 = vmatpush1.bf16.msra.mxu0 %v17976_v43  ;;  %12228 = vmatpush1.bf16.msra.mxu1 %v17978_v36 }
 0x86d   : > { %12065 = vmatprep.subr.bf16.mxu0 %v17985_v26  ;;  %12229 = vmatprep.subr.bf16.mxu1 %v17987_v0 }
 0x870   : > { %12066 = vmatpush1.bf16.msra.mxu0 %v17984_v44  ;;  %12230 = vmatpush1.bf16.msra.mxu1 %v17986_v15 }
 0x871   : > { %12067 = vmatprep.subr.bf16.mxu0 %v17993_v59  ;;  %12231 = vmatprep.subr.bf16.mxu1 %v17995_v41 }
 0x874   : > { %12068 = vmatpush1.bf16.msra.mxu0 %v17992_v20  ;;  %12232 = vmatpush1.bf16.msra.mxu1 %v17994_v21 }
 0x875   : > { %12069 = vmatprep.subr.bf16.mxu0 %v18001_v22  ;;  %12233 = vmatprep.subr.bf16.mxu1 %v18003_v23 }
 0x878   : > { %12070 = vmatpush1.bf16.msra.mxu0 %v18000_v61  ;;  %12234 = vmatpush1.bf16.msra.mxu1 %v18002_v25 }
 0x879   : > { %12071 = vmatprep.subr.bf16.mxu0 %v18009_v2  ;;  %12235 = vmatprep.subr.bf16.mxu1 %v18011_v51 }
 0x87c   : > { %12072 = vmatpush1.bf16.msra.mxu0 %v18008_v9  ;;  %12236 = vmatpush1.bf16.msra.mxu1 %v18010_v55 }
 0x87f   : > { %12074 = vmatmul.mubr.bf16.vlgmr.msra.gmra.mrb[4].mxu0 %v21091_v58  ;;  %12238 = vmatmul.mubr.bf16.vlgmr.msra.gmra.mrb[4].mxu1 %v21091_v58 }
 0x952   : > { %v12075_v33 = vpop.f32.mrb[4].mxu0  ;;  %v12239_v35 = vpop.f32.mrb[4].mxu1 }
 0x953   : > { %v18649_v34 = vadd.f32 %v12075_v33, %v9009_v49  ;;  %v12077_v62 = vpop.f32.mrb[5].mxu0  ;;  %v18651_v39 = vadd.f32 %v12239_v35, %v9017_v29  ;;  %v12241_v52 = vpop.f32.mrb[5].mxu1 }
 0x954   : > { %v18650_v42 = vadd.f32 %v12077_v62, %v9013_v1  ;;  %v12079_v58 = vpop.f32.mrb[6].mxu0  ;;  %v18652_v38 = vadd.f32 %v12241_v52, %v9021_v28  ;;  %v12243_v57 = vpop.f32.mrb[6].mxu1 }
 0x955   : > { %v12080_v24 = vpop.f32.mrb[7].mxu0  ;;  %v12244_v3 = vpop.f32.mrb[7].mxu1 }
 0x956   : > { %v12271_v16 = vcombine.low %v18649_v34, %v18650_v42  ;;  %v12272_v4 = vcombine.low %v18651_v39, %v18652_v38 }
 0x958   : > { %v12279_v40 = vrot.slane %v12271_v16, %v20735_v8  ;;  %v12286_v47 = vrot.slane %v12272_v4, %v20735_v8 }
 0x95a   : > { %v12287_v48 = vcombine.low %v12279_v40, %v12286_v47 }
 0x95c   : > { %v12291_v63 = vadd.f32 %v12287_v48, %v8271_v6 }
 0x95e   : > { %12293 = vst [vmem:[#allocation2 + $0x8] sm:$0xff] %v12291_v63 }
 0x95f PF: > { %12297 = sbr.rel (%p4239_p9) target bundleno = 3137 (0xc41), region = 76  ;;  %v12502_v54 = vld [vmem:[%s19326_s10] sm:$0xff] (!%p4239_p9)  ;;  %v12503_v60 = vld [vmem:[%s19326_s10 + $0x8] sm:$0xff] (!%p4239_p9)  ;;  %v12302_v27 = vlaneseq (!%p4239_p9)  ;;  %v19069_v29 = vmov (!%p4239_p9), 1983009808   ;;  %v21429_v63 = vld [vmem:[%s19334_s15] sm:$0xff] (!%p4239_p9) }
 0x960   : > { %v12506_v8 = vld [vmem:[%s19326_s10 + $0x20] sm:$0xff] (!%p4239_p9)  ;;  %v12507_v7 = vld [vmem:[%s19326_s10 + $0x28] sm:$0xff] (!%p4239_p9)  ;;  %v12337_v1 = vunpack.c.l.s4 (!%p4239_p9), %v19069_v29 }
 0x961   : > { %v18014_v56 = vcombine.high (!%p4239_p9), %v12502_v54, %v12506_v8  ;;  %v18013_v10 = vcombine.low (!%p4239_p9), %v12502_v54, %v12506_v8  ;;  %v12510_v12 = vld [vmem:[%s19326_s10 + $0x40] sm:$0xff] (!%p4239_p9)  ;;  %v18016_v32 = vcombine.high (!%p4239_p9), %v12503_v60, %v12507_v7  ;;  %v18015_v50 = vcombine.low (!%p4239_p9), %v12503_v60, %v12507_v7  ;;  %v12511_v43 = vld [vmem:[%s19326_s10 + $0x48] sm:$0xff] (!%p4239_p9) }
 0x962   : > { %v12514_v11 = vld [vmem:[%s19326_s10 + $0x60] sm:$0xff] (!%p4239_p9)  ;;  %v12515_v36 = vld [vmem:[%s19326_s10 + $0x68] sm:$0xff] (!%p4239_p9)  ;;  %v21408_v49 = vshrl.u32 (!%p4239_p9), %v12302_v27, 7  ;;  %v12338_v57 = vunpack.c.0.s8 (!%p4239_p9), %v12337_v1 }
 0x963   : > { %v18022_v31 = vcombine.high (!%p4239_p9), %v12510_v12, %v12514_v11  ;;  %v12518_v26 = vld [vmem:[%s19326_s10 + $0x80] sm:$0xff] (!%p4239_p9)  ;;  %15616 = vmatprep.subr.bf16.mxu0 (!%p4239_p9), %v18014_v56  ;;  %v18024_v0 = vcombine.high (!%p4239_p9), %v12511_v43, %v12515_v36  ;;  %v12519_v13 = vld [vmem:[%s19326_s10 + $0x88] sm:$0xff] (!%p4239_p9)  ;;  %15780 = vmatprep.subr.bf16.mxu1 (!%p4239_p9), %v18016_v32  ;;  %v18021_v14 = vcombine.low (!%p4239_p9), %v12510_v12, %v12514_v11 }
 0x964   : > { %v12522_v46 = vld [vmem:[%s19326_s10 + $0xa0] sm:$0xff] (!%p4239_p9)  ;;  %v12523_v45 = vld [vmem:[%s19326_s10 + $0xa8] sm:$0xff] (!%p4239_p9)  ;;  %15617 = vmatpush1.bf16.msra.mxu0 (!%p4239_p9), %v18013_v10  ;;  %15781 = vmatpush1.bf16.msra.mxu1 (!%p4239_p9), %v18015_v50  ;;  %v18023_v44 = vcombine.low (!%p4239_p9), %v12511_v43, %v12515_v36  ;;  %v21415_v58 = vsub.s32 (!%p4239_p9), 0, %v21408_v49  ;;  %v21418_v38 = vsub.s32 (!%p4239_p9), 1, %v21408_v49  ;;  %v21423_v3 = vsub.s32 (!%p4239_p9), 2, %v21408_v49 }
 0x965   : > { %15618 = vmatprep.subr.bf16.mxu0 (!%p4239_p9), %v18022_v31  ;;  %v18030_v15 = vcombine.high (!%p4239_p9), %v12518_v26, %v12522_v46  ;;  %15782 = vmatprep.subr.bf16.mxu1 (!%p4239_p9), %v18024_v0  ;;  %v18032_v59 = vcombine.high (!%p4239_p9), %v12519_v13, %v12523_v45  ;;  %v12526_v41 = vld [vmem:[%s19326_s10 + $0xc0] sm:$0xff] (!%p4239_p9)  ;;  %v12527_v18 = vld [vmem:[%s19326_s10 + $0xc8] sm:$0xff] (!%p4239_p9)  ;;  %v18029_v19 = vcombine.low (!%p4239_p9), %v12518_v26, %v12522_v46  ;;  %v21426_v4 = vsub.s32 (!%p4239_p9), 3, %v21408_v49 }
 0x966   : > { %v12530_v17 = vld [vmem:[%s19326_s10 + $0xe0] sm:$0xff]  ;;  %v12531_v53 = vld [vmem:[%s19326_s10 + $0xe8] sm:$0xff]  ;;  %v18031_v20 = vcombine.low %v12519_v13, %v12523_v45  ;;  %v12305_v56 = vrot.slane %v21429_v63, %v21415_v58  ;;  %v12309_v7 = vrot.slane %v21429_v63, %v21418_v38  ;;  %v21438_v10 = vsub.s32 %v12338_v57, %v21408_v49 }
 0x967   : > { %v18038_v21 = vcombine.high %v12526_v41, %v12530_v17  ;;  %v18040_v22 = vcombine.high %v12527_v18, %v12531_v53  ;;  %v12534_v23 = vld [vmem:[%s19326_s10 + $0x100] sm:$0xff]  ;;  %v12535_v30 = vld [vmem:[%s19326_s10 + $0x108] sm:$0xff]  ;;  %v18037_v61 = vcombine.low %v12526_v41, %v12530_v17  ;;  %v18039_v25 = vcombine.low %v12527_v18, %v12531_v53 }
 0x968   : > { %15619 = vmatpush1.bf16.msra.mxu0 %v18021_v14  ;;  %15783 = vmatpush1.bf16.msra.mxu1 %v18023_v44  ;;  %v12538_v5 = vld [vmem:[%s19326_s10 + $0x120] sm:$0xff]  ;;  %v12539_v37 = vld [vmem:[%s19326_s10 + $0x128] sm:$0xff]  ;;  %v12313_v50 = vrot.slane %v21429_v63, %v21423_v3  ;;  %v12317_v31 = vrot.slane %v21429_v63, %v21426_v4  ;;  %v12334_v0 = vcombine.low %v12305_v56, %v12309_v7 }
 0x969   : > { %15620 = vmatprep.subr.bf16.mxu0 %v18030_v15  ;;  %15784 = vmatprep.subr.bf16.mxu1 %v18032_v59  ;;  %v18046_v2 = vcombine.high %v12534_v23, %v12538_v5  ;;  %v18048_v51 = vcombine.high %v12535_v30, %v12539_v37  ;;  %v12542_v9 = vld [vmem:[%s19326_s10 + $0x140] sm:$0xff]  ;;  %v12543_v28 = vld [vmem:[%s19326_s10 + $0x148] sm:$0xff]  ;;  %v18045_v34 = vcombine.low %v12534_v23, %v12538_v5  ;;  %v12298_v23 = vld [vmem:[#allocation2] sm:$0xff] }
 0x96a   : > { %v12546_v55 = vld [vmem:[%s19326_s10 + $0x160] sm:$0xff]  ;;  %v12547_v33 = vld [vmem:[%s19326_s10 + $0x168] sm:$0xff]  ;;  %v18047_v35 = vcombine.low %v12535_v30, %v12539_v37  ;;  %v12335_v14 = vcombine.low %v12313_v50, %v12317_v31  ;;  %v12342_v17 = vrot.slane %v12334_v0, %v21438_v10 }
 0x96b   : > { %v18054_v62 = vcombine.high %v12542_v9, %v12546_v55  ;;  %v18056_v39 = vcombine.high %v12543_v28, %v12547_v33  ;;  %v12550_v42 = vld [vmem:[%s19326_s10 + $0x180] sm:$0xff]  ;;  %v12551_v24 = vld [vmem:[%s19326_s10 + $0x188] sm:$0xff]  ;;  %v18053_v40 = vcombine.low %v12542_v9, %v12546_v55  ;;  %v18055_v47 = vcombine.low %v12543_v28, %v12547_v33 }
 0x96c   : > { %15621 = vmatpush1.bf16.msra.mxu0 %v18029_v19  ;;  %15785 = vmatpush1.bf16.msra.mxu1 %v18031_v20  ;;  %v12554_v52 = vld [vmem:[%s19326_s10 + $0x1a0] sm:$0xff]  ;;  %v12555_v16 = vld [vmem:[%s19326_s10 + $0x1a8] sm:$0xff]  ;;  %v12349_v20 = vrot.slane %v12335_v14, %v21438_v10 }
 0x96d   : > { %15622 = vmatprep.subr.bf16.mxu0 %v18038_v21  ;;  %15786 = vmatprep.subr.bf16.mxu1 %v18040_v22  ;;  %v18062_v6 = vcombine.high %v12550_v42, %v12554_v52  ;;  %v18061_v48 = vcombine.low %v12550_v42, %v12554_v52  ;;  %v18064_v54 = vcombine.high %v12551_v24, %v12555_v16  ;;  %v12558_v8 = vld [vmem:[%s19326_s10 + $0x1c0] sm:$0xff]  ;;  %v12559_v11 = vld [vmem:[%s19326_s10 + $0x1c8] sm:$0xff] }
 0x96e   : > { %v12562_v60 = vld [vmem:[%s19326_s10 + $0x1e0] sm:$0xff]  ;;  %v12563_v32 = vld [vmem:[%s19326_s10 + $0x1e8] sm:$0xff]  ;;  %v18063_v26 = vcombine.low %v12551_v24, %v12555_v16  ;;  %v12350_v37 = vcombine.low %v12342_v17, %v12349_v20 }
 0x96f   : > { %v21441_v12 = vld [vmem:[%s19340_s16] sm:$0xff]  ;;  %v18070_v45 = vcombine.high %v12558_v8, %v12562_v60  ;;  %v18072_v15 = vcombine.high %v12559_v11, %v12563_v32  ;;  %v18069_v22 = vcombine.low %v12558_v8, %v12562_v60  ;;  %v18071_v27 = vcombine.low %v12559_v11, %v12563_v32 }
 0x970   : > { %15623 = vmatpush1.bf16.msra.mxu0 %v18037_v61  ;;  %15787 = vmatpush1.bf16.msra.mxu1 %v18039_v25  ;;  %v12377_v43 = vrot.slane %v21441_v12, %v21415_v58  ;;  %v12381_v36 = vrot.slane %v21441_v12, %v21418_v38  ;;  %v12385_v46 = vrot.slane %v21441_v12, %v21423_v3  ;;  %v12566_v59 = vld [vmem:[%s19326_s10 + $0x200] sm:$0xff]  ;;  %v12567_v53 = vld [vmem:[%s19326_s10 + $0x208] sm:$0xff] }
 0x971   : > { %15624 = vmatprep.subr.bf16.mxu0 %v18046_v2  ;;  %15788 = vmatprep.subr.bf16.mxu1 %v18048_v51  ;;  %v12389_v13 = vrot.slane %v21441_v12, %v21426_v4  ;;  %v12570_v41 = vld [vmem:[%s19326_s10 + $0x220] sm:$0xff]  ;;  %v12571_v19 = vld [vmem:[%s19326_s10 + $0x228] sm:$0xff]  ;;  %v12370_v29 = vmul.f32 %v12350_v37, %v12298_v23 }
 0x972   : > { %v12406_v44 = vcombine.low %v12377_v43, %v12381_v36  ;;  %v18078_v30 = vcombine.high %v12566_v59, %v12570_v41  ;;  %v18080_v61 = vcombine.high %v12567_v53, %v12571_v19  ;;  %v12574_v25 = vld [vmem:[%s19326_s10 + $0x240] sm:$0xff]  ;;  %v12575_v9 = vld [vmem:[%s19326_s10 + $0x248] sm:$0xff]  ;;  %v18077_v1 = vcombine.low %v12566_v59, %v12570_v41 }
 0x973   : > { %v12407_v18 = vcombine.low %v12385_v46, %v12389_v13  ;;  %v12578_v2 = vld [vmem:[%s19326_s10 + $0x260] sm:$0xff]  ;;  %v12579_v55 = vld [vmem:[%s19326_s10 + $0x268] sm:$0xff]  ;;  %v18079_v28 = vcombine.low %v12567_v53, %v12571_v19 }
 0x974   : > { %15625 = vmatpush1.bf16.msra.mxu0 %v18045_v34  ;;  %15789 = vmatpush1.bf16.msra.mxu1 %v18047_v35  ;;  %v12414_v21 = vrot.slane %v12406_v44, %v21438_v10  ;;  %v18086_v33 = vcombine.high %v12574_v25, %v12578_v2  ;;  %v18088_v35 = vcombine.high %v12575_v9, %v12579_v55  ;;  %v12583_v42 = vld [vmem:[%s19326_s10 + $0x288] sm:$0xff]  ;;  %v12598_v43 = vld [vmem:[%s19326_s10 + $0x300] sm:$0xff] }
 0x975   : > { %15626 = vmatprep.subr.bf16.mxu0 %v18054_v62  ;;  %15790 = vmatprep.subr.bf16.mxu1 %v18056_v39  ;;  %v12421_v5 = vrot.slane %v12407_v18, %v21438_v10  ;;  %v12582_v62 = vld [vmem:[%s19326_s10 + $0x280] sm:$0xff]  ;;  %v12587_v52 = vld [vmem:[%s19326_s10 + $0x2a8] sm:$0xff]  ;;  %v18085_v24 = vcombine.low %v12574_v25, %v12578_v2  ;;  %v18087_v16 = vcombine.low %v12575_v9, %v12579_v55 }
 0x976   : > { %v12586_v39 = vld [vmem:[%s19326_s10 + $0x2a0] sm:$0xff]  ;;  %v12591_v60 = vld [vmem:[%s19326_s10 + $0x2c8] sm:$0xff]  ;;  %v18095_v32 = vcombine.low %v12583_v42, %v12587_v52 }
 0x977   : > { %v12422_v51 = vcombine.low %v12414_v21, %v12421_v5  ;;  %v12595_v56 = vld [vmem:[%s19326_s10 + $0x2e8] sm:$0xff]  ;;  %v18093_v7 = vcombine.low %v12582_v62, %v12586_v39  ;;  %v12602_v36 = vld [vmem:[%s19326_s10 + $0x320] sm:$0xff] }
 0x978   : > { %15627 = vmatpush1.bf16.msra.mxu0 %v18053_v40  ;;  %15791 = vmatpush1.bf16.msra.mxu1 %v18055_v47  ;;  %v18094_v40 = vcombine.high %v12582_v62, %v12586_v39  ;;  %v18104_v31 = vcombine.high %v12591_v60, %v12595_v56  ;;  %v12599_v0 = vld [vmem:[%s19326_s10 + $0x308] sm:$0xff]  ;;  %v18110_v14 = vcombine.high %v12598_v43, %v12602_v36  ;;  %v12610_v59 = vld [vmem:[%s19326_s10 + $0x360] sm:$0xff] }
 0x979   : > { %15628 = vmatprep.subr.bf16.mxu0 %v18062_v6  ;;  %15792 = vmatprep.subr.bf16.mxu1 %v18064_v54  ;;  %v12442_v34 = vadd.f32 %v12422_v51, %v12370_v29  ;;  %v18096_v6 = vcombine.high %v12583_v42, %v12587_v52  ;;  %v12594_v54 = vld [vmem:[%s19326_s10 + $0x2e0] sm:$0xff]  ;;  %v12603_v46 = vld [vmem:[%s19326_s10 + $0x328] sm:$0xff]  ;;  %v18109_v18 = vcombine.low %v12598_v43, %v12602_v36 }
 0x97a   : > { %v18112_v44 = vcombine.high %v12599_v0, %v12603_v46  ;;  %v12607_v41 = vld [vmem:[%s19326_s10 + $0x348] sm:$0xff]  ;;  %v18111_v53 = vcombine.low %v12599_v0, %v12603_v46  ;;  %v12614_v21 = vld [vmem:[%s19326_s10 + $0x380] sm:$0xff] }
 0x97b   : > { %vm12444_vm4 = vcmp.gt.f32.partialorder %v12442_v34, 0.0  ;;  %v12446_v57 = vmul.f32 0.2, %v12442_v34  ;;  %v12611_v17 = vld [vmem:[%s19326_s10 + $0x368] sm:$0xff]  ;;  %v12622_v25 = vld [vmem:[%s19326_s10 + $0x3c0] sm:$0xff] }
 0x97c   : > { %15629 = vmatpush1.bf16.msra.mxu0 %v18061_v48  ;;  %15793 = vmatpush1.bf16.msra.mxu1 %v18063_v26  ;;  %v12590_v48 = vld [vmem:[%s19326_s10 + $0x2c0] sm:$0xff]  ;;  %v18120_v20 = vcombine.high %v12607_v41, %v12611_v17  ;;  %v12615_v23 = vld [vmem:[%s19326_s10 + $0x388] sm:$0xff] }
 0x97d   : > { %15630 = vmatprep.subr.bf16.mxu0 %v18070_v45  ;;  %15794 = vmatprep.subr.bf16.mxu1 %v18072_v15  ;;  %v21473_v47 = vsel %vm12444_vm4, %v12442_v34, %v12446_v57  ;;  %v18102_v50 = vcombine.high %v12590_v48, %v12594_v54  ;;  %v18101_v13 = vcombine.low %v12590_v48, %v12594_v54  ;;  %v12606_v15 = vld [vmem:[%s19326_s10 + $0x340] sm:$0xff]  ;;  %v12619_v5 = vld [vmem:[%s19326_s10 + $0x3a8] sm:$0xff]  ;;  %v21515_v57 = vsub.s32 4, %v21408_v49 }
 0x97e   : > { %v21479_v8 = vrot.slane %v21473_v47, %v21438_v10  ;;  %v18103_v45 = vcombine.low %v12591_v60, %v12595_v56  ;;  %v18118_v19 = vcombine.high %v12606_v15, %v12610_v59  ;;  %v12626_v2 = vld [vmem:[%s19326_s10 + $0x3e0] sm:$0xff]  ;;  %v12452_v51 = vcombine.high %v21473_v47, %v21473_v47  ;;  %v12623_v9 = vld [vmem:[%s19326_s10 + $0x3c8] sm:$0xff] }
 0x97f   : > { %v12627_v55 = vld [vmem:[%s19326_s10 + $0x3e8] sm:$0xff]  ;;  %v12630_v34 = vld [vmem:[%s19326_s10 + $0x400] sm:$0xff]  ;;  %v18133_v52 = vcombine.low %v12622_v25, %v12626_v2  ;;  %v12321_v43 = vrot.slane %v21429_v63, %v21515_v57 }
 0x980   : > { %15631 = vmatpush1.bf16.msra.mxu0 %v18069_v22  ;;  %15795 = vmatpush1.bf16.msra.mxu1 %v18071_v27  ;;  %v12467_v11 = vcombine.high %v21479_v8, %v21479_v8  ;;  %v12618_v22 = vld [vmem:[%s19326_s10 + $0x3a0] sm:$0xff]  ;;  %v18117_v27 = vcombine.low %v12606_v15, %v12610_v59  ;;  %v21510_v62 = vrot.slane %v12452_v51, %v21438_v10  ;;  %v12631_v39 = vld [vmem:[%s19326_s10 + $0x408] sm:$0xff] }
 0x981   : > { %15632 = vmatprep.subr.bf16.mxu0 %v18078_v30  ;;  %15796 = vmatprep.subr.bf16.mxu1 %v18080_v61  ;;  %v18119_v30 = vcombine.low %v12607_v41, %v12611_v17  ;;  %v18126_v37 = vcombine.high %v12614_v21, %v12618_v22  ;;  %v18128_v61 = vcombine.high %v12615_v23, %v12619_v5  ;;  %v12635_v42 = vld [vmem:[%s19326_s10 + $0x428] sm:$0xff]  ;;  %v12638_v47 = vld [vmem:[%s19326_s10 + $0x440] sm:$0xff] }
 0x982   : > { %v21487_v26 = vpack.c.bf16 %v12467_v11, %v12467_v11  ;;  %v18125_v29 = vcombine.low %v12614_v21, %v12618_v22  ;;  %v12642_v48 = vld [vmem:[%s19326_s10 + $0x460] sm:$0xff]  ;;  %v12639_v54 = vld [vmem:[%s19326_s10 + $0x448] sm:$0xff]  ;;  %v12468_v56 = vcombine.high %v21510_v62, %v21510_v62  ;;  %v21530_v11 = vsub.s32 7, %v21408_v49 }
 0x983   : > { %v12643_v60 = vld [vmem:[%s19326_s10 + $0x468] sm:$0xff]  ;;  %v18149_v0 = vcombine.low %v12638_v47, %v12642_v48  ;;  %v12393_v17 = vrot.slane %v21441_v12, %v21515_v57 }
 0x984   : > { %15633 = vmatpush1.bf16.msra.mxu0 %v18077_v1  ;;  %15797 = vmatpush1.bf16.msra.mxu1 %v18079_v28  ;;  %v18127_v1 = vcombine.low %v12615_v23, %v12619_v5  ;;  %v18134_v28 = vcombine.high %v12622_v25, %v12626_v2  ;;  %v18152_v46 = vcombine.high %v12639_v54, %v12643_v60  ;;  %v12647_v59 = vld [vmem:[%s19326_s10 + $0x488] sm:$0xff]  ;;  %v12299_v2 = vld [vmem:[#allocation2 + $0x8] sm:$0xff] }
 0x985   : > { %15634 = vmatprep.subr.bf16.mxu0 %v18086_v33  ;;  %15798 = vmatprep.subr.bf16.mxu1 %v18088_v35  ;;  %v18136_v33 = vcombine.high %v12623_v9, %v12627_v55  ;;  %v12634_v35 = vld [vmem:[%s19326_s10 + $0x420] sm:$0xff]  ;;  %v12651_v41 = vld [vmem:[%s19326_s10 + $0x4a8] sm:$0xff] }
 0x986   : > { %15648 = vmatprep.mubr.bf16.mxu0 %v21487_v26  ;;  %15812 = vmatprep.mubr.bf16.mxu1 %v21487_v26  ;;  %v12659_v25 = vld [vmem:[%s19326_s10 + $0x4e8] sm:$0xff] }
 0x988   : > { %15635 = vmatpush1.bf16.msra.mxu0 %v18085_v24  ;;  %15799 = vmatpush1.bf16.msra.mxu1 %v18087_v16  ;;  %v21518_v24 = vsub.s32 5, %v21408_v49  ;;  %v18135_v16 = vcombine.low %v12623_v9, %v12627_v55 }
 0x989   : > { %15636 = vmatprep.subr.bf16.mxu0 %v18094_v40  ;;  %15800 = vmatprep.subr.bf16.mxu1 %v18096_v6  ;;  %v18142_v40 = vcombine.high %v12630_v34, %v12634_v35  ;;  %v18144_v6 = vcombine.high %v12631_v39, %v12635_v42 }
 0x98a   : > { %v12325_v36 = vrot.slane %v21429_v63, %v21518_v24 }
 0x98c   : > { %15637 = vmatpush1.bf16.msra.mxu0 %v18093_v7  ;;  %15801 = vmatpush1.bf16.msra.mxu1 %v18095_v32  ;;  %v21527_v7 = vsub.s32 6, %v21408_v49  ;;  %v21534_v32 = vpack.c.bf16 %v21479_v8, %v21479_v8  ;;  %v18150_v49 = vcombine.high %v12638_v47, %v12642_v48  ;;  %v12650_v8 = vld [vmem:[%s19326_s10 + $0x4a0] sm:$0xff]  ;;  %v12351_v15 = vcombine.low %v12321_v43, %v12325_v36 }
 0x98d   : > { %15638 = vmatprep.subr.bf16.mxu0 %v18102_v50  ;;  %15802 = vmatprep.subr.bf16.mxu1 %v18104_v31  ;;  %v18141_v50 = vcombine.low %v12630_v34, %v12634_v35  ;;  %v18143_v31 = vcombine.low %v12631_v39, %v12635_v42  ;;  %v12662_v35 = vld [vmem:[%s19326_s10 + $0x500] sm:$0xff] }
 0x98e   : > { %v12359_v21 = vrot.slane %v12351_v15, %v21438_v10  ;;  %v12666_v39 = vld [vmem:[%s19326_s10 + $0x520] sm:$0xff] }
 0x98f   : > { %v18174_v48 = vcombine.high %v12662_v35, %v12666_v39  ;;  %v18173_v43 = vcombine.low %v12662_v35, %v12666_v39  ;;  %v12714_v35 = vld [vmem:[%s19326_s10 + $0x6a0] sm:$0xff]  ;;  %v12711_v39 = vld [vmem:[%s19326_s10 + $0x688] sm:$0xff] }
 0x990   : > { %15639 = vmatpush1.bf16.msra.mxu0 %v18101_v13  ;;  %15803 = vmatpush1.bf16.msra.mxu1 %v18103_v45  ;;  %v12646_v13 = vld [vmem:[%s19326_s10 + $0x480] sm:$0xff]  ;;  %v21542_v45 = vpack.c.bf16 %v12468_v56, %v12468_v56 }
 0x991   : > { %15640 = vmatprep.subr.bf16.mxu0 %v18110_v14  ;;  %15804 = vmatprep.subr.bf16.mxu1 %v18112_v44  ;;  %v12329_v14 = vrot.slane %v21429_v63, %v21527_v7  ;;  %v12333_v44 = vrot.slane %v21429_v63, %v21530_v11  ;;  %v18151_v63 = vcombine.low %v12639_v54, %v12643_v60  ;;  %v12670_v60 = vld [vmem:[%s19326_s10 + $0x540] sm:$0xff] }
 0x992   : > { %v18158_v22 = vcombine.high %v12646_v13, %v12650_v8  ;;  %v18157_v55 = vcombine.low %v12646_v13, %v12650_v8  ;;  %v12674_v56 = vld [vmem:[%s19326_s10 + $0x560] sm:$0xff]  ;;  %v12679_v8 = vld [vmem:[%s19326_s10 + $0x588] sm:$0xff] }
 0x993   : > { %v12682_v13 = vld [vmem:[%s19326_s10 + $0x5a0] sm:$0xff] }
 0x994   : > { %15641 = vmatpush1.bf16.msra.mxu0 %v18109_v18  ;;  %15805 = vmatpush1.bf16.msra.mxu1 %v18111_v53  ;;  %v12397_v18 = vrot.slane %v21441_v12, %v21518_v24  ;;  %v12401_v53 = vrot.slane %v21441_v12, %v21527_v7 }
 0x995   : > { %15642 = vmatprep.subr.bf16.mxu0 %v18118_v19  ;;  %15806 = vmatprep.subr.bf16.mxu1 %v18120_v20  ;;  %v12405_v19 = vrot.slane %v21441_v12, %v21530_v11  ;;  %v12352_v20 = vcombine.low %v12329_v14, %v12333_v44  ;;  %v12683_v14 = vld [vmem:[%s19326_s10 + $0x5a8] sm:$0xff]  ;;  %v18181_v44 = vcombine.low %v12670_v60, %v12674_v56 }
 0x996   : > { %v12423_v23 = vcombine.low %v12393_v17, %v12397_v18  ;;  %v12686_v17 = vld [vmem:[%s19326_s10 + $0x5c0] sm:$0xff] }
 0x997   : > { %v12424_v5 = vcombine.low %v12401_v53, %v12405_v19  ;;  %v12366_v12 = vrot.slane %v12352_v20, %v21438_v10  ;;  %v12690_v18 = vld [vmem:[%s19326_s10 + $0x5e0] sm:$0xff]  ;;  %v12687_v53 = vld [vmem:[%s19326_s10 + $0x5c8] sm:$0xff]  ;;  %v18191_v20 = vcombine.low %v12679_v8, %v12683_v14 }
 0x998   : > { %15643 = vmatpush1.bf16.msra.mxu0 %v18117_v27  ;;  %15807 = vmatpush1.bf16.msra.mxu1 %v18119_v30  ;;  %v18160_v27 = vcombine.high %v12647_v59, %v12651_v41  ;;  %v12654_v30 = vld [vmem:[%s19326_s10 + $0x4c0] sm:$0xff]  ;;  %v12431_v51 = vrot.slane %v12423_v23, %v21438_v10  ;;  %v12691_v19 = vld [vmem:[%s19326_s10 + $0x5e8] sm:$0xff] }
 0x999   : > { %15644 = vmatprep.subr.bf16.mxu0 %v18126_v37  ;;  %15808 = vmatprep.subr.bf16.mxu1 %v18128_v61  ;;  %v12658_v37 = vld [vmem:[%s19326_s10 + $0x4e0] sm:$0xff]  ;;  %v12655_v61 = vld [vmem:[%s19326_s10 + $0x4c8] sm:$0xff]  ;;  %v12438_v9 = vrot.slane %v12424_v5, %v21438_v10 }
 0x99a   : > { %v18168_v34 = vcombine.high %v12655_v61, %v12659_v25  ;;  %v12694_v23 = vld [vmem:[%s19326_s10 + $0x600] sm:$0xff] }
 0x99b   : > { %v12698_v5 = vld [vmem:[%s19326_s10 + $0x620] sm:$0xff] }
 0x99c   : > { %15645 = vmatpush1.bf16.msra.mxu0 %v18125_v29  ;;  %15809 = vmatpush1.bf16.msra.mxu1 %v18127_v1  ;;  %v12367_v29 = vcombine.low %v12359_v21, %v12366_v12  ;;  %v18159_v1 = vcombine.low %v12647_v59, %v12651_v41  ;;  %v18192_v41 = vcombine.high %v12679_v8, %v12683_v14 }
 0x99d   : > { %15646 = vmatprep.subr.bf16.mxu0 %v18134_v28  ;;  %15810 = vmatprep.subr.bf16.mxu1 %v18136_v33  ;;  %v18166_v28 = vcombine.high %v12654_v30, %v12658_v37  ;;  %v12439_v33 = vcombine.low %v12431_v51, %v12438_v9  ;;  %v18198_v21 = vcombine.high %v12686_v17, %v12690_v18  ;;  %v12706_v51 = vld [vmem:[%s19326_s10 + $0x660] sm:$0xff]  ;;  %v12703_v9 = vld [vmem:[%s19326_s10 + $0x648] sm:$0xff] }
 0x99e   : > { %v12371_v42 = vmul.f32 %v12367_v29, %v12299_v2  ;;  %v18199_v12 = vcombine.low %v12687_v53, %v12691_v19  ;;  %v12702_v2 = vld [vmem:[%s19326_s10 + $0x640] sm:$0xff]  ;;  %v18205_v29 = vcombine.low %v12694_v23, %v12698_v5 }
 0x9a0   : > { %15647 = vmatpush1.bf16.msra.mxu0 %v18133_v52  ;;  %15811 = vmatpush1.bf16.msra.mxu1 %v18135_v16  ;;  %v12663_v52 = vld [vmem:[%s19326_s10 + $0x508] sm:$0xff]  ;;  %v21574_v47 = vadd.f32 %v12439_v33, %v12371_v42 }
 0x9a1   : > { %15657 = vmatprep.subr.bf16.mxu0 %v18142_v40  ;;  %15821 = vmatprep.subr.bf16.mxu1 %v18144_v6  ;;  %v12667_v16 = vld [vmem:[%s19326_s10 + $0x528] sm:$0xff]  ;;  %v18165_v40 = vcombine.low %v12654_v30, %v12658_v37  ;;  %v18167_v6 = vcombine.low %v12655_v61, %v12659_v25  ;;  %v18197_v37 = vcombine.low %v12686_v17, %v12690_v18 }
 0x9a2   : > { %v18176_v54 = vcombine.high %v12663_v52, %v12667_v16  ;;  %v18175_v36 = vcombine.low %v12663_v52, %v12667_v16  ;;  %v12699_v30 = vld [vmem:[%s19326_s10 + $0x628] sm:$0xff]  ;;  %v18206_v61 = vcombine.high %v12694_v23, %v12698_v5  ;;  %v18213_v52 = vcombine.low %v12702_v2, %v12706_v51 }
 0x9a3   : > { %15649 = vmatmul.mubr.bf16.vlgmr.msra.gmra.mrb[0].mxu0 %v21534_v32  ;;  %15813 = vmatmul.mubr.bf16.vlgmr.msra.gmra.mrb[0].mxu1 %v21534_v32  ;;  %v12715_v42 = vld [vmem:[%s19326_s10 + $0x6a8] sm:$0xff]  ;;  %vm12445_vm5 = vcmp.gt.f32.partialorder %v21574_v47, 0.0 }
 0x9a4   : > { %15658 = vmatpush1.bf16.msra.mxu0 %v18141_v50  ;;  %15822 = vmatpush1.bf16.msra.mxu1 %v18143_v31  ;;  %v12671_v50 = vld [vmem:[%s19326_s10 + $0x548] sm:$0xff] }
 0x9a5   : > { %15659 = vmatprep.subr.bf16.mxu0 %v18150_v49  ;;  %15823 = vmatprep.subr.bf16.mxu1 %v18152_v46  ;;  %v12675_v31 = vld [vmem:[%s19326_s10 + $0x568] sm:$0xff]  ;;  %v12678_v46 = vld [vmem:[%s19326_s10 + $0x580] sm:$0xff] }
 0x9a6   : > { %15689 = vmatprep.mubr.bf16.mxu0 %v21542_v45  ;;  %15853 = vmatprep.mubr.bf16.mxu1 %v21542_v45  ;;  %v18184_v49 = vcombine.high %v12671_v50, %v12675_v31  ;;  %v18183_v15 = vcombine.low %v12671_v50, %v12675_v31  ;;  %v18190_v59 = vcombine.high %v12678_v46, %v12682_v13  ;;  %v12735_v17 = vld [vmem:[%s19326_s10 + $0x748] sm:$0xff] }
 0x9a7   : > { %v18223_v31 = vcombine.low %v12711_v39, %v12715_v42  ;;  %v12739_v18 = vld [vmem:[%s19326_s10 + $0x768] sm:$0xff] }
 0x9a8   : > { %15660 = vmatpush1.bf16.msra.mxu0 %v18149_v0  ;;  %15824 = vmatpush1.bf16.msra.mxu1 %v18151_v63  ;;  %v18182_v0 = vcombine.high %v12670_v60, %v12674_v56  ;;  %v18189_v63 = vcombine.low %v12678_v46, %v12682_v13  ;;  %v12719_v60 = vld [vmem:[%s19326_s10 + $0x6c8] sm:$0xff] }
 0x9a9   : > { %15661 = vmatprep.subr.bf16.mxu0 %v18158_v22  ;;  %15825 = vmatprep.subr.bf16.mxu1 %v18160_v27  ;;  %v18200_v22 = vcombine.high %v12687_v53, %v12691_v19  ;;  %v12695_v27 = vld [vmem:[%s19326_s10 + $0x608] sm:$0xff] }
 0x9aa   : > { %v18208_v25 = vcombine.high %v12695_v27, %v12699_v30  ;;  %v12723_v56 = vld [vmem:[%s19326_s10 + $0x6e8] sm:$0xff] }
 0x9ab   : > { %v12727_v46 = vld [vmem:[%s19326_s10 + $0x708] sm:$0xff]  ;;  %v18231_v14 = vcombine.low %v12719_v60, %v12723_v56 }
 0x9ac   : > { %15662 = vmatpush1.bf16.msra.mxu0 %v18157_v55  ;;  %15826 = vmatpush1.bf16.msra.mxu1 %v18159_v1  ;;  %v12707_v55 = vld [vmem:[%s19326_s10 + $0x668] sm:$0xff]  ;;  %v18207_v1 = vcombine.low %v12695_v27, %v12699_v30  ;;  %v12447_v27 = vmul.f32 0.2, %v21574_v47 }
 0x9ad   : > { %15663 = vmatprep.subr.bf16.mxu0 %v18166_v28  ;;  %15827 = vmatprep.subr.bf16.mxu1 %v18168_v34  ;;  %v18214_v28 = vcombine.high %v12702_v2, %v12706_v51  ;;  %v18216_v33 = vcombine.high %v12703_v9, %v12707_v55  ;;  %v12710_v34 = vld [vmem:[%s19326_s10 + $0x680] sm:$0xff]  ;;  %v18215_v16 = vcombine.low %v12703_v9, %v12707_v55  ;;  %v12731_v13 = vld [vmem:[%s19326_s10 + $0x728] sm:$0xff] }
 0x9ae   : > { %v18221_v50 = vcombine.low %v12710_v34, %v12714_v35  ;;  %v18239_v19 = vcombine.low %v12727_v46, %v12731_v13  ;;  %v12743_v23 = vld [vmem:[%s19326_s10 + $0x788] sm:$0xff]  ;;  %v12754_v2 = vld [vmem:[%s19326_s10 + $0x7e0] sm:$0xff]  ;;  %v21623_v55 = vsel %vm12445_vm5, %v21574_v47, %v12447_v27 }
 0x9af   : > { %v12747_v5 = vld [vmem:[%s19326_s10 + $0x7a8] sm:$0xff] }
 0x9b0   : > { %15664 = vmatpush1.bf16.msra.mxu0 %v18165_v40  ;;  %15828 = vmatpush1.bf16.msra.mxu1 %v18167_v6  ;;  %v18222_v40 = vcombine.high %v12710_v34, %v12714_v35  ;;  %v18224_v6 = vcombine.high %v12711_v39, %v12715_v42  ;;  %v12751_v51 = vld [vmem:[%s19326_s10 + $0x7c8] sm:$0xff]  ;;  %v12758_v34 = vld [vmem:[%s19326_s10 + $0x800] sm:$0xff]  ;;  %v21629_v39 = vrot.slane %v21623_v55, %v21438_v10 }
 0x9b1   : > { %15665 = vmatprep.subr.bf16.mxu0 %v18174_v48  ;;  %15829 = vmatprep.subr.bf16.mxu1 %v18176_v54  ;;  %v12718_v48 = vld [vmem:[%s19326_s10 + $0x6c0] sm:$0xff]  ;;  %v12755_v9 = vld [vmem:[%s19326_s10 + $0x7e8] sm:$0xff] }
 0x9b2   : > { %v12722_v54 = vld [vmem:[%s19326_s10 + $0x6e0] sm:$0xff]  ;;  %v12759_v47 = vld [vmem:[%s19326_s10 + $0x808] sm:$0xff] }
 0x9b3   : > { %v18229_v8 = vcombine.low %v12718_v48, %v12722_v54  ;;  %v12762_v35 = vld [vmem:[%s19326_s10 + $0x820] sm:$0xff]  ;;  %v12763_v42 = vld [vmem:[%s19326_s10 + $0x828] sm:$0xff] }
 0x9b4   : > { %15666 = vmatpush1.bf16.msra.mxu0 %v18173_v43  ;;  %15830 = vmatpush1.bf16.msra.mxu1 %v18175_v36  ;;  %v18230_v43 = vcombine.high %v12718_v48, %v12722_v54  ;;  %v18232_v36 = vcombine.high %v12719_v60, %v12723_v56  ;;  %v12766_v48 = vld [vmem:[%s19326_s10 + $0x840] sm:$0xff]  ;;  %v12484_v60 = vcombine.high %v21629_v39, %v21629_v39  ;;  %v12791_v27 = vld [vmem:[%s19326_s10 + $0x908] sm:$0xff] }
 0x9b5   : > { %15667 = vmatprep.subr.bf16.mxu0 %v18182_v0  ;;  %15831 = vmatprep.subr.bf16.mxu1 %v18184_v49  ;;  %v12726_v0 = vld [vmem:[%s19326_s10 + $0x700] sm:$0xff]  ;;  %v21639_v56 = vpack.c.bf16 %v21510_v62, %v21510_v62  ;;  %v12775_v62 = vld [vmem:[%s19326_s10 + $0x888] sm:$0xff] }
 0x9b6   : > { %v12730_v49 = vld [vmem:[%s19326_s10 + $0x720] sm:$0xff] }
 0x9b7   : > { %v18237_v53 = vcombine.low %v12726_v0, %v12730_v49  ;;  %v12770_v54 = vld [vmem:[%s19326_s10 + $0x860] sm:$0xff] }
 0x9b8   : > { %15668 = vmatpush1.bf16.msra.mxu0 %v18181_v44  ;;  %15832 = vmatpush1.bf16.msra.mxu1 %v18183_v15  ;;  %v18238_v44 = vcombine.high %v12726_v0, %v12730_v49  ;;  %v18240_v15 = vcombine.high %v12727_v46, %v12731_v13  ;;  %v18278_v0 = vcombine.high %v12766_v48, %v12770_v54  ;;  %v12774_v46 = vld [vmem:[%s19326_s10 + $0x880] sm:$0xff] }
 0x9b9   : > { %15669 = vmatprep.subr.bf16.mxu0 %v18190_v59  ;;  %15833 = vmatprep.subr.bf16.mxu1 %v18192_v41  ;;  %v12734_v59 = vld [vmem:[%s19326_s10 + $0x740] sm:$0xff] }
 0x9ba   : > { %v12738_v41 = vld [vmem:[%s19326_s10 + $0x760] sm:$0xff] }
 0x9bb   : > { %v18245_v30 = vcombine.low %v12734_v59, %v12738_v41  ;;  %v12778_v13 = vld [vmem:[%s19326_s10 + $0x8a0] sm:$0xff] }
 0x9bc   : > { %15670 = vmatpush1.bf16.msra.mxu0 %v18189_v63  ;;  %15834 = vmatpush1.bf16.msra.mxu1 %v18191_v20  ;;  %v18246_v63 = vcombine.high %v12734_v59, %v12738_v41  ;;  %v18248_v20 = vcombine.high %v12735_v17, %v12739_v18  ;;  %v18286_v59 = vcombine.high %v12774_v46, %v12778_v13 }
 0x9bd   : > { %15671 = vmatprep.subr.bf16.mxu0 %v18198_v21  ;;  %15835 = vmatprep.subr.bf16.mxu1 %v18200_v22  ;;  %v12742_v21 = vld [vmem:[%s19326_s10 + $0x780] sm:$0xff] }
 0x9be   : > { %v12746_v22 = vld [vmem:[%s19326_s10 + $0x7a0] sm:$0xff] }
 0x9c0   : > { %15672 = vmatpush1.bf16.msra.mxu0 %v18197_v37  ;;  %15836 = vmatpush1.bf16.msra.mxu1 %v18199_v12  ;;  %v18247_v37 = vcombine.low %v12735_v17, %v12739_v18  ;;  %v18254_v12 = vcombine.high %v12742_v21, %v12746_v22  ;;  %v12782_v17 = vld [vmem:[%s19326_s10 + $0x8c0] sm:$0xff] }
 0x9c1   : > { %15673 = vmatprep.subr.bf16.mxu0 %v18206_v61  ;;  %15837 = vmatprep.subr.bf16.mxu1 %v18208_v25  ;;  %v18256_v61 = vcombine.high %v12743_v23, %v12747_v5  ;;  %v12750_v25 = vld [vmem:[%s19326_s10 + $0x7c0] sm:$0xff] }
 0x9c2   : > { %v12786_v18 = vld [vmem:[%s19326_s10 + $0x8e0] sm:$0xff] }
 0x9c4   : > { %15674 = vmatpush1.bf16.msra.mxu0 %v18205_v29  ;;  %15838 = vmatpush1.bf16.msra.mxu1 %v18207_v1  ;;  %v18253_v29 = vcombine.low %v12742_v21, %v12746_v22  ;;  %v18255_v1 = vcombine.low %v12743_v23, %v12747_v5  ;;  %v18294_v21 = vcombine.high %v12782_v17, %v12786_v18  ;;  %v12790_v23 = vld [vmem:[%s19326_s10 + $0x900] sm:$0xff] }
 0x9c5   : > { %15675 = vmatprep.subr.bf16.mxu0 %v18214_v28  ;;  %15839 = vmatprep.subr.bf16.mxu1 %v18216_v33  ;;  %v18262_v28 = vcombine.high %v12750_v25, %v12754_v2  ;;  %v18264_v33 = vcombine.high %v12751_v51, %v12755_v9  ;;  %v12794_v5 = vld [vmem:[%s19326_s10 + $0x920] sm:$0xff] }
 0x9c8   : > { %15676 = vmatpush1.bf16.msra.mxu0 %v18213_v52  ;;  %15840 = vmatpush1.bf16.msra.mxu1 %v18215_v16  ;;  %v18261_v52 = vcombine.low %v12750_v25, %v12754_v2  ;;  %v18263_v16 = vcombine.low %v12751_v51, %v12755_v9  ;;  %v12798_v2 = vld [vmem:[%s19326_s10 + $0x940] sm:$0xff]  ;;  %v12799_v9 = vld [vmem:[%s19326_s10 + $0x948] sm:$0xff] }
 0x9c9   : > { %15677 = vmatprep.subr.bf16.mxu0 %v18222_v40  ;;  %15841 = vmatprep.subr.bf16.mxu1 %v18224_v6  ;;  %v18270_v40 = vcombine.high %v12758_v34, %v12762_v35  ;;  %v18272_v6 = vcombine.high %v12759_v47, %v12763_v42  ;;  %v12802_v51 = vld [vmem:[%s19326_s10 + $0x960] sm:$0xff] }
 0x9cc   : > { %15678 = vmatpush1.bf16.msra.mxu0 %v18221_v50  ;;  %15842 = vmatpush1.bf16.msra.mxu1 %v18223_v31  ;;  %v12767_v50 = vld [vmem:[%s19326_s10 + $0x848] sm:$0xff] }
 0x9cd   : > { %15679 = vmatprep.subr.bf16.mxu0 %v18230_v43  ;;  %15843 = vmatprep.subr.bf16.mxu1 %v18232_v36  ;;  %v12771_v31 = vld [vmem:[%s19326_s10 + $0x868] sm:$0xff]  ;;  %v18269_v43 = vcombine.low %v12758_v34, %v12762_v35  ;;  %v18271_v36 = vcombine.low %v12759_v47, %v12763_v42  ;;  %v12806_v35 = vld [vmem:[%s19326_s10 + $0x980] sm:$0xff] }
 0x9ce   : > { %v18280_v49 = vcombine.high %v12767_v50, %v12771_v31  ;;  %v12810_v47 = vld [vmem:[%s19326_s10 + $0x9a0] sm:$0xff]  ;;  %v12807_v42 = vld [vmem:[%s19326_s10 + $0x988] sm:$0xff] }
 0x9d0   : > { %15680 = vmatpush1.bf16.msra.mxu0 %v18229_v8  ;;  %15844 = vmatpush1.bf16.msra.mxu1 %v18231_v14  ;;  %v21645_v8 = vpack.c.bf16 %v12484_v60, %v12484_v60  ;;  %v12779_v14 = vld [vmem:[%s19326_s10 + $0x8a8] sm:$0xff]  ;;  %v12818_v60 = vld [vmem:[%s19326_s10 + $0x9e0] sm:$0xff] }
 0x9d1   : > { %15681 = vmatprep.subr.bf16.mxu0 %v18238_v44  ;;  %15845 = vmatprep.subr.bf16.mxu1 %v18240_v15  ;;  %v18277_v44 = vcombine.low %v12766_v48, %v12770_v54  ;;  %v18279_v15 = vcombine.low %v12767_v50, %v12771_v31  ;;  %v18288_v41 = vcombine.high %v12775_v62, %v12779_v14  ;;  %v12814_v54 = vld [vmem:[%s19326_s10 + $0x9c0] sm:$0xff]  ;;  %v12815_v50 = vld [vmem:[%s19326_s10 + $0x9c8] sm:$0xff] }
 0x9d2   : > { %v12819_v31 = vld [vmem:[%s19326_s10 + $0x9e8] sm:$0xff] }
 0x9d4   : > { %15682 = vmatpush1.bf16.msra.mxu0 %v18237_v53  ;;  %15846 = vmatpush1.bf16.msra.mxu1 %v18239_v19  ;;  %v12783_v53 = vld [vmem:[%s19326_s10 + $0x8c8] sm:$0xff] }
 0x9d5   : > { %15683 = vmatprep.subr.bf16.mxu0 %v18246_v63  ;;  %15847 = vmatprep.subr.bf16.mxu1 %v18248_v20  ;;  %v12787_v19 = vld [vmem:[%s19326_s10 + $0x8e8] sm:$0xff]  ;;  %v18285_v63 = vcombine.low %v12774_v46, %v12778_v13  ;;  %v18287_v20 = vcombine.low %v12775_v62, %v12779_v14  ;;  %v12822_v46 = vld [vmem:[%s19326_s10 + $0xa00] sm:$0xff] }
 0x9d6   : > { %v18296_v22 = vcombine.high %v12783_v53, %v12787_v19  ;;  %v12826_v13 = vld [vmem:[%s19326_s10 + $0xa20] sm:$0xff]  ;;  %v12823_v62 = vld [vmem:[%s19326_s10 + $0xa08] sm:$0xff] }
 0x9d7   : > { %v12827_v14 = vld [vmem:[%s19326_s10 + $0xa28] sm:$0xff] }
 0x9d8   : > { %15684 = vmatpush1.bf16.msra.mxu0 %v18245_v30  ;;  %15848 = vmatpush1.bf16.msra.mxu1 %v18247_v37  ;;  %v12795_v30 = vld [vmem:[%s19326_s10 + $0x928] sm:$0xff]  ;;  %v18293_v37 = vcombine.low %v12782_v17, %v12786_v18  ;;  %v12830_v17 = vld [vmem:[%s19326_s10 + $0xa40] sm:$0xff] }
 0x9d9   : > { %15685 = vmatprep.subr.bf16.mxu0 %v18254_v12  ;;  %15849 = vmatprep.subr.bf16.mxu1 %v18256_v61  ;;  %v18295_v12 = vcombine.low %v12783_v53, %v12787_v19  ;;  %v18302_v61 = vcombine.high %v12790_v23, %v12794_v5  ;;  %v18304_v25 = vcombine.high %v12791_v27, %v12795_v30  ;;  %v12834_v18 = vld [vmem:[%s19326_s10 + $0xa60] sm:$0xff]  ;;  %v12831_v53 = vld [vmem:[%s19326_s10 + $0xa48] sm:$0xff] }
 0x9da   : > { %v12835_v19 = vld [vmem:[%s19326_s10 + $0xa68] sm:$0xff] }
 0x9dc   : > { %15686 = vmatpush1.bf16.msra.mxu0 %v18253_v29  ;;  %15850 = vmatpush1.bf16.msra.mxu1 %v18255_v1  ;;  %v12803_v29 = vld [vmem:[%s19326_s10 + $0x968] sm:$0xff]  ;;  %v18301_v1 = vcombine.low %v12790_v23, %v12794_v5  ;;  %v12838_v23 = vld [vmem:[%s19326_s10 + $0xa80] sm:$0xff] }
 0x9dd   : > { %15687 = vmatprep.subr.bf16.mxu0 %v18262_v28  ;;  %15851 = vmatprep.subr.bf16.mxu1 %v18264_v33  ;;  %v18303_v28 = vcombine.low %v12791_v27, %v12795_v30  ;;  %v18310_v33 = vcombine.high %v12798_v2, %v12802_v51  ;;  %v18312_v34 = vcombine.high %v12799_v9, %v12803_v29  ;;  %v12842_v5 = vld [vmem:[%s19326_s10 + $0xaa0] sm:$0xff]  ;;  %v12839_v27 = vld [vmem:[%s19326_s10 + $0xa88] sm:$0xff] }
 0x9de   : > { %v12843_v30 = vld [vmem:[%s19326_s10 + $0xaa8] sm:$0xff] }
 0x9e0   : > { %15688 = vmatpush1.bf16.msra.mxu0 %v18261_v52  ;;  %15852 = vmatpush1.bf16.msra.mxu1 %v18263_v16  ;;  %v12811_v52 = vld [vmem:[%s19326_s10 + $0x9a8] sm:$0xff]  ;;  %v18309_v16 = vcombine.low %v12798_v2, %v12802_v51  ;;  %v12846_v2 = vld [vmem:[%s19326_s10 + $0xac0] sm:$0xff] }
 0x9e1   : > { %15698 = vmatprep.subr.bf16.mxu0 %v18270_v40  ;;  %15862 = vmatprep.subr.bf16.mxu1 %v18272_v6  ;;  %v18311_v40 = vcombine.low %v12799_v9, %v12803_v29  ;;  %v18318_v6 = vcombine.high %v12806_v35, %v12810_v47  ;;  %v18320_v48 = vcombine.high %v12807_v42, %v12811_v52  ;;  %v12850_v51 = vld [vmem:[%s19326_s10 + $0xae0] sm:$0xff]  ;;  %v12847_v9 = vld [vmem:[%s19326_s10 + $0xac8] sm:$0xff] }
 0x9e2   : > { %v12851_v29 = vld [vmem:[%s19326_s10 + $0xae8] sm:$0xff] }
 0x9e3   : > { %15690 = vmatmul.mubr.bf16.vlgmr.msra.gmra.mrb[0].mxu0 %v21639_v56  ;;  %15854 = vmatmul.mubr.bf16.vlgmr.msra.gmra.mrb[0].mxu1 %v21639_v56 }
 0x9e4   : > { %15699 = vmatpush1.bf16.msra.mxu0 %v18269_v43  ;;  %15863 = vmatpush1.bf16.msra.mxu1 %v18271_v36  ;;  %v18317_v43 = vcombine.low %v12806_v35, %v12810_v47  ;;  %v18319_v36 = vcombine.low %v12807_v42, %v12811_v52  ;;  %v12854_v35 = vld [vmem:[%s19326_s10 + $0xb00] sm:$0xff]  ;;  %v12855_v42 = vld [vmem:[%s19326_s10 + $0xb08] sm:$0xff] }
 0x9e5   : > { %15700 = vmatprep.subr.bf16.mxu0 %v18278_v0  ;;  %15864 = vmatprep.subr.bf16.mxu1 %v18280_v49  ;;  %v18326_v0 = vcombine.high %v12814_v54, %v12818_v60  ;;  %v18328_v49 = vcombine.high %v12815_v50, %v12819_v31  ;;  %v12858_v47 = vld [vmem:[%s19326_s10 + $0xb20] sm:$0xff]  ;;  %v12859_v52 = vld [vmem:[%s19326_s10 + $0xb28] sm:$0xff] }
 0x9e6   : > { %15730 = vmatprep.mubr.bf16.mxu0 %v21645_v8  ;;  %15894 = vmatprep.mubr.bf16.mxu1 %v21645_v8 }
 0x9e8   : > { %15701 = vmatpush1.bf16.msra.mxu0 %v18277_v44  ;;  %15865 = vmatpush1.bf16.msra.mxu1 %v18279_v15  ;;  %v18325_v44 = vcombine.low %v12814_v54, %v12818_v60  ;;  %v18327_v15 = vcombine.low %v12815_v50, %v12819_v31  ;;  %v12862_v54 = vld [vmem:[%s19326_s10 + $0xb40] sm:$0xff]  ;;  %v12863_v50 = vld [vmem:[%s19326_s10 + $0xb48] sm:$0xff] }
 0x9e9   : > { %15702 = vmatprep.subr.bf16.mxu0 %v18286_v59  ;;  %15866 = vmatprep.subr.bf16.mxu1 %v18288_v41  ;;  %v18334_v59 = vcombine.high %v12822_v46, %v12826_v13  ;;  %v18336_v41 = vcombine.high %v12823_v62, %v12827_v14  ;;  %v12866_v60 = vld [vmem:[%s19326_s10 + $0xb60] sm:$0xff]  ;;  %v12867_v31 = vld [vmem:[%s19326_s10 + $0xb68] sm:$0xff] }
 0x9ec   : > { %15703 = vmatpush1.bf16.msra.mxu0 %v18285_v63  ;;  %15867 = vmatpush1.bf16.msra.mxu1 %v18287_v20  ;;  %v18333_v63 = vcombine.low %v12822_v46, %v12826_v13  ;;  %v18335_v20 = vcombine.low %v12823_v62, %v12827_v14  ;;  %v12870_v46 = vld [vmem:[%s19326_s10 + $0xb80] sm:$0xff]  ;;  %v12871_v62 = vld [vmem:[%s19326_s10 + $0xb88] sm:$0xff] }
 0x9ed   : > { %15704 = vmatprep.subr.bf16.mxu0 %v18294_v21  ;;  %15868 = vmatprep.subr.bf16.mxu1 %v18296_v22  ;;  %v18342_v21 = vcombine.high %v12830_v17, %v12834_v18  ;;  %v18344_v22 = vcombine.high %v12831_v53, %v12835_v19  ;;  %v12874_v13 = vld [vmem:[%s19326_s10 + $0xba0] sm:$0xff]  ;;  %v12875_v14 = vld [vmem:[%s19326_s10 + $0xba8] sm:$0xff] }
 0x9f0   : > { %15705 = vmatpush1.bf16.msra.mxu0 %v18293_v37  ;;  %15869 = vmatpush1.bf16.msra.mxu1 %v18295_v12  ;;  %v18341_v37 = vcombine.low %v12830_v17, %v12834_v18  ;;  %v18343_v12 = vcombine.low %v12831_v53, %v12835_v19  ;;  %v12878_v17 = vld [vmem:[%s19326_s10 + $0xbc0] sm:$0xff]  ;;  %v12469_v53 = vcombine.high %v21623_v55, %v21623_v55  ;;  %v12879_v19 = vld [vmem:[%s19326_s10 + $0xbc8] sm:$0xff] }
 0x9f1   : > { %15706 = vmatprep.subr.bf16.mxu0 %v18302_v61  ;;  %15870 = vmatprep.subr.bf16.mxu1 %v18304_v25  ;;  %v18350_v61 = vcombine.high %v12838_v23, %v12842_v5  ;;  %v18352_v25 = vcombine.high %v12839_v27, %v12843_v30  ;;  %v12882_v18 = vld [vmem:[%s19326_s10 + $0xbe0] sm:$0xff]  ;;  %v12887_v55 = vld [vmem:[%s19326_s10 + $0xc08] sm:$0xff] }
 0x9f4   : > { %15707 = vmatpush1.bf16.msra.mxu0 %v18301_v1  ;;  %15871 = vmatpush1.bf16.msra.mxu1 %v18303_v28  ;;  %v18349_v1 = vcombine.low %v12838_v23, %v12842_v5  ;;  %v18351_v28 = vcombine.low %v12839_v27, %v12843_v30  ;;  %v12886_v5 = vld [vmem:[%s19326_s10 + $0xc00] sm:$0xff]  ;;  %v21710_v30 = vrot.slane %v12469_v53, %v21438_v10 }
 0x9f5   : > { %15708 = vmatprep.subr.bf16.mxu0 %v18310_v33  ;;  %15872 = vmatprep.subr.bf16.mxu1 %v18312_v34  ;;  %v18358_v33 = vcombine.high %v12846_v2, %v12850_v51  ;;  %v18360_v34 = vcombine.high %v12847_v9, %v12851_v29  ;;  %v12890_v27 = vld [vmem:[%s19326_s10 + $0xc20] sm:$0xff] }
 0x9f8   : > { %15709 = vmatpush1.bf16.msra.mxu0 %v18309_v16  ;;  %15873 = vmatpush1.bf16.msra.mxu1 %v18311_v40  ;;  %v18357_v16 = vcombine.low %v12846_v2, %v12850_v51  ;;  %v18359_v40 = vcombine.low %v12847_v9, %v12851_v29  ;;  %v12894_v51 = vld [vmem:[%s19326_s10 + $0xc40] sm:$0xff]  ;;  %v12485_v29 = vcombine.high %v21710_v30, %v21710_v30 }
 0x9f9   : > { %15710 = vmatprep.subr.bf16.mxu0 %v18318_v6  ;;  %15874 = vmatprep.subr.bf16.mxu1 %v18320_v48  ;;  %v18366_v6 = vcombine.high %v12854_v35, %v12858_v47  ;;  %v18368_v48 = vcombine.high %v12855_v42, %v12859_v52  ;;  %v12898_v9 = vld [vmem:[%s19326_s10 + $0xc60] sm:$0xff] }
 0x9fc   : > { %15711 = vmatpush1.bf16.msra.mxu0 %v18317_v43  ;;  %15875 = vmatpush1.bf16.msra.mxu1 %v18319_v36  ;;  %v18365_v43 = vcombine.low %v12854_v35, %v12858_v47  ;;  %v18367_v36 = vcombine.low %v12855_v42, %v12859_v52  ;;  %v18406_v47 = vcombine.high %v12894_v51, %v12898_v9  ;;  %v12902_v52 = vld [vmem:[%s19326_s10 + $0xc80] sm:$0xff] }
 0x9fd   : > { %15712 = vmatprep.subr.bf16.mxu0 %v18326_v0  ;;  %15876 = vmatprep.subr.bf16.mxu1 %v18328_v49  ;;  %v18374_v0 = vcombine.high %v12862_v54, %v12866_v60  ;;  %v18376_v49 = vcombine.high %v12863_v50, %v12867_v31 }
 0xa00   : > { %15713 = vmatpush1.bf16.msra.mxu0 %v18325_v44  ;;  %15877 = vmatpush1.bf16.msra.mxu1 %v18327_v15  ;;  %v18373_v44 = vcombine.low %v12862_v54, %v12866_v60  ;;  %v18375_v15 = vcombine.low %v12863_v50, %v12867_v31  ;;  %v12910_v31 = vld [vmem:[%s19326_s10 + $0xcc0] sm:$0xff] }
 0xa01   : > { %15714 = vmatprep.subr.bf16.mxu0 %v18334_v59  ;;  %15878 = vmatprep.subr.bf16.mxu1 %v18336_v41  ;;  %v18382_v59 = vcombine.high %v12870_v46, %v12874_v13  ;;  %v18384_v41 = vcombine.high %v12871_v62, %v12875_v14 }
 0xa04   : > { %15715 = vmatpush1.bf16.msra.mxu0 %v18333_v63  ;;  %15879 = vmatpush1.bf16.msra.mxu1 %v18335_v20  ;;  %v12883_v63 = vld [vmem:[%s19326_s10 + $0xbe8] sm:$0xff]  ;;  %v18381_v20 = vcombine.low %v12870_v46, %v12874_v13 }
 0xa05   : > { %15716 = vmatprep.subr.bf16.mxu0 %v18342_v21  ;;  %15880 = vmatprep.subr.bf16.mxu1 %v18344_v22  ;;  %v18383_v21 = vcombine.low %v12871_v62, %v12875_v14  ;;  %v18390_v22 = vcombine.high %v12878_v17, %v12882_v18  ;;  %v18392_v23 = vcombine.high %v12879_v19, %v12883_v63  ;;  %v12918_v14 = vld [vmem:[%s19326_s10 + $0xd00] sm:$0xff] }
 0xa08   : > { %15717 = vmatpush1.bf16.msra.mxu0 %v18341_v37  ;;  %15881 = vmatpush1.bf16.msra.mxu1 %v18343_v12  ;;  %v12891_v37 = vld [vmem:[%s19326_s10 + $0xc28] sm:$0xff]  ;;  %v18389_v12 = vcombine.low %v12878_v17, %v12882_v18 }
 0xa09   : > { %15718 = vmatprep.subr.bf16.mxu0 %v18350_v61  ;;  %15882 = vmatprep.subr.bf16.mxu1 %v18352_v25  ;;  %v18391_v61 = vcombine.low %v12879_v19, %v12883_v63  ;;  %v18398_v25 = vcombine.high %v12886_v5, %v12890_v27  ;;  %v18400_v2 = vcombine.high %v12887_v55, %v12891_v37  ;;  %v12926_v19 = vld [vmem:[%s19326_s10 + $0xd40] sm:$0xff] }
 0xa0a   : > { %v18399_v35 = vcombine.low %v12887_v55, %v12891_v37  ;;  %v12930_v63 = vld [vmem:[%s19326_s10 + $0xd60] sm:$0xff] }
 0xa0b   : > { %v12934_v55 = vld [vmem:[%s19326_s10 + $0xd80] sm:$0xff] }
 0xa0c   : > { %15719 = vmatpush1.bf16.msra.mxu0 %v18349_v1  ;;  %15883 = vmatpush1.bf16.msra.mxu1 %v18351_v28  ;;  %v21720_v1 = vpack.c.bf16 %v21629_v39, %v21629_v39  ;;  %v12895_v28 = vld [vmem:[%s19326_s10 + $0xc48] sm:$0xff]  ;;  %v12938_v37 = vld [vmem:[%s19326_s10 + $0xda0] sm:$0xff] }
 0xa0d   : > { %15720 = vmatprep.subr.bf16.mxu0 %v18358_v33  ;;  %15884 = vmatprep.subr.bf16.mxu1 %v18360_v34  ;;  %v12899_v33 = vld [vmem:[%s19326_s10 + $0xc68] sm:$0xff]  ;;  %v18397_v34 = vcombine.low %v12886_v5, %v12890_v27  ;;  %v18438_v5 = vcombine.high %v12926_v19, %v12930_v63 }
 0xa0e   : > { %v18408_v42 = vcombine.high %v12895_v28, %v12899_v33  ;;  %v12903_v39 = vld [vmem:[%s19326_s10 + $0xc88] sm:$0xff]  ;;  %v18407_v54 = vcombine.low %v12895_v28, %v12899_v33  ;;  %v12946_v28 = vld [vmem:[%s19326_s10 + $0xde0] sm:$0xff] }
 0xa0f   : > { %v12943_v33 = vld [vmem:[%s19326_s10 + $0xdc8] sm:$0xff] }
 0xa10   : > { %15721 = vmatpush1.bf16.msra.mxu0 %v18357_v16  ;;  %15885 = vmatpush1.bf16.msra.mxu1 %v18359_v40  ;;  %v12906_v16 = vld [vmem:[%s19326_s10 + $0xca0] sm:$0xff]  ;;  %v21726_v40 = vpack.c.bf16 %v12485_v29, %v12485_v29 }
 0xa11   : > { %15722 = vmatprep.subr.bf16.mxu0 %v18366_v6  ;;  %15886 = vmatprep.subr.bf16.mxu1 %v18368_v48  ;;  %v12907_v6 = vld [vmem:[%s19326_s10 + $0xca8] sm:$0xff]  ;;  %v18405_v48 = vcombine.low %v12894_v51, %v12898_v9  ;;  %v18414_v60 = vcombine.high %v12902_v52, %v12906_v16  ;;  %v18446_v51 = vcombine.high %v12934_v55, %v12938_v37  ;;  %v12942_v29 = vld [vmem:[%s19326_s10 + $0xdc0] sm:$0xff] }
 0xa12   : > { %v18416_v50 = vcombine.high %v12903_v39, %v12907_v6  ;;  %v18415_v46 = vcombine.low %v12903_v39, %v12907_v6  ;;  %v12954_v39 = vld [vmem:[%s19326_s10 + $0xe20] sm:$0xff]  ;;  %v12951_v6 = vld [vmem:[%s19326_s10 + $0xe08] sm:$0xff] }
 0xa14   : > { %15723 = vmatpush1.bf16.msra.mxu0 %v18365_v43  ;;  %15887 = vmatpush1.bf16.msra.mxu1 %v18367_v36  ;;  %v12914_v43 = vld [vmem:[%s19326_s10 + $0xce0] sm:$0xff]  ;;  %v12911_v36 = vld [vmem:[%s19326_s10 + $0xcc8] sm:$0xff] }
 0xa15   : > { %15724 = vmatprep.subr.bf16.mxu0 %v18374_v0  ;;  %15888 = vmatprep.subr.bf16.mxu1 %v18376_v49  ;;  %v12915_v0 = vld [vmem:[%s19326_s10 + $0xce8] sm:$0xff]  ;;  %v18413_v49 = vcombine.low %v12902_v52, %v12906_v16  ;;  %v18422_v13 = vcombine.high %v12910_v31, %v12914_v43  ;;  %v12950_v16 = vld [vmem:[%s19326_s10 + $0xe00] sm:$0xff] }
 0xa16   : > { %v18424_v62 = vcombine.high %v12911_v36, %v12915_v0  ;;  %v18423_v17 = vcombine.low %v12911_v36, %v12915_v0  ;;  %v12962_v36 = vld [vmem:[%s19326_s10 + $0xe60] sm:$0xff]  ;;  %v12959_v0 = vld [vmem:[%s19326_s10 + $0xe48] sm:$0xff] }
 0xa18   : > { %15725 = vmatpush1.bf16.msra.mxu0 %v18373_v44  ;;  %15889 = vmatpush1.bf16.msra.mxu1 %v18375_v15  ;;  %v12922_v44 = vld [vmem:[%s19326_s10 + $0xd20] sm:$0xff]  ;;  %v12919_v15 = vld [vmem:[%s19326_s10 + $0xd08] sm:$0xff] }
 0xa19   : > { %15726 = vmatprep.subr.bf16.mxu0 %v18382_v59  ;;  %15890 = vmatprep.subr.bf16.mxu1 %v18384_v41  ;;  %v12923_v59 = vld [vmem:[%s19326_s10 + $0xd28] sm:$0xff]  ;;  %v18421_v41 = vcombine.low %v12910_v31, %v12914_v43  ;;  %v18430_v18 = vcombine.high %v12918_v14, %v12922_v44  ;;  %v12958_v43 = vld [vmem:[%s19326_s10 + $0xe40] sm:$0xff] }
 0xa1a   : > { %v18432_v53 = vcombine.high %v12919_v15, %v12923_v59 }
 0xa1c   : > { %15727 = vmatpush1.bf16.msra.mxu0 %v18381_v20  ;;  %15891 = vmatpush1.bf16.msra.mxu1 %v18383_v21  ;;  %v12927_v20 = vld [vmem:[%s19326_s10 + $0xd48] sm:$0xff] }
 0xa1d   : > { %15728 = vmatprep.subr.bf16.mxu0 %v18390_v22  ;;  %15892 = vmatprep.subr.bf16.mxu1 %v18392_v23  ;;  %v12931_v21 = vld [vmem:[%s19326_s10 + $0xd68] sm:$0xff]  ;;  %v18429_v22 = vcombine.low %v12918_v14, %v12922_v44  ;;  %v18431_v23 = vcombine.low %v12919_v15, %v12923_v59  ;;  %v12966_v44 = vld [vmem:[%s19326_s10 + $0xe80] sm:$0xff] }
 0xa1e   : > { %v18440_v27 = vcombine.high %v12927_v20, %v12931_v21  ;;  %v12970_v15 = vld [vmem:[%s19326_s10 + $0xea0] sm:$0xff]  ;;  %v12967_v59 = vld [vmem:[%s19326_s10 + $0xe88] sm:$0xff] }
 0xa20   : > { %15729 = vmatpush1.bf16.msra.mxu0 %v18389_v12  ;;  %15893 = vmatpush1.bf16.msra.mxu1 %v18391_v61  ;;  %v12935_v12 = vld [vmem:[%s19326_s10 + $0xd88] sm:$0xff] }
 0xa21   : > { %15739 = vmatprep.subr.bf16.mxu0 %v18398_v25  ;;  %15903 = vmatprep.subr.bf16.mxu1 %v18400_v2  ;;  %v12939_v61 = vld [vmem:[%s19326_s10 + $0xda8] sm:$0xff]  ;;  %v18437_v25 = vcombine.low %v12926_v19, %v12930_v63  ;;  %v18439_v2 = vcombine.low %v12927_v20, %v12931_v21  ;;  %v12974_v63 = vld [vmem:[%s19326_s10 + $0xec0] sm:$0xff] }
 0xa22   : > { %v18448_v9 = vcombine.high %v12935_v12, %v12939_v61  ;;  %v12978_v20 = vld [vmem:[%s19326_s10 + $0xee0] sm:$0xff]  ;;  %v12975_v21 = vld [vmem:[%s19326_s10 + $0xec8] sm:$0xff] }
 0xa23   : > { %15731 = vmatmul.mubr.bf16.vlgmr.msra.gmra.mrb[0].mxu0 %v21720_v1  ;;  %15895 = vmatmul.mubr.bf16.vlgmr.msra.gmra.mrb[0].mxu1 %v21720_v1 }
 0xa24   : > { %15740 = vmatpush1.bf16.msra.mxu0 %v18397_v34  ;;  %15904 = vmatpush1.bf16.msra.mxu1 %v18399_v35  ;;  %v12947_v34 = vld [vmem:[%s19326_s10 + $0xde8] sm:$0xff]  ;;  %v18445_v35 = vcombine.low %v12934_v55, %v12938_v37  ;;  %v12982_v37 = vld [vmem:[%s19326_s10 + $0xf00] sm:$0xff] }
 0xa25   : > { %15741 = vmatprep.subr.bf16.mxu0 %v18406_v47  ;;  %15905 = vmatprep.subr.bf16.mxu1 %v18408_v42  ;;  %v18447_v47 = vcombine.low %v12935_v12, %v12939_v61  ;;  %v18454_v42 = vcombine.high %v12942_v29, %v12946_v28  ;;  %v18456_v52 = vcombine.high %v12943_v33, %v12947_v34  ;;  %v12986_v12 = vld [vmem:[%s19326_s10 + $0xf20] sm:$0xff]  ;;  %v12983_v61 = vld [vmem:[%s19326_s10 + $0xf08] sm:$0xff] }
 0xa26   : > { %15771 = vmatprep.mubr.bf16.mxu0 %v21726_v40  ;;  %15935 = vmatprep.mubr.bf16.mxu1 %v21726_v40 }
 0xa28   : > { %15742 = vmatpush1.bf16.msra.mxu0 %v18405_v48  ;;  %15906 = vmatpush1.bf16.msra.mxu1 %v18407_v54  ;;  %v12955_v48 = vld [vmem:[%s19326_s10 + $0xe28] sm:$0xff]  ;;  %v18453_v54 = vcombine.low %v12942_v29, %v12946_v28  ;;  %v12990_v28 = vld [vmem:[%s19326_s10 + $0xf40] sm:$0xff] }
 0xa29   : > { %15743 = vmatprep.subr.bf16.mxu0 %v18414_v60  ;;  %15907 = vmatprep.subr.bf16.mxu1 %v18416_v50  ;;  %v18455_v60 = vcombine.low %v12943_v33, %v12947_v34  ;;  %v18462_v50 = vcombine.high %v12950_v16, %v12954_v39  ;;  %v18464_v31 = vcombine.high %v12951_v6, %v12955_v48  ;;  %v12994_v33 = vld [vmem:[%s19326_s10 + $0xf60] sm:$0xff]  ;;  %v12991_v34 = vld [vmem:[%s19326_s10 + $0xf48] sm:$0xff] }
 0xa2c   : > { %15744 = vmatpush1.bf16.msra.mxu0 %v18413_v49  ;;  %15908 = vmatpush1.bf16.msra.mxu1 %v18415_v46  ;;  %v12963_v49 = vld [vmem:[%s19326_s10 + $0xe68] sm:$0xff]  ;;  %v18461_v46 = vcombine.low %v12950_v16, %v12954_v39  ;;  %v12998_v39 = vld [vmem:[%s19326_s10 + $0xf80] sm:$0xff] }
 0xa2d   : > { %15745 = vmatprep.subr.bf16.mxu0 %v18422_v13  ;;  %15909 = vmatprep.subr.bf16.mxu1 %v18424_v62  ;;  %v18463_v13 = vcombine.low %v12951_v6, %v12955_v48  ;;  %v18470_v62 = vcombine.high %v12958_v43, %v12962_v36  ;;  %v18472_v14 = vcombine.high %v12959_v0, %v12963_v49  ;;  %v13002_v6 = vld [vmem:[%s19326_s10 + $0xfa0] sm:$0xff]  ;;  %v12999_v48 = vld [vmem:[%s19326_s10 + $0xf88] sm:$0xff] }
 0xa30   : > { %15746 = vmatpush1.bf16.msra.mxu0 %v18421_v41  ;;  %15910 = vmatpush1.bf16.msra.mxu1 %v18423_v17  ;;  %v12971_v41 = vld [vmem:[%s19326_s10 + $0xea8] sm:$0xff]  ;;  %v18469_v17 = vcombine.low %v12958_v43, %v12962_v36  ;;  %v13006_v36 = vld [vmem:[%s19326_s10 + $0xfc0] sm:$0xff] }
 0xa31   : > { %15747 = vmatprep.subr.bf16.mxu0 %v18430_v18  ;;  %15911 = vmatprep.subr.bf16.mxu1 %v18432_v53  ;;  %v18471_v18 = vcombine.low %v12959_v0, %v12963_v49  ;;  %v18478_v53 = vcombine.high %v12966_v44, %v12970_v15  ;;  %v18480_v19 = vcombine.high %v12967_v59, %v12971_v41  ;;  %v13010_v0 = vld [vmem:[%s19326_s10 + $0xfe0] sm:$0xff]  ;;  %v13007_v49 = vld [vmem:[%s19326_s10 + $0xfc8] sm:$0xff] }
 0xa34   : > { %15748 = vmatpush1.bf16.msra.mxu0 %v18429_v22  ;;  %15912 = vmatpush1.bf16.msra.mxu1 %v18431_v23  ;;  %v12979_v22 = vld [vmem:[%s19326_s10 + $0xee8] sm:$0xff]  ;;  %v18477_v23 = vcombine.low %v12966_v44, %v12970_v15  ;;  %v12504_v15 = vld [vmem:[%s19326_s10 + $0x10] sm:$0xff] }
 0xa35   : > { %15749 = vmatprep.subr.bf16.mxu0 %v18438_v5  ;;  %15913 = vmatprep.subr.bf16.mxu1 %v18440_v27  ;;  %v18479_v5 = vcombine.low %v12967_v59, %v12971_v41  ;;  %v18486_v27 = vcombine.high %v12974_v63, %v12978_v20  ;;  %v18488_v55 = vcombine.high %v12975_v21, %v12979_v22  ;;  %v12508_v59 = vld [vmem:[%s19326_s10 + $0x30] sm:$0xff]  ;;  %v12505_v41 = vld [vmem:[%s19326_s10 + $0x18] sm:$0xff] }
 0xa38   : > { %15750 = vmatpush1.bf16.msra.mxu0 %v18437_v25  ;;  %15914 = vmatpush1.bf16.msra.mxu1 %v18439_v2  ;;  %v12987_v25 = vld [vmem:[%s19326_s10 + $0xf28] sm:$0xff]  ;;  %v18485_v2 = vcombine.low %v12974_v63, %v12978_v20  ;;  %v12512_v20 = vld [vmem:[%s19326_s10 + $0x50] sm:$0xff] }
 0xa39   : > { %15751 = vmatprep.subr.bf16.mxu0 %v18446_v51  ;;  %15915 = vmatprep.subr.bf16.mxu1 %v18448_v9  ;;  %v18487_v51 = vcombine.low %v12975_v21, %v12979_v22  ;;  %v18494_v9 = vcombine.high %v12982_v37, %v12986_v12  ;;  %v18496_v29 = vcombine.high %v12983_v61, %v12987_v25  ;;  %v12516_v21 = vld [vmem:[%s19326_s10 + $0x70] sm:$0xff] }
 0xa3a   : > { %v21794_v22 = vpack.c.bf16 %v21710_v30, %v21710_v30  ;;  %v12521_v30 = vld [vmem:[%s19326_s10 + $0x98] sm:$0xff] }
 0xa3c   : > { %15752 = vmatpush1.bf16.msra.mxu0 %v18445_v35  ;;  %15916 = vmatpush1.bf16.msra.mxu1 %v18447_v47  ;;  %v12995_v35 = vld [vmem:[%s19326_s10 + $0xf68] sm:$0xff]  ;;  %v18493_v47 = vcombine.low %v12982_v37, %v12986_v12  ;;  %v18026_v37 = vcombine.high %v12512_v20, %v12516_v21 }
 0xa3d   : > { %15753 = vmatprep.subr.bf16.mxu0 %v18454_v42  ;;  %15917 = vmatprep.subr.bf16.mxu1 %v18456_v52  ;;  %v18495_v42 = vcombine.low %v12983_v61, %v12987_v25  ;;  %v18502_v52 = vcombine.high %v12990_v28, %v12994_v33  ;;  %v18504_v16 = vcombine.high %v12991_v34, %v12995_v35  ;;  %v12520_v61 = vld [vmem:[%s19326_s10 + $0x90] sm:$0xff] }
 0xa3e   : > { %v12524_v25 = vld [vmem:[%s19326_s10 + $0xb0] sm:$0xff] }
 0xa40   : > { %15754 = vmatpush1.bf16.msra.mxu0 %v18453_v54  ;;  %15918 = vmatpush1.bf16.msra.mxu1 %v18455_v60  ;;  %v13003_v54 = vld [vmem:[%s19326_s10 + $0xfa8] sm:$0xff]  ;;  %v18501_v60 = vcombine.low %v12990_v28, %v12994_v33  ;;  %v12528_v33 = vld [vmem:[%s19326_s10 + $0xd0] sm:$0xff] }
 0xa41   : > { %15755 = vmatprep.subr.bf16.mxu0 %v18462_v50  ;;  %15919 = vmatprep.subr.bf16.mxu1 %v18464_v31  ;;  %v18503_v50 = vcombine.low %v12991_v34, %v12995_v35  ;;  %v18510_v31 = vcombine.high %v12998_v39, %v13002_v6  ;;  %v18512_v43 = vcombine.high %v12999_v48, %v13003_v54  ;;  %v12532_v34 = vld [vmem:[%s19326_s10 + $0xf0] sm:$0xff]  ;;  %v12529_v35 = vld [vmem:[%s19326_s10 + $0xd8] sm:$0xff] }
 0xa44   : > { %15756 = vmatpush1.bf16.msra.mxu0 %v18461_v46  ;;  %15920 = vmatpush1.bf16.msra.mxu1 %v18463_v13  ;;  %v13011_v46 = vld [vmem:[%s19326_s10 + $0xfe8] sm:$0xff]  ;;  %v18509_v13 = vcombine.low %v12998_v39, %v13002_v6  ;;  %v12536_v6 = vld [vmem:[%s19326_s10 + $0x110] sm:$0xff] }
 0xa45   : > { %15757 = vmatprep.subr.bf16.mxu0 %v18470_v62  ;;  %15921 = vmatprep.subr.bf16.mxu1 %v18472_v14  ;;  %v18511_v62 = vcombine.low %v12999_v48, %v13003_v54  ;;  %v18518_v14 = vcombine.high %v13006_v36, %v13010_v0  ;;  %v18520_v44 = vcombine.high %v13007_v49, %v13011_v46  ;;  %v12540_v48 = vld [vmem:[%s19326_s10 + $0x130] sm:$0xff]  ;;  %v12537_v54 = vld [vmem:[%s19326_s10 + $0x118] sm:$0xff] }
 0xa48   : > { %15758 = vmatpush1.bf16.msra.mxu0 %v18469_v17  ;;  %15922 = vmatpush1.bf16.msra.mxu1 %v18471_v18  ;;  %v12509_v17 = vld [vmem:[%s19326_s10 + $0x38] sm:$0xff]  ;;  %v18517_v18 = vcombine.low %v13006_v36, %v13010_v0  ;;  %v12544_v36 = vld [vmem:[%s19326_s10 + $0x150] sm:$0xff] }
 0xa49   : > { %15759 = vmatprep.subr.bf16.mxu0 %v18478_v53  ;;  %15923 = vmatprep.subr.bf16.mxu1 %v18480_v19  ;;  %v18519_v53 = vcombine.low %v13007_v49, %v13011_v46  ;;  %v18018_v19 = vcombine.high %v12504_v15, %v12508_v59  ;;  %v18020_v63 = vcombine.high %v12505_v41, %v12509_v17  ;;  %v12548_v0 = vld [vmem:[%s19326_s10 + $0x170] sm:$0xff]  ;;  %v12545_v49 = vld [vmem:[%s19326_s10 + $0x158] sm:$0xff] }
 0xa4a   : > { %v12549_v46 = vld [vmem:[%s19326_s10 + $0x178] sm:$0xff] }
 0xa4c   : > { %15760 = vmatpush1.bf16.msra.mxu0 %v18477_v23  ;;  %15924 = vmatpush1.bf16.msra.mxu1 %v18479_v5  ;;  %v12513_v23 = vld [vmem:[%s19326_s10 + $0x58] sm:$0xff] }
 0xa4d   : > { %15761 = vmatprep.subr.bf16.mxu0 %v18486_v27  ;;  %15925 = vmatprep.subr.bf16.mxu1 %v18488_v55  ;;  %v12517_v5 = vld [vmem:[%s19326_s10 + $0x78] sm:$0xff]  ;;  %v18017_v27 = vcombine.low %v12504_v15, %v12508_v59  ;;  %v18019_v55 = vcombine.low %v12505_v41, %v12509_v17  ;;  %v12552_v15 = vld [vmem:[%s19326_s10 + $0x190] sm:$0xff] }
 0xa4e   : > { %v18028_v12 = vcombine.high %v12513_v23, %v12517_v5  ;;  %v12556_v59 = vld [vmem:[%s19326_s10 + $0x1b0] sm:$0xff]  ;;  %v12553_v41 = vld [vmem:[%s19326_s10 + $0x198] sm:$0xff] }
 0xa4f   : > { %v12557_v17 = vld [vmem:[%s19326_s10 + $0x1b8] sm:$0xff] }
 0xa50   : > { %15762 = vmatpush1.bf16.msra.mxu0 %v18485_v2  ;;  %15926 = vmatpush1.bf16.msra.mxu1 %v18487_v51  ;;  %v12525_v2 = vld [vmem:[%s19326_s10 + $0xb8] sm:$0xff]  ;;  %v18025_v51 = vcombine.low %v12512_v20, %v12516_v21  ;;  %v12560_v20 = vld [vmem:[%s19326_s10 + $0x1d0] sm:$0xff] }
 0xa51   : > { %15763 = vmatprep.subr.bf16.mxu0 %v18494_v9  ;;  %15927 = vmatprep.subr.bf16.mxu1 %v18496_v29  ;;  %v18027_v9 = vcombine.low %v12513_v23, %v12517_v5  ;;  %v18034_v29 = vcombine.high %v12520_v61, %v12524_v25  ;;  %v18036_v28 = vcombine.high %v12521_v30, %v12525_v2  ;;  %v12564_v21 = vld [vmem:[%s19326_s10 + $0x1f0] sm:$0xff]  ;;  %v12561_v23 = vld [vmem:[%s19326_s10 + $0x1d8] sm:$0xff] }
 0xa52   : > { %v12565_v5 = vld [vmem:[%s19326_s10 + $0x1f8] sm:$0xff] }
 0xa54   : > { %15764 = vmatpush1.bf16.msra.mxu0 %v18493_v47  ;;  %15928 = vmatpush1.bf16.msra.mxu1 %v18495_v42  ;;  %v12533_v47 = vld [vmem:[%s19326_s10 + $0xf8] sm:$0xff]  ;;  %v18033_v42 = vcombine.low %v12520_v61, %v12524_v25  ;;  %v12568_v61 = vld [vmem:[%s19326_s10 + $0x210] sm:$0xff] }
 0xa55   : > { %15765 = vmatprep.subr.bf16.mxu0 %v18502_v52  ;;  %15929 = vmatprep.subr.bf16.mxu1 %v18504_v16  ;;  %v18035_v52 = vcombine.low %v12521_v30, %v12525_v2  ;;  %v18042_v16 = vcombine.high %v12528_v33, %v12532_v34  ;;  %v18044_v39 = vcombine.high %v12529_v35, %v12533_v47  ;;  %v12572_v25 = vld [vmem:[%s19326_s10 + $0x230] sm:$0xff]  ;;  %v12569_v30 = vld [vmem:[%s19326_s10 + $0x218] sm:$0xff] }
 0xa56   : > { %v12573_v2 = vld [vmem:[%s19326_s10 + $0x238] sm:$0xff] }
 0xa58   : > { %15766 = vmatpush1.bf16.msra.mxu0 %v18501_v60  ;;  %15930 = vmatpush1.bf16.msra.mxu1 %v18503_v50  ;;  %v12541_v60 = vld [vmem:[%s19326_s10 + $0x138] sm:$0xff]  ;;  %v18041_v50 = vcombine.low %v12528_v33, %v12532_v34  ;;  %v12576_v33 = vld [vmem:[%s19326_s10 + $0x250] sm:$0xff] }
 0xa59   : > { %15767 = vmatprep.subr.bf16.mxu0 %v18510_v31  ;;  %15931 = vmatprep.subr.bf16.mxu1 %v18512_v43  ;;  %v18050_v31 = vcombine.high %v12536_v6, %v12540_v48  ;;  %v18052_v43 = vcombine.high %v12537_v54, %v12541_v60  ;;  %v12580_v34 = vld [vmem:[%s19326_s10 + $0x270] sm:$0xff] }
 0xa5c   : > { %15768 = vmatpush1.bf16.msra.mxu0 %v18509_v13  ;;  %15932 = vmatpush1.bf16.msra.mxu1 %v18511_v62  ;;  %v18049_v13 = vcombine.low %v12536_v6, %v12540_v48  ;;  %v18051_v62 = vcombine.low %v12537_v54, %v12541_v60  ;;  %v12584_v6 = vld [vmem:[%s19326_s10 + $0x290] sm:$0xff]  ;;  %v12585_v54 = vld [vmem:[%s19326_s10 + $0x298] sm:$0xff] }
 0xa5d   : > { %15769 = vmatprep.subr.bf16.mxu0 %v18518_v14  ;;  %15933 = vmatprep.subr.bf16.mxu1 %v18520_v44  ;;  %v18058_v14 = vcombine.high %v12544_v36, %v12548_v0  ;;  %v18060_v44 = vcombine.high %v12545_v49, %v12549_v46  ;;  %v12588_v48 = vld [vmem:[%s19326_s10 + $0x2b0] sm:$0xff]  ;;  %v12589_v60 = vld [vmem:[%s19326_s10 + $0x2b8] sm:$0xff] }
 0xa60   : > { %15770 = vmatpush1.bf16.msra.mxu0 %v18517_v18  ;;  %15934 = vmatpush1.bf16.msra.mxu1 %v18519_v53  ;;  %v18057_v18 = vcombine.low %v12544_v36, %v12548_v0  ;;  %v18059_v53 = vcombine.low %v12545_v49, %v12549_v46  ;;  %v12592_v36 = vld [vmem:[%s19326_s10 + $0x2d0] sm:$0xff]  ;;  %v12593_v49 = vld [vmem:[%s19326_s10 + $0x2d8] sm:$0xff] }
 0xa61   : > { %15944 = vmatprep.subr.bf16.mxu0 %v18018_v19  ;;  %16108 = vmatprep.subr.bf16.mxu1 %v18020_v63  ;;  %v18066_v19 = vcombine.high %v12552_v15, %v12556_v59  ;;  %v18068_v63 = vcombine.high %v12553_v41, %v12557_v17  ;;  %v12596_v0 = vld [vmem:[%s19326_s10 + $0x2f0] sm:$0xff]  ;;  %v12597_v46 = vld [vmem:[%s19326_s10 + $0x2f8] sm:$0xff] }
 0xa63   : > { %15772 = vmatmul.mubr.bf16.vlgmr.msra.gmra.mrb[0].mxu0 %v21794_v22  ;;  %15936 = vmatmul.mubr.bf16.vlgmr.msra.gmra.mrb[0].mxu1 %v21794_v22 }
 0xa64   : > { %15945 = vmatpush1.bf16.msra.mxu0 %v18017_v27  ;;  %16109 = vmatpush1.bf16.msra.mxu1 %v18019_v55  ;;  %v18065_v27 = vcombine.low %v12552_v15, %v12556_v59  ;;  %v18067_v55 = vcombine.low %v12553_v41, %v12557_v17  ;;  %v12600_v15 = vld [vmem:[%s19326_s10 + $0x310] sm:$0xff]  ;;  %v12601_v41 = vld [vmem:[%s19326_s10 + $0x318] sm:$0xff] }
 0xa65   : > { %15946 = vmatprep.subr.bf16.mxu0 %v18026_v37  ;;  %16110 = vmatprep.subr.bf16.mxu1 %v18028_v12  ;;  %v18074_v37 = vcombine.high %v12560_v20, %v12564_v21  ;;  %v18076_v12 = vcombine.high %v12561_v23, %v12565_v5  ;;  %v12604_v59 = vld [vmem:[%s19326_s10 + $0x330] sm:$0xff]  ;;  %v12605_v17 = vld [vmem:[%s19326_s10 + $0x338] sm:$0xff] }
 0xa66   : > { %15976 = vmatprep.mubr.bf16.mxu0 %v21487_v26  ;;  %16140 = vmatprep.mubr.bf16.mxu1 %v21487_v26  ;;  %v18043_v26 = vcombine.low %v12529_v35, %v12533_v47  ;;  %v12577_v35 = vld [vmem:[%s19326_s10 + $0x258] sm:$0xff] }
 0xa67   : > { %v12581_v47 = vld [vmem:[%s19326_s10 + $0x278] sm:$0xff] }
 0xa68   : > { %15947 = vmatpush1.bf16.msra.mxu0 %v18025_v51  ;;  %16111 = vmatpush1.bf16.msra.mxu1 %v18027_v9  ;;  %v18073_v51 = vcombine.low %v12560_v20, %v12564_v21  ;;  %v18075_v9 = vcombine.low %v12561_v23, %v12565_v5  ;;  %v12608_v20 = vld [vmem:[%s19326_s10 + $0x350] sm:$0xff]  ;;  %v12609_v23 = vld [vmem:[%s19326_s10 + $0x358] sm:$0xff] }
 0xa69   : > { %15948 = vmatprep.subr.bf16.mxu0 %v18034_v29  ;;  %16112 = vmatprep.subr.bf16.mxu1 %v18036_v28  ;;  %v18082_v29 = vcombine.high %v12568_v61, %v12572_v25  ;;  %v18084_v28 = vcombine.high %v12569_v30, %v12573_v2  ;;  %v12612_v21 = vld [vmem:[%s19326_s10 + $0x370] sm:$0xff]  ;;  %v12613_v5 = vld [vmem:[%s19326_s10 + $0x378] sm:$0xff] }
 0xa6c   : > { %15949 = vmatpush1.bf16.msra.mxu0 %v18033_v42  ;;  %16113 = vmatpush1.bf16.msra.mxu1 %v18035_v52  ;;  %v18081_v42 = vcombine.low %v12568_v61, %v12572_v25  ;;  %v18083_v52 = vcombine.low %v12569_v30, %v12573_v2  ;;  %v12616_v61 = vld [vmem:[%s19326_s10 + $0x390] sm:$0xff]  ;;  %v12617_v30 = vld [vmem:[%s19326_s10 + $0x398] sm:$0xff] }
 0xa6d   : > { %15950 = vmatprep.subr.bf16.mxu0 %v18042_v16  ;;  %16114 = vmatprep.subr.bf16.mxu1 %v18044_v39  ;;  %v18090_v16 = vcombine.high %v12576_v33, %v12580_v34  ;;  %v18092_v39 = vcombine.high %v12577_v35, %v12581_v47  ;;  %v12620_v25 = vld [vmem:[%s19326_s10 + $0x3b0] sm:$0xff]  ;;  %v12621_v2 = vld [vmem:[%s19326_s10 + $0x3b8] sm:$0xff] }
 0xa70   : > { %15951 = vmatpush1.bf16.msra.mxu0 %v18041_v50  ;;  %16115 = vmatpush1.bf16.msra.mxu1 %v18043_v26  ;;  %v18089_v50 = vcombine.low %v12576_v33, %v12580_v34  ;;  %v18091_v26 = vcombine.low %v12577_v35, %v12581_v47  ;;  %v12624_v33 = vld [vmem:[%s19326_s10 + $0x3d0] sm:$0xff]  ;;  %v12625_v35 = vld [vmem:[%s19326_s10 + $0x3d8] sm:$0xff] }
 0xa71   : > { %15952 = vmatprep.subr.bf16.mxu0 %v18050_v31  ;;  %16116 = vmatprep.subr.bf16.mxu1 %v18052_v43  ;;  %v18098_v31 = vcombine.high %v12584_v6, %v12588_v48  ;;  %v18100_v43 = vcombine.high %v12585_v54, %v12589_v60  ;;  %v12628_v34 = vld [vmem:[%s19326_s10 + $0x3f0] sm:$0xff]  ;;  %v12629_v47 = vld [vmem:[%s19326_s10 + $0x3f8] sm:$0xff] }
 0xa74   : > { %15953 = vmatpush1.bf16.msra.mxu0 %v18049_v13  ;;  %16117 = vmatpush1.bf16.msra.mxu1 %v18051_v62  ;;  %v18097_v13 = vcombine.low %v12584_v6, %v12588_v48  ;;  %v18099_v62 = vcombine.low %v12585_v54, %v12589_v60  ;;  %v12632_v6 = vld [vmem:[%s19326_s10 + $0x410] sm:$0xff]  ;;  %v12633_v54 = vld [vmem:[%s19326_s10 + $0x418] sm:$0xff] }
 0xa75   : > { %15954 = vmatprep.subr.bf16.mxu0 %v18058_v14  ;;  %16118 = vmatprep.subr.bf16.mxu1 %v18060_v44  ;;  %v18106_v14 = vcombine.high %v12592_v36, %v12596_v0  ;;  %v18108_v44 = vcombine.high %v12593_v49, %v12597_v46  ;;  %v12636_v48 = vld [vmem:[%s19326_s10 + $0x430] sm:$0xff]  ;;  %v12637_v60 = vld [vmem:[%s19326_s10 + $0x438] sm:$0xff] }
 0xa78   : > { %15955 = vmatpush1.bf16.msra.mxu0 %v18057_v18  ;;  %16119 = vmatpush1.bf16.msra.mxu1 %v18059_v53  ;;  %v18105_v18 = vcombine.low %v12592_v36, %v12596_v0  ;;  %v18107_v53 = vcombine.low %v12593_v49, %v12597_v46  ;;  %v12640_v36 = vld [vmem:[%s19326_s10 + $0x450] sm:$0xff]  ;;  %v12641_v49 = vld [vmem:[%s19326_s10 + $0x458] sm:$0xff] }
 0xa79   : > { %15956 = vmatprep.subr.bf16.mxu0 %v18066_v19  ;;  %16120 = vmatprep.subr.bf16.mxu1 %v18068_v63  ;;  %v18114_v19 = vcombine.high %v12600_v15, %v12604_v59  ;;  %v18116_v63 = vcombine.high %v12601_v41, %v12605_v17  ;;  %v12644_v0 = vld [vmem:[%s19326_s10 + $0x470] sm:$0xff]  ;;  %v12645_v46 = vld [vmem:[%s19326_s10 + $0x478] sm:$0xff] }
 0xa7c   : > { %15957 = vmatpush1.bf16.msra.mxu0 %v18065_v27  ;;  %16121 = vmatpush1.bf16.msra.mxu1 %v18067_v55  ;;  %v18113_v27 = vcombine.low %v12600_v15, %v12604_v59  ;;  %v18115_v55 = vcombine.low %v12601_v41, %v12605_v17  ;;  %v12648_v15 = vld [vmem:[%s19326_s10 + $0x490] sm:$0xff]  ;;  %v12649_v41 = vld [vmem:[%s19326_s10 + $0x498] sm:$0xff] }
 0xa7d   : > { %15958 = vmatprep.subr.bf16.mxu0 %v18074_v37  ;;  %16122 = vmatprep.subr.bf16.mxu1 %v18076_v12  ;;  %v18122_v37 = vcombine.high %v12608_v20, %v12612_v21  ;;  %v18124_v12 = vcombine.high %v12609_v23, %v12613_v5  ;;  %v12652_v59 = vld [vmem:[%s19326_s10 + $0x4b0] sm:$0xff]  ;;  %v12653_v17 = vld [vmem:[%s19326_s10 + $0x4b8] sm:$0xff] }
 0xa80   : > { %15959 = vmatpush1.bf16.msra.mxu0 %v18073_v51  ;;  %16123 = vmatpush1.bf16.msra.mxu1 %v18075_v9  ;;  %v18121_v51 = vcombine.low %v12608_v20, %v12612_v21  ;;  %v18123_v9 = vcombine.low %v12609_v23, %v12613_v5  ;;  %v12656_v20 = vld [vmem:[%s19326_s10 + $0x4d0] sm:$0xff]  ;;  %v12657_v23 = vld [vmem:[%s19326_s10 + $0x4d8] sm:$0xff] }
 0xa81   : > { %15960 = vmatprep.subr.bf16.mxu0 %v18082_v29  ;;  %16124 = vmatprep.subr.bf16.mxu1 %v18084_v28  ;;  %v18130_v29 = vcombine.high %v12616_v61, %v12620_v25  ;;  %v18132_v28 = vcombine.high %v12617_v30, %v12621_v2  ;;  %v12660_v21 = vld [vmem:[%s19326_s10 + $0x4f0] sm:$0xff]  ;;  %v12661_v5 = vld [vmem:[%s19326_s10 + $0x4f8] sm:$0xff] }
 0xa84   : > { %15961 = vmatpush1.bf16.msra.mxu0 %v18081_v42  ;;  %16125 = vmatpush1.bf16.msra.mxu1 %v18083_v52  ;;  %v18129_v42 = vcombine.low %v12616_v61, %v12620_v25  ;;  %v18131_v52 = vcombine.low %v12617_v30, %v12621_v2  ;;  %v12668_v61 = vld [vmem:[%s19326_s10 + $0x530] sm:$0xff]  ;;  %v12665_v25 = vld [vmem:[%s19326_s10 + $0x518] sm:$0xff]  ;;  %v18169_v2 = vcombine.low %v12656_v20, %v12660_v21 }
 0xa85   : > { %15962 = vmatprep.subr.bf16.mxu0 %v18090_v16  ;;  %16126 = vmatprep.subr.bf16.mxu1 %v18092_v39  ;;  %v18138_v16 = vcombine.high %v12624_v33, %v12628_v34  ;;  %v18140_v39 = vcombine.high %v12625_v35, %v12629_v47  ;;  %v12669_v30 = vld [vmem:[%s19326_s10 + $0x538] sm:$0xff] }
 0xa88   : > { %15963 = vmatpush1.bf16.msra.mxu0 %v18089_v50  ;;  %16127 = vmatpush1.bf16.msra.mxu1 %v18091_v26  ;;  %v18137_v50 = vcombine.low %v12624_v33, %v12628_v34  ;;  %v18139_v26 = vcombine.low %v12625_v35, %v12629_v47  ;;  %v12673_v33 = vld [vmem:[%s19326_s10 + $0x558] sm:$0xff]  ;;  %v18179_v47 = vcombine.low %v12665_v25, %v12669_v30 }
 0xa89   : > { %15964 = vmatprep.subr.bf16.mxu0 %v18098_v31  ;;  %16128 = vmatprep.subr.bf16.mxu1 %v18100_v43  ;;  %v18146_v31 = vcombine.high %v12632_v6, %v12636_v48  ;;  %v18148_v43 = vcombine.high %v12633_v54, %v12637_v60  ;;  %v12677_v34 = vld [vmem:[%s19326_s10 + $0x578] sm:$0xff] }
 0xa8c   : > { %15965 = vmatpush1.bf16.msra.mxu0 %v18097_v13  ;;  %16129 = vmatpush1.bf16.msra.mxu1 %v18099_v62  ;;  %v18145_v13 = vcombine.low %v12632_v6, %v12636_v48  ;;  %v18147_v62 = vcombine.low %v12633_v54, %v12637_v60  ;;  %v12681_v6 = vld [vmem:[%s19326_s10 + $0x598] sm:$0xff]  ;;  %v18187_v60 = vcombine.low %v12673_v33, %v12677_v34 }
 0xa8d   : > { %15966 = vmatprep.subr.bf16.mxu0 %v18106_v14  ;;  %16130 = vmatprep.subr.bf16.mxu1 %v18108_v44  ;;  %v18154_v14 = vcombine.high %v12640_v36, %v12644_v0  ;;  %v18156_v44 = vcombine.high %v12641_v49, %v12645_v46  ;;  %v12685_v48 = vld [vmem:[%s19326_s10 + $0x5b8] sm:$0xff] }
 0xa90   : > { %15967 = vmatpush1.bf16.msra.mxu0 %v18105_v18  ;;  %16131 = vmatpush1.bf16.msra.mxu1 %v18107_v53  ;;  %v18153_v18 = vcombine.low %v12640_v36, %v12644_v0  ;;  %v18155_v53 = vcombine.low %v12641_v49, %v12645_v46  ;;  %v12689_v36 = vld [vmem:[%s19326_s10 + $0x5d8] sm:$0xff]  ;;  %v18195_v46 = vcombine.low %v12681_v6, %v12685_v48 }
 0xa91   : > { %15968 = vmatprep.subr.bf16.mxu0 %v18114_v19  ;;  %16132 = vmatprep.subr.bf16.mxu1 %v18116_v63  ;;  %v18162_v19 = vcombine.high %v12648_v15, %v12652_v59  ;;  %v18164_v63 = vcombine.high %v12649_v41, %v12653_v17  ;;  %v12693_v0 = vld [vmem:[%s19326_s10 + $0x5f8] sm:$0xff] }
 0xa94   : > { %15969 = vmatpush1.bf16.msra.mxu0 %v18113_v27  ;;  %16133 = vmatpush1.bf16.msra.mxu1 %v18115_v55  ;;  %v18163_v27 = vcombine.low %v12649_v41, %v12653_v17  ;;  %v18170_v55 = vcombine.high %v12656_v20, %v12660_v21  ;;  %v18203_v17 = vcombine.low %v12689_v36, %v12693_v0  ;;  %v12705_v20 = vld [vmem:[%s19326_s10 + $0x658] sm:$0xff] }
 0xa95   : > { %15970 = vmatprep.subr.bf16.mxu0 %v18122_v37  ;;  %16134 = vmatprep.subr.bf16.mxu1 %v18124_v12  ;;  %v18172_v37 = vcombine.high %v12657_v23, %v12661_v5  ;;  %v12664_v12 = vld [vmem:[%s19326_s10 + $0x510] sm:$0xff]  ;;  %v12709_v21 = vld [vmem:[%s19326_s10 + $0x678] sm:$0xff] }
 0xa96   : > { %v18177_v35 = vcombine.low %v12664_v12, %v12668_v61 }
 0xa98   : > { %15971 = vmatpush1.bf16.msra.mxu0 %v18121_v51  ;;  %16135 = vmatpush1.bf16.msra.mxu1 %v18123_v9  ;;  %v18178_v51 = vcombine.high %v12664_v12, %v12668_v61  ;;  %v18180_v9 = vcombine.high %v12665_v25, %v12669_v30  ;;  %v12713_v12 = vld [vmem:[%s19326_s10 + $0x698] sm:$0xff]  ;;  %v18219_v30 = vcombine.low %v12705_v20, %v12709_v21 }
 0xa99   : > { %15972 = vmatprep.subr.bf16.mxu0 %v18130_v29  ;;  %16136 = vmatprep.subr.bf16.mxu1 %v18132_v28  ;;  %v12672_v29 = vld [vmem:[%s19326_s10 + $0x550] sm:$0xff]  ;;  %v12717_v61 = vld [vmem:[%s19326_s10 + $0x6b8] sm:$0xff] }
 0xa9a   : > { %v12676_v28 = vld [vmem:[%s19326_s10 + $0x570] sm:$0xff] }
 0xa9b   : > { %v18185_v54 = vcombine.low %v12672_v29, %v12676_v28 }
 0xa9c   : > { %15973 = vmatpush1.bf16.msra.mxu0 %v18129_v42  ;;  %16137 = vmatpush1.bf16.msra.mxu1 %v18131_v52  ;;  %v18186_v42 = vcombine.high %v12672_v29, %v12676_v28  ;;  %v18188_v52 = vcombine.high %v12673_v33, %v12677_v34  ;;  %v12721_v29 = vld [vmem:[%s19326_s10 + $0x6d8] sm:$0xff]  ;;  %v18227_v34 = vcombine.low %v12713_v12, %v12717_v61 }
 0xa9d   : > { %15974 = vmatprep.subr.bf16.mxu0 %v18138_v16  ;;  %16138 = vmatprep.subr.bf16.mxu1 %v18140_v39  ;;  %v12680_v16 = vld [vmem:[%s19326_s10 + $0x590] sm:$0xff]  ;;  %v12725_v28 = vld [vmem:[%s19326_s10 + $0x6f8] sm:$0xff] }
 0xa9e   : > { %v12684_v39 = vld [vmem:[%s19326_s10 + $0x5b0] sm:$0xff] }
 0xa9f   : > { %v18193_v49 = vcombine.low %v12680_v16, %v12684_v39 }
 0xaa0   : > { %15975 = vmatpush1.bf16.msra.mxu0 %v18137_v50  ;;  %16139 = vmatpush1.bf16.msra.mxu1 %v18139_v26  ;;  %v18194_v50 = vcombine.high %v12680_v16, %v12684_v39  ;;  %v18196_v26 = vcombine.high %v12681_v6, %v12685_v48  ;;  %v12729_v16 = vld [vmem:[%s19326_s10 + $0x718] sm:$0xff]  ;;  %v18235_v48 = vcombine.low %v12721_v29, %v12725_v28 }
 0xaa1   : > { %15985 = vmatprep.subr.bf16.mxu0 %v18146_v31  ;;  %16149 = vmatprep.subr.bf16.mxu1 %v18148_v43  ;;  %v12688_v31 = vld [vmem:[%s19326_s10 + $0x5d0] sm:$0xff]  ;;  %v12733_v39 = vld [vmem:[%s19326_s10 + $0x738] sm:$0xff] }
 0xaa2   : > { %v12692_v43 = vld [vmem:[%s19326_s10 + $0x5f0] sm:$0xff] }
 0xaa3   : > { %15977 = vmatmul.mubr.bf16.vlgmr.msra.gmra.mrb[4].mxu0 %v21534_v32  ;;  %16141 = vmatmul.mubr.bf16.vlgmr.msra.gmra.mrb[4].mxu1 %v21534_v32  ;;  %v18161_v32 = vcombine.low %v12648_v15, %v12652_v59  ;;  %v12697_v15 = vld [vmem:[%s19326_s10 + $0x618] sm:$0xff]  ;;  %v18201_v41 = vcombine.low %v12688_v31, %v12692_v43 }
 0xaa4   : > { %15986 = vmatpush1.bf16.msra.mxu0 %v18145_v13  ;;  %16150 = vmatpush1.bf16.msra.mxu1 %v18147_v62  ;;  %v18202_v13 = vcombine.high %v12688_v31, %v12692_v43  ;;  %v18204_v62 = vcombine.high %v12689_v36, %v12693_v0  ;;  %v12701_v59 = vld [vmem:[%s19326_s10 + $0x638] sm:$0xff]  ;;  %v18243_v0 = vcombine.low %v12729_v16, %v12733_v39 }
 0xaa5   : > { %15987 = vmatprep.subr.bf16.mxu0 %v18154_v14  ;;  %16151 = vmatprep.subr.bf16.mxu1 %v18156_v44  ;;  %v12696_v14 = vld [vmem:[%s19326_s10 + $0x610] sm:$0xff]  ;;  %v12737_v31 = vld [vmem:[%s19326_s10 + $0x758] sm:$0xff] }
 0xaa6   : > { %16017 = vmatprep.mubr.bf16.mxu0 %v21542_v45  ;;  %16181 = vmatprep.mubr.bf16.mxu1 %v21542_v45  ;;  %v18171_v45 = vcombine.low %v12657_v23, %v12661_v5  ;;  %v12700_v44 = vld [vmem:[%s19326_s10 + $0x630] sm:$0xff]  ;;  %v18211_v5 = vcombine.low %v12697_v15, %v12701_v59  ;;  %v12741_v43 = vld [vmem:[%s19326_s10 + $0x778] sm:$0xff] }
 0xaa7   : > { %v18209_v23 = vcombine.low %v12696_v14, %v12700_v44 }
 0xaa8   : > { %15988 = vmatpush1.bf16.msra.mxu0 %v18153_v18  ;;  %16152 = vmatpush1.bf16.msra.mxu1 %v18155_v53  ;;  %v18210_v18 = vcombine.high %v12696_v14, %v12700_v44  ;;  %v18212_v53 = vcombine.high %v12697_v15, %v12701_v59  ;;  %v12745_v14 = vld [vmem:[%s19326_s10 + $0x798] sm:$0xff]  ;;  %v18251_v59 = vcombine.low %v12737_v31, %v12741_v43 }
 0xaa9   : > { %15989 = vmatprep.subr.bf16.mxu0 %v18162_v19  ;;  %16153 = vmatprep.subr.bf16.mxu1 %v18164_v63  ;;  %v12704_v19 = vld [vmem:[%s19326_s10 + $0x650] sm:$0xff]  ;;  %v12749_v44 = vld [vmem:[%s19326_s10 + $0x7b8] sm:$0xff] }
 0xaaa   : > { %v12708_v63 = vld [vmem:[%s19326_s10 + $0x670] sm:$0xff] }
 0xaab   : > { %v18217_v25 = vcombine.low %v12704_v19, %v12708_v63 }
 0xaac   : > { %15990 = vmatpush1.bf16.msra.mxu0 %v18161_v32  ;;  %16154 = vmatpush1.bf16.msra.mxu1 %v18163_v27  ;;  %v18218_v32 = vcombine.high %v12704_v19, %v12708_v63  ;;  %v18220_v27 = vcombine.high %v12705_v20, %v12709_v21  ;;  %v12753_v19 = vld [vmem:[%s19326_s10 + $0x7d8] sm:$0xff]  ;;  %v18259_v21 = vcombine.low %v12745_v14, %v12749_v44 }
 0xaad   : > { %15991 = vmatprep.subr.bf16.mxu0 %v18170_v55  ;;  %16155 = vmatprep.subr.bf16.mxu1 %v18172_v37  ;;  %v12712_v55 = vld [vmem:[%s19326_s10 + $0x690] sm:$0xff]  ;;  %v12757_v63 = vld [vmem:[%s19326_s10 + $0x7f8] sm:$0xff] }
 0xaae   : > { %v12716_v37 = vld [vmem:[%s19326_s10 + $0x6b0] sm:$0xff] }
 0xaaf   : > { %v18225_v33 = vcombine.low %v12712_v55, %v12716_v37 }
 0xab0   : > { %15992 = vmatpush1.bf16.msra.mxu0 %v18169_v2  ;;  %16156 = vmatpush1.bf16.msra.mxu1 %v18171_v45  ;;  %v18226_v2 = vcombine.high %v12712_v55, %v12716_v37  ;;  %v18228_v45 = vcombine.high %v12713_v12, %v12717_v61  ;;  %v12761_v55 = vld [vmem:[%s19326_s10 + $0x818] sm:$0xff]  ;;  %v18267_v61 = vcombine.low %v12753_v19, %v12757_v63 }
 0xab1   : > { %15993 = vmatprep.subr.bf16.mxu0 %v18178_v51  ;;  %16157 = vmatprep.subr.bf16.mxu1 %v18180_v9  ;;  %v12720_v51 = vld [vmem:[%s19326_s10 + $0x6d0] sm:$0xff]  ;;  %v12765_v37 = vld [vmem:[%s19326_s10 + $0x838] sm:$0xff] }
 0xab2   : > { %v12724_v9 = vld [vmem:[%s19326_s10 + $0x6f0] sm:$0xff] }
 0xab3   : > { %v18233_v6 = vcombine.low %v12720_v51, %v12724_v9 }
 0xab4   : > { %15994 = vmatpush1.bf16.msra.mxu0 %v18177_v35  ;;  %16158 = vmatpush1.bf16.msra.mxu1 %v18179_v47  ;;  %v18234_v35 = vcombine.high %v12720_v51, %v12724_v9  ;;  %v18236_v47 = vcombine.high %v12721_v29, %v12725_v28  ;;  %v12769_v51 = vld [vmem:[%s19326_s10 + $0x858] sm:$0xff]  ;;  %v18275_v28 = vcombine.low %v12761_v55, %v12765_v37 }
 0xab5   : > { %15995 = vmatprep.subr.bf16.mxu0 %v18186_v42  ;;  %16159 = vmatprep.subr.bf16.mxu1 %v18188_v52  ;;  %v12728_v42 = vld [vmem:[%s19326_s10 + $0x710] sm:$0xff]  ;;  %v12773_v9 = vld [vmem:[%s19326_s10 + $0x878] sm:$0xff] }
 0xab6   : > { %v12732_v52 = vld [vmem:[%s19326_s10 + $0x730] sm:$0xff] }
 0xab7   : > { %v18241_v36 = vcombine.low %v12728_v42, %v12732_v52 }
 0xab8   : > { %15996 = vmatpush1.bf16.msra.mxu0 %v18185_v54  ;;  %16160 = vmatpush1.bf16.msra.mxu1 %v18187_v60  ;;  %v18242_v54 = vcombine.high %v12728_v42, %v12732_v52  ;;  %v18244_v60 = vcombine.high %v12729_v16, %v12733_v39  ;;  %v12777_v42 = vld [vmem:[%s19326_s10 + $0x898] sm:$0xff]  ;;  %v18283_v39 = vcombine.low %v12769_v51, %v12773_v9 }
 0xab9   : > { %15997 = vmatprep.subr.bf16.mxu0 %v18194_v50  ;;  %16161 = vmatprep.subr.bf16.mxu1 %v18196_v26  ;;  %v12736_v50 = vld [vmem:[%s19326_s10 + $0x750] sm:$0xff]  ;;  %v12781_v52 = vld [vmem:[%s19326_s10 + $0x8b8] sm:$0xff] }
 0xaba   : > { %v12740_v26 = vld [vmem:[%s19326_s10 + $0x770] sm:$0xff] }
 0xabb   : > { %v18249_v15 = vcombine.low %v12736_v50, %v12740_v26 }
 0xabc   : > { %15998 = vmatpush1.bf16.msra.mxu0 %v18193_v49  ;;  %16162 = vmatpush1.bf16.msra.mxu1 %v18195_v46  ;;  %v18250_v49 = vcombine.high %v12736_v50, %v12740_v26  ;;  %v18252_v46 = vcombine.high %v12737_v31, %v12741_v43  ;;  %v12785_v50 = vld [vmem:[%s19326_s10 + $0x8d8] sm:$0xff]  ;;  %v18291_v31 = vcombine.low %v12777_v42, %v12781_v52 }
 0xabd   : > { %15999 = vmatprep.subr.bf16.mxu0 %v18202_v13  ;;  %16163 = vmatprep.subr.bf16.mxu1 %v18204_v62  ;;  %v12744_v13 = vld [vmem:[%s19326_s10 + $0x790] sm:$0xff]  ;;  %v12789_v26 = vld [vmem:[%s19326_s10 + $0x8f8] sm:$0xff] }
 0xabe   : > { %v12748_v62 = vld [vmem:[%s19326_s10 + $0x7b0] sm:$0xff] }
 0xabf   : > { %v18257_v20 = vcombine.low %v12744_v13, %v12748_v62 }
 0xac0   : > { %16000 = vmatpush1.bf16.msra.mxu0 %v18201_v41  ;;  %16164 = vmatpush1.bf16.msra.mxu1 %v18203_v17  ;;  %v18258_v41 = vcombine.high %v12744_v13, %v12748_v62  ;;  %v18260_v17 = vcombine.high %v12745_v14, %v12749_v44  ;;  %v12797_v13 = vld [vmem:[%s19326_s10 + $0x938] sm:$0xff] }
 0xac1   : > { %16001 = vmatprep.subr.bf16.mxu0 %v18210_v18  ;;  %16165 = vmatprep.subr.bf16.mxu1 %v18212_v53  ;;  %v12752_v18 = vld [vmem:[%s19326_s10 + $0x7d0] sm:$0xff] }
 0xac2   : > { %v12756_v53 = vld [vmem:[%s19326_s10 + $0x7f0] sm:$0xff] }
 0xac3   : > { %v18265_v12 = vcombine.low %v12752_v18, %v12756_v53 }
 0xac4   : > { %16002 = vmatpush1.bf16.msra.mxu0 %v18209_v23  ;;  %16166 = vmatpush1.bf16.msra.mxu1 %v18211_v5  ;;  %v18266_v23 = vcombine.high %v12752_v18, %v12756_v53  ;;  %v18268_v5 = vcombine.high %v12753_v19, %v12757_v63 }
 0xac5   : > { %16003 = vmatprep.subr.bf16.mxu0 %v18218_v32  ;;  %16167 = vmatprep.subr.bf16.mxu1 %v18220_v27  ;;  %v12760_v32 = vld [vmem:[%s19326_s10 + $0x810] sm:$0xff] }
 0xac6   : > { %v12764_v27 = vld [vmem:[%s19326_s10 + $0x830] sm:$0xff] }
 0xac7   : > { %v18273_v29 = vcombine.low %v12760_v32, %v12764_v27 }
 0xac8   : > { %16004 = vmatpush1.bf16.msra.mxu0 %v18217_v25  ;;  %16168 = vmatpush1.bf16.msra.mxu1 %v18219_v30  ;;  %v18274_v25 = vcombine.high %v12760_v32, %v12764_v27  ;;  %v18276_v30 = vcombine.high %v12761_v55, %v12765_v37 }
 0xac9   : > { %16005 = vmatprep.subr.bf16.mxu0 %v18226_v2  ;;  %16169 = vmatprep.subr.bf16.mxu1 %v18228_v45  ;;  %v12768_v2 = vld [vmem:[%s19326_s10 + $0x850] sm:$0xff] }
 0xaca   : > { %v12772_v45 = vld [vmem:[%s19326_s10 + $0x870] sm:$0xff] }
 0xacb   : > { %v18281_v16 = vcombine.low %v12768_v2, %v12772_v45 }
 0xacc   : > { %16006 = vmatpush1.bf16.msra.mxu0 %v18225_v33  ;;  %16170 = vmatpush1.bf16.msra.mxu1 %v18227_v34  ;;  %v18282_v33 = vcombine.high %v12768_v2, %v12772_v45  ;;  %v18284_v34 = vcombine.high %v12769_v51, %v12773_v9 }
 0xacd   : > { %16007 = vmatprep.subr.bf16.mxu0 %v18234_v35  ;;  %16171 = vmatprep.subr.bf16.mxu1 %v18236_v47  ;;  %v12776_v35 = vld [vmem:[%s19326_s10 + $0x890] sm:$0xff] }
 0xace   : > { %v12780_v47 = vld [vmem:[%s19326_s10 + $0x8b0] sm:$0xff] }
 0xad0   : > { %16008 = vmatpush1.bf16.msra.mxu0 %v18233_v6  ;;  %16172 = vmatpush1.bf16.msra.mxu1 %v18235_v48  ;;  %v18290_v6 = vcombine.high %v12776_v35, %v12780_v47  ;;  %v18292_v48 = vcombine.high %v12777_v42, %v12781_v52 }
 0xad1   : > { %16009 = vmatprep.subr.bf16.mxu0 %v18242_v54  ;;  %16173 = vmatprep.subr.bf16.mxu1 %v18244_v60  ;;  %v12784_v54 = vld [vmem:[%s19326_s10 + $0x8d0] sm:$0xff] }
 0xad2   : > { %v12788_v60 = vld [vmem:[%s19326_s10 + $0x8f0] sm:$0xff] }
 0xad3   : > { %v18298_v43 = vcombine.high %v12784_v54, %v12788_v60  ;;  %v18297_v62 = vcombine.low %v12784_v54, %v12788_v60 }
 0xad4   : > { %16010 = vmatpush1.bf16.msra.mxu0 %v18241_v36  ;;  %16174 = vmatpush1.bf16.msra.mxu1 %v18243_v0  ;;  %v18300_v36 = vcombine.high %v12785_v50, %v12789_v26  ;;  %v12792_v0 = vld [vmem:[%s19326_s10 + $0x910] sm:$0xff] }
 0xad5   : > { %16011 = vmatprep.subr.bf16.mxu0 %v18250_v49  ;;  %16175 = vmatprep.subr.bf16.mxu1 %v18252_v46  ;;  %v12796_v49 = vld [vmem:[%s19326_s10 + $0x930] sm:$0xff]  ;;  %v12793_v46 = vld [vmem:[%s19326_s10 + $0x918] sm:$0xff] }
 0xad6   : > { %v18306_v14 = vcombine.high %v12792_v0, %v12796_v49  ;;  %v18308_v44 = vcombine.high %v12793_v46, %v12797_v13  ;;  %v18305_v18 = vcombine.low %v12792_v0, %v12796_v49  ;;  %v18307_v53 = vcombine.low %v12793_v46, %v12797_v13 }
 0xad8   : > { %16012 = vmatpush1.bf16.msra.mxu0 %v18249_v15  ;;  %16176 = vmatpush1.bf16.msra.mxu1 %v18251_v59  ;;  %v12800_v15 = vld [vmem:[%s19326_s10 + $0x950] sm:$0xff] }
 0xad9   : > { %16013 = vmatprep.subr.bf16.mxu0 %v18258_v41  ;;  %16177 = vmatprep.subr.bf16.mxu1 %v18260_v17  ;;  %v12804_v59 = vld [vmem:[%s19326_s10 + $0x970] sm:$0xff]  ;;  %v12801_v41 = vld [vmem:[%s19326_s10 + $0x958] sm:$0xff] }
 0xada   : > { %v12805_v17 = vld [vmem:[%s19326_s10 + $0x978] sm:$0xff]  ;;  %v18314_v19 = vcombine.high %v12800_v15, %v12804_v59  ;;  %v18313_v32 = vcombine.low %v12800_v15, %v12804_v59 }
 0xadb   : > { %v18316_v63 = vcombine.high %v12801_v41, %v12805_v17  ;;  %v18315_v27 = vcombine.low %v12801_v41, %v12805_v17 }
 0xadc   : > { %16014 = vmatpush1.bf16.msra.mxu0 %v18257_v20  ;;  %16178 = vmatpush1.bf16.msra.mxu1 %v18259_v21  ;;  %v12808_v20 = vld [vmem:[%s19326_s10 + $0x990] sm:$0xff] }
 0xadd   : > { %16015 = vmatprep.subr.bf16.mxu0 %v18266_v23  ;;  %16179 = vmatprep.subr.bf16.mxu1 %v18268_v5  ;;  %v12812_v21 = vld [vmem:[%s19326_s10 + $0x9b0] sm:$0xff]  ;;  %v12809_v23 = vld [vmem:[%s19326_s10 + $0x998] sm:$0xff] }
 0xade   : > { %v12813_v5 = vld [vmem:[%s19326_s10 + $0x9b8] sm:$0xff]  ;;  %v18322_v55 = vcombine.high %v12808_v20, %v12812_v21  ;;  %v18321_v2 = vcombine.low %v12808_v20, %v12812_v21 }
 0xadf   : > { %v18324_v37 = vcombine.high %v12809_v23, %v12813_v5  ;;  %v18323_v45 = vcombine.low %v12809_v23, %v12813_v5 }
 0xae0   : > { %16016 = vmatpush1.bf16.msra.mxu0 %v18265_v12  ;;  %16180 = vmatpush1.bf16.msra.mxu1 %v18267_v61  ;;  %v12816_v12 = vld [vmem:[%s19326_s10 + $0x9d0] sm:$0xff] }
 0xae1   : > { %16026 = vmatprep.subr.bf16.mxu0 %v18274_v25  ;;  %16190 = vmatprep.subr.bf16.mxu1 %v18276_v30  ;;  %v12820_v61 = vld [vmem:[%s19326_s10 + $0x9f0] sm:$0xff]  ;;  %v12817_v25 = vld [vmem:[%s19326_s10 + $0x9d8] sm:$0xff] }
 0xae2   : > { %v12821_v30 = vld [vmem:[%s19326_s10 + $0x9f8] sm:$0xff]  ;;  %v18330_v51 = vcombine.high %v12816_v12, %v12820_v61 }
 0xae3   : > { %16018 = vmatmul.mubr.bf16.vlgmr.msra.gmra.mrb[4].mxu0 %v21639_v56  ;;  %16182 = vmatmul.mubr.bf16.vlgmr.msra.gmra.mrb[4].mxu1 %v21639_v56  ;;  %v18289_v56 = vcombine.low %v12776_v35, %v12780_v47  ;;  %v18332_v9 = vcombine.high %v12817_v25, %v12821_v30  ;;  %v18329_v35 = vcombine.low %v12816_v12, %v12820_v61 }
 0xae4   : > { %16027 = vmatpush1.bf16.msra.mxu0 %v18273_v29  ;;  %16191 = vmatpush1.bf16.msra.mxu1 %v18275_v28  ;;  %v12824_v29 = vld [vmem:[%s19326_s10 + $0xa10] sm:$0xff]  ;;  %v18331_v47 = vcombine.low %v12817_v25, %v12821_v30 }
 0xae5   : > { %16028 = vmatprep.subr.bf16.mxu0 %v18282_v33  ;;  %16192 = vmatprep.subr.bf16.mxu1 %v18284_v34  ;;  %v12828_v28 = vld [vmem:[%s19326_s10 + $0xa30] sm:$0xff]  ;;  %v12825_v33 = vld [vmem:[%s19326_s10 + $0xa18] sm:$0xff] }
 0xae6   : > { %16058 = vmatprep.mubr.bf16.mxu0 %v21645_v8  ;;  %16222 = vmatprep.mubr.bf16.mxu1 %v21645_v8  ;;  %v18299_v8 = vcombine.low %v12785_v50, %v12789_v26  ;;  %v12829_v34 = vld [vmem:[%s19326_s10 + $0xa38] sm:$0xff]  ;;  %v18338_v42 = vcombine.high %v12824_v29, %v12828_v28  ;;  %v18337_v54 = vcombine.low %v12824_v29, %v12828_v28 }
 0xae7   : > { %v18340_v52 = vcombine.high %v12825_v33, %v12829_v34  ;;  %v18339_v60 = vcombine.low %v12825_v33, %v12829_v34 }
 0xae8   : > { %16029 = vmatpush1.bf16.msra.mxu0 %v18281_v16  ;;  %16193 = vmatpush1.bf16.msra.mxu1 %v18283_v39  ;;  %v12832_v16 = vld [vmem:[%s19326_s10 + $0xa50] sm:$0xff] }
 0xae9   : > { %16030 = vmatprep.subr.bf16.mxu0 %v18290_v6  ;;  %16194 = vmatprep.subr.bf16.mxu1 %v18292_v48  ;;  %v12836_v39 = vld [vmem:[%s19326_s10 + $0xa70] sm:$0xff]  ;;  %v12833_v6 = vld [vmem:[%s19326_s10 + $0xa58] sm:$0xff] }
 0xaea   : > { %v12837_v48 = vld [vmem:[%s19326_s10 + $0xa78] sm:$0xff]  ;;  %v18346_v50 = vcombine.high %v12832_v16, %v12836_v39  ;;  %v18345_v0 = vcombine.low %v12832_v16, %v12836_v39 }
 0xaeb   : > { %v18348_v26 = vcombine.high %v12833_v6, %v12837_v48  ;;  %v18347_v49 = vcombine.low %v12833_v6, %v12837_v48 }
 0xaec   : > { %16031 = vmatpush1.bf16.msra.mxu0 %v18289_v56  ;;  %16195 = vmatpush1.bf16.msra.mxu1 %v18291_v31  ;;  %v12840_v56 = vld [vmem:[%s19326_s10 + $0xa90] sm:$0xff] }
 0xaed   : > { %16032 = vmatprep.subr.bf16.mxu0 %v18298_v43  ;;  %16196 = vmatprep.subr.bf16.mxu1 %v18300_v36  ;;  %v12844_v31 = vld [vmem:[%s19326_s10 + $0xab0] sm:$0xff]  ;;  %v12841_v43 = vld [vmem:[%s19326_s10 + $0xa98] sm:$0xff] }
 0xaee   : > { %v12845_v36 = vld [vmem:[%s19326_s10 + $0xab8] sm:$0xff]  ;;  %v18354_v46 = vcombine.high %v12840_v56, %v12844_v31  ;;  %v18353_v15 = vcombine.low %v12840_v56, %v12844_v31 }
 0xaef   : > { %v18356_v13 = vcombine.high %v12841_v43, %v12845_v36  ;;  %v18355_v59 = vcombine.low %v12841_v43, %v12845_v36 }
 0xaf0   : > { %16033 = vmatpush1.bf16.msra.mxu0 %v18297_v62  ;;  %16197 = vmatpush1.bf16.msra.mxu1 %v18299_v8  ;;  %v12848_v62 = vld [vmem:[%s19326_s10 + $0xad0] sm:$0xff] }
 0xaf1   : > { %16034 = vmatprep.subr.bf16.mxu0 %v18306_v14  ;;  %16198 = vmatprep.subr.bf16.mxu1 %v18308_v44  ;;  %v12852_v8 = vld [vmem:[%s19326_s10 + $0xaf0] sm:$0xff]  ;;  %v12849_v14 = vld [vmem:[%s19326_s10 + $0xad8] sm:$0xff] }
 0xaf2   : > { %v12853_v44 = vld [vmem:[%s19326_s10 + $0xaf8] sm:$0xff]  ;;  %v18362_v41 = vcombine.high %v12848_v62, %v12852_v8  ;;  %v18361_v20 = vcombine.low %v12848_v62, %v12852_v8 }
 0xaf3   : > { %v18364_v17 = vcombine.high %v12849_v14, %v12853_v44  ;;  %v18363_v21 = vcombine.low %v12849_v14, %v12853_v44 }
 0xaf4   : > { %16035 = vmatpush1.bf16.msra.mxu0 %v18305_v18  ;;  %16199 = vmatpush1.bf16.msra.mxu1 %v18307_v53  ;;  %v12856_v18 = vld [vmem:[%s19326_s10 + $0xb10] sm:$0xff] }
 0xaf5   : > { %16036 = vmatprep.subr.bf16.mxu0 %v18314_v19  ;;  %16200 = vmatprep.subr.bf16.mxu1 %v18316_v63  ;;  %v12860_v53 = vld [vmem:[%s19326_s10 + $0xb30] sm:$0xff]  ;;  %v12857_v19 = vld [vmem:[%s19326_s10 + $0xb18] sm:$0xff] }
 0xaf6   : > { %v12861_v63 = vld [vmem:[%s19326_s10 + $0xb38] sm:$0xff]  ;;  %v18370_v23 = vcombine.high %v12856_v18, %v12860_v53  ;;  %v18369_v12 = vcombine.low %v12856_v18, %v12860_v53 }
 0xaf7   : > { %v18372_v5 = vcombine.high %v12857_v19, %v12861_v63  ;;  %v18371_v61 = vcombine.low %v12857_v19, %v12861_v63 }
 0xaf8   : > { %16037 = vmatpush1.bf16.msra.mxu0 %v18313_v32  ;;  %16201 = vmatpush1.bf16.msra.mxu1 %v18315_v27  ;;  %v12864_v32 = vld [vmem:[%s19326_s10 + $0xb50] sm:$0xff] }
 0xaf9   : > { %16038 = vmatprep.subr.bf16.mxu0 %v18322_v55  ;;  %16202 = vmatprep.subr.bf16.mxu1 %v18324_v37  ;;  %v12868_v27 = vld [vmem:[%s19326_s10 + $0xb70] sm:$0xff]  ;;  %v12865_v55 = vld [vmem:[%s19326_s10 + $0xb58] sm:$0xff] }
 0xafa   : > { %v12869_v37 = vld [vmem:[%s19326_s10 + $0xb78] sm:$0xff]  ;;  %v18378_v25 = vcombine.high %v12864_v32, %v12868_v27  ;;  %v18377_v29 = vcombine.low %v12864_v32, %v12868_v27 }
 0xafb   : > { %v18380_v30 = vcombine.high %v12865_v55, %v12869_v37  ;;  %v18379_v28 = vcombine.low %v12865_v55, %v12869_v37  ;;  %v12920_v37 = vld [vmem:[%s19326_s10 + $0xd10] sm:$0xff] }
 0xafc   : > { %16039 = vmatpush1.bf16.msra.mxu0 %v18321_v2  ;;  %16203 = vmatpush1.bf16.msra.mxu1 %v18323_v45  ;;  %v12872_v2 = vld [vmem:[%s19326_s10 + $0xb90] sm:$0xff] }
 0xafd   : > { %16040 = vmatprep.subr.bf16.mxu0 %v18330_v51  ;;  %16204 = vmatprep.subr.bf16.mxu1 %v18332_v9  ;;  %v12876_v45 = vld [vmem:[%s19326_s10 + $0xbb0] sm:$0xff]  ;;  %v12873_v51 = vld [vmem:[%s19326_s10 + $0xb98] sm:$0xff] }
 0xafe   : > { %v12877_v9 = vld [vmem:[%s19326_s10 + $0xbb8] sm:$0xff]  ;;  %v18386_v33 = vcombine.high %v12872_v2, %v12876_v45  ;;  %v18385_v16 = vcombine.low %v12872_v2, %v12876_v45 }
 0xaff   : > { %v18388_v34 = vcombine.high %v12873_v51, %v12877_v9  ;;  %v18387_v39 = vcombine.low %v12873_v51, %v12877_v9  ;;  %v12928_v51 = vld [vmem:[%s19326_s10 + $0xd50] sm:$0xff] }
 0xb00   : > { %16041 = vmatpush1.bf16.msra.mxu0 %v18329_v35  ;;  %16205 = vmatpush1.bf16.msra.mxu1 %v18331_v47  ;;  %v12880_v35 = vld [vmem:[%s19326_s10 + $0xbd0] sm:$0xff] }
 0xb01   : > { %16042 = vmatprep.subr.bf16.mxu0 %v18338_v42  ;;  %16206 = vmatprep.subr.bf16.mxu1 %v18340_v52  ;;  %v12884_v47 = vld [vmem:[%s19326_s10 + $0xbf0] sm:$0xff]  ;;  %v12881_v42 = vld [vmem:[%s19326_s10 + $0xbd8] sm:$0xff] }
 0xb02   : > { %v12885_v52 = vld [vmem:[%s19326_s10 + $0xbf8] sm:$0xff]  ;;  %v18394_v6 = vcombine.high %v12880_v35, %v12884_v47  ;;  %v18393_v56 = vcombine.low %v12880_v35, %v12884_v47  ;;  %v12932_v9 = vld [vmem:[%s19326_s10 + $0xd70] sm:$0xff] }
 0xb03   : > { %v18396_v48 = vcombine.high %v12881_v42, %v12885_v52  ;;  %v18395_v31 = vcombine.low %v12881_v42, %v12885_v52  ;;  %v18442_v47 = vcombine.high %v12928_v51, %v12932_v9  ;;  %v12936_v52 = vld [vmem:[%s19326_s10 + $0xd90] sm:$0xff] }
 0xb04   : > { %16043 = vmatpush1.bf16.msra.mxu0 %v18337_v54  ;;  %16207 = vmatpush1.bf16.msra.mxu1 %v18339_v60  ;;  %v12888_v54 = vld [vmem:[%s19326_s10 + $0xc10] sm:$0xff] }
 0xb05   : > { %16044 = vmatprep.subr.bf16.mxu0 %v18346_v50  ;;  %16208 = vmatprep.subr.bf16.mxu1 %v18348_v26  ;;  %v12892_v60 = vld [vmem:[%s19326_s10 + $0xc30] sm:$0xff]  ;;  %v12889_v50 = vld [vmem:[%s19326_s10 + $0xc18] sm:$0xff] }
 0xb06   : > { %v12893_v26 = vld [vmem:[%s19326_s10 + $0xc38] sm:$0xff]  ;;  %v18402_v43 = vcombine.high %v12888_v54, %v12892_v60  ;;  %v18401_v62 = vcombine.low %v12888_v54, %v12892_v60 }
 0xb07   : > { %v18404_v36 = vcombine.high %v12889_v50, %v12893_v26  ;;  %v18403_v8 = vcombine.low %v12889_v50, %v12893_v26  ;;  %v18441_v50 = vcombine.low %v12928_v51, %v12932_v9 }
 0xb08   : > { %16045 = vmatpush1.bf16.msra.mxu0 %v18345_v0  ;;  %16209 = vmatpush1.bf16.msra.mxu1 %v18347_v49  ;;  %v12896_v0 = vld [vmem:[%s19326_s10 + $0xc50] sm:$0xff] }
 0xb09   : > { %16046 = vmatprep.subr.bf16.mxu0 %v18354_v46  ;;  %16210 = vmatprep.subr.bf16.mxu1 %v18356_v13  ;;  %v12900_v49 = vld [vmem:[%s19326_s10 + $0xc70] sm:$0xff]  ;;  %v12897_v46 = vld [vmem:[%s19326_s10 + $0xc58] sm:$0xff] }
 0xb0a   : > { %v12901_v13 = vld [vmem:[%s19326_s10 + $0xc78] sm:$0xff]  ;;  %v18410_v14 = vcombine.high %v12896_v0, %v12900_v49  ;;  %v18409_v18 = vcombine.low %v12896_v0, %v12900_v49  ;;  %v12948_v0 = vld [vmem:[%s19326_s10 + $0xdf0] sm:$0xff] }
 0xb0b   : > { %v18412_v44 = vcombine.high %v12897_v46, %v12901_v13  ;;  %v18411_v53 = vcombine.low %v12897_v46, %v12901_v13  ;;  %v12945_v13 = vld [vmem:[%s19326_s10 + $0xdd8] sm:$0xff] }
 0xb0c   : > { %16047 = vmatpush1.bf16.msra.mxu0 %v18353_v15  ;;  %16211 = vmatpush1.bf16.msra.mxu1 %v18355_v59  ;;  %v12904_v15 = vld [vmem:[%s19326_s10 + $0xc90] sm:$0xff] }
 0xb0d   : > { %16048 = vmatprep.subr.bf16.mxu0 %v18362_v41  ;;  %16212 = vmatprep.subr.bf16.mxu1 %v18364_v17  ;;  %v12908_v59 = vld [vmem:[%s19326_s10 + $0xcb0] sm:$0xff]  ;;  %v12905_v41 = vld [vmem:[%s19326_s10 + $0xc98] sm:$0xff] }
 0xb0e   : > { %v12909_v17 = vld [vmem:[%s19326_s10 + $0xcb8] sm:$0xff]  ;;  %v18418_v19 = vcombine.high %v12904_v15, %v12908_v59 }
 0xb0f   : > { %v18420_v63 = vcombine.high %v12905_v41, %v12909_v17  ;;  %v18419_v32 = vcombine.low %v12905_v41, %v12909_v17 }
 0xb10   : > { %16049 = vmatpush1.bf16.msra.mxu0 %v18361_v20  ;;  %16213 = vmatpush1.bf16.msra.mxu1 %v18363_v21  ;;  %v12912_v20 = vld [vmem:[%s19326_s10 + $0xcd0] sm:$0xff] }
 0xb11   : > { %16050 = vmatprep.subr.bf16.mxu0 %v18370_v23  ;;  %16214 = vmatprep.subr.bf16.mxu1 %v18372_v5  ;;  %v12916_v21 = vld [vmem:[%s19326_s10 + $0xcf0] sm:$0xff]  ;;  %v12913_v23 = vld [vmem:[%s19326_s10 + $0xcd8] sm:$0xff] }
 0xb12   : > { %v12917_v5 = vld [vmem:[%s19326_s10 + $0xcf8] sm:$0xff]  ;;  %v18426_v27 = vcombine.high %v12912_v20, %v12916_v21 }
 0xb13   : > { %v18428_v55 = vcombine.high %v12913_v23, %v12917_v5 }
 0xb14   : > { %16051 = vmatpush1.bf16.msra.mxu0 %v18369_v12  ;;  %16215 = vmatpush1.bf16.msra.mxu1 %v18371_v61  ;;  %v12924_v12 = vld [vmem:[%s19326_s10 + $0xd30] sm:$0xff]  ;;  %v12921_v61 = vld [vmem:[%s19326_s10 + $0xd18] sm:$0xff] }
 0xb15   : > { %16052 = vmatprep.subr.bf16.mxu0 %v18378_v25  ;;  %16216 = vmatprep.subr.bf16.mxu1 %v18380_v30  ;;  %v12925_v25 = vld [vmem:[%s19326_s10 + $0xd38] sm:$0xff]  ;;  %v18425_v30 = vcombine.low %v12912_v20, %v12916_v21  ;;  %v18434_v2 = vcombine.high %v12920_v37, %v12924_v12  ;;  %v12952_v20 = vld [vmem:[%s19326_s10 + $0xe10] sm:$0xff] }
 0xb16   : > { %v18436_v45 = vcombine.high %v12921_v61, %v12925_v25  ;;  %v18435_v35 = vcombine.low %v12921_v61, %v12925_v25  ;;  %v12956_v21 = vld [vmem:[%s19326_s10 + $0xe30] sm:$0xff] }
 0xb17   : > { %v12960_v25 = vld [vmem:[%s19326_s10 + $0xe50] sm:$0xff]  ;;  %v18465_v51 = vcombine.low %v12952_v20, %v12956_v21 }
 0xb18   : > { %16053 = vmatpush1.bf16.msra.mxu0 %v18377_v29  ;;  %16217 = vmatpush1.bf16.msra.mxu1 %v18379_v28  ;;  %v12929_v29 = vld [vmem:[%s19326_s10 + $0xd58] sm:$0xff] }
 0xb19   : > { %16054 = vmatprep.subr.bf16.mxu0 %v18386_v33  ;;  %16218 = vmatprep.subr.bf16.mxu1 %v18388_v34  ;;  %v12933_v28 = vld [vmem:[%s19326_s10 + $0xd78] sm:$0xff]  ;;  %v18433_v33 = vcombine.low %v12920_v37, %v12924_v12  ;;  %v22023_v34 = vld [vmem:[%s19332_s9] sm:$0xff]  ;;  %v18466_v12 = vcombine.high %v12952_v20, %v12956_v21 }
 0xb1a   : > { %v18444_v42 = vcombine.high %v12929_v29, %v12933_v28  ;;  %v13027_v54 = vrot.slane %v22023_v34, %v21423_v3  ;;  %v13023_v60 = vrot.slane %v22023_v34, %v21418_v38  ;;  %v13031_v26 = vrot.slane %v22023_v34, %v21426_v4 }
 0xb1c   : > { %16055 = vmatpush1.bf16.msra.mxu0 %v18385_v16  ;;  %16219 = vmatpush1.bf16.msra.mxu1 %v18387_v39  ;;  %v12940_v16 = vld [vmem:[%s19326_s10 + $0xdb0] sm:$0xff]  ;;  %v13019_v39 = vrot.slane %v22023_v34, %v21415_v58 }
 0xb1d   : > { %16056 = vmatprep.subr.bf16.mxu0 %v18394_v6  ;;  %16220 = vmatprep.subr.bf16.mxu1 %v18396_v48  ;;  %v12937_v6 = vld [vmem:[%s19326_s10 + $0xd98] sm:$0xff]  ;;  %v18450_v58 = vcombine.high %v12936_v52, %v12940_v16  ;;  %v18449_v4 = vcombine.low %v12936_v52, %v12940_v16 }
 0xb1e   : > { %v12941_v48 = vld [vmem:[%s19326_s10 + $0xdb8] sm:$0xff] }
 0xb1f   : > { %v18451_v17 = vcombine.low %v12937_v6, %v12941_v48 }
 0xb20   : > { %16057 = vmatpush1.bf16.msra.mxu0 %v18393_v56  ;;  %16221 = vmatpush1.bf16.msra.mxu1 %v18395_v31  ;;  %v18443_v56 = vcombine.low %v12929_v29, %v12933_v28 }
 0xb21   : > { %16067 = vmatprep.subr.bf16.mxu0 %v18402_v43  ;;  %16231 = vmatprep.subr.bf16.mxu1 %v18404_v36  ;;  %v18452_v43 = vcombine.high %v12937_v6, %v12941_v48  ;;  %v12944_v36 = vld [vmem:[%s19326_s10 + $0xdd0] sm:$0xff] }
 0xb22   : > { %v12976_v48 = vld [vmem:[%s19326_s10 + $0xed0] sm:$0xff] }
 0xb23   : > { %16059 = vmatmul.mubr.bf16.vlgmr.msra.gmra.mrb[4].mxu0 %v21720_v1  ;;  %16223 = vmatmul.mubr.bf16.vlgmr.msra.gmra.mrb[4].mxu1 %v21720_v1  ;;  %v18417_v1 = vcombine.low %v12904_v15, %v12908_v59 }
 0xb24   : > { %16068 = vmatpush1.bf16.msra.mxu0 %v18401_v62  ;;  %16232 = vmatpush1.bf16.msra.mxu1 %v18403_v8  ;;  %v12949_v62 = vld [vmem:[%s19326_s10 + $0xdf8] sm:$0xff] }
 0xb25   : > { %16069 = vmatprep.subr.bf16.mxu0 %v18410_v14  ;;  %16233 = vmatprep.subr.bf16.mxu1 %v18412_v44  ;;  %v18459_v37 = vcombine.low %v12945_v13, %v12949_v62 }
 0xb26   : > { %16099 = vmatprep.mubr.bf16.mxu0 %v21726_v40  ;;  %16263 = vmatprep.mubr.bf16.mxu1 %v21726_v40  ;;  %v18427_v40 = vcombine.low %v12913_v23, %v12917_v5  ;;  %v12953_v5 = vld [vmem:[%s19326_s10 + $0xe18] sm:$0xff] }
 0xb28   : > { %16070 = vmatpush1.bf16.msra.mxu0 %v18409_v18  ;;  %16234 = vmatpush1.bf16.msra.mxu1 %v18411_v53  ;;  %v18458_v18 = vcombine.high %v12944_v36, %v12948_v0 }
 0xb29   : > { %16071 = vmatprep.subr.bf16.mxu0 %v18418_v19  ;;  %16235 = vmatprep.subr.bf16.mxu1 %v18420_v63  ;;  %v18460_v63 = vcombine.high %v12945_v13, %v12949_v62 }
 0xb2c   : > { %16072 = vmatpush1.bf16.msra.mxu0 %v18417_v1  ;;  %16236 = vmatpush1.bf16.msra.mxu1 %v18419_v32  ;;  %v12957_v1 = vld [vmem:[%s19326_s10 + $0xe38] sm:$0xff] }
 0xb2d   : > { %16073 = vmatprep.subr.bf16.mxu0 %v18426_v27  ;;  %16237 = vmatprep.subr.bf16.mxu1 %v18428_v55  ;;  %v18457_v27 = vcombine.low %v12944_v36, %v12948_v0  ;;  %v18468_v61 = vcombine.high %v12953_v5, %v12957_v1  ;;  %v18467_v9 = vcombine.low %v12953_v5, %v12957_v1  ;;  %v12988_v36 = vld [vmem:[%s19326_s10 + $0xf30] sm:$0xff]  ;;  %v12985_v0 = vld [vmem:[%s19326_s10 + $0xf18] sm:$0xff] }
 0xb2e   : > { %v13008_v5 = vld [vmem:[%s19326_s10 + $0xfd0] sm:$0xff] }
 0xb2f   : > { %v13012_v1 = vld [vmem:[%s19326_s10 + $0xff0] sm:$0xff] }
 0xb30   : > { %16074 = vmatpush1.bf16.msra.mxu0 %v18425_v30  ;;  %16238 = vmatpush1.bf16.msra.mxu1 %v18427_v40  ;;  %v12964_v30 = vld [vmem:[%s19326_s10 + $0xe70] sm:$0xff] }
 0xb31   : > { %16075 = vmatprep.subr.bf16.mxu0 %v18434_v2  ;;  %16239 = vmatprep.subr.bf16.mxu1 %v18436_v45  ;;  %v12961_v2 = vld [vmem:[%s19326_s10 + $0xe58] sm:$0xff]  ;;  %v18474_v29 = vcombine.high %v12960_v25, %v12964_v30  ;;  %v18473_v52 = vcombine.low %v12960_v25, %v12964_v30  ;;  %v18521_v25 = vcombine.low %v13008_v5, %v13012_v1 }
 0xb32   : > { %v12965_v45 = vld [vmem:[%s19326_s10 + $0xe78] sm:$0xff] }
 0xb33   : > { %v18476_v28 = vcombine.high %v12961_v2, %v12965_v45  ;;  %v18475_v16 = vcombine.low %v12961_v2, %v12965_v45  ;;  %v13043_v2 = vrot.slane %v22023_v34, %v21527_v7  ;;  %v13039_v45 = vrot.slane %v22023_v34, %v21518_v24 }
 0xb34   : > { %16076 = vmatpush1.bf16.msra.mxu0 %v18433_v33  ;;  %16240 = vmatpush1.bf16.msra.mxu1 %v18435_v35  ;;  %v12968_v33 = vld [vmem:[%s19326_s10 + $0xe90] sm:$0xff] }
 0xb35   : > { %16077 = vmatprep.subr.bf16.mxu0 %v18442_v47  ;;  %16241 = vmatprep.subr.bf16.mxu1 %v18444_v42  ;;  %v12972_v35 = vld [vmem:[%s19326_s10 + $0xeb0] sm:$0xff]  ;;  %v12969_v47 = vld [vmem:[%s19326_s10 + $0xe98] sm:$0xff] }
 0xb36   : > { %v15773_v31 = vpop.f32.mrb[0].mxu0  ;;  %v15937_v3 = vpop.f32.mrb[0].mxu1  ;;  %v12973_v42 = vld [vmem:[%s19326_s10 + $0xeb8] sm:$0xff] }
 0xb37   : > { %v18701_v49 = vadd.f32 %v15773_v31, %v13019_v39  ;;  %v15775_v46 = vpop.f32.mrb[1].mxu0  ;;  %v18703_v38 = vadd.f32 %v15937_v3, %v13027_v54  ;;  %v15939_v14 = vpop.f32.mrb[1].mxu1  ;;  %v18482_v39 = vcombine.high %v12968_v33, %v12972_v35  ;;  %v18484_v6 = vcombine.high %v12969_v47, %v12973_v42  ;;  %v12980_v54 = vld [vmem:[%s19326_s10 + $0xef0] sm:$0xff] }
 0xb38   : > { %v18702_v8 = vadd.f32 %v15775_v46, %v13023_v60  ;;  %v15777_v44 = vpop.f32.mrb[2].mxu0  ;;  %16078 = vmatpush1.bf16.msra.mxu0 %v18441_v50  ;;  %v18704_v15 = vadd.f32 %v15939_v14, %v13031_v26  ;;  %v15941_v59 = vpop.f32.mrb[2].mxu1  ;;  %16242 = vmatpush1.bf16.msra.mxu1 %v18443_v56  ;;  %v12977_v60 = vld [vmem:[%s19326_s10 + $0xed8] sm:$0xff]  ;;  %v18481_v26 = vcombine.low %v12968_v33, %v12972_v35 }
 0xb39   : > { %v15778_v41 = vpop.f32.mrb[3].mxu0  ;;  %16079 = vmatprep.subr.bf16.mxu0 %v18450_v58  ;;  %v15942_v19 = vpop.f32.mrb[3].mxu1  ;;  %16243 = vmatprep.subr.bf16.mxu1 %v18452_v43  ;;  %v12981_v50 = vld [vmem:[%s19326_s10 + $0xef8] sm:$0xff]  ;;  %v18483_v56 = vcombine.low %v12969_v47, %v12973_v42  ;;  %v18490_v58 = vcombine.high %v12976_v48, %v12980_v54  ;;  %v12984_v43 = vld [vmem:[%s19326_s10 + $0xf10] sm:$0xff]  ;;  %v18489_v3 = vcombine.low %v12976_v48, %v12980_v54 }
 0xb3a   : > { %v16280_v53 = vcombine.low %v18701_v49, %v18702_v8  ;;  %v16281_v23 = vcombine.low %v18703_v38, %v18704_v15  ;;  %v18492_v31 = vcombine.high %v12977_v60, %v12981_v50  ;;  %v12989_v49 = vld [vmem:[%s19326_s10 + $0xf38] sm:$0xff]  ;;  %v18491_v46 = vcombine.low %v12977_v60, %v12981_v50  ;;  %v12992_v38 = vld [vmem:[%s19326_s10 + $0xf50] sm:$0xff] }
 0xb3b   : > { %v18498_v13 = vcombine.high %v12984_v43, %v12988_v36  ;;  %v18500_v62 = vcombine.high %v12985_v0, %v12989_v49  ;;  %v12996_v8 = vld [vmem:[%s19326_s10 + $0xf70] sm:$0xff]  ;;  %v12993_v14 = vld [vmem:[%s19326_s10 + $0xf58] sm:$0xff]  ;;  %v18499_v15 = vcombine.low %v12985_v0, %v12989_v49 }
 0xb3c   : > { %v16288_v32 = vrot.slane %v16280_v53, %v21438_v10  ;;  %16080 = vmatpush1.bf16.msra.mxu0 %v18449_v4  ;;  %v16295_v55 = vrot.slane %v16281_v23, %v21438_v10  ;;  %16244 = vmatpush1.bf16.msra.mxu1 %v18451_v17  ;;  %v12997_v44 = vld [vmem:[%s19326_s10 + $0xf78] sm:$0xff]  ;;  %v18497_v4 = vcombine.low %v12984_v43, %v12988_v36  ;;  %v13000_v17 = vld [vmem:[%s19326_s10 + $0xf90] sm:$0xff] }
 0xb3d   : > { %16081 = vmatprep.subr.bf16.mxu0 %v18458_v18  ;;  %16245 = vmatprep.subr.bf16.mxu1 %v18460_v63  ;;  %v18506_v59 = vcombine.high %v12992_v38, %v12996_v8  ;;  %v18508_v41 = vcombine.high %v12993_v14, %v12997_v44  ;;  %v13004_v18 = vld [vmem:[%s19326_s10 + $0xfb0] sm:$0xff]  ;;  %v13001_v53 = vld [vmem:[%s19326_s10 + $0xf98] sm:$0xff]  ;;  %v18505_v63 = vcombine.low %v12992_v38, %v12996_v8 }
 0xb3e   : > { %v16296_v40 = vcombine.low %v16288_v32, %v16295_v55  ;;  %v13005_v19 = vld [vmem:[%s19326_s10 + $0xfb8] sm:$0xff]  ;;  %v18507_v20 = vcombine.low %v12993_v14, %v12997_v44  ;;  %v18514_v21 = vcombine.high %v13000_v17, %v13004_v18  ;;  %v18513_v55 = vcombine.low %v13000_v17, %v13004_v18 }
 0xb3f   : > { %v18516_v23 = vcombine.high %v13001_v53, %v13005_v19  ;;  %v13009_v32 = vld [vmem:[%s19326_s10 + $0xfd8] sm:$0xff] }
 0xb40   : > { %16082 = vmatpush1.bf16.msra.mxu0 %v18457_v27  ;;  %16316 = vst [vmem:[#allocation13] sm:$0xff] %v16296_v40  ;;  %16246 = vmatpush1.bf16.msra.mxu1 %v18459_v37  ;;  %v13013_v27 = vld [vmem:[%s19326_s10 + $0xff8] sm:$0xff]  ;;  %v18515_v37 = vcombine.low %v13001_v53, %v13005_v19  ;;  %v13035_v40 = vrot.slane %v22023_v34, %v21515_v57 }
 0xb41   : > { %16083 = vmatprep.subr.bf16.mxu0 %v18466_v12  ;;  %16247 = vmatprep.subr.bf16.mxu1 %v18468_v61  ;;  %v18522_v12 = vcombine.high %v13008_v5, %v13012_v1  ;;  %v18524_v61 = vcombine.high %v13009_v32, %v13013_v27  ;;  %v18523_v30 = vcombine.low %v13009_v32, %v13013_v27 }
 0xb44   : > { %16084 = vmatpush1.bf16.msra.mxu0 %v18465_v51  ;;  %16248 = vmatpush1.bf16.msra.mxu1 %v18467_v9  ;;  %v13047_v51 = vrot.slane %v22023_v34, %v21530_v11 }
 0xb45   : > { %16085 = vmatprep.subr.bf16.mxu0 %v18474_v29  ;;  %16249 = vmatprep.subr.bf16.mxu1 %v18476_v28 }
 0xb48   : > { %16086 = vmatpush1.bf16.msra.mxu0 %v18473_v52  ;;  %16250 = vmatpush1.bf16.msra.mxu1 %v18475_v16 }
 0xb49   : > { %16087 = vmatprep.subr.bf16.mxu0 %v18482_v39  ;;  %16251 = vmatprep.subr.bf16.mxu1 %v18484_v6 }
 0xb4c   : > { %16088 = vmatpush1.bf16.msra.mxu0 %v18481_v26  ;;  %16252 = vmatpush1.bf16.msra.mxu1 %v18483_v56 }
 0xb4d   : > { %16089 = vmatprep.subr.bf16.mxu0 %v18490_v58  ;;  %16253 = vmatprep.subr.bf16.mxu1 %v18492_v31 }
 0xb50   : > { %16090 = vmatpush1.bf16.msra.mxu0 %v18489_v3  ;;  %16254 = vmatpush1.bf16.msra.mxu1 %v18491_v46 }
 0xb51   : > { %16091 = vmatprep.subr.bf16.mxu0 %v18498_v13  ;;  %16255 = vmatprep.subr.bf16.mxu1 %v18500_v62 }
 0xb54   : > { %16092 = vmatpush1.bf16.msra.mxu0 %v18497_v4  ;;  %16256 = vmatpush1.bf16.msra.mxu1 %v18499_v15 }
 0xb55   : > { %16093 = vmatprep.subr.bf16.mxu0 %v18506_v59  ;;  %16257 = vmatprep.subr.bf16.mxu1 %v18508_v41 }
 0xb58   : > { %16094 = vmatpush1.bf16.msra.mxu0 %v18505_v63  ;;  %16258 = vmatpush1.bf16.msra.mxu1 %v18507_v20 }
 0xb59   : > { %16095 = vmatprep.subr.bf16.mxu0 %v18514_v21  ;;  %16259 = vmatprep.subr.bf16.mxu1 %v18516_v23 }
 0xb5c   : > { %16096 = vmatpush1.bf16.msra.mxu0 %v18513_v55  ;;  %16260 = vmatpush1.bf16.msra.mxu1 %v18515_v37 }
 0xb5d   : > { %16097 = vmatprep.subr.bf16.mxu0 %v18522_v12  ;;  %16261 = vmatprep.subr.bf16.mxu1 %v18524_v61 }
 0xb60   : > { %16098 = vmatpush1.bf16.msra.mxu0 %v18521_v25  ;;  %16262 = vmatpush1.bf16.msra.mxu1 %v18523_v30 }
 0xb63   : > { %16100 = vmatmul.mubr.bf16.vlgmr.msra.gmra.mrb[4].mxu0 %v21794_v22  ;;  %16264 = vmatmul.mubr.bf16.vlgmr.msra.gmra.mrb[4].mxu1 %v21794_v22 }
 0xc36   : > { %v16101_v9 = vpop.f32.mrb[4].mxu0  ;;  %v16265_v28 = vpop.f32.mrb[4].mxu1 }
 0xc37   : > { %v18705_v29 = vadd.f32 %v16101_v9, %v13035_v40  ;;  %v16103_v33 = vpop.f32.mrb[5].mxu0  ;;  %v18707_v35 = vadd.f32 %v16265_v28, %v13043_v2  ;;  %v16267_v42 = vpop.f32.mrb[5].mxu1 }
 0xc38   : > { %v18706_v47 = vadd.f32 %v16103_v33, %v13039_v45  ;;  %v16105_v22 = vpop.f32.mrb[6].mxu0  ;;  %v18708_v52 = vadd.f32 %v16267_v42, %v13047_v51  ;;  %v16269_v16 = vpop.f32.mrb[6].mxu1 }
 0xc39   : > { %v16106_v57 = vpop.f32.mrb[7].mxu0  ;;  %v16270_v6 = vpop.f32.mrb[7].mxu1 }
 0xc3a   : > { %v16297_v39 = vcombine.low %v18705_v29, %v18706_v47  ;;  %v16298_v7 = vcombine.low %v18707_v35, %v18708_v52 }
 0xc3c   : > { %v16305_v48 = vrot.slane %v16297_v39, %v21438_v10  ;;  %v16312_v24 = vrot.slane %v16298_v7, %v21438_v10 }
 0xc3e   : > { %v16313_v54 = vcombine.low %v16305_v48, %v16312_v24 }
 0xc40   : > { %16317 = vst [vmem:[#allocation13 + $0x8] sm:$0xff] %v16313_v54 }
 0xc41 PF: > { %p18793_p4 = scmp.eq.s32.totalorder %s19219_s23, 9  ;;  %s19070_s1 = smov [#allocation13]  }
 0xc42   : > { %s16325_s28 = sshll.u32 %s19070_s1, 4  ;;  %s16326_s28 = int_to_ptr.vmem [resolvable:$true] %s16325_s28 }
 0xc43   : > { %s18985_s12 = scalar_lea.vmem %s16326_s28, 256  ;;  %p18992_p1 = scmp.lt.s32.totalorder %s16326_s28, %s16326_s28 }
 0xc44   : > { %p18986_p6 = scmp.ne.s32.totalorder %s16326_s28, %s18985_s12  ;;  %p18993_p11 = scmp.lt.s32.totalorder %s18985_s12, %s18985_s12 }
 0xc46   : > { %p18987_p5 = pnand %p18986_p6, %p18793_p4  ;;  %p18994_p3 = por %p18993_p11, %p18992_p1 }
 0xc48   : > { %p18988_p8 = pneg %p18987_p5 }
 0xc4a   : > { %p18995_p10 = pnand %p18994_p3, %p18988_p8 }
 0xc4c   : > { %18998 = shalt.err (!%p18995_p10)
}
 0xc4d   : > { %s18999_s21 = scalar_lea.hbm %s22128_s5, 256 }
 0xc4e   : > { %p19000_p9 = scmp.ne.s32.totalorder %s22128_s5, %s18999_s21  ;;  %p19005_p7 = scmp.lt.u32.totalorder %s18999_s21, %s22128_s5 }
 0xc50   : > { %p19001_p12 = pnand %p19000_p9, %p18793_p4 }
 0xc52   : > { %p19002_p2 = pneg %p19001_p12 }
 0xc54   : > { %p19007_p13 = pnand %p19005_p7, %p19002_p2 }
 0xc56   : > { %19010 = shalt.err (!%p19007_p13)
}
 0xc57   : > { %18770 = dma.vmem_to_hbm [thread:$0]  (%p18793_p4), %s16326_s28, 256, %s22128_s5, [#allocation6]  }
 0xc58   : > { %19040 = dma.done.wait (%p18793_p4), [#allocation6], 256  }
 0xc59   : > { %19042 = vsyncadd (%p18793_p4), [#allocation6], 4294967040 }
 0xc5a PF: > { %p20_p0 = scmp.ge.s32.totalorder %s19122_s22, 12   ;;  %s22155_s18 = smov %s19049_s19 }
 0xc5b   : > { %s22156_s19 = smov %s19053_s20  ;;  %s22157_s20 = smov %s19132_s25 }
 0xc5c   : > { %s22158_s21 = smov %s19122_s22  ;;  %22 = sbr.rel (!%p20_p0) target bundleno = 9 (0x9), region = 133 }
 0xc63   :  { %16338 = vsyncpa [#allocation5], 1 }
 0xc64   :  { %16340 = vsyncpa [#allocation5 + $0x1], 1 }
 0xc65   :  { %16341 = vsyncpa [#allocation8], 1 }
 0xc66   :  { %16343 = vsyncpa [#allocation8 + $0x1], 1 }
 0xc67   :  { %16344 = vsyncpa [#allocation11], 1 }
 0xc68   :  { %16346 = vsyncpa [#allocation11 + $0x1], 1 }
 0xc69   :  { %16347 = vsyncpa [#allocation6], 1 }
 0xc6a   :  { %16349 = vsyncpa [#allocation6 + $0x1], 1 }

</bundles_post_ra>
